<compile_context>
chip_gen: v6e
topology: v6e:2x2x1
jax: 0.10.0
libtpu: 0.0.40
codegen_flags: <defaults>
</compile_context>

<pallas_src>
import math
import numpy as np
import jax
import jax.numpy as jnp
from jax.experimental import pallas as pl
from jax.experimental.pallas import tpu as pltpu

WINDOW_SIZE = 11
SIGMA = 1.5
C1 = 0.01 ** 2
C2 = 0.03 ** 2


def _gaussian_1d(window_size, sigma):
    g = np.array(
        [math.exp(-((x - window_size // 2) ** 2) / float(2 * sigma ** 2))
         for x in range(window_size)],
        dtype=np.float64,
    )
    g = g / g.sum()
    return g.astype(np.float32)


def _banded_matrix(n, w1d, pad):
    # B[j, c] = w[j - c + pad] (zero outside the band).  Right-multiplying a row
    # vector x (length n) by B gives the 1-D "same" correlation with zero padding.
    ws = len(w1d)
    B = np.zeros((n, n), dtype=np.float32)
    for j in range(n):
        for c in range(n):
            k = j - c + pad
            if 0 <= k < ws:
                B[j, c] = w1d[k]
    return B


def _make_ssim_kernel(G, H, W, NC, total_elems):
    needs_mask = (NC % G) != 0          # only the last chunk may hold padded slabs
    prec = jax.lax.Precision.HIGHEST    # full-f32 MXU passes (keeps 1e-4 accuracy)

    def kernel(x1_ref, x2_ref, bh_ref, bv_ref, out_ref, acc_ref):
        step = pl.program_id(0)

        @pl.when(step == 0)
        def _():
            acc_ref[...] = jnp.zeros_like(acc_ref)

        x1 = x1_ref[...]                      # (G, H, W)
        x2 = x2_ref[...]
        bh = bh_ref[...]                      # (W, W) horizontal band
        bv = bv_ref[...]                      # (H, H) vertical band

        # Stack the 5 conv inputs so each separable pass is one MXU call.
        stacked = jnp.concatenate(
            [x1, x2, x1 * x1, x2 * x2, x1 * x2], axis=0)       # (5G, H, W)

        # Horizontal pass: fold (5, G, H) into M -> (5G*H, W) @ (W, W).
        h = jnp.dot(stacked.reshape(5 * G * H, W), bh,
                    preferred_element_type=jnp.float32,
                    precision=prec).reshape(5 * G, H, W)

        # Vertical pass: batched (H, H) @ (H, W) on the MXU.
        bvb = jnp.broadcast_to(bv, (5 * G, H, H))
        conv = jnp.einsum('bir,brc->bic', bvb, h,
                          preferred_element_type=jnp.float32,
                          precision=prec)                       # (5G, H, W)

        mu1 = conv[0 * G:1 * G]
        mu2 = conv[1 * G:2 * G]
        mu1_sq = mu1 * mu1
        mu2_sq = mu2 * mu2
        mu1_mu2 = mu1 * mu2
        sigma1_sq = conv[2 * G:3 * G] - mu1_sq
        sigma2_sq = conv[3 * G:4 * G] - mu2_sq
        sigma12 = conv[4 * G:5 * G] - mu1_mu2

        num = (2.0 * mu1_mu2 + C1) * (2.0 * sigma12 + C2)
        den = (mu1_sq + mu2_sq + C1) * (sigma1_sq + sigma2_sq + C2)
        ssim_map = num / den

        if needs_mask:
            # Zero-padded tail slabs would contribute ssim==1 per element; mask them.
            slab = jax.lax.broadcasted_iota(jnp.int32, (G, H, W), 0) + step * G
            ssim_map = jnp.where(slab < NC, ssim_map, 0.0)

        acc_ref[...] = acc_ref[...] + jnp.sum(ssim_map)

        @pl.when(step == pl.num_programs(0) - 1)
        def _():
            out_ref[...] = acc_ref[...] * (1.0 / float(total_elems))

    return kernel


def _choose_chunk(NC, H, W, budget_bytes=8 << 20):
    # ~2 double-buffered inputs + stacked/h/conv intermediates + elementwise temps
    # is roughly 30 f32 slab-sized live values; keep the chunk a few MiB.
    per_slab = H * W * 4 * 32
    return int(max(1, min(NC, budget_bytes // per_slab)))


def ssim_pallas(img1, img2, window_size=WINDOW_SIZE):
    N, C, H, W = img1.shape
    NC = N * C
    pad = window_size // 2
    w1d = _gaussian_1d(window_size, SIGMA)

    bh = jnp.asarray(_banded_matrix(W, w1d, pad))        # x @ bh  : horizontal pass
    bv = jnp.asarray(_banded_matrix(H, w1d, pad).T)      # bv @ x  : vertical pass

    G = _choose_chunk(NC, H, W)
    num_blocks = -(-NC // G)
    NC_pad = num_blocks * G

    x1 = img1.astype(jnp.float32).reshape(NC, H, W)
    x2 = img2.astype(jnp.float32).reshape(NC, H, W)
    if NC_pad != NC:
        cfg = ((0, NC_pad - NC), (0, 0), (0, 0))
        x1 = jnp.pad(x1, cfg)
        x2 = jnp.pad(x2, cfg)

    kernel = _make_ssim_kernel(G, H, W, NC, N * C * H * W)

    out = pl.pallas_call(
        kernel,
        out_shape=jax.ShapeDtypeStruct((1, 1), jnp.float32),
        grid_spec=pltpu.PrefetchScalarGridSpec(
            num_scalar_prefetch=0,
            grid=(num_blocks,),
            in_specs=[
                pl.BlockSpec((G, H, W), lambda i: (i, 0, 0)),
                pl.BlockSpec((G, H, W), lambda i: (i, 0, 0)),
                pl.BlockSpec((W, W), lambda i: (0, 0)),   # resident constant band
                pl.BlockSpec((H, H), lambda i: (0, 0)),   # resident constant band
            ],
            out_specs=pl.BlockSpec((1, 1), lambda i: (0, 0)),
            scratch_shapes=[pltpu.VMEM((1, 1), jnp.float32)],
        ),
        compiler_params=pltpu.CompilerParams(
            dimension_semantics=("arbitrary",),
            vmem_limit_bytes=32 << 20),
    )(x1, x2, bh, bv)
    return out[0, 0]


def ssim_reference(img1, img2, window_size=WINDOW_SIZE):
    # Pure-JAX reference mirroring the PyTorch F.conv2d(groups=channel) path.
    N, C, H, W = img1.shape
    pad = window_size // 2
    w1d = _gaussian_1d(window_size, SIGMA)
    w2d = np.outer(w1d, w1d).astype(np.float32)
    window = jnp.asarray(
        np.broadcast_to(w2d, (C, 1, window_size, window_size)).copy())

    def conv(x):
        return jax.lax.conv_general_dilated(
            x, window, window_strides=(1, 1),
            padding=[(pad, pad), (pad, pad)],
            dimension_numbers=("NCHW", "OIHW", "NCHW"),
            feature_group_count=C,
            precision=jax.lax.Precision.HIGHEST)

    mu1 = conv(img1)
    mu2 = conv(img2)
    mu1_sq = mu1 * mu1
    mu2_sq = mu2 * mu2
    mu1_mu2 = mu1 * mu2
    s1 = conv(img1 * img1) - mu1_sq
    s2 = conv(img2 * img2) - mu2_sq
    s12 = conv(img1 * img2) - mu1_mu2
    ssim_map = ((2 * mu1_mu2 + C1) * (2 * s12 + C2) /
                ((mu1_sq + mu2_sq + C1) * (s1 + s2 + C2)))
    return ssim_map.mean()


if __name__ == "__main__":
    key = jax.random.PRNGKey(0)
    k1, k2 = jax.random.split(key)
    N, C, H, W = 2, 4, 16, 16
    img1 = jax.random.uniform(k1, (N, C, H, W), dtype=jnp.float32)
    img2 = jax.random.uniform(k2, (N, C, H, W), dtype=jnp.float32)

    out = jax.block_until_ready(ssim_pallas(img1, img2))
    ref = jax.block_until_ready(ssim_reference(img1, img2))
    np.testing.assert_allclose(np.asarray(out), np.asarray(ref),
                               rtol=1e-3, atol=1e-4)
    print("KERNEL_OK")
</pallas_src>

<mosaic_0001>
module attributes {stable_mosaic.version = 11 : i64} {
  func.func @kernel(%arg0: i32, %arg1: memref<8x16x16xf32, #tpu.memory_space<vmem>>, %arg2: memref<8x16x16xf32, #tpu.memory_space<vmem>>, %arg3: memref<16x16xf32, #tpu.memory_space<vmem>>, %arg4: memref<16x16xf32, #tpu.memory_space<vmem>>, %arg5: memref<1x1xf32, #tpu.memory_space<vmem>>, %arg6: memref<1x1xf32, #tpu.memory_space<vmem>>) attributes {dimension_semantics = [#tpu.dimension_semantics<arbitrary>], iteration_bounds = array<i64: 1>, scalar_prefetch = 0 : i64, scratch_operands = 1 : i64, tpu.core_type = #tpu.core_type<tc>, window_params = [{transform_indices = @transform_0, window_bounds = array<i64: 8, 16, 16>}, {transform_indices = @transform_1, window_bounds = array<i64: 8, 16, 16>}, {pipeline_mode = #tpu.pipeline_mode<synchronous>, transform_indices = @transform_2, window_bounds = array<i64: 16, 16>}, {pipeline_mode = #tpu.pipeline_mode<synchronous>, transform_indices = @transform_3, window_bounds = array<i64: 16, 16>}, {pipeline_mode = #tpu.pipeline_mode<synchronous>, transform_indices = @transform_4, window_bounds = array<i64: 1, 1>}]} {
    %c0_i32 = arith.constant 0 : i32
    %0 = arith.cmpi eq, %arg0, %c0_i32 : i32
    %1 = arith.extui %0 : i1 to i32
    %c0_i32_0 = arith.constant 0 : i32
    %2 = arith.cmpi ne, %1, %c0_i32_0 : i32
    scf.if %2 {
      %cst_24 = arith.constant 0.000000e+00 : f32
      %56 = vector.broadcast %cst_24 : f32 to vector<1x1xf32>
      %c0_25 = arith.constant 0 : index
      %c0_26 = arith.constant 0 : index
      %57 = vector.load %arg6[%c0_25, %c0_26] : memref<1x1xf32, #tpu.memory_space<vmem>>, vector<1x1xf32>
      tpu.vector_store %arg6[%c0_25, %c0_26], %56 {strides = array<i32>} : memref<1x1xf32, #tpu.memory_space<vmem>>, vector<1x1xf32>,
    } else {
    }
    %c0 = arith.constant 0 : index
    %c0_1 = arith.constant 0 : index
    %c0_2 = arith.constant 0 : index
    %3 = vector.load %arg1[%c0, %c0_1, %c0_2] : memref<8x16x16xf32, #tpu.memory_space<vmem>>, vector<8x16x16xf32>
    %c0_3 = arith.constant 0 : index
    %c0_4 = arith.constant 0 : index
    %c0_5 = arith.constant 0 : index
    %4 = vector.load %arg2[%c0_3, %c0_4, %c0_5] : memref<8x16x16xf32, #tpu.memory_space<vmem>>, vector<8x16x16xf32>
    %c0_6 = arith.constant 0 : index
    %c0_7 = arith.constant 0 : index
    %5 = vector.load %arg3[%c0_6, %c0_7] : memref<16x16xf32, #tpu.memory_space<vmem>>, vector<16x16xf32>
    %c0_8 = arith.constant 0 : index
    %c0_9 = arith.constant 0 : index
    %6 = vector.load %arg4[%c0_8, %c0_9] : memref<16x16xf32, #tpu.memory_space<vmem>>, vector<16x16xf32>
    %7 = arith.mulf %3, %3 : vector<8x16x16xf32>
    %8 = arith.mulf %4, %4 : vector<8x16x16xf32>
    %9 = arith.mulf %3, %4 : vector<8x16x16xf32>
    %10 = tpu.concatenate %3, %4, %7, %8, %9 in 0 : vector<8x16x16xf32>, vector<8x16x16xf32>, vector<8x16x16xf32>, vector<8x16x16xf32>, vector<8x16x16xf32> -> vector<40x16x16xf32>
    %11 = vector.shape_cast %10 : vector<40x16x16xf32> to vector<640x16xf32>
    %cst = arith.constant dense<0.000000e+00> : vector<640x16xf32>
    %12 = tpu.matmul %11, %5, %cst {dimension_numbers = #tpu.dot_dimension_numbers<[1], [0], [0], [1], [0, 0, 1, 1], [], []>, precision = #tpu.contract_precision<fp32>} : vector<640x16xf32>, vector<16x16xf32>, vector<640x16xf32> -> vector<640x16xf32>
    %13 = vector.shape_cast %12 : vector<640x16xf32> to vector<40x16x16xf32>
    %14 = vector.shape_cast %6 : vector<16x16xf32> to vector<1x16x16xf32>
    %15 = vector.broadcast %14 : vector<1x16x16xf32> to vector<40x16x16xf32>
    "tpu.trace_start"() <{level = 10 : i32, message = "bir,brc->bic"}> : () -> ()
    %cst_10 = arith.constant dense<0.000000e+00> : vector<40x16x16xf32>
    %16 = tpu.matmul %15, %13, %cst_10 {dimension_numbers = #tpu.dot_dimension_numbers<[2], [1], [1], [2], [0, 0, 0, 1, 1, 2], [0], [0]>, precision = #tpu.contract_precision<fp32>} : vector<40x16x16xf32>, vector<40x16x16xf32>, vector<40x16x16xf32> -> vector<40x16x16xf32>
    "tpu.trace_stop"() : () -> ()
    %17 = vector.extract_strided_slice %16 {offsets = [0, 0, 0], sizes = [8, 16, 16], strides = [1, 1, 1]} : vector<40x16x16xf32> to vector<8x16x16xf32>
    %18 = vector.extract_strided_slice %16 {offsets = [8, 0, 0], sizes = [8, 16, 16], strides = [1, 1, 1]} : vector<40x16x16xf32> to vector<8x16x16xf32>
    %19 = arith.mulf %17, %17 : vector<8x16x16xf32>
    %20 = arith.mulf %18, %18 : vector<8x16x16xf32>
    %21 = arith.mulf %17, %18 : vector<8x16x16xf32>
    %22 = vector.extract_strided_slice %16 {offsets = [16, 0, 0], sizes = [8, 16, 16], strides = [1, 1, 1]} : vector<40x16x16xf32> to vector<8x16x16xf32>
    %23 = arith.subf %22, %19 : vector<8x16x16xf32>
    %24 = vector.extract_strided_slice %16 {offsets = [24, 0, 0], sizes = [8, 16, 16], strides = [1, 1, 1]} : vector<40x16x16xf32> to vector<8x16x16xf32>
    %25 = arith.subf %24, %20 : vector<8x16x16xf32>
    %26 = vector.extract_strided_slice %16 {offsets = [32, 0, 0], sizes = [8, 16, 16], strides = [1, 1, 1]} : vector<40x16x16xf32> to vector<8x16x16xf32>
    %27 = arith.subf %26, %21 : vector<8x16x16xf32>
    %cst_11 = arith.constant 2.000000e+00 : f32
    %28 = vector.broadcast %cst_11 : f32 to vector<8x16x16xf32>
    %29 = arith.mulf %28, %21 : vector<8x16x16xf32>
    %cst_12 = arith.constant 9.99999974E-5 : f32
    %30 = vector.broadcast %cst_12 : f32 to vector<8x16x16xf32>
    %31 = arith.addf %29, %30 : vector<8x16x16xf32>
    %cst_13 = arith.constant 2.000000e+00 : f32
    %32 = vector.broadcast %cst_13 : f32 to vector<8x16x16xf32>
    %33 = arith.mulf %32, %27 : vector<8x16x16xf32>
    %cst_14 = arith.constant 8.99999984E-4 : f32
    %34 = vector.broadcast %cst_14 : f32 to vector<8x16x16xf32>
    %35 = arith.addf %33, %34 : vector<8x16x16xf32>
    %36 = arith.mulf %31, %35 : vector<8x16x16xf32>
    %37 = arith.addf %19, %20 : vector<8x16x16xf32>
    %cst_15 = arith.constant 9.99999974E-5 : f32
    %38 = vector.broadcast %cst_15 : f32 to vector<8x16x16xf32>
    %39 = arith.addf %37, %38 : vector<8x16x16xf32>
    %40 = arith.addf %23, %25 : vector<8x16x16xf32>
    %cst_16 = arith.constant 8.99999984E-4 : f32
    %41 = vector.broadcast %cst_16 : f32 to vector<8x16x16xf32>
    %42 = arith.addf %40, %41 : vector<8x16x16xf32>
    %43 = arith.mulf %39, %42 : vector<8x16x16xf32>
    %44 = arith.divf %36, %43 : vector<8x16x16xf32>
    %c0_17 = arith.constant 0 : index
    %c0_18 = arith.constant 0 : index
    %45 = vector.load %arg6[%c0_17, %c0_18] : memref<1x1xf32, #tpu.memory_space<vmem>>, vector<1x1xf32>
    %46 = vector.shape_cast %44 : vector<8x16x16xf32> to vector<1x8x16x16xf32>
    %cst_19 = arith.constant dense<0.000000e+00> : vector<1xf32>
    %47 = vector.multi_reduction <add>, %46, %cst_19 [1, 2, 3] : vector<1x8x16x16xf32> to vector<1xf32>
    %48 = vector.shape_cast %47 : vector<1xf32> to vector<1x1x1x1xf32>
    %49 = vector.extract %48[0, 0, 0, 0] : f32 from vector<1x1x1x1xf32>
    %50 = vector.broadcast %49 : f32 to vector<1x1xf32>
    %51 = arith.addf %45, %50 : vector<1x1xf32>
    %c0_20 = arith.constant 0 : index
    %c0_21 = arith.constant 0 : index
    %52 = vector.load %arg6[%c0_20, %c0_21] : memref<1x1xf32, #tpu.memory_space<vmem>>, vector<1x1xf32>
    tpu.vector_store %arg6[%c0_20, %c0_21], %51 {strides = array<i32>} : memref<1x1xf32, #tpu.memory_space<vmem>>, vector<1x1xf32>,
    %c0_i32_22 = arith.constant 0 : i32
    %53 = arith.cmpi eq, %arg0, %c0_i32_22 : i32
    %54 = arith.extui %53 : i1 to i32
    %c0_i32_23 = arith.constant 0 : i32
    %55 = arith.cmpi ne, %54, %c0_i32_23 : i32
    scf.if %55 {
      %c0_24 = arith.constant 0 : index
      %c0_25 = arith.constant 0 : index
      %56 = vector.load %arg6[%c0_24, %c0_25] : memref<1x1xf32, #tpu.memory_space<vmem>>, vector<1x1xf32>
      %cst_26 = arith.constant 4.8828125E-4 : f32
      %57 = vector.broadcast %cst_26 : f32 to vector<1x1xf32>
      %58 = arith.mulf %56, %57 : vector<1x1xf32>
      %c0_27 = arith.constant 0 : index
      %c0_28 = arith.constant 0 : index
      %59 = vector.load %arg5[%c0_27, %c0_28] : memref<1x1xf32, #tpu.memory_space<vmem>>, vector<1x1xf32>
      tpu.vector_store %arg5[%c0_27, %c0_28], %58 {strides = array<i32>} : memref<1x1xf32, #tpu.memory_space<vmem>>, vector<1x1xf32>,
    } else {
    }
    return
  }
  func.func @transform_0(%arg0: i32) -> (i32, i32, i32) {
    %c0_i32 = arith.constant 0 : i32
    %c0_i32_0 = arith.constant 0 : i32
    %c0_i32_1 = arith.constant 0 : i32
    return %arg0, %c0_i32, %c0_i32_0 : i32, i32, i32
  }
  func.func @transform_1(%arg0: i32) -> (i32, i32, i32) {
    %c0_i32 = arith.constant 0 : i32
    %c0_i32_0 = arith.constant 0 : i32
    %c0_i32_1 = arith.constant 0 : i32
    return %arg0, %c0_i32, %c0_i32_0 : i32, i32, i32
  }
  func.func @transform_2(%arg0: i32) -> (i32, i32) {
    %c0_i32 = arith.constant 0 : i32
    %c0_i32_0 = arith.constant 0 : i32
    %c0_i32_1 = arith.constant 0 : i32
    return %c0_i32, %c0_i32_0 : i32, i32
  }
  func.func @transform_3(%arg0: i32) -> (i32, i32) {
    %c0_i32 = arith.constant 0 : i32
    %c0_i32_0 = arith.constant 0 : i32
    %c0_i32_1 = arith.constant 0 : i32
    return %c0_i32, %c0_i32_0 : i32, i32
  }
  func.func @transform_4(%arg0: i32) -> (i32, i32) {
    %c0_i32 = arith.constant 0 : i32
    %c0_i32_0 = arith.constant 0 : i32
    %c0_i32_1 = arith.constant 0 : i32
    return %c0_i32, %c0_i32_0 : i32, i32
  }
}

</mosaic_0001>

<bundles_post_ra>
// kernel: tpu_custom_call.1
= control target key start
LH: loop header
LB: loop body
LE: loop exit
PB: predicated region body
PF: predicated region fallthrough
CT: control target
= control target key end

     0   :  { %9 = vsyncpa [#allocation4], 0  ;;  %s33223_s0 = inlined_call_operand.hbm [shape: f32[8,16,16], index: 0, kind: input, shape index: {}]   ;;  %s33224_s1 = inlined_call_operand.hbm [shape: f32[8,16,16], index: 1, kind: input, shape index: {}]   ;;  %s33225_s2 = inlined_call_operand.hbm [shape: f32[16,16], index: 2, kind: input, shape index: {}]   ;;  %s33226_s3 = inlined_call_operand.hbm [shape: f32[16,16], index: 3, kind: input, shape index: {}]   ;;  %s33227_s4 = inlined_call_operand.hbm [shape: f32[1,1], index: 4, kind: output, shape index: {}]  }
   0x1   :  { %10 = vsyncpa [#allocation7], 0 }
   0x2   :  { %11 = vsyncpa [#allocation10], 0 }
   0x3   :  { %12 = vsyncpa [#allocation5], 0  ;;  %s28744_s15 = smov [#allocation6]   ;;  %s28745_s17 = smov [#allocation3]  }
   0x4   :  { %s30_s16 = sshll.u32 %s28744_s15, 4  ;;  %s18_s18 = sshll.u32 %s28745_s17, 4  ;;  %s31_s16 = int_to_ptr.vmem [resolvable:$true] %s30_s16  ;;  %s19_s18 = int_to_ptr.vmem [resolvable:$true] %s18_s18 }
   0x5   :  { %s28644_s19 = scalar_lea.vmem %s31_s16, 2048  ;;  %p28649_p1 = scmp.lt.s32.totalorder %s31_s16, %s31_s16 }
   0x6   :  { %p28645_p0 = scmp.ne.s32.totalorder %s31_s16, %s28644_s19  ;;  %p28650_p2 = scmp.lt.s32.totalorder %s28644_s19, %s28644_s19 }
   0x8   :  { %p28651_p3 = por %p28650_p2, %p28649_p1 }
   0xa   :  { %p28652_p4 = pnand %p28651_p3, %p28645_p0 }
   0xc   :  { %28655 = shalt.err (!%p28652_p4)
}
   0xd   :  { %s28746_s20 = smov 128   ;;  %s28747_s21 = smov 8  }
   0xe   :  { %36 = dma.hbm_to_vmem [thread:$0]  %s33224_s1, 2048, %s31_s16, [#allocation7], %s28746_s20, %s28746_s20, %s28747_s21  }
   0xf   :  { %s28664_s24 = scalar_lea.vmem %s19_s18, 2048  ;;  %p28669_p6 = scmp.lt.s32.totalorder %s19_s18, %s19_s18 }
  0x10   :  { %p28665_p5 = scmp.ne.s32.totalorder %s19_s18, %s28664_s24  ;;  %p28670_p7 = scmp.lt.s32.totalorder %s28664_s24, %s28664_s24 }
  0x12   :  { %p28671_p8 = por %p28670_p7, %p28669_p6 }
  0x14   :  { %p28672_p9 = pnand %p28671_p8, %p28665_p5 }
  0x16   :  { %28675 = shalt.err (!%p28672_p9)
}
  0x17   :  { %24 = dma.hbm_to_vmem [thread:$0]  %s33223_s0, 2048, %s19_s18, [#allocation4], %s28746_s20, %s28746_s20, %s28747_s21  }
  0x18   :  { %s28748_s27 = smov [#allocation8]   ;;  %s28749_s29 = smov [#allocation9]  }
  0x19   :  { %s42_s28 = sshll.u32 %s28748_s27, 4  ;;  %s54_s30 = sshll.u32 %s28749_s29, 4  ;;  %s43_s28 = int_to_ptr.vmem [resolvable:$true] %s42_s28  ;;  %s55_s30 = int_to_ptr.vmem [resolvable:$true] %s54_s30 }
  0x1a   :  { %s28684_s1 = scalar_lea.vmem %s43_s28, 256  ;;  %p28689_p11 = scmp.lt.s32.totalorder %s43_s28, %s43_s28 }
  0x1b   :  { %p28685_p10 = scmp.ne.s32.totalorder %s43_s28, %s28684_s1  ;;  %p28690_p12 = scmp.lt.s32.totalorder %s28684_s1, %s28684_s1 }
  0x1d   :  { %p28691_p13 = por %p28690_p12, %p28689_p11 }
  0x1f   :  { %p28692_p0 = pnand %p28691_p13, %p28685_p10 }
  0x21   :  { %28695 = shalt.err (!%p28692_p0)
}
  0x22   :  { %48 = dma.hbm_to_vmem [thread:$0]  %s33225_s2, 256, %s43_s28, [#allocation7], %s28746_s20, %s28746_s20, %s28747_s21  }
  0x23   :  { %s28704_s0 = scalar_lea.vmem %s55_s30, 256  ;;  %p28709_p2 = scmp.lt.s32.totalorder %s55_s30, %s55_s30 }
  0x24   :  { %p28705_p1 = scmp.ne.s32.totalorder %s55_s30, %s28704_s0  ;;  %p28710_p3 = scmp.lt.s32.totalorder %s28704_s0, %s28704_s0 }
  0x26   :  { %p28711_p4 = por %p28710_p3, %p28709_p2 }
  0x28   :  { %p28712_p5 = pnand %p28711_p4, %p28705_p1 }
  0x2a   :  { %28715 = shalt.err (!%p28712_p5)
}
  0x2b   :  { %60 = dma.hbm_to_vmem [thread:$0]  %s33226_s3, 256, %s55_s30, [#allocation10], %s28746_s20, %s28746_s20, %s28747_s21  }
  0x2c   :  { %28736 = dma.done.wait [#allocation4], 2048  }
  0x2d   :  { %28737 = vsyncadd [#allocation4], 4294965248 }
  0x2e   :  { %28738 = dma.done.wait [#allocation7], 2304  }
  0x2f   :  { %28739 = vsyncadd [#allocation7], 4294964992 }
  0x30   :  { %28740 = dma.done.wait [#allocation10], 256  }
  0x31   :  { %28741 = vsyncadd [#allocation10], 4294967040  ;;  %vm163_vm0 = vcmask 130048   ;;  %v112_v0 = vld [vmem:[#allocation8 + $0x8] sm:$0xff]  ;;  %v111_v1 = vld [vmem:[#allocation8] sm:$0xff]  ;;  %vm77_vm1 = vcmask 0  }
  0x32   :  { %v28801_v2 = vld [vmem:[#allocation3] sm:$0xff]  ;;  %v28803_v3 = vand.u32 4294901760, %v112_v0  ;;  %v28805_v4 = vand.u32 4294901760, %v111_v1  ;;  %v28809_v6 = vld [vmem:[#allocation3 + $0x8] sm:$0xff]  ;;  %v28811_v7 = vld [vmem:[#allocation3 + $0x10] sm:$0xff]  ;;  %s28751_s3 = smov [#allocation11]  }
  0x33   :  { %v165_v5 = vsel %vm163_vm0, %v28801_v2, 0  ;;  %v168_v9 = vsel %vm163_vm0, %v28809_v6, 0  ;;  %v171_v10 = vsel %vm163_vm0, %v28811_v7, 0  ;;  %v28819_v11 = vld [vmem:[#allocation3 + $0x18] sm:$0xff]  ;;  %v28821_v12 = vld [vmem:[#allocation3 + $0x20] sm:$0xff]  ;;  %v28823_v13 = vld [vmem:[#allocation3 + $0x28] sm:$0xff] }
  0x34   :  { %33544 = vst [vmem:[#allocation16_spill] sm:$0xff] %v28803_v3  ;;  %33545 = vst [vmem:[#allocation17_spill] sm:$0xff] %v28805_v4  ;;  %v28813_v8 = vand.u32 4294901760, %v165_v5  ;;  %26154 = vmatprep.subr.mxu0 %v28803_v3  ;;  %v28827_v14 = vsub.f32 %v112_v0, %v28803_v3  ;;  %v28829_v15 = vand.u32 4294901760, %v168_v9  ;;  %v28832_v16 = vsub.f32 %v111_v1, %v28805_v4  ;;  %v28887_v38 = vld [vmem:[#allocation3 + $0x30] sm:$0xff]  ;;  %v28889_v39 = vld [vmem:[#allocation3 + $0x38] sm:$0xff] }
  0x35   :  { %v28834_v17 = vand.u32 4294901760, %v171_v10  ;;  %26155 = vmatpush3.msra.mxu0 %v28803_v3  ;;  %v174_v19 = vsel %vm163_vm0, %v28819_v11, 0  ;;  %v177_v20 = vsel %vm163_vm0, %v28821_v12, 0  ;;  %v180_v21 = vsel %vm163_vm0, %v28823_v13, 0  ;;  %v28897_v44 = vld [vmem:[#allocation3 + $0x40] sm:$0xff]  ;;  %v28902_v49 = vld [vmem:[#allocation3 + $0x48] sm:$0xff] }
  0x36   :  { %33546 = vst [vmem:[#allocation18_spill] sm:$0xff] %v28813_v8  ;;  %33547 = vst [vmem:[#allocation19_spill] sm:$0xff] %v28829_v15  ;;  %v28838_v18 = vsub.f32 %v165_v5, %v28813_v8  ;;  %26282 = vmatprep.mubr.f32.mxu1 %v28813_v8  ;;  %26156 = vmatprep.subr.mxu0 %v28805_v4  ;;  %v28849_v22 = vand.u32 4294901760, %v28827_v14  ;;  %v28852_v23 = vsub.f32 %v168_v9, %v28829_v15  ;;  %v28904_v50 = vld [vmem:[#allocation3 + $0x50] sm:$0xff]  ;;  %v28921_v59 = vld [vmem:[#allocation3 + $0x58] sm:$0xff]  ;;  %s24691_s9 = sshll.u32 %s28751_s3, 4  ;;  %s24692_s9 = int_to_ptr.vmem [resolvable:$true] %s24691_s9 }
  0x37   :  { %33548 = vst [vmem:[#allocation20_spill] sm:$0xff] %v28834_v17  ;;  %v28855_v24 = vand.u32 4294901760, %v28832_v16  ;;  %v28858_v25 = vsub.f32 %v171_v10, %v28834_v17  ;;  %26157 = vmatpush3.msra.mxu0 %v28805_v4  ;;  %v28862_v27 = vand.u32 4294901760, %v174_v19  ;;  %v28864_v28 = vand.u32 4294901760, %v177_v20  ;;  %v28931_v0 = vld [vmem:[#allocation3 + $0x60] sm:$0xff]  ;;  %v28933_v1 = vld [vmem:[#allocation3 + $0x68] sm:$0xff]  ;;  %p28721_p7 = scmp.lt.s32.totalorder %s24692_s9, %s24692_s9 }
  0x38   :  { %33549 = vst [vmem:[#allocation21_spill] sm:$0xff] %v28838_v18  ;;  %33550 = vst [vmem:[#allocation22_spill] sm:$0xff] %v28849_v22  ;;  %v33238_v26 = vand.u32 4294901760, %v28838_v18  ;;  %v28866_v29 = vand.u32 4294901760, %v180_v21  ;;  %v1303_v30 = vsub.f32 %v28827_v14, %v28849_v22  ;;  %v33237_v31 = vand.u32 4294901760, %v28852_v23  ;;  %26402 = vmatprep.subr.mxu0 %v28827_v14  ;;  %s28716_s10 = scalar_lea.vmem %s24692_s9, 16 }
  0x39   :  { %33551 = vst [vmem:[#allocation23_spill] sm:$0xff] %v28852_v23  ;;  %33552 = vst [vmem:[#allocation24_spill] sm:$0xff] %v28855_v24  ;;  %v1310_v32 = vsub.f32 %v28832_v16, %v28855_v24  ;;  %v33236_v33 = vand.u32 4294901760, %v28858_v25  ;;  %v28879_v35 = vsub.f32 %v174_v19, %v28862_v27  ;;  %v28882_v36 = vsub.f32 %v177_v20, %v28864_v28  ;;  %p28717_p6 = scmp.ne.s32.totalorder %s24692_s9, %s28716_s10  ;;  %s28720_s11 = scalar_lea.vmem %s24692_s9, 32 }
  0x3a   :  { %33553 = vst [vmem:[#allocation25_spill] sm:$0xff] %v28858_v25  ;;  %33554 = vst [vmem:[#allocation26_spill] sm:$0xff] %v28862_v27  ;;  %v474_v34 = vsub.f32 %v28838_v18, %v33238_v26  ;;  %v28885_v37 = vsub.f32 %v180_v21, %v28866_v29  ;;  %v1304_v40 = vand.u32 4294901760, %v1303_v30  ;;  %v484_v41 = vsub.f32 %v28852_v23, %v33237_v31  ;;  %p28722_p8 = scmp.lt.s32.totalorder %s28720_s11, %s28716_s10 }
  0x3b   :  { %33555 = vst [vmem:[#allocation27_spill] sm:$0xff] %v28864_v28  ;;  %33556 = vst [vmem:[#allocation28_spill] sm:$0xff] %v28866_v29  ;;  %v1311_v42 = vand.u32 4294901760, %v1310_v32  ;;  %v494_v43 = vsub.f32 %v28858_v25, %v33236_v33  ;;  %v33235_v46 = vand.u32 4294901760, %v28879_v35  ;;  %v33233_v47 = vand.u32 4294901760, %v28882_v36 }
  0x3c   :  { %33557 = vst [vmem:[#allocation29_spill] sm:$0xff] %v28879_v35  ;;  %33558 = vst [vmem:[#allocation30_spill] sm:$0xff] %v28882_v36  ;;  %v475_v45 = vand.u32 4294901760, %v474_v34  ;;  %v33230_v48 = vand.u32 4294901760, %v28885_v37  ;;  %26278 = vmatprep.subr.mxu1 %v1304_v40  ;;  %v485_v51 = vand.u32 4294901760, %v484_v41  ;;  %v183_v53 = vsel %vm163_vm0, %v28887_v38, 0  ;;  %p28723_p9 = por %p28722_p8, %p28721_p7 }
  0x3d   :  { %33559 = vst [vmem:[#allocation31_spill] sm:$0xff] %v28885_v37  ;;  %v495_v52 = vand.u32 4294901760, %v494_v43  ;;  %v186_v54 = vsel %vm163_vm0, %v28889_v39, 0  ;;  %26279 = vmatpush3.msra.mxu1 %v1304_v40  ;;  %v504_v55 = vsub.f32 %v28879_v35, %v33235_v46  ;;  %v514_v56 = vsub.f32 %v28882_v36, %v33233_v47  ;;  %v29019_v47 = vld [vmem:[#allocation6 + $0x8] sm:$0xff] }
  0x3e   :  { %26158 = vmatprep.mubr.f32.mxu0 %v475_v45  ;;  %v524_v57 = vsub.f32 %v28885_v37, %v33230_v48  ;;  %v28919_v58 = vand.u32 4294901760, %v183_v53  ;;  %26280 = vmatprep.subr.mxu1 %v1311_v42  ;;  %v28923_v60 = vand.u32 4294901760, %v186_v54  ;;  %v189_v61 = vsel %vm163_vm0, %v28897_v44, 0  ;;  %v29117_v37 = vld [vmem:[#allocation6 + $0x40] sm:$0xff]  ;;  %p28724_p10 = pnand %p28723_p9, %p28717_p6 }
  0x3f   :  { %26159 = vmatmul.mubr.f32.vlgmr.msra.gmra.mxu0 %v485_v51  ;;  %v192_v62 = vsel %vm163_vm0, %v28902_v49, 0  ;;  %v195_v63 = vsel %vm163_vm0, %v28904_v50, 0  ;;  %26281 = vmatpush3.msra.mxu1 %v1311_v42  ;;  %v505_v5 = vand.u32 4294901760, %v504_v55  ;;  %v515_v9 = vand.u32 4294901760, %v514_v56 }
  0x40   :  { %33560 = vst [vmem:[#allocation32_spill] sm:$0xff] %v28919_v58  ;;  %33561 = vst [vmem:[#allocation33_spill] sm:$0xff] %v28923_v60  ;;  %26161 = vmatprep.mubr.f32.mxu0 %v495_v52  ;;  %v525_v10 = vand.u32 4294901760, %v524_v57  ;;  %v28936_v19 = vsub.f32 %v183_v53, %v28919_v58  ;;  %26283 = vmatmul.mubr.f32.vlgmr.msra.gmra.mxu1 %v28829_v15  ;;  %v28940_v20 = vsub.f32 %v186_v54, %v28923_v60 }
  0x41   :  { %v28942_v21 = vand.u32 4294901760, %v189_v61  ;;  %v28944_v30 = vand.u32 4294901760, %v192_v62  ;;  %v28946_v32 = vand.u32 4294901760, %v195_v63  ;;  %26403 = vmatpush3.msra.mxu0 %v28827_v14  ;;  %26285 = vmatprep.mubr.f32.mxu1 %v28834_v17  ;;  %v198_v40 = vsel %vm163_vm0, %v28921_v59, 0 }
  0x42   :  { %33562 = vst [vmem:[#allocation34_spill] sm:$0xff] %v28936_v19  ;;  %33563 = vst [vmem:[#allocation35_spill] sm:$0xff] %v28940_v20  ;;  %v33229_v34 = vand.u32 4294901760, %v28936_v19  ;;  %v201_v41 = vsel %vm163_vm0, %v28931_v0, 0  ;;  %v204_v42 = vsel %vm163_vm0, %v28933_v1, 0  ;;  %26404 = vmatprep.subr.mxu0 %v28832_v16  ;;  %v33228_v43 = vand.u32 4294901760, %v28940_v20  ;;  %26526 = vmatprep.subr.mxu1 %v28803_v3 }
  0x43   :  { %33564 = vst [vmem:[#allocation36_spill] sm:$0xff] %v28942_v21  ;;  %33565 = vst [vmem:[#allocation37_spill] sm:$0xff] %v28944_v30  ;;  %26162 = vmatmul.mubr.f32.gmra.mxu0 %v505_v5  ;;  %v28960_v14 = vsub.f32 %v189_v61, %v28942_v21  ;;  %v28963_v45 = vsub.f32 %v192_v62, %v28944_v30  ;;  %v28966_v51 = vsub.f32 %v195_v63, %v28946_v32  ;;  %v28986_v63 = vld [vmem:[#allocation3 + $0x70] sm:$0xff] }
  0x44   :  { %33566 = vst [vmem:[#allocation38_spill] sm:$0xff] %v28946_v32  ;;  %26164 = vmatprep.mubr.f32.mxu0 %v515_v9  ;;  %v534_v52 = vsub.f32 %v28936_v19, %v33229_v34  ;;  %v28972_v53 = vand.u32 4294901760, %v198_v40  ;;  %v28974_v54 = vand.u32 4294901760, %v201_v41  ;;  %v28976_v55 = vand.u32 4294901760, %v204_v42  ;;  %26405 = vmatpush3.msra.mxu0 %v28832_v16 }
  0x45   :  { %33567 = vst [vmem:[#allocation39_spill] sm:$0xff] %v28960_v14  ;;  %33568 = vst [vmem:[#allocation40_spill] sm:$0xff] %v28963_v45  ;;  %26286 = vmatmul.mubr.f32.gmra.mxu1 %v28862_v27  ;;  %v544_v56 = vsub.f32 %v28940_v20, %v33228_v43  ;;  %v33231_v57 = vand.u32 4294901760, %v28960_v14  ;;  %v33232_v61 = vand.u32 4294901760, %v28963_v45  ;;  %v33234_v62 = vand.u32 4294901760, %v28966_v51  ;;  %26650 = vmatprep.subr.mxu0 %v28849_v22  ;;  %v29093_v20 = vld [vmem:[#allocation6 + $0x30] sm:$0xff] }
  0x46   :  { %33569 = vst [vmem:[#allocation41_spill] sm:$0xff] %v28966_v51  ;;  %33570 = vst [vmem:[#allocation42_spill] sm:$0xff] %v28972_v53  ;;  %26288 = vmatprep.mubr.f32.mxu1 %v28864_v28  ;;  %v535_v5 = vand.u32 4294901760, %v534_v52  ;;  %v28991_v16 = vsub.f32 %v198_v40, %v28972_v53  ;;  %v28994_v9 = vsub.f32 %v201_v41, %v28974_v54  ;;  %26527 = vmatpush3.msra.mxu1 %v28803_v3  ;;  %v29009_v41 = vld [vmem:[#allocation3 + $0x78] sm:$0xff] }
  0x47   :  { %33571 = vst [vmem:[#allocation43_spill] sm:$0xff] %v28974_v54  ;;  %33572 = vst [vmem:[#allocation44_spill] sm:$0xff] %v28976_v55  ;;  %v28997_v43 = vsub.f32 %v204_v42, %v28976_v55  ;;  %26165 = vmatmul.mubr.f32.gmra.mxu0 %v525_v10  ;;  %v545_v34 = vand.u32 4294901760, %v544_v56  ;;  %v554_v48 = vsub.f32 %v28960_v14, %v33231_v57  ;;  %26528 = vmatprep.subr.mxu1 %v28805_v4  ;;  %v29012_v42 = vld [vmem:[#allocation6] sm:$0xff] }
  0x48   :  { %33573 = vst [vmem:[#allocation45_spill] sm:$0xff] %v28991_v16  ;;  %33574 = vst [vmem:[#allocation46_spill] sm:$0xff] %v28994_v9  ;;  %v564_v52 = vsub.f32 %v28963_v45, %v33232_v61  ;;  %v574_v40 = vsub.f32 %v28966_v51, %v33234_v62  ;;  %26167 = vmatprep.mubr.f32.mxu0 %v535_v5  ;;  %v33241_v10 = vand.u32 4294901760, %v28991_v16  ;;  %v33244_v56 = vand.u32 4294901760, %v28994_v9 }
  0x49   :  { %33575 = vst [vmem:[#allocation47_spill] sm:$0xff] %v28997_v43  ;;  %v207_v61 = vsel %vm163_vm0, %v28986_v63, 0  ;;  %26529 = vmatpush3.msra.mxu1 %v28805_v4  ;;  %v555_v62 = vand.u32 4294901760, %v554_v48  ;;  %v210_v57 = vsel %vm163_vm0, %v29009_v41, 0  ;;  %v29035_v48 = vld [vmem:[#allocation6 + $0x10] sm:$0xff] }
  0x4a   :  { %26289 = vmatmul.mubr.f32.gmra.mxu1 %v28866_v29  ;;  %v565_v46 = vand.u32 4294901760, %v564_v52  ;;  %v29023_v33 = vand.u32 4294901760, %v207_v61  ;;  %26774 = vmatprep.subr.mxu1 %v28803_v3  ;;  %v575_v5 = vand.u32 4294901760, %v574_v40  ;;  %v584_v31 = vsub.f32 %v28991_v16, %v33241_v10 }
  0x4b   :  { %26291 = vmatprep.mubr.f32.mxu1 %v28919_v58  ;;  %v594_v26 = vsub.f32 %v28994_v9, %v33244_v56  ;;  %26168 = vmatmul.mubr.f32.gmra.mxu0 %v545_v34  ;;  %v29040_v29 = vand.u32 4294901760, %v210_v57  ;;  %v213_v40 = vsel %vm163_vm0, %v29012_v42, 0  ;;  %v216_v10 = vsel %vm163_vm0, %v29019_v47, 0  ;;  %v29046_v58 = vld [vmem:[#allocation6 + $0x18] sm:$0xff]  ;;  %v29048_v56 = vld [vmem:[#allocation6 + $0x20] sm:$0xff] }
  0x4c   :  { %33576 = vst [vmem:[#allocation48_spill] sm:$0xff] %v29023_v33  ;;  %v29038_v52 = vsub.f32 %v207_v61, %v29023_v33  ;;  %26170 = vmatprep.mubr.f32.mxu0 %v555_v62  ;;  %v585_v28 = vand.u32 4294901760, %v584_v31  ;;  %v33579_v34 = vand.u32 4294901760, %v28997_v43  ;;  %v29053_v17 = vand.u32 4294901760, %v213_v40  ;;  %v29064_v31 = vld [vmem:[#allocation6 + $0x28] sm:$0xff] }
  0x4d   :  { %33578 = vst [vmem:[#allocation50_spill] sm:$0xff] %v29040_v29  ;;  %v595_v27 = vand.u32 4294901760, %v594_v26  ;;  %v29058_v8 = vsub.f32 %v210_v57, %v29040_v29  ;;  %v29060_v9 = vand.u32 4294901760, %v216_v10  ;;  %v219_v62 = vsel %vm163_vm0, %v29035_v48, 0 }
  0x4e   :  { %33577 = vst [vmem:[#allocation49_spill] sm:$0xff] %v29038_v52  ;;  %v604_v61 = vsub.f32 %v28997_v43, %v33579_v34  ;;  %33580 = vst [vmem:[#allocation51_spill] sm:$0xff] %v29053_v17  ;;  %26292 = vmatmul.mubr.f32.gmra.mxu1 %v28923_v60  ;;  %v29068_v26 = vsub.f32 %v213_v40, %v29053_v17  ;;  %v29070_v34 = vand.u32 4294901760, %v219_v62  ;;  %v222_v15 = vsel %vm163_vm0, %v29046_v58, 0 }
  0x4f   :  { %33581 = vst [vmem:[#allocation52_spill] sm:$0xff] %v29058_v8  ;;  %33582 = vst [vmem:[#allocation53_spill] sm:$0xff] %v29060_v9  ;;  %26294 = vmatprep.mubr.f32.mxu1 %v28942_v21  ;;  %v225_v57 = vsel %vm163_vm0, %v29048_v56, 0  ;;  %26171 = vmatmul.mubr.f32.gmra.mxu0 %v565_v46  ;;  %v33585_v60 = vand.u32 4294901760, %v29038_v52  ;;  %v33281_v16 = vand.u32 4294901760, %v29058_v8  ;;  %v29081_v21 = vsub.f32 %v216_v10, %v29060_v9 }
  0x50   :  { %33583 = vst [vmem:[#allocation54_spill] sm:$0xff] %v29068_v26  ;;  %33584 = vst [vmem:[#allocation55_spill] sm:$0xff] %v29070_v34  ;;  %v29083_v40 = vand.u32 4294901760, %v222_v15  ;;  %26173 = vmatprep.mubr.f32.mxu0 %v575_v5  ;;  %v29087_v45 = vsub.f32 %v219_v62, %v29070_v34  ;;  %v29089_v14 = vand.u32 4294901760, %v225_v57  ;;  %v228_v46 = vsel %vm163_vm0, %v29064_v31, 0  ;;  %v29105_v62 = vld [vmem:[#allocation6 + $0x38] sm:$0xff] }
  0x51   :  { %v614_v43 = vsub.f32 %v29038_v52, %v33585_v60  ;;  %33586 = vst [vmem:[#allocation56_spill] sm:$0xff] %v29081_v21  ;;  %v624_v60 = vsub.f32 %v29058_v8, %v33281_v16  ;;  %v29103_v5 = vand.u32 4294901760, %v228_v46  ;;  %v605_v51 = vand.u32 4294901760, %v604_v61  ;;  %v29124_v61 = vld [vmem:[#allocation6 + $0x48] sm:$0xff] }
  0x52   :  { %33587 = vst [vmem:[#allocation57_spill] sm:$0xff] %v29083_v40  ;;  %33588 = vst [vmem:[#allocation58_spill] sm:$0xff] %v29087_v45  ;;  %26295 = vmatmul.mubr.f32.gmra.mxu1 %v28944_v30  ;;  %v29101_v10 = vsub.f32 %v222_v15, %v29083_v40  ;;  %v33592_v52 = vand.u32 4294901760, %v29068_v26  ;;  %v29115_v8 = vsub.f32 %v225_v57, %v29089_v14  ;;  %v29133_v30 = vld [vmem:[#allocation6 + $0x50] sm:$0xff] }
  0x53   :  { %33589 = vst [vmem:[#allocation59_spill] sm:$0xff] %v29089_v14  ;;  %26297 = vmatprep.mubr.f32.mxu1 %v28946_v32  ;;  %33591 = vst [vmem:[#allocation61_spill] sm:$0xff] %v29103_v5  ;;  %26174 = vmatmul.mubr.f32.gmra.mxu0 %v585_v28  ;;  %v231_v32 = vsel %vm163_vm0, %v29093_v20, 0  ;;  %v615_v16 = vand.u32 4294901760, %v614_v43  ;;  %v29129_v15 = vsub.f32 %v228_v46, %v29103_v5  ;;  %v29143_v43 = vld [vmem:[#allocation6 + $0x58] sm:$0xff]  ;;  %v33599_v46 = vand.u32 4294901760, %v29087_v45 }
  0x54   :  { %33590 = vst [vmem:[#allocation60_spill] sm:$0xff] %v29101_v10  ;;  %v634_v19 = vsub.f32 %v29068_v26, %v33592_v52  ;;  %26176 = vmatprep.mubr.f32.mxu0 %v595_v27  ;;  %33593 = vst [vmem:[#allocation62_spill] sm:$0xff] %v29115_v8  ;;  %v29120_v28 = vand.u32 4294901760, %v231_v32  ;;  %v234_v52 = vsel %vm163_vm0, %v29105_v62, 0  ;;  %v625_v27 = vand.u32 4294901760, %v624_v60 }
  0x55   :  { %33595 = vst [vmem:[#allocation64_spill] sm:$0xff] %v29129_v15  ;;  %v29131_v57 = vand.u32 4294901760, %v234_v52  ;;  %v33597_v26 = vand.u32 4294901760, %v29081_v21  ;;  %v237_v60 = vsel %vm163_vm0, %v29117_v37, 0  ;;  %v246_v3 = vsel %vm163_vm0, %v29143_v43, 0 }
  0x56   :  { %26298 = vmatmul.mubr.f32.gmra.mxu1 %v28972_v53  ;;  %33594 = vst [vmem:[#allocation63_spill] sm:$0xff] %v29120_v28  ;;  %v635_v53 = vand.u32 4294901760, %v634_v19  ;;  %v29139_v36 = vsub.f32 %v231_v32, %v29120_v28  ;;  %v29149_v19 = vand.u32 4294901760, %v237_v60  ;;  %v243_v32 = vsel %vm163_vm0, %v29133_v30, 0 }
  0x57   :  { %26300 = vmatprep.mubr.f32.mxu1 %v28974_v54  ;;  %33596 = vst [vmem:[#allocation65_spill] sm:$0xff] %v29131_v57  ;;  %26177 = vmatmul.mubr.f32.gmra.mxu0 %v605_v51  ;;  %v644_v4 = vsub.f32 %v29081_v21, %v33597_v26  ;;  %v654_v54 = vsub.f32 %v29087_v45, %v33599_v46  ;;  %v240_v26 = vsel %vm163_vm0, %v29124_v61, 0  ;;  %v29153_v21 = vld [vmem:[#allocation6 + $0x60] sm:$0xff] }
  0x58   :  { %33598 = vst [vmem:[#allocation66_spill] sm:$0xff] %v29139_v36  ;;  %26179 = vmatprep.mubr.f32.mxu0 %v615_v16  ;;  %33600 = vst [vmem:[#allocation67_spill] sm:$0xff] %v29149_v19  ;;  %v33601_v16 = vand.u32 4294901760, %v29101_v10  ;;  %v29164_v45 = vsub.f32 %v234_v52, %v29131_v57  ;;  %v29169_v24 = vand.u32 4294901760, %v240_v26  ;;  %v29177_v52 = vsub.f32 %v237_v60, %v29149_v19 }
  0x59   :  { %v645_v35 = vand.u32 4294901760, %v644_v4  ;;  %v655_v22 = vand.u32 4294901760, %v654_v54  ;;  %v29183_v4 = vld [vmem:[#allocation6 + $0x70] sm:$0xff]  ;;  %v33608_v54 = vand.u32 4294901760, %v29129_v15 }
  0x5a   :  { %26301 = vmatmul.mubr.f32.gmra.mxu1 %v28976_v55  ;;  %v664_v46 = vsub.f32 %v29101_v10, %v33601_v16  ;;  %33602 = vst [vmem:[#allocation68_spill] sm:$0xff] %v29169_v24  ;;  %v33603_v16 = vand.u32 4294901760, %v29115_v8  ;;  %v29179_v10 = vand.u32 4294901760, %v243_v32  ;;  %33605 = vst [vmem:[#allocation70_spill] sm:$0xff] %v29183_v4  ;;  %v29186_v55 = vand.u32 4294901760, %v246_v3 }
  0x5b   :  { %26303 = vmatprep.mubr.f32.mxu1 %v29023_v33  ;;  %26180 = vmatmul.mubr.f32.gmra.mxu0 %v625_v27  ;;  %v249_v33 = vsel %vm163_vm0, %v29153_v21, 0  ;;  %v29181_v27 = vld [vmem:[#allocation6 + $0x68] sm:$0xff]  ;;  %v684_v60 = vsub.f32 %v29129_v15, %v33608_v54 }
  0x5c   :  { %26182 = vmatprep.mubr.f32.mxu0 %v635_v53  ;;  %v674_v51 = vsub.f32 %v29115_v8, %v33603_v16  ;;  %33604 = vst [vmem:[#allocation69_spill] sm:$0xff] %v29179_v10  ;;  %33606 = vst [vmem:[#allocation71_spill] sm:$0xff] %v29186_v55  ;;  %v29188_v25 = vand.u32 4294901760, %v249_v33  ;;  %v665_v53 = vand.u32 4294901760, %v664_v46  ;;  %v33609_v8 = vand.u32 4294901760, %v29139_v36 }
  0x5d   :  { %v252_v18 = vsel %vm163_vm0, %v29181_v27, 0  ;;  %v255_v46 = vsel %vm163_vm0, %v29183_v4, 0  ;;  %v29207_v16 = vsub.f32 %v243_v32, %v29179_v10  ;;  %v685_v32 = vand.u32 4294901760, %v684_v60 }
  0x5e   :  { %26304 = vmatmul.mubr.f32.gmra.mxu1 %v29040_v29  ;;  %33607 = vst [vmem:[#allocation72_spill] sm:$0xff] %v29188_v25  ;;  %v694_v23 = vsub.f32 %v29139_v36, %v33609_v8  ;;  %v29199_v29 = vsub.f32 %v240_v26, %v29169_v24  ;;  %v29213_v8 = vsub.f32 %v246_v3, %v29186_v55  ;;  %v29218_v36 = vld [vmem:[#allocation6 + $0x78] sm:$0xff] }
  0x5f   :  { %26306 = vmatprep.mubr.f32.mxu1 %v29053_v17  ;;  %26183 = vmatmul.mubr.f32.gmra.mxu0 %v645_v35  ;;  %v675_v17 = vand.u32 4294901760, %v674_v51  ;;  %v115_v35 = vmul.f32 %v28801_v2, %v28801_v2  ;;  %v29216_v26 = vsub.f32 %v249_v33, %v29188_v25  ;;  %v29223_v51 = vand.u32 4294901760, %v255_v46 }
  0x60   :  { %26185 = vmatprep.mubr.f32.mxu0 %v655_v22  ;;  %33610 = vst [vmem:[#allocation73_spill] sm:$0xff] %v29213_v8  ;;  %v29221_v22 = vand.u32 4294901760, %v252_v18  ;;  %v695_v54 = vand.u32 4294901760, %v694_v23  ;;  %v33613_v2 = vand.u32 4294901760, %v29164_v45  ;;  %v33338_v3 = vand.u32 4294901760, %v29199_v29 }
  0x61   :  { %33612 = vst [vmem:[#allocation75_spill] sm:$0xff] %v29223_v51  ;;  %v33614_v33 = vand.u32 4294901760, %v29177_v52  ;;  %v258_v4 = vsel %vm163_vm0, %v29218_v36, 0 }
  0x62   :  { %26307 = vmatmul.mubr.f32.gmra.mxu1 %v29060_v9  ;;  %33611 = vst [vmem:[#allocation74_spill] sm:$0xff] %v29221_v22  ;;  %v704_v9 = vsub.f32 %v29164_v45, %v33613_v2  ;;  %v117_v2 = vmul.f32 %v28811_v7, %v28811_v7  ;;  %v29255_v60 = vand.u32 4294901760, %v258_v4 }
  0x63   :  { %26309 = vmatprep.mubr.f32.mxu1 %v29070_v34  ;;  %26186 = vmatmul.mubr.f32.gmra.mxu0 %v665_v53  ;;  %v714_v15 = vsub.f32 %v29177_v52, %v33614_v33  ;;  %v116_v53 = vmul.f32 %v28809_v6, %v28809_v6  ;;  %v29245_v33 = vsub.f32 %v252_v18, %v29221_v22 }
  0x64   :  { %26188 = vmatprep.mubr.f32.mxu0 %v675_v17  ;;  %v261_v17 = vsel %vm163_vm0, %v115_v35, 0  ;;  %v29248_v34 = vsub.f32 %v255_v46, %v29223_v51  ;;  %v118_v6 = vmul.f32 %v28819_v11, %v28819_v11  ;;  %v705_v23 = vand.u32 4294901760, %v704_v9  ;;  %33616 = vst [vmem:[#allocation77_spill] sm:$0xff] %v29255_v60 }
  0x65   :  { %v724_v35 = vsub.f32 %v29199_v29, %v33338_v3  ;;  %v715_v7 = vand.u32 4294901760, %v714_v15  ;;  %v264_v46 = vsel %vm163_vm0, %v116_v53, 0  ;;  %v33619_v11 = vand.u32 4294901760, %v29213_v8 }
  0x66   :  { %26310 = vmatmul.mubr.f32.gmra.mxu1 %v29083_v40  ;;  %33615 = vst [vmem:[#allocation76_spill] sm:$0xff] %v29248_v34  ;;  %v29260_v40 = vand.u32 4294901760, %v261_v17  ;;  %v267_v15 = vsel %vm163_vm0, %v117_v2, 0  ;;  %v29282_v2 = vand.u32 4294901760, %v264_v46 }
  0x67   :  { %26312 = vmatprep.mubr.f32.mxu1 %v29089_v14  ;;  %26189 = vmatmul.mubr.f32.gmra.mxu0 %v685_v32  ;;  %v33617_v14 = vand.u32 4294901760, %v29207_v16  ;;  %v744_v9 = vsub.f32 %v29213_v8, %v33619_v11  ;;  %v33620_v32 = vand.u32 4294901760, %v29216_v26  ;;  %v120_v11 = vmul.f32 %v28823_v13, %v28823_v13 }
  0x68   :  { %26191 = vmatprep.mubr.f32.mxu0 %v695_v54  ;;  %33618 = vst [vmem:[#allocation78_spill] sm:$0xff] %v29260_v40  ;;  %v119_v54 = vmul.f32 %v28821_v12, %v28821_v12  ;;  %v725_v8 = vand.u32 4294901760, %v724_v35  ;;  %33621 = vst [vmem:[#allocation79_spill] sm:$0xff] %v29282_v2  ;;  %v121_v12 = vmul.f32 %v28887_v38, %v28887_v38  ;;  %v29289_v53 = vand.u32 4294901760, %v267_v15 }
  0x69   :  { %v734_v18 = vsub.f32 %v29207_v16, %v33617_v14  ;;  %v754_v3 = vsub.f32 %v29216_v26, %v33620_v32  ;;  %v29280_v32 = vsub.f32 %v258_v4, %v29255_v60  ;;  %v29287_v14 = vsub.f32 %v261_v17, %v29260_v40 }
  0x6a   :  { %26313 = vmatmul.mubr.f32.gmra.mxu1 %v29103_v5  ;;  %v270_v5 = vsel %vm163_vm0, %v118_v6, 0  ;;  %33622 = vst [vmem:[#allocation80_spill] sm:$0xff] %v29289_v53  ;;  %v745_v13 = vand.u32 4294901760, %v744_v9  ;;  %v273_v4 = vsel %vm163_vm0, %v119_v54, 0  ;;  %v33624_v35 = vand.u32 4294901760, %v29245_v33 }
  0x6b   :  { %26315 = vmatprep.mubr.f32.mxu1 %v29120_v28  ;;  %26192 = vmatmul.mubr.f32.gmra.mxu0 %v705_v23  ;;  %v735_v28 = vand.u32 4294901760, %v734_v18  ;;  %v29292_v23 = vand.u32 4294901760, %v270_v5  ;;  %v755_v6 = vand.u32 4294901760, %v754_v3  ;;  %v276_v18 = vsel %vm163_vm0, %v120_v11, 0 }
  0x6c   :  { %26194 = vmatprep.mubr.f32.mxu0 %v715_v7  ;;  %v764_v38 = vsub.f32 %v29245_v33, %v33624_v35  ;;  %v33625_v7 = vand.u32 4294901760, %v29248_v34  ;;  %v33355_v9 = vand.u32 4294901760, %v29280_v32  ;;  %v279_v54 = vsel %vm163_vm0, %v121_v12, 0 }
  0x6d   :  { %33623 = vst [vmem:[#allocation81_spill] sm:$0xff] %v29292_v23  ;;  %v122_v3 = vmul.f32 %v28889_v39, %v28889_v39  ;;  %v29322_v11 = vand.u32 4294901760, %v276_v18 }
  0x6e   :  { %26316 = vmatmul.mubr.f32.gmra.mxu1 %v29131_v57  ;;  %v774_v17 = vsub.f32 %v29248_v34, %v33625_v7  ;;  %v29305_v57 = vsub.f32 %v264_v46, %v29282_v2  ;;  %v29314_v7 = vand.u32 4294901760, %v273_v4  ;;  %v29320_v46 = vsub.f32 %v270_v5, %v29292_v23 }
  0x6f   :  { %26318 = vmatprep.mubr.f32.mxu1 %v29149_v19  ;;  %26195 = vmatmul.mubr.f32.gmra.mxu0 %v725_v8  ;;  %v29312_v19 = vsub.f32 %v267_v15, %v29289_v53  ;;  %v123_v8 = vmul.f32 %v28897_v44, %v28897_v44  ;;  %33627 = vst [vmem:[#allocation83_spill] sm:$0xff] %v29322_v11  ;;  %v765_v39 = vand.u32 4294901760, %v764_v38  ;;  %v282_v5 = vsel %vm163_vm0, %v122_v3, 0 }
  0x70   :  { %26197 = vmatprep.mubr.f32.mxu0 %v735_v28  ;;  %33626 = vst [vmem:[#allocation82_spill] sm:$0xff] %v29314_v7  ;;  %v29325_v28 = vand.u32 4294901760, %v279_v54  ;;  %v124_v15 = vmul.f32 %v28902_v49, %v28902_v49  ;;  %v775_v12 = vand.u32 4294901760, %v774_v17  ;;  %v784_v44 = vsub.f32 %v29280_v32, %v33355_v9 }
  0x71   :  { %v33359_v35 = vand.u32 4294901760, %v29305_v57  ;;  %v29339_v34 = vsub.f32 %v273_v4, %v29314_v7  ;;  %v285_v49 = vsel %vm163_vm0, %v123_v8, 0  ;;  %v29345_v17 = vsub.f32 %v276_v18, %v29322_v11 }
  0x72   :  { %26319 = vmatmul.mubr.f32.gmra.mxu1 %v29169_v24  ;;  %33628 = vst [vmem:[#allocation84_spill] sm:$0xff] %v29325_v28  ;;  %v33629_v24 = vand.u32 4294901760, %v29287_v14  ;;  %v29353_v3 = vand.u32 4294901760, %v282_v5  ;;  %v288_v4 = vsel %vm163_vm0, %v124_v15, 0  ;;  %v126_v8 = vmul.f32 %v28921_v59, %v28921_v59 }
  0x73   :  { %26321 = vmatprep.mubr.f32.mxu1 %v29179_v10  ;;  %26198 = vmatmul.mubr.f32.gmra.mxu0 %v745_v13  ;;  %v33358_v10 = vand.u32 4294901760, %v29312_v19  ;;  %v785_v9 = vand.u32 4294901760, %v784_v44  ;;  %v804_v18 = vsub.f32 %v29305_v57, %v33359_v35  ;;  %v29361_v13 = vand.u32 4294901760, %v285_v49 }
  0x74   :  { %26200 = vmatprep.mubr.f32.mxu0 %v755_v6  ;;  %v794_v38 = vsub.f32 %v29287_v14, %v33629_v24  ;;  %v125_v6 = vmul.f32 %v28904_v50, %v28904_v50  ;;  %v29351_v24 = vsub.f32 %v279_v54, %v29325_v28  ;;  %33631 = vst [vmem:[#allocation86_spill] sm:$0xff] %v29353_v3  ;;  %v33633_v59 = vand.u32 4294901760, %v29320_v46 }
  0x75   :  { %33632 = vst [vmem:[#allocation87_spill] sm:$0xff] %v29361_v13  ;;  %v814_v54 = vsub.f32 %v29312_v19, %v33358_v10  ;;  %v29371_v15 = vand.u32 4294901760, %v288_v4  ;;  %v29380_v35 = vsub.f32 %v282_v5, %v29353_v3  ;;  %v129_v5 = vmul.f32 %v28986_v63, %v28986_v63 }
  0x76   :  { %26322 = vmatmul.mubr.f32.gmra.mxu1 %v29186_v55  ;;  %33630 = vst [vmem:[#allocation85_spill] sm:$0xff] %v29351_v24  ;;  %v795_v50 = vand.u32 4294901760, %v794_v38  ;;  %v291_v44 = vsel %vm163_vm0, %v125_v6, 0  ;;  %v128_v6 = vmul.f32 %v28933_v1, %v28933_v1 }
  0x77   :  { %26324 = vmatprep.mubr.f32.mxu1 %v29188_v25  ;;  %26201 = vmatmul.mubr.f32.gmra.mxu0 %v765_v39  ;;  %v824_v39 = vsub.f32 %v29320_v46, %v33633_v59  ;;  %33634 = vst [vmem:[#allocation88_spill] sm:$0xff] %v29371_v15  ;;  %33635 = vst [vmem:[#allocation89_spill] sm:$0xff] %v29380_v35  ;;  %v294_v25 = vsel %vm163_vm0, %v126_v8, 0  ;;  %v805_v59 = vand.u32 4294901760, %v804_v18  ;;  %v29391_v10 = vand.u32 4294901760, %v291_v44 }
  0x78   :  { %26203 = vmatprep.mubr.f32.mxu0 %v775_v12  ;;  %v127_v12 = vmul.f32 %v28931_v0, %v28931_v0  ;;  %v815_v0 = vand.u32 4294901760, %v814_v54  ;;  %v33641_v18 = vand.u32 4294901760, %v29345_v17  ;;  %v33372_v54 = vand.u32 4294901760, %v29380_v35 }
  0x79   :  { %33638 = vst [vmem:[#allocation91_spill] sm:$0xff] %v29391_v10  ;;  %v825_v8 = vand.u32 4294901760, %v824_v39  ;;  %v131_v39 = vmul.f32 %v29012_v42, %v29012_v42 }
  0x7a   :  { %26325 = vmatmul.mubr.f32.gmra.mxu1 %v29221_v22  ;;  %v29384_v22 = vsub.f32 %v285_v49, %v29361_v13  ;;  %v29399_v49 = vand.u32 4294901760, %v294_v25  ;;  %v297_v1 = vsel %vm163_vm0, %v127_v12, 0  ;;  %v130_v12 = vmul.f32 %v29009_v41, %v29009_v41 }
  0x7b   :  { %26327 = vmatprep.mubr.f32.mxu1 %v29223_v51  ;;  %26204 = vmatmul.mubr.f32.gmra.mxu0 %v785_v9  ;;  %v33637_v51 = vand.u32 4294901760, %v29339_v34  ;;  %v29397_v9 = vsub.f32 %v288_v4, %v29371_v15  ;;  %v29419_v55 = vand.u32 4294901760, %v297_v1 }
  0x7c   :  { %33636 = vst [vmem:[#allocation90_spill] sm:$0xff] %v29384_v22  ;;  %26206 = vmatprep.mubr.f32.mxu0 %v795_v50  ;;  %33640 = vst [vmem:[#allocation93_spill] sm:$0xff] %v29399_v49  ;;  %v33642_v50 = vand.u32 4294901760, %v29351_v24 }
  0x7d   :  { %v834_v38 = vsub.f32 %v29339_v34, %v33637_v51  ;;  %33639 = vst [vmem:[#allocation92_spill] sm:$0xff] %v29397_v9  ;;  %v844_v51 = vsub.f32 %v29345_v17, %v33641_v18  ;;  %v29417_v18 = vsub.f32 %v291_v44, %v29391_v10  ;;  %33644 = vst [vmem:[#allocation95_spill] sm:$0xff] %v29419_v55 }
  0x7e   :  { %26328 = vmatmul.mubr.f32.gmra.mxu1 %v29255_v60  ;;  %v854_v63 = vsub.f32 %v29351_v24, %v33642_v50  ;;  %v300_v60 = vsel %vm163_vm0, %v128_v6, 0  ;;  %v303_v50 = vsel %vm163_vm0, %v129_v5, 0  ;;  %v29425_v6 = vsub.f32 %v294_v25, %v29399_v49 }
  0x7f   :  { %26330 = vmatprep.mubr.f32.mxu1 %v29260_v40  ;;  %26207 = vmatmul.mubr.f32.gmra.mxu0 %v805_v59  ;;  %v835_v40 = vand.u32 4294901760, %v834_v38  ;;  %33643 = vst [vmem:[#allocation94_spill] sm:$0xff] %v29417_v18  ;;  %v845_v41 = vand.u32 4294901760, %v844_v51  ;;  %v864_v44 = vsub.f32 %v29380_v35, %v33372_v54  ;;  %v29431_v38 = vand.u32 4294901760, %v300_v60 }
  0x80   :  { %26209 = vmatprep.mubr.f32.mxu0 %v815_v0  ;;  %33645 = vst [vmem:[#allocation96_spill] sm:$0xff] %v29425_v6  ;;  %v855_v4 = vand.u32 4294901760, %v854_v63  ;;  %v33647_v0 = vand.u32 4294901760, %v29384_v22  ;;  %v306_v25 = vsel %vm163_vm0, %v130_v12, 0  ;;  %v309_v59 = vsel %vm163_vm0, %v131_v39, 0 }
  0x81   :  { %33646 = vst [vmem:[#allocation97_spill] sm:$0xff] %v29431_v38  ;;  %v29442_v63 = vsub.f32 %v297_v1, %v29419_v55  ;;  %v132_v54 = vmul.f32 %v29019_v47, %v29019_v47  ;;  %v29457_v1 = vand.u32 4294901760, %v306_v25  ;;  %v29459_v51 = vand.u32 4294901760, %v309_v59 }
  0x82   :  { %26331 = vmatmul.mubr.f32.gmra.mxu1 %v29282_v2  ;;  %v874_v5 = vsub.f32 %v29384_v22, %v33647_v0  ;;  %v29436_v2 = vand.u32 4294901760, %v303_v50  ;;  %v33650_v0 = vand.u32 4294901760, %v29397_v9 }
  0x83   :  { %26333 = vmatprep.mubr.f32.mxu1 %v29289_v53  ;;  %26210 = vmatmul.mubr.f32.gmra.mxu0 %v825_v8  ;;  %33649 = vst [vmem:[#allocation99_spill] sm:$0xff] %v29442_v63  ;;  %v133_v8 = vmul.f32 %v29035_v48, %v29035_v48  ;;  %33652 = vst [vmem:[#allocation101_spill] sm:$0xff] %v29457_v1  ;;  %v134_v53 = vmul.f32 %v29046_v58, %v29046_v58 }
  0x84   :  { %33648 = vst [vmem:[#allocation98_spill] sm:$0xff] %v29436_v2  ;;  %26212 = vmatprep.mubr.f32.mxu0 %v835_v40  ;;  %v884_v12 = vsub.f32 %v29397_v9, %v33650_v0  ;;  %v29455_v40 = vsub.f32 %v300_v60, %v29431_v38  ;;  %33653 = vst [vmem:[#allocation102_spill] sm:$0xff] %v29459_v51  ;;  %v875_v22 = vand.u32 4294901760, %v874_v5  ;;  %v33655_v0 = vand.u32 4294901760, %v29417_v18 }
  0x85   :  { %v29464_v35 = vsub.f32 %v303_v50, %v29436_v2  ;;  %v315_v9 = vsel %vm163_vm0, %v133_v8, 0  ;;  %v29481_v5 = vsub.f32 %v306_v25, %v29457_v1  ;;  %v318_v8 = vsel %vm163_vm0, %v134_v53, 0 }
  0x86   :  { %26334 = vmatmul.mubr.f32.gmra.mxu1 %v29292_v23  ;;  %33651 = vst [vmem:[#allocation100_spill] sm:$0xff] %v29455_v40  ;;  %v865_v23 = vand.u32 4294901760, %v864_v44  ;;  %v894_v39 = vsub.f32 %v29417_v18, %v33655_v0  ;;  %v885_v24 = vand.u32 4294901760, %v884_v12  ;;  %v136_v60 = vmul.f32 %v29064_v31, %v29064_v31 }
  0x87   :  { %26336 = vmatprep.mubr.f32.mxu1 %v29314_v7  ;;  %26213 = vmatmul.mubr.f32.gmra.mxu0 %v845_v41  ;;  %33654 = vst [vmem:[#allocation103_spill] sm:$0xff] %v29464_v35  ;;  %v312_v7 = vsel %vm163_vm0, %v132_v54, 0  ;;  %v33656_v41 = vand.u32 4294901760, %v29425_v6  ;;  %33657 = vst [vmem:[#allocation104_spill] sm:$0xff] %v29481_v5  ;;  %v29484_v54 = vsub.f32 %v309_v59, %v29459_v51  ;;  %v33661_v25 = vand.u32 4294901760, %v29442_v63 }
  0x88   :  { %26215 = vmatprep.mubr.f32.mxu0 %v855_v4  ;;  %v135_v4 = vmul.f32 %v29048_v56, %v29048_v56  ;;  %v29488_v0 = vand.u32 4294901760, %v312_v7  ;;  %v895_v50 = vand.u32 4294901760, %v894_v39  ;;  %v29498_v59 = vand.u32 4294901760, %v318_v8 }
  0x89   :  { %v904_v44 = vsub.f32 %v29425_v6, %v33656_v41  ;;  %33658 = vst [vmem:[#allocation105_spill] sm:$0xff] %v29484_v54  ;;  %v29490_v41 = vand.u32 4294901760, %v315_v9  ;;  %v33405_v39 = vand.u32 4294901760, %v29481_v5 }
  0x8a   :  { %26337 = vmatmul.mubr.f32.gmra.mxu1 %v29322_v11  ;;  %33659 = vst [vmem:[#allocation106_spill] sm:$0xff] %v29488_v0  ;;  %33662 = vst [vmem:[#allocation108_spill] sm:$0xff] %v29498_v59  ;;  %v321_v53 = vsel %vm163_vm0, %v135_v4, 0  ;;  %v33663_v11 = vand.u32 4294901760, %v29455_v40  ;;  %v29513_v4 = vsub.f32 %v312_v7, %v29488_v0 }
  0x8b   :  { %26339 = vmatprep.mubr.f32.mxu1 %v29325_v28  ;;  %26216 = vmatmul.mubr.f32.gmra.mxu0 %v865_v23  ;;  %33660 = vst [vmem:[#allocation107_spill] sm:$0xff] %v29490_v41  ;;  %v914_v28 = vsub.f32 %v29442_v63, %v33661_v25  ;;  %v137_v23 = vmul.f32 %v29093_v20, %v29093_v20  ;;  %v905_v12 = vand.u32 4294901760, %v904_v44  ;;  %v324_v44 = vsel %vm163_vm0, %v136_v60, 0 }
  0x8c   :  { %26218 = vmatprep.mubr.f32.mxu0 %v875_v22  ;;  %v924_v22 = vsub.f32 %v29455_v40, %v33663_v11  ;;  %33665 = vst [vmem:[#allocation109_spill] sm:$0xff] %v29513_v4  ;;  %v29516_v6 = vsub.f32 %v315_v9, %v29490_v41  ;;  %v29519_v11 = vand.u32 4294901760, %v321_v53  ;;  %v138_v25 = vmul.f32 %v29105_v62, %v29105_v62 }
  0x8d   :  { %v327_v7 = vsel %vm163_vm0, %v137_v23, 0  ;;  %v33669_v60 = vand.u32 4294901760, %v29484_v54  ;;  %v142_v23 = vmul.f32 %v29143_v43, %v29143_v43 }
  0x8e   :  { %26340 = vmatmul.mubr.f32.gmra.mxu1 %v29353_v3  ;;  %v33664_v3 = vand.u32 4294901760, %v29464_v35  ;;  %33666 = vst [vmem:[#allocation110_spill] sm:$0xff] %v29516_v6  ;;  %33667 = vst [vmem:[#allocation111_spill] sm:$0xff] %v29519_v11  ;;  %v925_v9 = vand.u32 4294901760, %v924_v22  ;;  %v29544_v22 = vsub.f32 %v321_v53, %v29519_v11 }
  0x8f   :  { %26342 = vmatprep.mubr.f32.mxu1 %v29361_v13  ;;  %26219 = vmatmul.mubr.f32.gmra.mxu0 %v885_v24  ;;  %v915_v13 = vand.u32 4294901760, %v914_v28  ;;  %v29525_v24 = vsub.f32 %v318_v8, %v29498_v59  ;;  %v944_v28 = vsub.f32 %v29481_v5, %v33405_v39  ;;  %v29546_v39 = vand.u32 4294901760, %v327_v7 }
  0x90   :  { %v934_v63 = vsub.f32 %v29464_v35, %v33664_v3  ;;  %26221 = vmatprep.mubr.f32.mxu0 %v895_v50  ;;  %v139_v3 = vmul.f32 %v29117_v37, %v29117_v37  ;;  %v954_v50 = vsub.f32 %v29484_v54, %v33669_v60  ;;  %33671 = vst [vmem:[#allocation114_spill] sm:$0xff] %v29544_v22  ;;  %v330_v5 = vsel %vm163_vm0, %v138_v25, 0 }
  0x91   :  { %33668 = vst [vmem:[#allocation112_spill] sm:$0xff] %v29525_v24  ;;  %33672 = vst [vmem:[#allocation115_spill] sm:$0xff] %v29546_v39  ;;  %v141_v60 = vmul.f32 %v29133_v30, %v29133_v30  ;;  %v945_v35 = vand.u32 4294901760, %v944_v28  ;;  %v33674_v25 = vand.u32 4294901760, %v29513_v4 }
  0x92   :  { %26343 = vmatmul.mubr.f32.gmra.mxu1 %v29371_v15  ;;  %v29537_v15 = vand.u32 4294901760, %v324_v44  ;;  %v935_v8 = vand.u32 4294901760, %v934_v63 }
  0x93   :  { %26345 = vmatprep.mubr.f32.mxu1 %v29391_v10  ;;  %26222 = vmatmul.mubr.f32.gmra.mxu0 %v905_v12  ;;  %v140_v10 = vmul.f32 %v29124_v61, %v29124_v61  ;;  %v333_v12 = vsel %vm163_vm0, %v139_v3, 0  ;;  %v964_v54 = vsub.f32 %v29513_v4, %v33674_v25  ;;  %v29566_v3 = vand.u32 4294901760, %v330_v5 }
  0x94   :  { %33670 = vst [vmem:[#allocation113_spill] sm:$0xff] %v29537_v15  ;;  %26224 = vmatprep.mubr.f32.mxu0 %v915_v13  ;;  %v955_v13 = vand.u32 4294901760, %v954_v50  ;;  %v29556_v53 = vsub.f32 %v324_v44, %v29537_v15  ;;  %v29571_v50 = vsub.f32 %v327_v7, %v29546_v39  ;;  %v33679_v25 = vand.u32 4294901760, %v29525_v24 }
  0x95   :  { %33676 = vst [vmem:[#allocation117_spill] sm:$0xff] %v29566_v3  ;;  %v336_v28 = vsel %vm163_vm0, %v140_v10, 0  ;;  %v342_v7 = vsel %vm163_vm0, %v142_v23, 0  ;;  %v965_v44 = vand.u32 4294901760, %v964_v54  ;;  %v33683_v10 = vand.u32 4294901760, %v29544_v22 }
  0x96   :  { %26346 = vmatmul.mubr.f32.gmra.mxu1 %v29399_v49  ;;  %33673 = vst [vmem:[#allocation116_spill] sm:$0xff] %v29556_v53  ;;  %v33675_v49 = vand.u32 4294901760, %v29516_v6  ;;  %33677 = vst [vmem:[#allocation118_spill] sm:$0xff] %v29571_v50 }
  0x97   :  { %26348 = vmatprep.mubr.f32.mxu1 %v29419_v55  ;;  %26225 = vmatmul.mubr.f32.gmra.mxu0 %v925_v9  ;;  %v29573_v55 = vand.u32 4294901760, %v333_v12  ;;  %v339_v9 = vsel %vm163_vm0, %v141_v60, 0  ;;  %v144_v60 = vmul.f32 %v29181_v27, %v29181_v27  ;;  %v994_v40 = vsub.f32 %v29544_v22, %v33683_v10 }
  0x98   :  { %v974_v63 = vsub.f32 %v29516_v6, %v33675_v49  ;;  %26227 = vmatprep.mubr.f32.mxu0 %v935_v8  ;;  %v984_v49 = vsub.f32 %v29525_v24, %v33679_v25  ;;  %v143_v6 = vmul.f32 %v29153_v21, %v29153_v21  ;;  %v29584_v8 = vand.u32 4294901760, %v336_v28  ;;  %v33682_v24 = vld [vmem:[#allocation70_spill] sm:$0xff] }
  0x99   :  { %33678 = vst [vmem:[#allocation119_spill] sm:$0xff] %v29573_v55  ;;  %v29592_v25 = vand.u32 4294901760, %v339_v9  ;;  %v145_v4 = vmul.f32 %v33682_v24, %v33682_v24  ;;  %v29601_v18 = vsub.f32 %v333_v12, %v29573_v55  ;;  %v348_v23 = vsel %vm163_vm0, %v144_v60, 0 }
  0x9a   :  { %26349 = vmatmul.mubr.f32.gmra.mxu1 %v29431_v38  ;;  %33680 = vst [vmem:[#allocation120_spill] sm:$0xff] %v29584_v8  ;;  %v29590_v38 = vsub.f32 %v330_v5, %v29566_v3  ;;  %v345_v5 = vsel %vm163_vm0, %v143_v6, 0  ;;  %v985_v54 = vand.u32 4294901760, %v984_v49  ;;  %v29612_v10 = vsub.f32 %v336_v28, %v29584_v8 }
  0x9b   :  { %26351 = vmatprep.mubr.f32.mxu1 %v29436_v2  ;;  %26228 = vmatmul.mubr.f32.gmra.mxu0 %v945_v35  ;;  %33681 = vst [vmem:[#allocation121_spill] sm:$0xff] %v29592_v25  ;;  %v975_v2 = vand.u32 4294901760, %v974_v63  ;;  %v29604_v35 = vand.u32 4294901760, %v342_v7  ;;  %v33685_v63 = vand.u32 4294901760, %v29556_v53  ;;  %v351_v6 = vsel %vm163_vm0, %v145_v4, 0 }
  0x9c   :  { %26230 = vmatprep.mubr.f32.mxu0 %v955_v13  ;;  %33686 = vst [vmem:[#allocation122_spill] sm:$0xff] %v29612_v10  ;;  %v146_v49 = vmul.f32 %v29218_v36, %v29218_v36  ;;  %v29626_v60 = vand.u32 4294901760, %v345_v5 }
  0x9d   :  { %33684 = vst [vmem:[#allocation70_spill] sm:$0xff] %v29604_v35  ;;  %v1004_v13 = vsub.f32 %v29556_v53, %v33685_v63  ;;  %v33687_v63 = vand.u32 4294901760, %v29571_v50  ;;  %v29631_v4 = vsub.f32 %v342_v7, %v29604_v35  ;;  %v33691_v53 = vand.u32 4294901760, %v29590_v38  ;;  %v28621_v7 = vld [vmem:[#allocation3 + $0x8] sm:$0xff] }
  0x9e   :  { %26352 = vmatmul.mubr.f32.gmra.mxu1 %v29457_v1  ;;  %v29617_v1 = vsub.f32 %v339_v9, %v29592_v25  ;;  %33688 = vst [vmem:[#allocation123_spill] sm:$0xff] %v29626_v60  ;;  %v29633_v9 = vand.u32 4294901760, %v348_v23 }
  0x9f   :  { %26354 = vmatprep.mubr.f32.mxu1 %v29459_v51  ;;  %26231 = vmatmul.mubr.f32.gmra.mxu0 %v965_v44  ;;  %v995_v51 = vand.u32 4294901760, %v994_v40  ;;  %v1014_v28 = vsub.f32 %v29571_v50, %v33687_v63  ;;  %v28620_v44 = vld [vmem:[#allocation3] sm:$0xff]  ;;  %v29637_v63 = vand.u32 4294901760, %v351_v6  ;;  %v1024_v50 = vsub.f32 %v29590_v38, %v33691_v53 }
  0xa0   :  { %26233 = vmatprep.mubr.f32.mxu0 %v975_v2  ;;  %v147_v12 = vmul.f32 %v28620_v44, %v29012_v42  ;;  %33689 = vst [vmem:[#allocation124_spill] sm:$0xff] %v29633_v9  ;;  %v1005_v2 = vand.u32 4294901760, %v1004_v13  ;;  %v354_v44 = vsel %vm163_vm0, %v146_v49, 0  ;;  %v33692_v13 = vand.u32 4294901760, %v29601_v18  ;;  %v28622_v42 = vld [vmem:[#allocation3 + $0x10] sm:$0xff] }
  0xa1   :  { %33690 = vst [vmem:[#allocation125_spill] sm:$0xff] %v29637_v63  ;;  %v1015_v22 = vand.u32 4294901760, %v1014_v28 }
  0xa2   :  { %26355 = vmatmul.mubr.f32.gmra.mxu1 %v29488_v0  ;;  %v148_v0 = vmul.f32 %v28621_v7, %v29019_v47  ;;  %v1034_v40 = vsub.f32 %v29601_v18, %v33692_v13  ;;  %v357_v49 = vsel %vm163_vm0, %v147_v12, 0  ;;  %v149_v47 = vmul.f32 %v28622_v42, %v29035_v48  ;;  %v28623_v48 = vld [vmem:[#allocation3 + $0x18] sm:$0xff] }
  0xa3   :  { %26357 = vmatprep.mubr.f32.mxu1 %v29490_v41  ;;  %26234 = vmatmul.mubr.f32.gmra.mxu0 %v985_v54  ;;  %v29649_v41 = vsub.f32 %v345_v5, %v29626_v60  ;;  %v29654_v54 = vsub.f32 %v348_v23, %v29633_v9  ;;  %v29663_v5 = vsub.f32 %v351_v6, %v29637_v63  ;;  %v29665_v7 = vand.u32 4294901760, %v354_v44  ;;  %v28624_v6 = vld [vmem:[#allocation3 + $0x20] sm:$0xff] }
  0xa4   :  { %26236 = vmatprep.mubr.f32.mxu0 %v995_v51  ;;  %v33693_v51 = vand.u32 4294901760, %v29612_v10  ;;  %v1025_v13 = vand.u32 4294901760, %v1024_v50  ;;  %v33695_v23 = vand.u32 4294901760, %v29617_v1  ;;  %v360_v53 = vsel %vm163_vm0, %v148_v0, 0  ;;  %v28626_v0 = vld [vmem:[#allocation3 + $0x30] sm:$0xff] }
  0xa5   :  { %33694 = vst [vmem:[#allocation126_spill] sm:$0xff] %v29665_v7  ;;  %v150_v42 = vmul.f32 %v28623_v48, %v29046_v58  ;;  %v33697_v50 = vand.u32 4294901760, %v29631_v4  ;;  %v29687_v48 = vand.u32 4294901760, %v360_v53 }
  0xa6   :  { %26358 = vmatmul.mubr.f32.gmra.mxu1 %v29498_v59  ;;  %v1044_v28 = vsub.f32 %v29612_v10, %v33693_v51  ;;  %v1054_v12 = vsub.f32 %v29617_v1, %v33695_v23  ;;  %v29673_v59 = vand.u32 4294901760, %v357_v49  ;;  %v151_v10 = vmul.f32 %v28624_v6, %v29048_v56  ;;  %v28625_v51 = vld [vmem:[#allocation3 + $0x28] sm:$0xff] }
  0xa7   :  { %26360 = vmatprep.mubr.f32.mxu1 %v29519_v11  ;;  %26237 = vmatmul.mubr.f32.gmra.mxu0 %v1005_v2  ;;  %v1035_v11 = vand.u32 4294901760, %v1034_v40  ;;  %v1064_v2 = vsub.f32 %v29631_v4, %v33697_v50  ;;  %v363_v23 = vsel %vm163_vm0, %v149_v47, 0  ;;  %v29685_v40 = vsub.f32 %v354_v44, %v29665_v7  ;;  %33698 = vst [vmem:[#allocation128_spill] sm:$0xff] %v29687_v48 }
  0xa8   :  { %26239 = vmatprep.mubr.f32.mxu0 %v1015_v22  ;;  %33696 = vst [vmem:[#allocation127_spill] sm:$0xff] %v29673_v59  ;;  %v1045_v58 = vand.u32 4294901760, %v1044_v28  ;;  %v1055_v56 = vand.u32 4294901760, %v1054_v12  ;;  %v366_v6 = vsel %vm163_vm0, %v150_v42, 0  ;;  %v152_v50 = vmul.f32 %v28625_v51, %v29064_v31 }
  0xa9   :  { %v153_v47 = vmul.f32 %v28626_v0, %v29093_v20  ;;  %v33699_v28 = vand.u32 4294901760, %v29649_v41  ;;  %v29696_v44 = vsub.f32 %v357_v49, %v29673_v59  ;;  %v1065_v12 = vand.u32 4294901760, %v1064_v2 }
  0xaa   :  { %26361 = vmatmul.mubr.f32.gmra.mxu1 %v29537_v15  ;;  %v33701_v31 = vand.u32 4294901760, %v29654_v54  ;;  %v33702_v20 = vand.u32 4294901760, %v29663_v5  ;;  %v29711_v51 = vsub.f32 %v360_v53, %v29687_v48  ;;  %v29713_v0 = vand.u32 4294901760, %v366_v6  ;;  %v28628_v53 = vld [vmem:[#allocation3 + $0x40] sm:$0xff] }
  0xab   :  { %26363 = vmatprep.mubr.f32.mxu1 %v29546_v39  ;;  %26240 = vmatmul.mubr.f32.gmra.mxu0 %v1025_v13  ;;  %v1074_v22 = vsub.f32 %v29649_v41, %v33699_v28  ;;  %v29698_v39 = vand.u32 4294901760, %v363_v23  ;;  %v369_v13 = vsel %vm163_vm0, %v151_v10, 0  ;;  %v372_v2 = vsel %vm163_vm0, %v152_v50, 0 }
  0xac   :  { %26242 = vmatprep.mubr.f32.mxu0 %v1035_v11  ;;  %v1084_v42 = vsub.f32 %v29654_v54, %v33701_v31  ;;  %v1094_v11 = vsub.f32 %v29663_v5, %v33702_v20  ;;  %33703 = vst [vmem:[#allocation130_spill] sm:$0xff] %v29713_v0  ;;  %v29715_v10 = vand.u32 4294901760, %v369_v13  ;;  %v375_v28 = vsel %vm163_vm0, %v153_v47, 0  ;;  %v28627_v31 = vld [vmem:[#allocation3 + $0x38] sm:$0xff] }
  0xad   :  { %33700 = vst [vmem:[#allocation129_spill] sm:$0xff] %v29698_v39  ;;  %v33458_v20 = vand.u32 4294901760, %v29696_v44  ;;  %v29722_v49 = vsub.f32 %v363_v23, %v29698_v39  ;;  %v155_v15 = vmul.f32 %v28628_v53, %v29117_v37  ;;  %v29728_v47 = vsub.f32 %v366_v6, %v29713_v0  ;;  %v28629_v53 = vld [vmem:[#allocation3 + $0x48] sm:$0xff] }
  0xae   :  { %26364 = vmatmul.mubr.f32.gmra.mxu1 %v29566_v3  ;;  %33704 = vst [vmem:[#allocation131_spill] sm:$0xff] %v29715_v10  ;;  %v1075_v3 = vand.u32 4294901760, %v1074_v22  ;;  %v1095_v50 = vand.u32 4294901760, %v1094_v11  ;;  %v29732_v22 = vand.u32 4294901760, %v375_v28  ;;  %v33707_v23 = vand.u32 4294901760, %v29685_v40 }
  0xaf   :  { %26366 = vmatprep.mubr.f32.mxu1 %v29573_v55  ;;  %26243 = vmatmul.mubr.f32.gmra.mxu0 %v1045_v58  ;;  %v154_v55 = vmul.f32 %v28627_v31, %v29105_v62  ;;  %v1085_v58 = vand.u32 4294901760, %v1084_v42  ;;  %v29730_v62 = vand.u32 4294901760, %v372_v2  ;;  %v33461_v37 = vand.u32 4294901760, %v29711_v51 }
  0xb0   :  { %26245 = vmatprep.mubr.f32.mxu0 %v1055_v56  ;;  %33706 = vst [vmem:[#allocation133_spill] sm:$0xff] %v29732_v22  ;;  %v1104_v56 = vsub.f32 %v29685_v40, %v33707_v23  ;;  %v29739_v31 = vsub.f32 %v369_v13, %v29715_v10  ;;  %v1114_v6 = vsub.f32 %v29696_v44, %v33458_v20  ;;  %v28630_v23 = vld [vmem:[#allocation3 + $0x50] sm:$0xff] }
  0xb1   :  { %33705 = vst [vmem:[#allocation132_spill] sm:$0xff] %v29730_v62  ;;  %v378_v42 = vsel %vm163_vm0, %v154_v55, 0  ;;  %v157_v13 = vmul.f32 %v28630_v23, %v29133_v30  ;;  %v29756_v20 = vsub.f32 %v375_v28, %v29732_v22 }
  0xb2   :  { %26367 = vmatmul.mubr.f32.gmra.mxu1 %v29584_v8  ;;  %v29758_v11 = vand.u32 4294901760, %v378_v42  ;;  %v1115_v23 = vand.u32 4294901760, %v1114_v6 }
  0xb3   :  { %26369 = vmatprep.mubr.f32.mxu1 %v29592_v25  ;;  %26246 = vmatmul.mubr.f32.gmra.mxu0 %v1065_v12  ;;  %v381_v12 = vsel %vm163_vm0, %v155_v15, 0  ;;  %v156_v25 = vmul.f32 %v28629_v53, %v29124_v61  ;;  %v1105_v15 = vand.u32 4294901760, %v1104_v56  ;;  %v1124_v61 = vsub.f32 %v29711_v51, %v33461_v37  ;;  %v28632_v37 = vld [vmem:[#allocation3 + $0x60] sm:$0xff] }
  0xb4   :  { %26248 = vmatprep.mubr.f32.mxu0 %v1075_v3  ;;  %v29753_v3 = vsub.f32 %v372_v2, %v29730_v62  ;;  %33708 = vst [vmem:[#allocation134_spill] sm:$0xff] %v29758_v11  ;;  %v29764_v53 = vand.u32 4294901760, %v381_v12  ;;  %v33710_v2 = vand.u32 4294901760, %v29722_v49  ;;  %v387_v56 = vsel %vm163_vm0, %v157_v13, 0 }
  0xb5   :  { %v384_v28 = vsel %vm163_vm0, %v156_v25, 0  ;;  %v159_v30 = vmul.f32 %v28632_v37, %v29153_v21 }
  0xb6   :  { %26370 = vmatmul.mubr.f32.gmra.mxu1 %v29604_v35  ;;  %33709 = vst [vmem:[#allocation135_spill] sm:$0xff] %v29764_v53  ;;  %v1134_v55 = vsub.f32 %v29722_v49, %v33710_v2  ;;  %v29781_v35 = vsub.f32 %v378_v42, %v29758_v11  ;;  %v29787_v21 = vsub.f32 %v381_v12, %v29764_v53  ;;  %v29789_v37 = vand.u32 4294901760, %v384_v28  ;;  %v28633_v2 = vld [vmem:[#allocation3 + $0x68] sm:$0xff] }
  0xb7   :  { %26372 = vmatprep.mubr.f32.mxu1 %v29626_v60  ;;  %26249 = vmatmul.mubr.f32.gmra.mxu0 %v1085_v58  ;;  %v28631_v60 = vld [vmem:[#allocation3 + $0x58] sm:$0xff]  ;;  %v160_v42 = vmul.f32 %v28633_v2, %v29181_v27 }
  0xb8   :  { %26251 = vmatprep.mubr.f32.mxu0 %v1095_v50  ;;  %v158_v58 = vmul.f32 %v28631_v60, %v29143_v43  ;;  %v33711_v50 = vand.u32 4294901760, %v29728_v47  ;;  %v1125_v43 = vand.u32 4294901760, %v1124_v61  ;;  %v33712_v60 = vand.u32 4294901760, %v29739_v31  ;;  %33713 = vst [vmem:[#allocation136_spill] sm:$0xff] %v29789_v37  ;;  %v28634_v61 = vld [vmem:[#allocation3 + $0x70] sm:$0xff] }
  0xba   :  { %26373 = vmatmul.mubr.f32.gmra.mxu1 %v29633_v9  ;;  %v1144_v6 = vsub.f32 %v29728_v47, %v33711_v50  ;;  %v1154_v13 = vsub.f32 %v29739_v31, %v33712_v60  ;;  %v1135_v50 = vand.u32 4294901760, %v1134_v55  ;;  %v390_v25 = vsel %vm163_vm0, %v158_v58, 0 }
  0xbb   :  { %26375 = vmatprep.mubr.f32.mxu1 %v29637_v63  ;;  %26252 = vmatmul.mubr.f32.gmra.mxu0 %v1105_v15  ;;  %v29791_v63 = vand.u32 4294901760, %v387_v56  ;;  %v393_v15 = vsel %vm163_vm0, %v159_v30, 0  ;;  %v161_v60 = vmul.f32 %v28634_v61, %v33682_v24  ;;  %v33716_v9 = vand.u32 4294901760, %v29756_v20 }
  0xbc   :  { %26254 = vmatprep.mubr.f32.mxu0 %v1115_v23  ;;  %v1145_v12 = vand.u32 4294901760, %v1144_v6  ;;  %v33715_v23 = vand.u32 4294901760, %v29753_v3  ;;  %v1155_v2 = vand.u32 4294901760, %v1154_v13  ;;  %v33472_v30 = vand.u32 4294901760, %v29787_v21 }
  0xbd   :  { %33714 = vst [vmem:[#allocation137_spill] sm:$0xff] %v29791_v63  ;;  %v1174_v58 = vsub.f32 %v29756_v20, %v33716_v9  ;;  %v29810_v24 = vand.u32 4294901760, %v390_v25  ;;  %v29813_v6 = vsub.f32 %v387_v56, %v29791_v63  ;;  %v29815_v61 = vand.u32 4294901760, %v393_v15  ;;  %v28635_v9 = vld [vmem:[#allocation3 + $0x78] sm:$0xff] }
  0xbe   :  { %26376 = vmatmul.mubr.f32.gmra.mxu1 %v29665_v7  ;;  %v1164_v55 = vsub.f32 %v29753_v3, %v33715_v23  ;;  %v29808_v7 = vsub.f32 %v384_v28, %v29789_v37  ;;  %v396_v23 = vsel %vm163_vm0, %v160_v42, 0  ;;  %v162_v27 = vmul.f32 %v28635_v9, %v29218_v36 }
  0xbf   :  { %26378 = vmatprep.mubr.f32.mxu1 %v29673_v59  ;;  %26255 = vmatmul.mubr.f32.gmra.mxu0 %v1125_v43  ;;  %33717 = vst [vmem:[#allocation138_spill] sm:$0xff] %v29810_v24  ;;  %33718 = vst [vmem:[#allocation139_spill] sm:$0xff] %v29815_v61  ;;  %v399_v43 = vsel %vm163_vm0, %v161_v60, 0  ;;  %v1175_v13 = vand.u32 4294901760, %v1174_v58  ;;  %v1194_v42 = vsub.f32 %v29787_v21, %v33472_v30  ;;  %v29832_v9 = vand.u32 4294901760, %v396_v23 }
  0xc0   :  { %26257 = vmatprep.mubr.f32.mxu0 %v1135_v50  ;;  %v1165_v28 = vand.u32 4294901760, %v1164_v55  ;;  %v33719_v50 = vand.u32 4294901760, %v29781_v35  ;;  %v33475_v59 = vand.u32 4294901760, %v29808_v7  ;;  %v29830_v36 = vsub.f32 %v390_v25, %v29810_v24 }
  0xc1   :  { %33720 = vst [vmem:[#allocation140_spill] sm:$0xff] %v29832_v9  ;;  %v29836_v55 = vsub.f32 %v393_v15, %v29815_v61  ;;  %v29838_v58 = vand.u32 4294901760, %v399_v43  ;;  %v29848_v30 = vsub.f32 %v396_v23, %v29832_v9  ;;  %v1195_v60 = vand.u32 4294901760, %v1194_v42 }
  0xc2   :  { %26379 = vmatmul.mubr.f32.gmra.mxu1 %v29687_v48  ;;  %v1184_v56 = vsub.f32 %v29781_v35, %v33719_v50  ;;  %v1204_v25 = vsub.f32 %v29808_v7, %v33475_v59 }
  0xc3   :  { %26381 = vmatprep.mubr.f32.mxu1 %v29698_v39  ;;  %26258 = vmatmul.mubr.f32.gmra.mxu0 %v1145_v12  ;;  %33721 = vst [vmem:[#allocation141_spill] sm:$0xff] %v29838_v58  ;;  %v402_v12 = vsel %vm163_vm0, %v162_v27, 0  ;;  %v33723_v27 = vand.u32 4294901760, %v29813_v6  ;;  %v33481_v42 = vand.u32 4294901760, %v29848_v30 }
  0xc4   :  { %26260 = vmatprep.mubr.f32.mxu0 %v1155_v2  ;;  %v1185_v50 = vand.u32 4294901760, %v1184_v56  ;;  %v33482_v2 = vand.u32 4294901760, %v29830_v36  ;;  %v29850_v15 = vand.u32 4294901760, %v402_v12  ;;  %v33478_v56 = vand.u32 4294901760, %v29836_v55 }
  0xc5   :  { %v1205_v23 = vand.u32 4294901760, %v1204_v25  ;;  %v1244_v25 = vsub.f32 %v29848_v30, %v33481_v42 }
  0xc6   :  { %26382 = vmatmul.mubr.f32.gmra.mxu1 %v29713_v0  ;;  %33722 = vst [vmem:[#allocation142_spill] sm:$0xff] %v29850_v15  ;;  %v1214_v0 = vsub.f32 %v29813_v6, %v33723_v27  ;;  %v29866_v59 = vsub.f32 %v402_v12, %v29850_v15 }
  0xc7   :  { %26384 = vmatprep.mubr.f32.mxu1 %v29715_v10  ;;  %26261 = vmatmul.mubr.f32.gmra.mxu0 %v1165_v28  ;;  %v29857_v28 = vsub.f32 %v399_v43, %v29838_v58  ;;  %v1234_v43 = vsub.f32 %v29836_v55, %v33478_v56  ;;  %v1245_v56 = vand.u32 4294901760, %v1244_v25  ;;  %v33726_v25 = vld [vmem:[#allocation23_spill] sm:$0xff] }
  0xc8   :  { %26263 = vmatprep.mubr.f32.mxu0 %v1175_v13  ;;  %v1224_v13 = vsub.f32 %v29830_v36, %v33482_v2  ;;  %v1215_v27 = vand.u32 4294901760, %v1214_v0  ;;  %v33479_v12 = vand.u32 4294901760, %v29866_v59  ;;  %v33766_v2 = vld [vmem:[#allocation60_spill] sm:$0xff] }
  0xc9   :  { %v1235_v0 = vand.u32 4294901760, %v1234_v43  ;;  %v33724_v43 = vld [vmem:[#allocation21_spill] sm:$0xff] }
  0xca   :  { %26385 = vmatmul.mubr.f32.gmra.mxu1 %v29730_v62  ;;  %v33480_v62 = vand.u32 4294901760, %v29857_v28 }
  0xcb   :  { %26387 = vmatprep.mubr.f32.mxu1 %v29732_v22  ;;  %26264 = vmatmul.mubr.f32.gmra.mxu0 %v1185_v50  ;;  %v1225_v50 = vand.u32 4294901760, %v1224_v13 }
  0xcc   :  { %26266 = vmatprep.mubr.f32.mxu0 %v1195_v60  ;;  %v1254_v60 = vsub.f32 %v29857_v28, %v33480_v62  ;;  %v33743_v62 = vld [vmem:[#allocation39_spill] sm:$0xff] }
  0xce   :  { %26388 = vmatmul.mubr.f32.gmra.mxu1 %v29758_v11  ;;  %v1255_v13 = vand.u32 4294901760, %v1254_v60  ;;  %v33728_v60 = vld [vmem:[#allocation22_spill] sm:$0xff] }
  0xcf   :  { %26390 = vmatprep.mubr.f32.mxu1 %v29764_v53  ;;  %26267 = vmatmul.mubr.f32.gmra.mxu0 %v1205_v23  ;;  %v1264_v23 = vsub.f32 %v29866_v59, %v33479_v12  ;;  %v33735_v12 = vld [vmem:[#allocation17_spill] sm:$0xff]  ;;  %v33791_v53 = vand.u32 4294901760, %v29345_v17 }
  0xd0   :  { %26269 = vmatprep.mubr.f32.mxu0 %v1215_v27 }
  0xd1   :  { %v1265_v27 = vand.u32 4294901760, %v1264_v23  ;;  %v33730_v23 = vld [vmem:[#allocation24_spill] sm:$0xff] }
  0xd2   :  { %26391 = vmatmul.mubr.f32.gmra.mxu1 %v29789_v37  ;;  %v33782_v37 = vand.u32 4294901760, %v29245_v33 }
  0xd3   :  { %26393 = vmatprep.mubr.f32.mxu1 %v29791_v63  ;;  %26270 = vmatmul.mubr.f32.gmra.mxu0 %v1225_v50  ;;  %v33725_v50 = vand.u32 4294901760, %v33724_v43 }
  0xd4   :  { %26272 = vmatprep.mubr.f32.mxu0 %v1235_v0  ;;  %v33727_v0 = vld [vmem:[#allocation25_spill] sm:$0xff] }
  0xd6   :  { %26394 = vmatmul.mubr.f32.gmra.mxu1 %v29810_v24 }
  0xd7   :  { %26396 = vmatprep.mubr.f32.mxu1 %v29815_v61  ;;  %26273 = vmatmul.mubr.f32.gmra.mxu0 %v1245_v56  ;;  %v33729_v56 = vand.u32 4294901760, %v33726_v25 }
  0xd8   :  { %26275 = vmatprep.mubr.f32.mxu0 %v1255_v13  ;;  %v33731_v13 = vand.u32 4294901760, %v33727_v0 }
  0xda   :  { %26397 = vmatmul.mubr.f32.gmra.mxu1 %v29832_v9  ;;  %v33768_v9 = vand.u32 4294901760, %v33766_v2 }
  0xdb   :  { %26399 = vmatprep.mubr.f32.mxu1 %v29838_v58  ;;  %26276 = vmatmul.mubr.f32.gmra.mxu0 %v1265_v27  ;;  %v33732_v27 = vld [vmem:[#allocation29_spill] sm:$0xff] }
  0xdc   :  { %26406 = vmatprep.mubr.f32.mxu0 %v33724_v43  ;;  %v33733_v43 = vld [vmem:[#allocation16_spill] sm:$0xff] }
  0xde   :  { %26400 = vmatmul.mubr.f32.gmra.mxu1 %v29850_v15 }
  0xdf   :  { %26530 = vmatprep.mubr.f32.mxu1 %v33725_v50  ;;  %26407 = vmatmul.mubr.f32.vlgmr.msra.gmra.mxu0 %v33726_v25  ;;  %v33734_v50 = vld [vmem:[#allocation30_spill] sm:$0xff] }
  0xe0   :  { %26409 = vmatprep.mubr.f32.mxu0 %v33727_v0  ;;  %26651 = vmatpush3.msra.mxu0 %v33728_v60  ;;  %v33736_v60 = vand.u32 4294901760, %v33732_v27  ;;  %v33737_v25 = vand.u32 4294901760, %v33734_v50  ;;  %v33738_v0 = vld [vmem:[#allocation31_spill] sm:$0xff] }
  0xe1   :  { %26652 = vmatprep.subr.mxu0 %v33730_v23 }
  0xe2   :  { %26531 = vmatmul.mubr.f32.vlgmr.msra.gmra.mxu1 %v33729_v56  ;;  %26653 = vmatpush3.msra.mxu0 %v33730_v23  ;;  %v33739_v56 = vld [vmem:[#allocation34_spill] sm:$0xff]  ;;  %v33740_v23 = vand.u32 4294901760, %v33738_v0 }
  0xe3   :  { %26533 = vmatprep.mubr.f32.mxu1 %v33731_v13  ;;  %26410 = vmatmul.mubr.f32.gmra.mxu0 %v33732_v27  ;;  %v33741_v13 = vand.u32 4294901760, %v33739_v56 }
  0xe4   :  { %26775 = vmatpush3.msra.mxu1 %v33733_v43  ;;  %26412 = vmatprep.mubr.f32.mxu0 %v33734_v50  ;;  %v33742_v43 = vld [vmem:[#allocation35_spill] sm:$0xff]  ;;  %v33745_v50 = vand.u32 4294901760, %v33743_v62 }
  0xe5   :  { %26776 = vmatprep.subr.mxu1 %v33735_v12  ;;  %v33744_v27 = vand.u32 4294901760, %v33742_v43 }
  0xe6   :  { %26534 = vmatmul.mubr.f32.gmra.mxu1 %v33736_v60  ;;  %v33747_v60 = vld [vmem:[#allocation41_spill] sm:$0xff] }
  0xe7   :  { %26536 = vmatprep.mubr.f32.mxu1 %v33737_v25  ;;  %26777 = vmatpush3.msra.mxu1 %v33735_v12  ;;  %v33746_v12 = vld [vmem:[#allocation40_spill] sm:$0xff] }
  0xe8   :  { %26413 = vmatmul.mubr.f32.gmra.mxu0 %v33738_v0  ;;  %v33748_v25 = vand.u32 4294901760, %v33746_v12  ;;  %v33749_v0 = vand.u32 4294901760, %v33747_v60 }
  0xe9   :  { %26415 = vmatprep.mubr.f32.mxu0 %v33739_v56  ;;  %v33750_v56 = vld [vmem:[#allocation45_spill] sm:$0xff] }
  0xea   :  { %26537 = vmatmul.mubr.f32.gmra.mxu1 %v33740_v23  ;;  %v33751_v23 = vld [vmem:[#allocation46_spill] sm:$0xff] }
  0xeb   :  { %26539 = vmatprep.mubr.f32.mxu1 %v33741_v13  ;;  %v33752_v13 = vand.u32 4294901760, %v33750_v56 }
  0xec   :  { %26416 = vmatmul.mubr.f32.gmra.mxu0 %v33742_v43  ;;  %v33754_v43 = vld [vmem:[#allocation47_spill] sm:$0xff] }
  0xed   :  { %26418 = vmatprep.mubr.f32.mxu0 %v33743_v62  ;;  %v33753_v62 = vand.u32 4294901760, %v33751_v23 }
  0xee   :  { %26540 = vmatmul.mubr.f32.gmra.mxu1 %v33744_v27  ;;  %v33755_v27 = vld [vmem:[#allocation49_spill] sm:$0xff] }
  0xef   :  { %26542 = vmatprep.mubr.f32.mxu1 %v33745_v50  ;;  %v33756_v50 = vand.u32 4294901760, %v33754_v43 }
  0xf0   :  { %26419 = vmatmul.mubr.f32.gmra.mxu0 %v33746_v12  ;;  %v33757_v12 = vand.u32 4294901760, %v33755_v27 }
  0xf1   :  { %26421 = vmatprep.mubr.f32.mxu0 %v33747_v60  ;;  %v33758_v60 = vld [vmem:[#allocation52_spill] sm:$0xff] }
  0xf2   :  { %26543 = vmatmul.mubr.f32.gmra.mxu1 %v33748_v25  ;;  %v33759_v25 = vld [vmem:[#allocation54_spill] sm:$0xff] }
  0xf3   :  { %26545 = vmatprep.mubr.f32.mxu1 %v33749_v0  ;;  %v33760_v0 = vand.u32 4294901760, %v33758_v60 }
  0xf4   :  { %26422 = vmatmul.mubr.f32.gmra.mxu0 %v33750_v56  ;;  %v33761_v56 = vand.u32 4294901760, %v33759_v25 }
  0xf5   :  { %26424 = vmatprep.mubr.f32.mxu0 %v33751_v23 }
  0xf6   :  { %26546 = vmatmul.mubr.f32.gmra.mxu1 %v33752_v13  ;;  %v33762_v13 = vld [vmem:[#allocation56_spill] sm:$0xff] }
  0xf7   :  { %26548 = vmatprep.mubr.f32.mxu1 %v33753_v62  ;;  %v33763_v62 = vld [vmem:[#allocation58_spill] sm:$0xff] }
  0xf8   :  { %26425 = vmatmul.mubr.f32.gmra.mxu0 %v33754_v43  ;;  %v33765_v42 = vand.u32 4294901760, %v33763_v62 }
  0xf9   :  { %26427 = vmatprep.mubr.f32.mxu0 %v33755_v27  ;;  %v33764_v27 = vand.u32 4294901760, %v33762_v13 }
  0xfa   :  { %26549 = vmatmul.mubr.f32.gmra.mxu1 %v33756_v50 }
  0xfb   :  { %26551 = vmatprep.mubr.f32.mxu1 %v33757_v12 }
  0xfc   :  { %26428 = vmatmul.mubr.f32.gmra.mxu0 %v33758_v60 }
  0xfd   :  { %26430 = vmatprep.mubr.f32.mxu0 %v33759_v25 }
  0xfe   :  { %26552 = vmatmul.mubr.f32.gmra.mxu1 %v33760_v0 }
  0xff   :  { %26554 = vmatprep.mubr.f32.mxu1 %v33761_v56  ;;  %v26160_v23 = vpop.f32.mrf.mxu0  ;;  %v33767_v56 = vld [vmem:[#allocation62_spill] sm:$0xff] }
 0x100   :  { %26431 = vmatmul.mubr.f32.gmra.mxu0 %v33762_v13  ;;  %v26284_v50 = vpop.f32.mrf.mxu1 }
 0x101   :  { %26433 = vmatprep.mubr.f32.mxu0 %v33763_v62  ;;  %v477_v43 = vpop.f32.mrf.mxu0  ;;  %v29952_v12 = vadd.f32 %v26284_v50, %v26160_v23  ;;  %v33769_v23 = vand.u32 4294901760, %v33767_v56  ;;  %v33770_v50 = vld [vmem:[#allocation64_spill] sm:$0xff] }
 0x102   :  { %26555 = vmatmul.mubr.f32.gmra.mxu1 %v33764_v27  ;;  %v1348_v0 = vpop.f32.mrf.mxu1  ;;  %v33772_v24 = vand.u32 4294901760, %v33770_v50 }
 0x103   :  { %26557 = vmatprep.mubr.f32.mxu1 %v33765_v42  ;;  %v26163_v60 = vpop.f32.mrf.mxu0  ;;  %v29957_v25 = vadd.f32 %v1348_v0, %v477_v43  ;;  %v33771_v43 = vld [vmem:[#allocation66_spill] sm:$0xff] }
 0x104   :  { %26434 = vmatmul.mubr.f32.gmra.mxu0 %v33766_v2 }
 0x105   :  { %26436 = vmatprep.mubr.f32.mxu0 %v33767_v56  ;;  %v497_v15 = vpop.f32.mrf.mxu0  ;;  %v26287_v58 = vpop.f32.mrf.mxu1 }
 0x106   :  { %26558 = vmatmul.mubr.f32.gmra.mxu1 %v33768_v9  ;;  %v29962_v13 = vadd.f32 %v26287_v58, %v26163_v60  ;;  %v33773_v9 = vand.u32 4294901760, %v33771_v43 }
 0x107   :  { %26560 = vmatprep.mubr.f32.mxu1 %v33769_v23  ;;  %v26166_v62 = vpop.f32.mrf.mxu0  ;;  %v1360_v42 = vpop.f32.mrf.mxu1 }
 0x108   :  { %26437 = vmatmul.mubr.f32.gmra.mxu0 %v33770_v50  ;;  %v29967_v27 = vadd.f32 %v1360_v42, %v497_v15  ;;  %v33774_v42 = vand.u32 4294901760, %v29164_v45 }
 0x109   :  { %26439 = vmatprep.mubr.f32.mxu0 %v33771_v43  ;;  %v517_v0 = vpop.f32.mrf.mxu0 }
 0x10a   :  { %v26290_v61 = vpop.f32.mrf.mxu1  ;;  %26561 = vmatmul.mubr.f32.gmra.mxu1 %v33772_v24  ;;  %v33775_v24 = vand.u32 4294901760, %v29177_v52 }
 0x10b   :  { %v29972_v2 = vadd.f32 %v26290_v61, %v26166_v62  ;;  %26563 = vmatprep.mubr.f32.mxu1 %v33773_v9  ;;  %v26169_v58 = vpop.f32.mrf.mxu0 }
 0x10c   :  { %v1372_v60 = vpop.f32.mrf.mxu1  ;;  %26440 = vmatmul.mubr.f32.gmra.mxu0 %v29164_v45 }
 0x10d   :  { %v29977_v56 = vadd.f32 %v1372_v60, %v517_v0  ;;  %26442 = vmatprep.mubr.f32.mxu0 %v29177_v52  ;;  %v537_v15 = vpop.f32.mrf.mxu0  ;;  %v33776_v60 = vand.u32 4294901760, %v29199_v29 }
 0x10e   :  { %v26293_v23 = vpop.f32.mrf.mxu1  ;;  %26564 = vmatmul.mubr.f32.gmra.mxu1 %v33774_v42  ;;  %v33778_v42 = vld [vmem:[#allocation73_spill] sm:$0xff] }
 0x10f   :  { %v29982_v50 = vadd.f32 %v26293_v23, %v26169_v58  ;;  %26566 = vmatprep.mubr.f32.mxu1 %v33775_v24  ;;  %v26172_v61 = vpop.f32.mrf.mxu0  ;;  %v33777_v58 = vand.u32 4294901760, %v29207_v16  ;;  %v33779_v63 = vand.u32 4294901760, %v33778_v42 }
 0x110   :  { %v1384_v62 = vpop.f32.mrf.mxu1  ;;  %26443 = vmatmul.mubr.f32.gmra.mxu0 %v29199_v29 }
 0x111   :  { %v29987_v43 = vadd.f32 %v1384_v62, %v537_v15  ;;  %26445 = vmatprep.mubr.f32.mxu0 %v29207_v16  ;;  %v557_v0 = vpop.f32.mrf.mxu0 }
 0x112   :  { %v26296_v9 = vpop.f32.mrf.mxu1  ;;  %26567 = vmatmul.mubr.f32.gmra.mxu1 %v33776_v60 }
 0x113   :  { %v29992_v45 = vadd.f32 %v26296_v9, %v26172_v61  ;;  %26569 = vmatprep.mubr.f32.mxu1 %v33777_v58  ;;  %v26175_v52 = vpop.f32.mrf.mxu0  ;;  %v33780_v61 = vand.u32 4294901760, %v29216_v26 }
 0x114   :  { %v1396_v23 = vpop.f32.mrf.mxu1  ;;  %26446 = vmatmul.mubr.f32.gmra.mxu0 %v33778_v42 }
 0x115   :  { %v29997_v24 = vadd.f32 %v1396_v23, %v557_v0  ;;  %26448 = vmatprep.mubr.f32.mxu0 %v29216_v26  ;;  %v577_v15 = vpop.f32.mrf.mxu0  ;;  %v33781_v0 = vld [vmem:[#allocation76_spill] sm:$0xff] }
 0x116   :  { %v26299_v62 = vpop.f32.mrf.mxu1  ;;  %26570 = vmatmul.mubr.f32.gmra.mxu1 %v33779_v63  ;;  %v33783_v63 = vand.u32 4294901760, %v33781_v0 }
 0x117   :  { %v30002_v29 = vadd.f32 %v26299_v62, %v26175_v52  ;;  %26572 = vmatprep.mubr.f32.mxu1 %v33780_v61  ;;  %v26178_v16 = vpop.f32.mrf.mxu0 }
 0x118   :  { %v1408_v9 = vpop.f32.mrf.mxu1  ;;  %26449 = vmatmul.mubr.f32.gmra.mxu0 %v29245_v33 }
 0x119   :  { %v30007_v60 = vadd.f32 %v1408_v9, %v577_v15  ;;  %26451 = vmatprep.mubr.f32.mxu0 %v33781_v0  ;;  %v597_v58 = vpop.f32.mrf.mxu0  ;;  %v33784_v9 = vand.u32 4294901760, %v29280_v32 }
 0x11a   :  { %v26302_v23 = vpop.f32.mrf.mxu1  ;;  %26573 = vmatmul.mubr.f32.gmra.mxu1 %v33782_v37  ;;  %v33785_v37 = vand.u32 4294901760, %v29287_v14 }
 0x11b   :  { %v30012_v42 = vadd.f32 %v26302_v23, %v26178_v16  ;;  %26575 = vmatprep.mubr.f32.mxu1 %v33783_v63  ;;  %v26181_v26 = vpop.f32.mrf.mxu0 }
 0x11c   :  { %v1420_v52 = vpop.f32.mrf.mxu1  ;;  %26452 = vmatmul.mubr.f32.gmra.mxu0 %v29280_v32 }
 0x11d   :  { %v30017_v62 = vadd.f32 %v1420_v52, %v597_v58  ;;  %26454 = vmatprep.mubr.f32.mxu0 %v29287_v14  ;;  %v617_v15 = vpop.f32.mrf.mxu0  ;;  %v33786_v52 = vand.u32 4294901760, %v29305_v57 }
 0x11e   :  { %v26305_v61 = vpop.f32.mrf.mxu1  ;;  %26576 = vmatmul.mubr.f32.gmra.mxu1 %v33784_v9 }
 0x11f   :  { %v30022_v33 = vadd.f32 %v26305_v61, %v26181_v26  ;;  %26578 = vmatprep.mubr.f32.mxu1 %v33785_v37  ;;  %v26184_v16 = vpop.f32.mrf.mxu0  ;;  %v33787_v26 = vand.u32 4294901760, %v29312_v19 }
 0x120   :  { %v1432_v0 = vpop.f32.mrf.mxu1  ;;  %26455 = vmatmul.mubr.f32.gmra.mxu0 %v29305_v57 }
 0x121   :  { %v30027_v23 = vadd.f32 %v1432_v0, %v617_v15  ;;  %26457 = vmatprep.mubr.f32.mxu0 %v29312_v19  ;;  %v637_v58 = vpop.f32.mrf.mxu0  ;;  %v33788_v0 = vand.u32 4294901760, %v29320_v46 }
 0x122   :  { %v26308_v63 = vpop.f32.mrf.mxu1  ;;  %26579 = vmatmul.mubr.f32.gmra.mxu1 %v33786_v52 }
 0x123   :  { %v30032_v32 = vadd.f32 %v26308_v63, %v26184_v16  ;;  %26581 = vmatprep.mubr.f32.mxu1 %v33787_v26  ;;  %v26187_v14 = vpop.f32.mrf.mxu0  ;;  %v33789_v16 = vand.u32 4294901760, %v29339_v34 }
 0x124   :  { %v1444_v61 = vpop.f32.mrf.mxu1  ;;  %26458 = vmatmul.mubr.f32.gmra.mxu0 %v29320_v46 }
 0x125   :  { %v30037_v9 = vadd.f32 %v1444_v61, %v637_v58  ;;  %26460 = vmatprep.mubr.f32.mxu0 %v29339_v34  ;;  %v657_v15 = vpop.f32.mrf.mxu0  ;;  %v33790_v58 = vld [vmem:[#allocation85_spill] sm:$0xff] }
 0x126   :  { %v26311_v37 = vpop.f32.mrf.mxu1  ;;  %26582 = vmatmul.mubr.f32.gmra.mxu1 %v33788_v0  ;;  %v33793_v0 = vld [vmem:[#allocation89_spill] sm:$0xff] }
 0x127   :  { %v30042_v57 = vadd.f32 %v26311_v37, %v26187_v14  ;;  %26584 = vmatprep.mubr.f32.mxu1 %v33789_v16  ;;  %v26190_v19 = vpop.f32.mrf.mxu0  ;;  %v33792_v14 = vand.u32 4294901760, %v33790_v58  ;;  %v33795_v22 = vand.u32 4294901760, %v33793_v0 }
 0x128   :  { %v1456_v63 = vpop.f32.mrf.mxu1  ;;  %26461 = vmatmul.mubr.f32.gmra.mxu0 %v29345_v17 }
 0x129   :  { %v30047_v52 = vadd.f32 %v1456_v63, %v657_v15  ;;  %26463 = vmatprep.mubr.f32.mxu0 %v33790_v58  ;;  %v677_v26 = vpop.f32.mrf.mxu0  ;;  %v33794_v15 = vld [vmem:[#allocation90_spill] sm:$0xff] }
 0x12a   :  { %v26314_v61 = vpop.f32.mrf.mxu1  ;;  %26585 = vmatmul.mubr.f32.gmra.mxu1 %v33791_v53  ;;  %v33796_v53 = vand.u32 4294901760, %v33794_v15 }
 0x12b   :  { %v30052_v46 = vadd.f32 %v26314_v61, %v26190_v19  ;;  %26587 = vmatprep.mubr.f32.mxu1 %v33792_v14  ;;  %v26193_v34 = vpop.f32.mrf.mxu0  ;;  %v33797_v61 = vld [vmem:[#allocation92_spill] sm:$0xff] }
 0x12c   :  { %v1468_v37 = vpop.f32.mrf.mxu1  ;;  %26464 = vmatmul.mubr.f32.gmra.mxu0 %v33793_v0  ;;  %v33799_v39 = vand.u32 4294901760, %v33797_v61 }
 0x12d   :  { %v30057_v16 = vadd.f32 %v1468_v37, %v677_v26  ;;  %26466 = vmatprep.mubr.f32.mxu0 %v33794_v15  ;;  %v697_v63 = vpop.f32.mrf.mxu0  ;;  %v33798_v26 = vld [vmem:[#allocation94_spill] sm:$0xff]  ;;  %v33802_v15 = vld [vmem:[#allocation96_spill] sm:$0xff] }
 0x12e   :  { %v26317_v11 = vpop.f32.mrf.mxu1  ;;  %26588 = vmatmul.mubr.f32.gmra.mxu1 %v33795_v22  ;;  %v33801_v22 = vand.u32 4294901760, %v33798_v26  ;;  %v33805_v8 = vand.u32 4294901760, %v33802_v15 }
 0x12f   :  { %v30062_v17 = vadd.f32 %v26317_v11, %v26193_v34  ;;  %26590 = vmatprep.mubr.f32.mxu1 %v33796_v53  ;;  %v26196_v19 = vpop.f32.mrf.mxu0 }
 0x130   :  { %v1480_v58 = vpop.f32.mrf.mxu1  ;;  %26467 = vmatmul.mubr.f32.gmra.mxu0 %v33797_v61 }
 0x131   :  { %v30067_v14 = vadd.f32 %v1480_v58, %v697_v63  ;;  %26469 = vmatprep.mubr.f32.mxu0 %v33798_v26  ;;  %v717_v37 = vpop.f32.mrf.mxu0  ;;  %v33804_v63 = vld [vmem:[#allocation99_spill] sm:$0xff]  ;;  %v33808_v26 = vld [vmem:[#allocation100_spill] sm:$0xff] }
 0x132   :  { %v26320_v10 = vpop.f32.mrf.mxu1  ;;  %26591 = vmatmul.mubr.f32.gmra.mxu1 %v33799_v39  ;;  %v33807_v39 = vand.u32 4294901760, %v33804_v63 }
 0x133   :  { %v30072_v0 = vadd.f32 %v26320_v10, %v26196_v19  ;;  %26593 = vmatprep.mubr.f32.mxu1 %v33801_v22  ;;  %v26199_v11 = vpop.f32.mrf.mxu0 }
 0x134   :  { %v1492_v34 = vpop.f32.mrf.mxu1  ;;  %26470 = vmatmul.mubr.f32.gmra.mxu0 %v33802_v15 }
 0x135   :  { %33800 = vst [vmem:[#allocation21_spill] sm:$0xff] %v30072_v0  ;;  %v30077_v53 = vadd.f32 %v1492_v34, %v717_v37  ;;  %26472 = vmatprep.mubr.f32.mxu0 %v33804_v63  ;;  %v737_v58 = vpop.f32.mrf.mxu0  ;;  %v33810_v37 = vld [vmem:[#allocation103_spill] sm:$0xff]  ;;  %v33811_v0 = vand.u32 4294901760, %v33808_v26  ;;  %v33814_v63 = vld [vmem:[#allocation104_spill] sm:$0xff] }
 0x136   :  { %v26323_v48 = vpop.f32.mrf.mxu1  ;;  %26594 = vmatmul.mubr.f32.gmra.mxu1 %v33805_v8  ;;  %v33813_v8 = vand.u32 4294901760, %v33810_v37 }
 0x137   :  { %33803 = vst [vmem:[#allocation23_spill] sm:$0xff] %v30077_v53  ;;  %v30082_v61 = vadd.f32 %v26323_v48, %v26199_v11  ;;  %26596 = vmatprep.mubr.f32.mxu1 %v33807_v39  ;;  %v26202_v10 = vpop.f32.mrf.mxu0 }
 0x138   :  { %v1504_v19 = vpop.f32.mrf.mxu1  ;;  %26473 = vmatmul.mubr.f32.gmra.mxu0 %v33808_v26 }
 0x139   :  { %33806 = vst [vmem:[#allocation25_spill] sm:$0xff] %v30082_v61  ;;  %v30087_v22 = vadd.f32 %v1504_v19, %v737_v58  ;;  %26475 = vmatprep.mubr.f32.mxu0 %v33810_v37  ;;  %v757_v34 = vpop.f32.mrf.mxu0  ;;  %v33816_v58 = vld [vmem:[#allocation105_spill] sm:$0xff]  ;;  %v33817_v61 = vand.u32 4294901760, %v33814_v63 }
 0x13a   :  { %v26326_v53 = vpop.f32.mrf.mxu1  ;;  %26597 = vmatmul.mubr.f32.gmra.mxu1 %v33811_v0  ;;  %v33819_v0 = vand.u32 4294901760, %v33816_v58  ;;  %v33820_v37 = vld [vmem:[#allocation109_spill] sm:$0xff] }
 0x13b   :  { %33809 = vst [vmem:[#allocation22_spill] sm:$0xff] %v30087_v22  ;;  %v30092_v15 = vadd.f32 %v26326_v53, %v26202_v10  ;;  %26599 = vmatprep.mubr.f32.mxu1 %v33813_v8  ;;  %v26205_v48 = vpop.f32.mrf.mxu0 }
 0x13c   :  { %v1516_v11 = vpop.f32.mrf.mxu1  ;;  %26476 = vmatmul.mubr.f32.gmra.mxu0 %v33814_v63 }
 0x13d   :  { %33812 = vst [vmem:[#allocation24_spill] sm:$0xff] %v30092_v15  ;;  %v30097_v39 = vadd.f32 %v1516_v11, %v757_v34  ;;  %26478 = vmatprep.mubr.f32.mxu0 %v33816_v58  ;;  %v777_v19 = vpop.f32.mrf.mxu0  ;;  %v33822_v34 = vld [vmem:[#allocation110_spill] sm:$0xff]  ;;  %v33823_v15 = vand.u32 4294901760, %v33820_v37  ;;  %v33826_v58 = vld [vmem:[#allocation112_spill] sm:$0xff] }
 0x13e   :  { %v26329_v22 = vpop.f32.mrf.mxu1  ;;  %26600 = vmatmul.mubr.f32.gmra.mxu1 %v33817_v61  ;;  %v33825_v61 = vand.u32 4294901760, %v33822_v34 }
 0x13f   :  { %33815 = vst [vmem:[#allocation29_spill] sm:$0xff] %v30097_v39  ;;  %v30102_v26 = vadd.f32 %v26329_v22, %v26205_v48  ;;  %26602 = vmatprep.mubr.f32.mxu1 %v33819_v0  ;;  %v26208_v53 = vpop.f32.mrf.mxu0 }
 0x140   :  { %v1528_v10 = vpop.f32.mrf.mxu1  ;;  %26479 = vmatmul.mubr.f32.gmra.mxu0 %v33820_v37 }
 0x141   :  { %33818 = vst [vmem:[#allocation16_spill] sm:$0xff] %v30102_v26  ;;  %v30107_v8 = vadd.f32 %v1528_v10, %v777_v19  ;;  %26481 = vmatprep.mubr.f32.mxu0 %v33822_v34  ;;  %v797_v11 = vpop.f32.mrf.mxu0  ;;  %v33828_v19 = vld [vmem:[#allocation114_spill] sm:$0xff]  ;;  %v33829_v26 = vand.u32 4294901760, %v33826_v58  ;;  %v33831_v34 = vld [vmem:[#allocation116_spill] sm:$0xff] }
 0x142   :  { %v26332_v39 = vpop.f32.mrf.mxu1  ;;  %26603 = vmatmul.mubr.f32.gmra.mxu1 %v33823_v15  ;;  %v33830_v15 = vand.u32 4294901760, %v33828_v19 }
 0x143   :  { %33821 = vst [vmem:[#allocation30_spill] sm:$0xff] %v30107_v8  ;;  %v30112_v63 = vadd.f32 %v26332_v39, %v26208_v53  ;;  %26605 = vmatprep.mubr.f32.mxu1 %v33825_v61  ;;  %v26211_v22 = vpop.f32.mrf.mxu0 }
 0x144   :  { %v1540_v48 = vpop.f32.mrf.mxu1  ;;  %26482 = vmatmul.mubr.f32.gmra.mxu0 %v33826_v58 }
 0x145   :  { %33824 = vst [vmem:[#allocation17_spill] sm:$0xff] %v30112_v63  ;;  %v30117_v0 = vadd.f32 %v1540_v48, %v797_v11  ;;  %26484 = vmatprep.mubr.f32.mxu0 %v33828_v19  ;;  %v817_v10 = vpop.f32.mrf.mxu0  ;;  %v33832_v11 = vld [vmem:[#allocation118_spill] sm:$0xff]  ;;  %v33833_v63 = vand.u32 4294901760, %v33831_v34 }
 0x146   :  { %v26335_v8 = vpop.f32.mrf.mxu1  ;;  %26606 = vmatmul.mubr.f32.gmra.mxu1 %v33829_v26  ;;  %v33834_v26 = vand.u32 4294901760, %v33832_v11 }
 0x147   :  { %33827 = vst [vmem:[#allocation31_spill] sm:$0xff] %v30117_v0  ;;  %v30122_v37 = vadd.f32 %v26335_v8, %v26211_v22  ;;  %26608 = vmatprep.mubr.f32.mxu1 %v33830_v15  ;;  %v26214_v39 = vpop.f32.mrf.mxu0 }
 0x148   :  { %v1552_v53 = vpop.f32.mrf.mxu1  ;;  %26485 = vmatmul.mubr.f32.gmra.mxu0 %v33831_v34 }
 0x149   :  { %v30127_v61 = vadd.f32 %v1552_v53, %v817_v10  ;;  %26487 = vmatprep.mubr.f32.mxu0 %v33832_v11  ;;  %v837_v48 = vpop.f32.mrf.mxu0  ;;  %v33836_v53 = vand.u32 4294901760, %v29590_v38  ;;  %v33838_v11 = vld [vmem:[#allocation122_spill] sm:$0xff] }
 0x14a   :  { %v26338_v0 = vpop.f32.mrf.mxu1  ;;  %26609 = vmatmul.mubr.f32.gmra.mxu1 %v33833_v63  ;;  %v33837_v63 = vand.u32 4294901760, %v29601_v18 }
 0x14b   :  { %v30132_v58 = vadd.f32 %v26338_v0, %v26214_v39  ;;  %26611 = vmatprep.mubr.f32.mxu1 %v33834_v26  ;;  %v26217_v8 = vpop.f32.mrf.mxu0 }
 0x14c   :  { %v1564_v22 = vpop.f32.mrf.mxu1  ;;  %26488 = vmatmul.mubr.f32.gmra.mxu0 %v29590_v38 }
 0x14d   :  { %v30137_v19 = vadd.f32 %v1564_v22, %v837_v48  ;;  %26490 = vmatprep.mubr.f32.mxu0 %v29601_v18  ;;  %v857_v10 = vpop.f32.mrf.mxu0 }
 0x14e   :  { %v26341_v15 = vpop.f32.mrf.mxu1  ;;  %26612 = vmatmul.mubr.f32.gmra.mxu1 %v33836_v53 }
 0x14f   :  { %33835 = vst [vmem:[#allocation34_spill] sm:$0xff] %v30137_v19  ;;  %v30142_v34 = vadd.f32 %v26341_v15, %v26217_v8  ;;  %26614 = vmatprep.mubr.f32.mxu1 %v33837_v63  ;;  %v26220_v0 = vpop.f32.mrf.mxu0  ;;  %v33839_v19 = vand.u32 4294901760, %v33838_v11  ;;  %v33840_v8 = vand.u32 4294901760, %v29617_v1 }
 0x150   :  { %v1576_v39 = vpop.f32.mrf.mxu1  ;;  %26491 = vmatmul.mubr.f32.gmra.mxu0 %v33838_v11 }
 0x151   :  { %v30147_v26 = vadd.f32 %v1576_v39, %v857_v10  ;;  %26493 = vmatprep.mubr.f32.mxu0 %v29617_v1  ;;  %v877_v48 = vpop.f32.mrf.mxu0  ;;  %v33841_v39 = vand.u32 4294901760, %v29631_v4 }
 0x152   :  { %v26344_v22 = vpop.f32.mrf.mxu1  ;;  %26615 = vmatmul.mubr.f32.gmra.mxu1 %v33839_v19  ;;  %v33842_v19 = vand.u32 4294901760, %v29649_v41 }
 0x153   :  { %v30152_v38 = vadd.f32 %v26344_v22, %v26220_v0  ;;  %26617 = vmatprep.mubr.f32.mxu1 %v33840_v8  ;;  %v26223_v18 = vpop.f32.mrf.mxu0 }
 0x154   :  { %v1588_v15 = vpop.f32.mrf.mxu1  ;;  %26494 = vmatmul.mubr.f32.gmra.mxu0 %v29631_v4 }
 0x155   :  { %v30157_v53 = vadd.f32 %v1588_v15, %v877_v48  ;;  %26496 = vmatprep.mubr.f32.mxu0 %v29649_v41  ;;  %v897_v10 = vpop.f32.mrf.mxu0  ;;  %v33843_v15 = vand.u32 4294901760, %v29654_v54 }
 0x156   :  { %v26347_v63 = vpop.f32.mrf.mxu1  ;;  %26618 = vmatmul.mubr.f32.gmra.mxu1 %v33841_v39 }
 0x157   :  { %v30162_v11 = vadd.f32 %v26347_v63, %v26223_v18  ;;  %26620 = vmatprep.mubr.f32.mxu1 %v33842_v19  ;;  %v26226_v1 = vpop.f32.mrf.mxu0  ;;  %v33844_v18 = vand.u32 4294901760, %v29663_v5 }
 0x158   :  { %v1600_v0 = vpop.f32.mrf.mxu1  ;;  %26497 = vmatmul.mubr.f32.gmra.mxu0 %v29654_v54 }
 0x159   :  { %v30167_v22 = vadd.f32 %v1600_v0, %v897_v10  ;;  %26499 = vmatprep.mubr.f32.mxu0 %v29663_v5  ;;  %v917_v48 = vpop.f32.mrf.mxu0  ;;  %v33845_v0 = vand.u32 4294901760, %v29685_v40 }
 0x15a   :  { %v26350_v8 = vpop.f32.mrf.mxu1  ;;  %26621 = vmatmul.mubr.f32.gmra.mxu1 %v33843_v15 }
 0x15b   :  { %v30172_v4 = vadd.f32 %v26350_v8, %v26226_v1  ;;  %26623 = vmatprep.mubr.f32.mxu1 %v33844_v18  ;;  %v26229_v41 = vpop.f32.mrf.mxu0  ;;  %v33846_v1 = vand.u32 4294901760, %v29696_v44 }
 0x15c   :  { %v1612_v63 = vpop.f32.mrf.mxu1  ;;  %26500 = vmatmul.mubr.f32.gmra.mxu0 %v29685_v40 }
 0x15d   :  { %v30177_v39 = vadd.f32 %v1612_v63, %v917_v48  ;;  %26502 = vmatprep.mubr.f32.mxu0 %v29696_v44  ;;  %v937_v10 = vpop.f32.mrf.mxu0  ;;  %v33847_v63 = vand.u32 4294901760, %v29711_v51 }
 0x15e   :  { %v26353_v19 = vpop.f32.mrf.mxu1  ;;  %26624 = vmatmul.mubr.f32.gmra.mxu1 %v33845_v0 }
 0x15f   :  { %v30182_v54 = vadd.f32 %v26353_v19, %v26229_v41  ;;  %26626 = vmatprep.mubr.f32.mxu1 %v33846_v1  ;;  %v26232_v5 = vpop.f32.mrf.mxu0  ;;  %v33848_v41 = vand.u32 4294901760, %v29722_v49 }
 0x160   :  { %v1624_v8 = vpop.f32.mrf.mxu1  ;;  %26503 = vmatmul.mubr.f32.gmra.mxu0 %v29711_v51 }
 0x161   :  { %v30187_v15 = vadd.f32 %v1624_v8, %v937_v10  ;;  %26505 = vmatprep.mubr.f32.mxu0 %v29722_v49  ;;  %v957_v48 = vpop.f32.mrf.mxu0  ;;  %v33850_v8 = vand.u32 4294901760, %v29728_v47 }
 0x162   :  { %v26356_v18 = vpop.f32.mrf.mxu1  ;;  %26627 = vmatmul.mubr.f32.gmra.mxu1 %v33847_v63 }
 0x163   :  { %v30192_v40 = vadd.f32 %v26356_v18, %v26232_v5  ;;  %26629 = vmatprep.mubr.f32.mxu1 %v33848_v41  ;;  %v26235_v44 = vpop.f32.mrf.mxu0  ;;  %v33851_v5 = vand.u32 4294901760, %v29739_v31 }
 0x164   :  { %v1636_v19 = vpop.f32.mrf.mxu1  ;;  %26506 = vmatmul.mubr.f32.gmra.mxu0 %v29728_v47 }
 0x165   :  { %v30197_v0 = vadd.f32 %v1636_v19, %v957_v48  ;;  %26508 = vmatprep.mubr.f32.mxu0 %v29739_v31  ;;  %v977_v10 = vpop.f32.mrf.mxu0  ;;  %v33853_v19 = vand.u32 4294901760, %v29753_v3 }
 0x166   :  { %v26359_v1 = vpop.f32.mrf.mxu1  ;;  %26630 = vmatmul.mubr.f32.gmra.mxu1 %v33850_v8 }
 0x167   :  { %33849 = vst [vmem:[#allocation35_spill] sm:$0xff] %v30197_v0  ;;  %v30202_v51 = vadd.f32 %v26359_v1, %v26235_v44  ;;  %26632 = vmatprep.mubr.f32.mxu1 %v33851_v5  ;;  %v26238_v49 = vpop.f32.mrf.mxu0  ;;  %v33854_v44 = vand.u32 4294901760, %v29756_v20  ;;  %v33891_v0 = vld [vmem:[#allocation48_spill] sm:$0xff] }
 0x168   :  { %v1648_v18 = vpop.f32.mrf.mxu1  ;;  %26509 = vmatmul.mubr.f32.gmra.mxu0 %v29753_v3 }
 0x169   :  { %v30207_v63 = vadd.f32 %v1648_v18, %v977_v10  ;;  %26511 = vmatprep.mubr.f32.mxu0 %v29756_v20  ;;  %v997_v48 = vpop.f32.mrf.mxu0  ;;  %v33856_v18 = vand.u32 4294901760, %v29781_v35 }
 0x16a   :  { %v26362_v41 = vpop.f32.mrf.mxu1  ;;  %26633 = vmatmul.mubr.f32.gmra.mxu1 %v33853_v19 }
 0x16b   :  { %33852 = vst [vmem:[#allocation39_spill] sm:$0xff] %v30207_v63  ;;  %v30212_v47 = vadd.f32 %v26362_v41, %v26238_v49  ;;  %26635 = vmatprep.mubr.f32.mxu1 %v33854_v44  ;;  %v26241_v31 = vpop.f32.mrf.mxu0  ;;  %v33857_v49 = vand.u32 4294901760, %v29787_v21  ;;  %v33887_v63 = vld [vmem:[#allocation43_spill] sm:$0xff] }
 0x16c   :  { %v1660_v1 = vpop.f32.mrf.mxu1  ;;  %26512 = vmatmul.mubr.f32.gmra.mxu0 %v29781_v35 }
 0x16d   :  { %v30217_v8 = vadd.f32 %v1660_v1, %v997_v48  ;;  %26514 = vmatprep.mubr.f32.mxu0 %v29787_v21  ;;  %v1017_v10 = vpop.f32.mrf.mxu0  ;;  %v33859_v1 = vand.u32 4294901760, %v29808_v7 }
 0x16e   :  { %v26365_v5 = vpop.f32.mrf.mxu1  ;;  %26636 = vmatmul.mubr.f32.gmra.mxu1 %v33856_v18 }
 0x16f   :  { %33855 = vst [vmem:[#allocation40_spill] sm:$0xff] %v30217_v8  ;;  %v30222_v3 = vadd.f32 %v26365_v5, %v26241_v31  ;;  %26638 = vmatprep.mubr.f32.mxu1 %v33857_v49  ;;  %v26244_v20 = vpop.f32.mrf.mxu0  ;;  %v33860_v31 = vand.u32 4294901760, %v29813_v6  ;;  %v33884_v8 = vld [vmem:[#allocation38_spill] sm:$0xff] }
 0x170   :  { %v1672_v41 = vpop.f32.mrf.mxu1  ;;  %26515 = vmatmul.mubr.f32.gmra.mxu0 %v29808_v7 }
 0x171   :  { %v30227_v19 = vadd.f32 %v1672_v41, %v1017_v10  ;;  %26517 = vmatprep.mubr.f32.mxu0 %v29813_v6  ;;  %v1037_v48 = vpop.f32.mrf.mxu0  ;;  %v33862_v41 = vand.u32 4294901760, %v29830_v36 }
 0x172   :  { %v26368_v44 = vpop.f32.mrf.mxu1  ;;  %26639 = vmatmul.mubr.f32.gmra.mxu1 %v33859_v1 }
 0x173   :  { %33858 = vst [vmem:[#allocation41_spill] sm:$0xff] %v30227_v19  ;;  %v30232_v35 = vadd.f32 %v26368_v44, %v26244_v20  ;;  %26641 = vmatprep.mubr.f32.mxu1 %v33860_v31  ;;  %v26247_v21 = vpop.f32.mrf.mxu0  ;;  %v33863_v20 = vand.u32 4294901760, %v29836_v55  ;;  %v33881_v19 = vld [vmem:[#allocation36_spill] sm:$0xff] }
 0x174   :  { %v1684_v5 = vpop.f32.mrf.mxu1  ;;  %26518 = vmatmul.mubr.f32.gmra.mxu0 %v29830_v36 }
 0x175   :  { %v30237_v18 = vadd.f32 %v1684_v5, %v1037_v48  ;;  %26520 = vmatprep.mubr.f32.mxu0 %v29836_v55  ;;  %v1057_v10 = vpop.f32.mrf.mxu0  ;;  %v33865_v5 = vand.u32 4294901760, %v29848_v30 }
 0x176   :  { %v26371_v49 = vpop.f32.mrf.mxu1  ;;  %26642 = vmatmul.mubr.f32.gmra.mxu1 %v33862_v41 }
 0x177   :  { %33861 = vst [vmem:[#allocation45_spill] sm:$0xff] %v30237_v18  ;;  %v30242_v7 = vadd.f32 %v26371_v49, %v26247_v21  ;;  %26644 = vmatprep.mubr.f32.mxu1 %v33863_v20  ;;  %v26250_v6 = vpop.f32.mrf.mxu0  ;;  %v33866_v21 = vand.u32 4294901760, %v29857_v28  ;;  %v33878_v18 = vld [vmem:[#allocation32_spill] sm:$0xff] }
 0x178   :  { %v1696_v44 = vpop.f32.mrf.mxu1  ;;  %26521 = vmatmul.mubr.f32.gmra.mxu0 %v29848_v30 }
 0x179   :  { %v30247_v1 = vadd.f32 %v1696_v44, %v1057_v10  ;;  %26523 = vmatprep.mubr.f32.mxu0 %v29857_v28  ;;  %v1077_v48 = vpop.f32.mrf.mxu0  ;;  %v33868_v10 = vld [vmem:[#allocation18_spill] sm:$0xff] }
 0x17a   :  { %v26374_v31 = vpop.f32.mrf.mxu1  ;;  %26645 = vmatmul.mubr.f32.gmra.mxu1 %v33865_v5 }
 0x17b   :  { %33864 = vst [vmem:[#allocation46_spill] sm:$0xff] %v30247_v1  ;;  %v30252_v36 = vadd.f32 %v26374_v31, %v26250_v6  ;;  %26647 = vmatprep.mubr.f32.mxu1 %v33866_v21  ;;  %v26253_v55 = vpop.f32.mrf.mxu0  ;;  %v33869_v1 = vand.u32 4294901760, %v29866_v59  ;;  %v33870_v31 = vld [vmem:[#allocation19_spill] sm:$0xff]  ;;  %v33872_v21 = vld [vmem:[#allocation20_spill] sm:$0xff] }
 0x17c   :  { %v1708_v49 = vpop.f32.mrf.mxu1  ;;  %26524 = vmatmul.mubr.f32.gmra.mxu0 %v29866_v59 }
 0x17d   :  { %v30257_v41 = vadd.f32 %v1708_v49, %v1077_v48  ;;  %26654 = vmatprep.mubr.f32.mxu0 %v33868_v10  ;;  %v1097_v20 = vpop.f32.mrf.mxu0 }
 0x17e   :  { %v26377_v44 = vpop.f32.mrf.mxu1  ;;  %26648 = vmatmul.mubr.f32.gmra.mxu1 %v33869_v1 }
 0x17f   :  { %33867 = vst [vmem:[#allocation47_spill] sm:$0xff] %v30257_v41  ;;  %v30262_v30 = vadd.f32 %v26377_v44, %v26253_v55  ;;  %26778 = vmatprep.mubr.f32.mxu1 %v33868_v10  ;;  %v26256_v6 = vpop.f32.mrf.mxu0  ;;  %v33873_v55 = vld [vmem:[#allocation26_spill] sm:$0xff]  ;;  %v33875_v44 = vld [vmem:[#allocation27_spill] sm:$0xff] }
 0x180   :  { %v1720_v28 = vpop.f32.mrf.mxu1  ;;  %26655 = vmatmul.mubr.f32.vlgmr.msra.gmra.mxu0 %v33870_v31 }
 0x181   :  { %v30266_v5 = vadd.f32 %v1720_v28, %v1097_v20  ;;  %26657 = vmatprep.mubr.f32.mxu0 %v33872_v21  ;;  %v1117_v48 = vpop.f32.mrf.mxu0 }
 0x182   :  { %v26380_v49 = vpop.f32.mrf.mxu1  ;;  %26779 = vmatmul.mubr.f32.vlgmr.msra.gmra.mxu1 %v33870_v31 }
 0x183   :  { %33871 = vst [vmem:[#allocation49_spill] sm:$0xff] %v30266_v5  ;;  %v30270_v41 = vadd.f32 %v26380_v49, %v26256_v6  ;;  %26781 = vmatprep.mubr.f32.mxu1 %v33872_v21  ;;  %v26259_v59 = vpop.f32.mrf.mxu0  ;;  %v33876_v49 = vld [vmem:[#allocation28_spill] sm:$0xff] }
 0x184   :  { %v1732_v1 = vpop.f32.mrf.mxu1  ;;  %26658 = vmatmul.mubr.f32.gmra.mxu0 %v33873_v55 }
 0x185   :  { %v30274_v10 = vadd.f32 %v1732_v1, %v1117_v48  ;;  %26660 = vmatprep.mubr.f32.mxu0 %v33875_v44  ;;  %v1137_v20 = vpop.f32.mrf.mxu0 }
 0x186   :  { %v26383_v28 = vpop.f32.mrf.mxu1  ;;  %26782 = vmatmul.mubr.f32.gmra.mxu1 %v33873_v55 }
 0x187   :  { %33874 = vst [vmem:[#allocation52_spill] sm:$0xff] %v30274_v10  ;;  %v30278_v5 = vadd.f32 %v26383_v28, %v26259_v59  ;;  %26784 = vmatprep.mubr.f32.mxu1 %v33875_v44  ;;  %v26262_v6 = vpop.f32.mrf.mxu0  ;;  %v33879_v28 = vld [vmem:[#allocation33_spill] sm:$0xff] }
 0x188   :  { %v1744_v31 = vpop.f32.mrf.mxu1  ;;  %26661 = vmatmul.mubr.f32.gmra.mxu0 %v33876_v49 }
 0x189   :  { %v30282_v21 = vadd.f32 %v1744_v31, %v1137_v20  ;;  %26663 = vmatprep.mubr.f32.mxu0 %v33878_v18  ;;  %v1157_v48 = vpop.f32.mrf.mxu0 }
 0x18a   :  { %v26386_v1 = vpop.f32.mrf.mxu1  ;;  %26785 = vmatmul.mubr.f32.gmra.mxu1 %v33876_v49 }
 0x18b   :  { %33877 = vst [vmem:[#allocation54_spill] sm:$0xff] %v30282_v21  ;;  %v30286_v10 = vadd.f32 %v26386_v1, %v26262_v6  ;;  %26787 = vmatprep.mubr.f32.mxu1 %v33878_v18  ;;  %v26265_v59 = vpop.f32.mrf.mxu0  ;;  %v33882_v1 = vld [vmem:[#allocation37_spill] sm:$0xff] }
 0x18c   :  { %v1756_v55 = vpop.f32.mrf.mxu1  ;;  %26664 = vmatmul.mubr.f32.gmra.mxu0 %v33879_v28 }
 0x18d   :  { %v30290_v44 = vadd.f32 %v1756_v55, %v1157_v48  ;;  %26666 = vmatprep.mubr.f32.mxu0 %v33881_v19  ;;  %v1177_v20 = vpop.f32.mrf.mxu0 }
 0x18e   :  { %v26389_v31 = vpop.f32.mrf.mxu1  ;;  %26788 = vmatmul.mubr.f32.gmra.mxu1 %v33879_v28 }
 0x18f   :  { %33880 = vst [vmem:[#allocation56_spill] sm:$0xff] %v30290_v44  ;;  %v30294_v21 = vadd.f32 %v26389_v31, %v26265_v59  ;;  %26790 = vmatprep.mubr.f32.mxu1 %v33881_v19  ;;  %v26268_v6 = vpop.f32.mrf.mxu0  ;;  %v33885_v31 = vld [vmem:[#allocation42_spill] sm:$0xff] }
 0x190   :  { %v1768_v49 = vpop.f32.mrf.mxu1  ;;  %26667 = vmatmul.mubr.f32.gmra.mxu0 %v33882_v1 }
 0x191   :  { %v30298_v18 = vadd.f32 %v1768_v49, %v1177_v20  ;;  %26669 = vmatprep.mubr.f32.mxu0 %v33884_v8  ;;  %v1197_v48 = vpop.f32.mrf.mxu0 }
 0x192   :  { %v26392_v55 = vpop.f32.mrf.mxu1  ;;  %26791 = vmatmul.mubr.f32.gmra.mxu1 %v33882_v1 }
 0x193   :  { %33883 = vst [vmem:[#allocation58_spill] sm:$0xff] %v30298_v18  ;;  %v30302_v44 = vadd.f32 %v26392_v55, %v26268_v6  ;;  %26793 = vmatprep.mubr.f32.mxu1 %v33884_v8  ;;  %v26271_v59 = vpop.f32.mrf.mxu0  ;;  %v33889_v55 = vld [vmem:[#allocation44_spill] sm:$0xff] }
 0x194   :  { %v1780_v28 = vpop.f32.mrf.mxu1  ;;  %26670 = vmatmul.mubr.f32.gmra.mxu0 %v33885_v31 }
 0x195   :  { %v30306_v19 = vadd.f32 %v1780_v28, %v1197_v48  ;;  %26672 = vmatprep.mubr.f32.mxu0 %v33887_v63  ;;  %v1217_v20 = vpop.f32.mrf.mxu0 }
 0x196   :  { %v26395_v49 = vpop.f32.mrf.mxu1  ;;  %26794 = vmatmul.mubr.f32.gmra.mxu1 %v33885_v31 }
 0x197   :  { %33886 = vst [vmem:[#allocation60_spill] sm:$0xff] %v30306_v19  ;;  %v30310_v18 = vadd.f32 %v26395_v49, %v26271_v59  ;;  %26796 = vmatprep.mubr.f32.mxu1 %v33887_v63  ;;  %v26274_v6 = vpop.f32.mrf.mxu0  ;;  %v33893_v49 = vld [vmem:[#allocation50_spill] sm:$0xff] }
 0x198   :  { %v1792_v1 = vpop.f32.mrf.mxu1  ;;  %26673 = vmatmul.mubr.f32.gmra.mxu0 %v33889_v55 }
 0x199   :  { %33888 = vst [vmem:[#allocation62_spill] sm:$0xff] %v30310_v18  ;;  %v30314_v8 = vadd.f32 %v1792_v1, %v1217_v20  ;;  %26675 = vmatprep.mubr.f32.mxu0 %v33891_v0  ;;  %v1237_v48 = vpop.f32.mrf.mxu0  ;;  %v33895_v18 = vld [vmem:[#allocation51_spill] sm:$0xff] }
 0x19a   :  { %v26398_v28 = vpop.f32.mrf.mxu1  ;;  %26797 = vmatmul.mubr.f32.gmra.mxu1 %v33889_v55 }
 0x19b   :  { %33890 = vst [vmem:[#allocation64_spill] sm:$0xff] %v30314_v8  ;;  %v30318_v19 = vadd.f32 %v26398_v28, %v26274_v6  ;;  %26799 = vmatprep.mubr.f32.mxu1 %v33891_v0  ;;  %v26277_v59 = vpop.f32.mrf.mxu0  ;;  %v33897_v28 = vld [vmem:[#allocation53_spill] sm:$0xff] }
 0x19c   :  { %v1804_v31 = vpop.f32.mrf.mxu1  ;;  %26676 = vmatmul.mubr.f32.gmra.mxu0 %v33893_v49 }
 0x19d   :  { %33892 = vst [vmem:[#allocation66_spill] sm:$0xff] %v30318_v19  ;;  %v30322_v63 = vadd.f32 %v1804_v31, %v1237_v48  ;;  %26678 = vmatprep.mubr.f32.mxu0 %v33895_v18  ;;  %v1257_v20 = vpop.f32.mrf.mxu0  ;;  %v33899_v48 = vld [vmem:[#allocation55_spill] sm:$0xff] }
 0x19e   :  { %v26401_v1 = vpop.f32.mrf.mxu1  ;;  %26800 = vmatmul.mubr.f32.gmra.mxu1 %v33893_v49 }
 0x19f   :  { %33894 = vst [vmem:[#allocation73_spill] sm:$0xff] %v30322_v63  ;;  %v30326_v8 = vadd.f32 %v26401_v1, %v26277_v59  ;;  %26802 = vmatprep.mubr.f32.mxu1 %v33895_v18  ;;  %v26408_v55 = vpop.f32.mrf.mxu0 }
 0x1a0   :  { %v1816_v6 = vpop.f32.mrf.mxu1  ;;  %26679 = vmatmul.mubr.f32.gmra.mxu0 %v33897_v28  ;;  %v1906_v19 = vadd.f32 %v26408_v55, %v29952_v12  ;;  %v33901_v12 = vld [vmem:[#allocation59_spill] sm:$0xff] }
 0x1a1   :  { %33896 = vst [vmem:[#allocation76_spill] sm:$0xff] %v30326_v8  ;;  %v30330_v0 = vadd.f32 %v1816_v6, %v1257_v20  ;;  %26681 = vmatprep.mubr.f32.mxu0 %v33899_v48  ;;  %v1898_v31 = vpop.f32.mrf.mxu0  ;;  %v33900_v8 = vld [vmem:[#allocation57_spill] sm:$0xff] }
 0x1a2   :  { %v26532_v63 = vpop.f32.mrf.mxu1  ;;  %26803 = vmatmul.mubr.f32.gmra.mxu1 %v33897_v28  ;;  %v1899_v49 = vadd.f32 %v1898_v31, %v29957_v25 }
 0x1a3   :  { %33898 = vst [vmem:[#allocation85_spill] sm:$0xff] %v30330_v0  ;;  %v30336_v59 = vadd.f32 %v26532_v63, %v1906_v19  ;;  %26805 = vmatprep.mubr.f32.mxu1 %v33899_v48  ;;  %v26411_v18 = vpop.f32.mrf.mxu0  ;;  %v33902_v48 = vld [vmem:[#allocation61_spill] sm:$0xff] }
 0x1a4   :  { %v2526_v1 = vpop.f32.mrf.mxu1  ;;  %26682 = vmatmul.mubr.f32.gmra.mxu0 %v33900_v8  ;;  %v1920_v20 = vadd.f32 %v26411_v18, %v29962_v13 }
 0x1a5   :  { %v30341_v6 = vadd.f32 %v2526_v1, %v1899_v49  ;;  %26684 = vmatprep.mubr.f32.mxu0 %v33901_v12  ;;  %v1912_v55 = vpop.f32.mrf.mxu0  ;;  %v33903_v49 = vld [vmem:[#allocation63_spill] sm:$0xff] }
 0x1a6   :  { %v26535_v0 = vpop.f32.mrf.mxu1  ;;  %26806 = vmatmul.mubr.f32.gmra.mxu1 %v33900_v8  ;;  %v1913_v25 = vadd.f32 %v1912_v55, %v29967_v27 }
 0x1a7   :  { %v30346_v19 = vadd.f32 %v26535_v0, %v1920_v20  ;;  %26808 = vmatprep.mubr.f32.mxu1 %v33901_v12  ;;  %v33904_v12 = vld [vmem:[#allocation65_spill] sm:$0xff] }
 0x1a8   :  { %v26414_v63 = vpop.f32.mrf.mxu0  ;;  %v2542_v28 = vpop.f32.mrf.mxu1  ;;  %26685 = vmatmul.mubr.f32.gmra.mxu0 %v33902_v48 }
 0x1a9   :  { %v1934_v13 = vadd.f32 %v26414_v63, %v29972_v2  ;;  %v30351_v31 = vadd.f32 %v2542_v28, %v1913_v25  ;;  %26687 = vmatprep.mubr.f32.mxu0 %v33903_v49  ;;  %v33905_v25 = vld [vmem:[#allocation67_spill] sm:$0xff] }
 0x1aa   :  { %v1926_v18 = vpop.f32.mrf.mxu0  ;;  %v26538_v1 = vpop.f32.mrf.mxu1  ;;  %26809 = vmatmul.mubr.f32.gmra.mxu1 %v33902_v48 }
 0x1ab   :  { %v1927_v27 = vadd.f32 %v1926_v18, %v29977_v56  ;;  %v30356_v8 = vadd.f32 %v26538_v1, %v1934_v13  ;;  %26811 = vmatprep.mubr.f32.mxu1 %v33903_v49  ;;  %v33906_v18 = vld [vmem:[#allocation68_spill] sm:$0xff] }
 0x1ac   :  { %v26417_v0 = vpop.f32.mrf.mxu0  ;;  %v2558_v20 = vpop.f32.mrf.mxu1  ;;  %26688 = vmatmul.mubr.f32.gmra.mxu0 %v33904_v12 }
 0x1ad   :  { %v1948_v2 = vadd.f32 %v26417_v0, %v29982_v50  ;;  %v30361_v55 = vadd.f32 %v2558_v20, %v1927_v27  ;;  %26690 = vmatprep.mubr.f32.mxu0 %v33905_v25  ;;  %v33907_v27 = vld [vmem:[#allocation69_spill] sm:$0xff] }
 0x1ae   :  { %v1940_v63 = vpop.f32.mrf.mxu0  ;;  %v26541_v28 = vpop.f32.mrf.mxu1  ;;  %26812 = vmatmul.mubr.f32.gmra.mxu1 %v33904_v12 }
 0x1af   :  { %v1941_v56 = vadd.f32 %v1940_v63, %v29987_v43  ;;  %v30366_v48 = vadd.f32 %v26541_v28, %v1948_v2  ;;  %26814 = vmatprep.mubr.f32.mxu1 %v33905_v25  ;;  %v33908_v63 = vld [vmem:[#allocation71_spill] sm:$0xff] }
 0x1b0   :  { %v26420_v13 = vpop.f32.mrf.mxu0  ;;  %v2574_v49 = vpop.f32.mrf.mxu1  ;;  %26691 = vmatmul.mubr.f32.gmra.mxu0 %v33906_v18 }
 0x1b1   :  { %v1962_v50 = vadd.f32 %v26420_v13, %v29992_v45  ;;  %v30371_v1 = vadd.f32 %v2574_v49, %v1941_v56  ;;  %26693 = vmatprep.mubr.f32.mxu0 %v33907_v27  ;;  %v33909_v56 = vld [vmem:[#allocation72_spill] sm:$0xff] }
 0x1b2   :  { %v1954_v0 = vpop.f32.mrf.mxu0  ;;  %v26544_v20 = vpop.f32.mrf.mxu1  ;;  %26815 = vmatmul.mubr.f32.gmra.mxu1 %v33906_v18 }
 0x1b3   :  { %v1955_v43 = vadd.f32 %v1954_v0, %v29997_v24  ;;  %v30376_v12 = vadd.f32 %v26544_v20, %v1962_v50  ;;  %26817 = vmatprep.mubr.f32.mxu1 %v33907_v27  ;;  %v33910_v0 = vld [vmem:[#allocation74_spill] sm:$0xff] }
 0x1b4   :  { %v26423_v2 = vpop.f32.mrf.mxu0  ;;  %v2590_v25 = vpop.f32.mrf.mxu1  ;;  %26694 = vmatmul.mubr.f32.gmra.mxu0 %v33908_v63 }
 0x1b5   :  { %v1976_v45 = vadd.f32 %v26423_v2, %v30002_v29  ;;  %v30381_v28 = vadd.f32 %v2590_v25, %v1955_v43  ;;  %26696 = vmatprep.mubr.f32.mxu0 %v33909_v56  ;;  %v33911_v43 = vld [vmem:[#allocation75_spill] sm:$0xff] }
 0x1b6   :  { %v1968_v13 = vpop.f32.mrf.mxu0  ;;  %v26547_v49 = vpop.f32.mrf.mxu1  ;;  %26818 = vmatmul.mubr.f32.gmra.mxu1 %v33908_v63 }
 0x1b7   :  { %v1969_v24 = vadd.f32 %v1968_v13, %v30007_v60  ;;  %v30386_v18 = vadd.f32 %v26547_v49, %v1976_v45  ;;  %26820 = vmatprep.mubr.f32.mxu1 %v33909_v56  ;;  %v33912_v13 = vld [vmem:[#allocation77_spill] sm:$0xff] }
 0x1b8   :  { %v26426_v50 = vpop.f32.mrf.mxu0  ;;  %v2606_v27 = vpop.f32.mrf.mxu1  ;;  %26697 = vmatmul.mubr.f32.gmra.mxu0 %v33910_v0 }
 0x1b9   :  { %v1990_v29 = vadd.f32 %v26426_v50, %v30012_v42  ;;  %v30391_v20 = vadd.f32 %v2606_v27, %v1969_v24  ;;  %26699 = vmatprep.mubr.f32.mxu0 %v33911_v43  ;;  %v33913_v24 = vld [vmem:[#allocation78_spill] sm:$0xff] }
 0x1ba   :  { %v1982_v2 = vpop.f32.mrf.mxu0  ;;  %v26550_v25 = vpop.f32.mrf.mxu1  ;;  %26821 = vmatmul.mubr.f32.gmra.mxu1 %v33910_v0 }
 0x1bb   :  { %v1983_v60 = vadd.f32 %v1982_v2, %v30017_v62  ;;  %v30396_v63 = vadd.f32 %v26550_v25, %v1990_v29  ;;  %26823 = vmatprep.mubr.f32.mxu1 %v33911_v43  ;;  %v33915_v2 = vld [vmem:[#allocation79_spill] sm:$0xff] }
 0x1bc   :  { %v26429_v45 = vpop.f32.mrf.mxu0  ;;  %v2622_v56 = vpop.f32.mrf.mxu1  ;;  %26700 = vmatmul.mubr.f32.gmra.mxu0 %v33912_v13 }
 0x1bd   :  { %v2004_v42 = vadd.f32 %v26429_v45, %v30022_v33  ;;  %v30401_v49 = vadd.f32 %v2622_v56, %v1983_v60  ;;  %26702 = vmatprep.mubr.f32.mxu0 %v33913_v24  ;;  %v33917_v60 = vld [vmem:[#allocation80_spill] sm:$0xff] }
 0x1be   :  { %v1996_v50 = vpop.f32.mrf.mxu0  ;;  %v26553_v27 = vpop.f32.mrf.mxu1  ;;  %26824 = vmatmul.mubr.f32.gmra.mxu1 %v33912_v13 }
 0x1bf   :  { %v1997_v62 = vadd.f32 %v1996_v50, %v30027_v23  ;;  %v30406_v0 = vadd.f32 %v26553_v27, %v2004_v42  ;;  %26826 = vmatprep.mubr.f32.mxu1 %v33913_v24  ;;  %v33919_v50 = vld [vmem:[#allocation81_spill] sm:$0xff] }
 0x1c0   :  { %v26432_v29 = vpop.f32.mrf.mxu0  ;;  %v2638_v43 = vpop.f32.mrf.mxu1  ;;  %26703 = vmatmul.mubr.f32.gmra.mxu0 %v33915_v2 }
 0x1c1   :  { %33914 = vst [vmem:[#allocation89_spill] sm:$0xff] %v30406_v0  ;;  %v2018_v33 = vadd.f32 %v26432_v29, %v30032_v32  ;;  %v30411_v25 = vadd.f32 %v2638_v43, %v1997_v62  ;;  %26705 = vmatprep.mubr.f32.mxu0 %v33917_v60  ;;  %v33921_v62 = vld [vmem:[#allocation82_spill] sm:$0xff] }
 0x1c2   :  { %v2010_v45 = vpop.f32.mrf.mxu0  ;;  %v26556_v56 = vpop.f32.mrf.mxu1  ;;  %26827 = vmatmul.mubr.f32.gmra.mxu1 %v33915_v2 }
 0x1c3   :  { %33916 = vst [vmem:[#allocation90_spill] sm:$0xff] %v30411_v25  ;;  %v2011_v23 = vadd.f32 %v2010_v45, %v30037_v9  ;;  %v30416_v13 = vadd.f32 %v26556_v56, %v2018_v33  ;;  %26829 = vmatprep.mubr.f32.mxu1 %v33917_v60  ;;  %v33923_v45 = vld [vmem:[#allocation83_spill] sm:$0xff] }
 0x1c4   :  { %v26435_v42 = vpop.f32.mrf.mxu0  ;;  %v2654_v24 = vpop.f32.mrf.mxu1  ;;  %26706 = vmatmul.mubr.f32.gmra.mxu0 %v33919_v50 }
 0x1c5   :  { %33918 = vst [vmem:[#allocation92_spill] sm:$0xff] %v30416_v13  ;;  %v2032_v32 = vadd.f32 %v26435_v42, %v30042_v57  ;;  %v30421_v27 = vadd.f32 %v2654_v24, %v2011_v23  ;;  %26708 = vmatprep.mubr.f32.mxu0 %v33921_v62  ;;  %v33925_v23 = vld [vmem:[#allocation84_spill] sm:$0xff] }
 0x1c6   :  { %v2024_v29 = vpop.f32.mrf.mxu0  ;;  %v26559_v43 = vpop.f32.mrf.mxu1  ;;  %26830 = vmatmul.mubr.f32.gmra.mxu1 %v33919_v50 }
 0x1c7   :  { %33920 = vst [vmem:[#allocation94_spill] sm:$0xff] %v30421_v27  ;;  %v2025_v9 = vadd.f32 %v2024_v29, %v30047_v52  ;;  %v30426_v2 = vadd.f32 %v26559_v43, %v2032_v32  ;;  %26832 = vmatprep.mubr.f32.mxu1 %v33921_v62  ;;  %v33927_v29 = vld [vmem:[#allocation86_spill] sm:$0xff] }
 0x1c8   :  { %v26438_v33 = vpop.f32.mrf.mxu0  ;;  %v2670_v60 = vpop.f32.mrf.mxu1  ;;  %26709 = vmatmul.mubr.f32.gmra.mxu0 %v33923_v45 }
 0x1c9   :  { %33922 = vst [vmem:[#allocation96_spill] sm:$0xff] %v30426_v2  ;;  %v2046_v57 = vadd.f32 %v26438_v33, %v30052_v46  ;;  %v30431_v56 = vadd.f32 %v2670_v60, %v2025_v9  ;;  %26711 = vmatprep.mubr.f32.mxu0 %v33925_v23  ;;  %v33929_v9 = vld [vmem:[#allocation87_spill] sm:$0xff] }
 0x1ca   :  { %v2038_v42 = vpop.f32.mrf.mxu0  ;;  %v26562_v24 = vpop.f32.mrf.mxu1  ;;  %26833 = vmatmul.mubr.f32.gmra.mxu1 %v33923_v45 }
 0x1cb   :  { %33924 = vst [vmem:[#allocation99_spill] sm:$0xff] %v30431_v56  ;;  %v2039_v52 = vadd.f32 %v2038_v42, %v30057_v16  ;;  %v30436_v50 = vadd.f32 %v26562_v24, %v2046_v57  ;;  %26835 = vmatprep.mubr.f32.mxu1 %v33925_v23  ;;  %v33931_v42 = vld [vmem:[#allocation88_spill] sm:$0xff]  ;;  %v33932_v24 = vld [vmem:[#allocation21_spill] sm:$0xff] }
 0x1cc   :  { %v26441_v32 = vpop.f32.mrf.mxu0  ;;  %v2686_v62 = vpop.f32.mrf.mxu1  ;;  %26712 = vmatmul.mubr.f32.gmra.mxu0 %v33927_v29 }
 0x1cd   :  { %33926 = vst [vmem:[#allocation100_spill] sm:$0xff] %v30436_v50  ;;  %v2060_v46 = vadd.f32 %v26441_v32, %v30062_v17  ;;  %v30441_v43 = vadd.f32 %v2686_v62, %v2039_v52  ;;  %26714 = vmatprep.mubr.f32.mxu0 %v33929_v9  ;;  %v33934_v32 = vld [vmem:[#allocation91_spill] sm:$0xff] }
 0x1ce   :  { %v2052_v33 = vpop.f32.mrf.mxu0  ;;  %v26565_v60 = vpop.f32.mrf.mxu1  ;;  %26836 = vmatmul.mubr.f32.gmra.mxu1 %v33927_v29  ;;  %v33935_v29 = vld [vmem:[#allocation23_spill] sm:$0xff] }
 0x1cf   :  { %33928 = vst [vmem:[#allocation103_spill] sm:$0xff] %v30441_v43  ;;  %v2053_v16 = vadd.f32 %v2052_v33, %v30067_v14  ;;  %v30446_v45 = vadd.f32 %v26565_v60, %v2060_v46  ;;  %26838 = vmatprep.mubr.f32.mxu1 %v33929_v9  ;;  %v33937_v60 = vld [vmem:[#allocation93_spill] sm:$0xff] }
 0x1d0   :  { %v26444_v57 = vpop.f32.mrf.mxu0  ;;  %v2702_v23 = vpop.f32.mrf.mxu1  ;;  %26715 = vmatmul.mubr.f32.gmra.mxu0 %v33931_v42 }
 0x1d1   :  { %33930 = vst [vmem:[#allocation104_spill] sm:$0xff] %v30446_v45  ;;  %v2074_v17 = vadd.f32 %v26444_v57, %v33932_v24  ;;  %v30451_v52 = vadd.f32 %v2702_v23, %v2053_v16  ;;  %26717 = vmatprep.mubr.f32.mxu0 %v33934_v32  ;;  %v33938_v45 = vld [vmem:[#allocation25_spill] sm:$0xff]  ;;  %v33940_v23 = vld [vmem:[#allocation95_spill] sm:$0xff] }
 0x1d2   :  { %v2066_v62 = vpop.f32.mrf.mxu0  ;;  %v26568_v43 = vpop.f32.mrf.mxu1  ;;  %26839 = vmatmul.mubr.f32.gmra.mxu1 %v33931_v42  ;;  %v33941_v42 = vld [vmem:[#allocation22_spill] sm:$0xff] }
 0x1d3   :  { %33933 = vst [vmem:[#allocation105_spill] sm:$0xff] %v30451_v52  ;;  %v2067_v14 = vadd.f32 %v2066_v62, %v33935_v29  ;;  %v30456_v46 = vadd.f32 %v26568_v43, %v2074_v17  ;;  %26841 = vmatprep.mubr.f32.mxu1 %v33934_v32  ;;  %v33943_v29 = vld [vmem:[#allocation97_spill] sm:$0xff] }
 0x1d4   :  { %v26447_v9 = vpop.f32.mrf.mxu0  ;;  %v2718_v33 = vpop.f32.mrf.mxu1  ;;  %26718 = vmatmul.mubr.f32.gmra.mxu0 %v33937_v60 }
 0x1d5   :  { %33936 = vst [vmem:[#allocation109_spill] sm:$0xff] %v30456_v46  ;;  %v2088_v57 = vadd.f32 %v26447_v9, %v33938_v45  ;;  %v30461_v16 = vadd.f32 %v2718_v33, %v2067_v14  ;;  %26720 = vmatprep.mubr.f32.mxu0 %v33940_v23  ;;  %v33944_v46 = vld [vmem:[#allocation24_spill] sm:$0xff]  ;;  %v33946_v9 = vld [vmem:[#allocation98_spill] sm:$0xff] }
 0x1d6   :  { %v2080_v24 = vpop.f32.mrf.mxu0  ;;  %v26571_v52 = vpop.f32.mrf.mxu1  ;;  %26842 = vmatmul.mubr.f32.gmra.mxu1 %v33937_v60  ;;  %v33947_v60 = vld [vmem:[#allocation29_spill] sm:$0xff] }
 0x1d7   :  { %33939 = vst [vmem:[#allocation110_spill] sm:$0xff] %v30461_v16  ;;  %v2081_v62 = vadd.f32 %v2080_v24, %v33941_v42  ;;  %v30466_v43 = vadd.f32 %v26571_v52, %v2088_v57  ;;  %26844 = vmatprep.mubr.f32.mxu1 %v33940_v23  ;;  %v33949_v42 = vld [vmem:[#allocation101_spill] sm:$0xff] }
 0x1d8   :  { %v26450_v17 = vpop.f32.mrf.mxu0  ;;  %v2734_v32 = vpop.f32.mrf.mxu1  ;;  %26721 = vmatmul.mubr.f32.gmra.mxu0 %v33943_v29 }
 0x1d9   :  { %33942 = vst [vmem:[#allocation112_spill] sm:$0xff] %v30466_v43  ;;  %v2102_v45 = vadd.f32 %v26450_v17, %v33944_v46  ;;  %v30471_v14 = vadd.f32 %v2734_v32, %v2081_v62  ;;  %26723 = vmatprep.mubr.f32.mxu0 %v33946_v9  ;;  %v33950_v43 = vld [vmem:[#allocation16_spill] sm:$0xff]  ;;  %v33952_v17 = vld [vmem:[#allocation102_spill] sm:$0xff] }
 0x1da   :  { %v2094_v33 = vpop.f32.mrf.mxu0  ;;  %v26574_v16 = vpop.f32.mrf.mxu1  ;;  %26845 = vmatmul.mubr.f32.gmra.mxu1 %v33943_v29  ;;  %v33953_v29 = vld [vmem:[#allocation30_spill] sm:$0xff] }
 0x1db   :  { %33945 = vst [vmem:[#allocation114_spill] sm:$0xff] %v30471_v14  ;;  %v2095_v24 = vadd.f32 %v2094_v33, %v33947_v60  ;;  %v30476_v52 = vadd.f32 %v26574_v16, %v2102_v45  ;;  %26847 = vmatprep.mubr.f32.mxu1 %v33946_v9  ;;  %v33954_v60 = vld [vmem:[#allocation106_spill] sm:$0xff] }
 0x1dc   :  { %v26453_v57 = vpop.f32.mrf.mxu0  ;;  %v2750_v23 = vpop.f32.mrf.mxu1  ;;  %26724 = vmatmul.mubr.f32.gmra.mxu0 %v33949_v42 }
 0x1dd   :  { %33948 = vst [vmem:[#allocation116_spill] sm:$0xff] %v30476_v52  ;;  %v2116_v46 = vadd.f32 %v26453_v57, %v33950_v43  ;;  %v30481_v62 = vadd.f32 %v2750_v23, %v2095_v24  ;;  %26726 = vmatprep.mubr.f32.mxu0 %v33952_v17  ;;  %v33955_v52 = vld [vmem:[#allocation17_spill] sm:$0xff]  ;;  %v33957_v57 = vld [vmem:[#allocation107_spill] sm:$0xff] }
 0x1de   :  { %v2108_v32 = vpop.f32.mrf.mxu0  ;;  %v26577_v14 = vpop.f32.mrf.mxu1  ;;  %26848 = vmatmul.mubr.f32.gmra.mxu1 %v33949_v42  ;;  %v33958_v42 = vld [vmem:[#allocation31_spill] sm:$0xff] }
 0x1df   :  { %33951 = vst [vmem:[#allocation118_spill] sm:$0xff] %v30481_v62  ;;  %v2109_v33 = vadd.f32 %v2108_v32, %v33953_v29  ;;  %v30486_v16 = vadd.f32 %v26577_v14, %v2116_v46  ;;  %26850 = vmatprep.mubr.f32.mxu1 %v33952_v17  ;;  %v33959_v29 = vld [vmem:[#allocation108_spill] sm:$0xff] }
 0x1e0   :  { %v26456_v45 = vpop.f32.mrf.mxu0  ;;  %v2766_v9 = vpop.f32.mrf.mxu1  ;;  %26727 = vmatmul.mubr.f32.gmra.mxu0 %v33954_v60 }
 0x1e1   :  { %v2130_v43 = vadd.f32 %v26456_v45, %v33955_v52  ;;  %v30491_v24 = vadd.f32 %v2766_v9, %v2109_v33  ;;  %26729 = vmatprep.mubr.f32.mxu0 %v33957_v57  ;;  %v33961_v45 = vld [vmem:[#allocation111_spill] sm:$0xff] }
 0x1e2   :  { %v2122_v23 = vpop.f32.mrf.mxu0  ;;  %v26580_v62 = vpop.f32.mrf.mxu1  ;;  %26851 = vmatmul.mubr.f32.gmra.mxu1 %v33954_v60 }
 0x1e3   :  { %33956 = vst [vmem:[#allocation122_spill] sm:$0xff] %v30491_v24  ;;  %v2123_v32 = vadd.f32 %v2122_v23, %v33958_v42  ;;  %v30496_v14 = vadd.f32 %v26580_v62, %v2130_v43  ;;  %26853 = vmatprep.mubr.f32.mxu1 %v33957_v57  ;;  %v33962_v23 = vld [vmem:[#allocation113_spill] sm:$0xff] }
 0x1e4   :  { %v26459_v46 = vpop.f32.mrf.mxu0  ;;  %v2782_v17 = vpop.f32.mrf.mxu1  ;;  %26730 = vmatmul.mubr.f32.gmra.mxu0 %v33959_v29 }
 0x1e5   :  { %v2144_v52 = vadd.f32 %v26459_v46, %v30122_v37  ;;  %v30501_v33 = vadd.f32 %v2782_v17, %v2123_v32  ;;  %26732 = vmatprep.mubr.f32.mxu0 %v33961_v45  ;;  %v33964_v32 = vld [vmem:[#allocation115_spill] sm:$0xff] }
 0x1e6   :  { %v2136_v9 = vpop.f32.mrf.mxu0  ;;  %v26583_v24 = vpop.f32.mrf.mxu1  ;;  %26854 = vmatmul.mubr.f32.gmra.mxu1 %v33959_v29  ;;  %v33965_v29 = vld [vmem:[#allocation34_spill] sm:$0xff] }
 0x1e7   :  { %33960 = vst [vmem:[#allocation18_spill] sm:$0xff] %v30501_v33  ;;  %v2137_v60 = vadd.f32 %v2136_v9, %v30127_v61  ;;  %v30506_v62 = vadd.f32 %v26583_v24, %v2144_v52  ;;  %26856 = vmatprep.mubr.f32.mxu1 %v33961_v45  ;;  %v33966_v9 = vld [vmem:[#allocation117_spill] sm:$0xff] }
 0x1e8   :  { %v26462_v43 = vpop.f32.mrf.mxu0  ;;  %v2798_v57 = vpop.f32.mrf.mxu1  ;;  %26733 = vmatmul.mubr.f32.gmra.mxu0 %v33962_v23 }
 0x1e9   :  { %v2158_v37 = vadd.f32 %v26462_v43, %v30132_v58  ;;  %v30511_v42 = vadd.f32 %v2798_v57, %v2137_v60  ;;  %26735 = vmatprep.mubr.f32.mxu0 %v33964_v32  ;;  %v33968_v43 = vld [vmem:[#allocation119_spill] sm:$0xff] }
 0x1ea   :  { %v2150_v46 = vpop.f32.mrf.mxu0  ;;  %v26586_v17 = vpop.f32.mrf.mxu1  ;;  %26857 = vmatmul.mubr.f32.gmra.mxu1 %v33962_v23 }
 0x1eb   :  { %33963 = vst [vmem:[#allocation19_spill] sm:$0xff] %v30511_v42  ;;  %v2151_v61 = vadd.f32 %v2150_v46, %v33965_v29  ;;  %v30516_v24 = vadd.f32 %v26586_v17, %v2158_v37  ;;  %26859 = vmatprep.mubr.f32.mxu1 %v33964_v32  ;;  %v33969_v17 = vld [vmem:[#allocation120_spill] sm:$0xff] }
 0x1ec   :  { %v26465_v52 = vpop.f32.mrf.mxu0  ;;  %v2814_v45 = vpop.f32.mrf.mxu1  ;;  %26736 = vmatmul.mubr.f32.gmra.mxu0 %v33966_v9 }
 0x1ed   :  { %v2172_v58 = vadd.f32 %v26465_v52, %v30142_v34  ;;  %v30521_v60 = vadd.f32 %v2814_v45, %v2151_v61  ;;  %26738 = vmatprep.mubr.f32.mxu0 %v33968_v43  ;;  %v33971_v61 = vld [vmem:[#allocation121_spill] sm:$0xff] }
 0x1ee   :  { %v2164_v57 = vpop.f32.mrf.mxu0  ;;  %v26589_v42 = vpop.f32.mrf.mxu1  ;;  %26860 = vmatmul.mubr.f32.gmra.mxu1 %v33966_v9 }
 0x1ef   :  { %33967 = vst [vmem:[#allocation20_spill] sm:$0xff] %v30521_v60  ;;  %v2165_v23 = vadd.f32 %v2164_v57, %v30147_v26  ;;  %v30526_v37 = vadd.f32 %v26589_v42, %v2172_v58  ;;  %26862 = vmatprep.mubr.f32.mxu1 %v33968_v43  ;;  %v33972_v43 = vld [vmem:[#allocation70_spill] sm:$0xff] }
 0x1f0   :  { %v26468_v32 = vpop.f32.mrf.mxu0  ;;  %v2830_v46 = vpop.f32.mrf.mxu1  ;;  %26739 = vmatmul.mubr.f32.gmra.mxu0 %v33969_v17 }
 0x1f1   :  { %v2186_v34 = vadd.f32 %v26468_v32, %v30152_v38  ;;  %v30531_v29 = vadd.f32 %v2830_v46, %v2165_v23  ;;  %26741 = vmatprep.mubr.f32.mxu0 %v33971_v61  ;;  %v33974_v23 = vld [vmem:[#allocation123_spill] sm:$0xff] }
 0x1f2   :  { %v2178_v52 = vpop.f32.mrf.mxu0  ;;  %v26592_v45 = vpop.f32.mrf.mxu1  ;;  %26863 = vmatmul.mubr.f32.gmra.mxu1 %v33969_v17 }
 0x1f3   :  { %33970 = vst [vmem:[#allocation26_spill] sm:$0xff] %v30531_v29  ;;  %v2179_v26 = vadd.f32 %v2178_v52, %v30157_v53  ;;  %v30536_v42 = vadd.f32 %v26592_v45, %v2186_v34  ;;  %26865 = vmatprep.mubr.f32.mxu1 %v33971_v61  ;;  %v33975_v52 = vld [vmem:[#allocation124_spill] sm:$0xff] }
 0x1f4   :  { %v26471_v9 = vpop.f32.mrf.mxu0  ;;  %v2846_v58 = vpop.f32.mrf.mxu1  ;;  %26742 = vmatmul.mubr.f32.gmra.mxu0 %v33972_v43 }
 0x1f5   :  { %v2200_v38 = vadd.f32 %v26471_v9, %v30162_v11  ;;  %v30541_v57 = vadd.f32 %v2846_v58, %v2179_v26  ;;  %26744 = vmatprep.mubr.f32.mxu0 %v33974_v23  ;;  %v33977_v26 = vld [vmem:[#allocation125_spill] sm:$0xff] }
 0x1f6   :  { %v2192_v32 = vpop.f32.mrf.mxu0  ;;  %v26595_v46 = vpop.f32.mrf.mxu1  ;;  %26866 = vmatmul.mubr.f32.gmra.mxu1 %v33972_v43 }
 0x1f7   :  { %33973 = vst [vmem:[#allocation27_spill] sm:$0xff] %v30541_v57  ;;  %v2193_v53 = vadd.f32 %v2192_v32, %v30167_v22  ;;  %v30546_v17 = vadd.f32 %v26595_v46, %v2200_v38  ;;  %26868 = vmatprep.mubr.f32.mxu1 %v33974_v23  ;;  %v33978_v32 = vld [vmem:[#allocation126_spill] sm:$0xff] }
 0x1f8   :  { %v26474_v34 = vpop.f32.mrf.mxu0  ;;  %v2862_v61 = vpop.f32.mrf.mxu1  ;;  %26745 = vmatmul.mubr.f32.gmra.mxu0 %v33975_v52 }
 0x1f9   :  { %v2214_v11 = vadd.f32 %v26474_v34, %v30172_v4  ;;  %v30551_v45 = vadd.f32 %v2862_v61, %v2193_v53  ;;  %26747 = vmatprep.mubr.f32.mxu0 %v33977_v26  ;;  %v33980_v53 = vld [vmem:[#allocation127_spill] sm:$0xff] }
 0x1fa   :  { %v2206_v9 = vpop.f32.mrf.mxu0  ;;  %v26598_v58 = vpop.f32.mrf.mxu1  ;;  %26869 = vmatmul.mubr.f32.gmra.mxu1 %v33975_v52 }
 0x1fb   :  { %33976 = vst [vmem:[#allocation28_spill] sm:$0xff] %v30551_v45  ;;  %v2207_v22 = vadd.f32 %v2206_v9, %v30177_v39  ;;  %v30556_v43 = vadd.f32 %v26598_v58, %v2214_v11  ;;  %26871 = vmatprep.mubr.f32.mxu1 %v33977_v26  ;;  %v33981_v9 = vld [vmem:[#allocation128_spill] sm:$0xff] }
 0x1fc   :  { %v26477_v38 = vpop.f32.mrf.mxu0  ;;  %v2878_v23 = vpop.f32.mrf.mxu1  ;;  %26748 = vmatmul.mubr.f32.gmra.mxu0 %v33978_v32 }
 0x1fd   :  { %v2228_v4 = vadd.f32 %v26477_v38, %v30182_v54  ;;  %v30561_v46 = vadd.f32 %v2878_v23, %v2207_v22  ;;  %26750 = vmatprep.mubr.f32.mxu0 %v33980_v53  ;;  %v33983_v22 = vld [vmem:[#allocation129_spill] sm:$0xff] }
 0x1fe   :  { %v2220_v34 = vpop.f32.mrf.mxu0  ;;  %v26601_v61 = vpop.f32.mrf.mxu1  ;;  %26872 = vmatmul.mubr.f32.gmra.mxu1 %v33978_v32  ;;  %v113_v32 = vld [vmem:[#allocation9] sm:$0xff] }
 0x1ff   :  { %33979 = vst [vmem:[#allocation32_spill] sm:$0xff] %v30561_v46  ;;  %v2221_v39 = vadd.f32 %v2220_v34, %v30187_v15  ;;  %v30566_v52 = vadd.f32 %v26601_v61, %v2228_v4  ;;  %26874 = vmatprep.mubr.f32.mxu1 %v33980_v53  ;;  %v33986_v34 = vld [vmem:[#allocation130_spill] sm:$0xff]  ;;  %v33987_v61 = vld [vmem:[#allocation131_spill] sm:$0xff] }
 0x200   :  { %v26480_v11 = vpop.f32.mrf.mxu0  ;;  %v2894_v26 = vpop.f32.mrf.mxu1  ;;  %26751 = vmatmul.mubr.f32.gmra.mxu0 %v33981_v9 }
 0x201   :  { %v2242_v54 = vadd.f32 %v26480_v11, %v30192_v40  ;;  %v30571_v58 = vadd.f32 %v2894_v26, %v2221_v39  ;;  %26753 = vmatprep.mubr.f32.mxu0 %v33983_v22  ;;  %v4261_v26 = vsel %vm163_vm0, %v113_v32, 0 }
 0x202   :  { %v30574_v38 = vpop.f32.mrf.mxu0  ;;  %v26604_v23 = vpop.f32.mrf.mxu1  ;;  %26875 = vmatmul.mubr.f32.gmra.mxu1 %v33981_v9 }
 0x203   :  { %33982 = vst [vmem:[#allocation33_spill] sm:$0xff] %v30571_v58  ;;  %33984 = vst [vmem:[#allocation36_spill] sm:$0xff] %v30574_v38  ;;  %v30577_v15 = vadd.f32 %v26604_v23, %v2242_v54  ;;  %26877 = vmatprep.mubr.f32.mxu1 %v33983_v22  ;;  %v33990_v23 = vld [vmem:[#allocation132_spill] sm:$0xff] }
 0x204   :  { %v26483_v4 = vpop.f32.mrf.mxu0  ;;  %v30580_v53 = vpop.f32.mrf.mxu1  ;;  %26754 = vmatmul.mubr.f32.gmra.mxu0 %v33986_v34 }
 0x205   :  { %33985 = vst [vmem:[#allocation37_spill] sm:$0xff] %v30580_v53  ;;  %v2256_v40 = vadd.f32 %v26483_v4, %v30202_v51  ;;  %26756 = vmatprep.mubr.f32.mxu0 %v33987_v61  ;;  %v33991_v4 = vld [vmem:[#allocation133_spill] sm:$0xff]  ;;  %v30597_v53 = vand.u32 4294901760, %v4261_v26 }
 0x206   :  { %v30585_v39 = vpop.f32.mrf.mxu0  ;;  %v26607_v11 = vpop.f32.mrf.mxu1  ;;  %26878 = vmatmul.mubr.f32.gmra.mxu1 %v33986_v34 }
 0x207   :  { %33988 = vst [vmem:[#allocation38_spill] sm:$0xff] %v30585_v39  ;;  %v30589_v9 = vadd.f32 %v26607_v11, %v2256_v40  ;;  %26880 = vmatprep.mubr.f32.mxu1 %v33987_v61  ;;  %v33994_v11 = vld [vmem:[#allocation134_spill] sm:$0xff] }
 0x208   :  { %v26486_v54 = vpop.f32.mrf.mxu0  ;;  %v30592_v22 = vpop.f32.mrf.mxu1  ;;  %26757 = vmatmul.mubr.f32.gmra.mxu0 %v33990_v23 }
 0x209   :  { %33989 = vst [vmem:[#allocation42_spill] sm:$0xff] %v30592_v22  ;;  %v2270_v51 = vadd.f32 %v26486_v54, %v30212_v47  ;;  %26759 = vmatprep.mubr.f32.mxu0 %v33991_v4  ;;  %v33995_v54 = vld [vmem:[#allocation135_spill] sm:$0xff]  ;;  %v30611_v22 = vsub.f32 %v4261_v26, %v30597_v53 }
 0x20a   :  { %v30599_v39 = vpop.f32.mrf.mxu0  ;;  %v26610_v34 = vpop.f32.mrf.mxu1  ;;  %26881 = vmatmul.mubr.f32.gmra.mxu1 %v33990_v23 }
 0x20b   :  { %33992 = vst [vmem:[#allocation43_spill] sm:$0xff] %v30599_v39  ;;  %v30602_v32 = vadd.f32 %v26610_v34, %v2270_v51  ;;  %26883 = vmatprep.mubr.f32.mxu1 %v33991_v4  ;;  %v33998_v34 = vld [vmem:[#allocation136_spill] sm:$0xff]  ;;  %v30625_v26 = vand.u32 4294901760, %v30611_v22 }
 0x20c   :  { %v26489_v40 = vpop.f32.mrf.mxu0  ;;  %v30605_v61 = vpop.f32.mrf.mxu1  ;;  %26760 = vmatmul.mubr.f32.gmra.mxu0 %v33994_v11 }
 0x20d   :  { %33993 = vst [vmem:[#allocation44_spill] sm:$0xff] %v30605_v61  ;;  %v2284_v47 = vadd.f32 %v26489_v40, %v30222_v3  ;;  %26762 = vmatprep.mubr.f32.mxu0 %v33995_v54  ;;  %v33999_v40 = vld [vmem:[#allocation137_spill] sm:$0xff] }
 0x20e   :  { %v30613_v39 = vpop.f32.mrf.mxu0  ;;  %v26613_v38 = vpop.f32.mrf.mxu1  ;;  %26884 = vmatmul.mubr.f32.gmra.mxu1 %v33994_v11 }
 0x20f   :  { %33996 = vst [vmem:[#allocation48_spill] sm:$0xff] %v30613_v39  ;;  %v30616_v23 = vadd.f32 %v26613_v38, %v2284_v47  ;;  %26886 = vmatprep.mubr.f32.mxu1 %v33995_v54  ;;  %v34002_v54 = vld [vmem:[#allocation138_spill] sm:$0xff] }
 0x210   :  { %v26492_v51 = vpop.f32.mrf.mxu0  ;;  %v30619_v4 = vpop.f32.mrf.mxu1  ;;  %26763 = vmatmul.mubr.f32.gmra.mxu0 %v33998_v34 }
 0x211   :  { %33997 = vst [vmem:[#allocation50_spill] sm:$0xff] %v30619_v4  ;;  %v2298_v3 = vadd.f32 %v26492_v51, %v30232_v35  ;;  %26765 = vmatprep.mubr.f32.mxu0 %v33999_v40  ;;  %v34003_v51 = vld [vmem:[#allocation139_spill] sm:$0xff]  ;;  %v4336_v4 = vsub.f32 %v30611_v22, %v30625_v26 }
 0x212   :  { %v30627_v39 = vpop.f32.mrf.mxu0  ;;  %v26616_v61 = vpop.f32.mrf.mxu1  ;;  %26887 = vmatmul.mubr.f32.gmra.mxu1 %v33998_v34 }
 0x213   :  { %34000 = vst [vmem:[#allocation51_spill] sm:$0xff] %v30627_v39  ;;  %v30630_v38 = vadd.f32 %v26616_v61, %v2298_v3  ;;  %26889 = vmatprep.mubr.f32.mxu1 %v33999_v40  ;;  %v34007_v40 = vld [vmem:[#allocation140_spill] sm:$0xff] }
 0x214   :  { %v26495_v11 = vpop.f32.mrf.mxu0  ;;  %v30633_v47 = vpop.f32.mrf.mxu1  ;;  %26766 = vmatmul.mubr.f32.gmra.mxu0 %v34002_v54 }
 0x215   :  { %34001 = vst [vmem:[#allocation53_spill] sm:$0xff] %v30633_v47  ;;  %v2312_v35 = vadd.f32 %v26495_v11, %v30242_v7  ;;  %26768 = vmatprep.mubr.f32.mxu0 %v34003_v51  ;;  %v34008_v11 = vld [vmem:[#allocation141_spill] sm:$0xff]  ;;  %v30651_v47 = vand.u32 4294901760, %v4336_v4 }
 0x216   :  { %v30640_v39 = vpop.f32.mrf.mxu0  ;;  %v26619_v58 = vpop.f32.mrf.mxu1  ;;  %26890 = vmatmul.mubr.f32.gmra.mxu1 %v34002_v54 }
 0x217   :  { %34004 = vst [vmem:[#allocation55_spill] sm:$0xff] %v30640_v39  ;;  %v30643_v61 = vadd.f32 %v26619_v58, %v2312_v35  ;;  %26892 = vmatprep.mubr.f32.mxu1 %v34003_v51  ;;  %v34012_v51 = vld [vmem:[#allocation142_spill] sm:$0xff] }
 0x218   :  { %v26498_v34 = vpop.f32.mrf.mxu0  ;;  %v30646_v3 = vpop.f32.mrf.mxu1  ;;  %26769 = vmatmul.mubr.f32.gmra.mxu0 %v34007_v40 }
 0x219   :  { %34005 = vst [vmem:[#allocation57_spill] sm:$0xff] %v30643_v61  ;;  %34006 = vst [vmem:[#allocation59_spill] sm:$0xff] %v30646_v3  ;;  %v2326_v7 = vadd.f32 %v26498_v34, %v30252_v36  ;;  %26771 = vmatprep.mubr.f32.mxu0 %v34008_v11 }
 0x21a   :  { %v30653_v46 = vpop.f32.mrf.mxu0  ;;  %v26622_v39 = vpop.f32.mrf.mxu1  ;;  %26893 = vmatmul.mubr.f32.gmra.mxu1 %v34007_v40 }
 0x21b   :  { %34009 = vst [vmem:[#allocation61_spill] sm:$0xff] %v30653_v46  ;;  %v30656_v58 = vadd.f32 %v26622_v39, %v2326_v7  ;;  %26895 = vmatprep.mubr.f32.mxu1 %v34008_v11 }
 0x21c   :  { %v26501_v54 = vpop.f32.mrf.mxu0  ;;  %v30659_v35 = vpop.f32.mrf.mxu1  ;;  %26772 = vmatmul.mubr.f32.gmra.mxu0 %v34012_v51 }
 0x21d   :  { %34010 = vst [vmem:[#allocation63_spill] sm:$0xff] %v30656_v58  ;;  %34011 = vst [vmem:[#allocation65_spill] sm:$0xff] %v30659_v35  ;;  %v2340_v36 = vadd.f32 %v26501_v54, %v30262_v30  ;;  %26902 = vmatprep.mubr.f32.mxu0 %v30651_v47 }
 0x21e   :  { %v30664_v4 = vpop.f32.mrf.mxu0  ;;  %v26625_v34 = vpop.f32.mrf.mxu1  ;;  %26896 = vmatmul.mubr.f32.gmra.mxu1 %v34012_v51 }
 0x21f   :  { %34013 = vst [vmem:[#allocation67_spill] sm:$0xff] %v30664_v4  ;;  %v30667_v46 = vadd.f32 %v26625_v34, %v2340_v36  ;;  %26909 = vmatprep.mubr.f32.mxu1 %v30597_v53 }
 0x220   :  { %v26504_v39 = vpop.f32.mrf.mxu0  ;;  %v30670_v40 = vpop.f32.mrf.mxu1 }
 0x221   :  { %34014 = vst [vmem:[#allocation68_spill] sm:$0xff] %v30667_v46  ;;  %34015 = vst [vmem:[#allocation69_spill] sm:$0xff] %v30670_v40  ;;  %v2354_v7 = vadd.f32 %v26504_v39, %v30270_v41 }
 0x222   :  { %v30673_v11 = vpop.f32.mrf.mxu0  ;;  %v26628_v35 = vpop.f32.mrf.mxu1 }
 0x223   :  { %34016 = vst [vmem:[#allocation71_spill] sm:$0xff] %v30673_v11  ;;  %v30675_v30 = vadd.f32 %v26628_v35, %v2354_v7 }
 0x224   :  { %v26507_v54 = vpop.f32.mrf.mxu0  ;;  %v30677_v3 = vpop.f32.mrf.mxu1 }
 0x225   :  { %34017 = vst [vmem:[#allocation72_spill] sm:$0xff] %v30675_v30  ;;  %34018 = vst [vmem:[#allocation74_spill] sm:$0xff] %v30677_v3  ;;  %v2368_v4 = vadd.f32 %v26507_v54, %v30278_v5 }
 0x226   :  { %v30680_v51 = vpop.f32.mrf.mxu0  ;;  %v26631_v36 = vpop.f32.mrf.mxu1 }
 0x227   :  { %34019 = vst [vmem:[#allocation75_spill] sm:$0xff] %v30680_v51  ;;  %v30682_v34 = vadd.f32 %v26631_v36, %v2368_v4 }
 0x228   :  { %v26510_v45 = vpop.f32.mrf.mxu0  ;;  %v30684_v57 = vpop.f32.mrf.mxu1 }
 0x229   :  { %34020 = vst [vmem:[#allocation77_spill] sm:$0xff] %v30682_v34  ;;  %34021 = vst [vmem:[#allocation78_spill] sm:$0xff] %v30684_v57  ;;  %v2382_v41 = vadd.f32 %v26510_v45, %v30286_v10  ;;  %v114_v45 = vld [vmem:[#allocation9 + $0x8] sm:$0xff] }
 0x22a   :  { %v30687_v39 = vpop.f32.mrf.mxu0  ;;  %v26634_v11 = vpop.f32.mrf.mxu1 }
 0x22b   :  { %34022 = vst [vmem:[#allocation79_spill] sm:$0xff] %v30687_v39  ;;  %v30689_v35 = vadd.f32 %v26634_v11, %v2382_v41 }
 0x22c   :  { %v26513_v7 = vpop.f32.mrf.mxu0  ;;  %v30691_v40 = vpop.f32.mrf.mxu1 }
 0x22d   :  { %34023 = vst [vmem:[#allocation80_spill] sm:$0xff] %v30689_v35  ;;  %34024 = vst [vmem:[#allocation81_spill] sm:$0xff] %v30691_v40  ;;  %v2396_v5 = vadd.f32 %v26513_v7, %v30294_v21  ;;  %v4264_v21 = vsel %vm163_vm0, %v114_v45, 0  ;;  %v34031_v7 = vld [vmem:[#allocation62_spill] sm:$0xff] }
 0x22e   :  { %v30694_v54 = vpop.f32.mrf.mxu0  ;;  %v26637_v51 = vpop.f32.mrf.mxu1 }
 0x22f   :  { %34025 = vst [vmem:[#allocation82_spill] sm:$0xff] %v30694_v54  ;;  %v30696_v4 = vadd.f32 %v26637_v51, %v2396_v5 }
 0x230   :  { %v26516_v36 = vpop.f32.mrf.mxu0  ;;  %v30698_v3 = vpop.f32.mrf.mxu1 }
 0x231   :  { %34026 = vst [vmem:[#allocation83_spill] sm:$0xff] %v30696_v4  ;;  %34027 = vst [vmem:[#allocation84_spill] sm:$0xff] %v30698_v3  ;;  %v2410_v10 = vadd.f32 %v26516_v36, %v30302_v44  ;;  %v30713_v3 = vand.u32 4294901760, %v4264_v21 }
 0x232   :  { %v30701_v39 = vpop.f32.mrf.mxu0  ;;  %v26640_v11 = vpop.f32.mrf.mxu1 }
 0x233   :  { %34028 = vst [vmem:[#allocation86_spill] sm:$0xff] %v30701_v39  ;;  %v30703_v41 = vadd.f32 %v26640_v11, %v2410_v10  ;;  %v34035_v39 = vld [vmem:[#allocation66_spill] sm:$0xff]  ;;  %v30723_v45 = vsub.f32 %v4264_v21, %v30713_v3 }
 0x234   :  { %v26519_v57 = vpop.f32.mrf.mxu0  ;;  %v30705_v40 = vpop.f32.mrf.mxu1 }
 0x235   :  { %34029 = vst [vmem:[#allocation87_spill] sm:$0xff] %v30703_v41  ;;  %34030 = vst [vmem:[#allocation88_spill] sm:$0xff] %v30705_v40  ;;  %v2424_v54 = vadd.f32 %v26519_v57, %v34031_v7 }
 0x236   :  { %v30709_v51 = vpop.f32.mrf.mxu0  ;;  %v26643_v5 = vpop.f32.mrf.mxu1 }
 0x237   :  { %34032 = vst [vmem:[#allocation21_spill] sm:$0xff] %v30709_v51  ;;  %v30711_v29 = vadd.f32 %v26643_v5, %v2424_v54  ;;  %v34039_v54 = vld [vmem:[#allocation76_spill] sm:$0xff] }
 0x238   :  { %v26522_v44 = vpop.f32.mrf.mxu0  ;;  %v30715_v36 = vpop.f32.mrf.mxu1 }
 0x239   :  { %34033 = vst [vmem:[#allocation91_spill] sm:$0xff] %v30711_v29  ;;  %34034 = vst [vmem:[#allocation23_spill] sm:$0xff] %v30715_v36  ;;  %v2438_v10 = vadd.f32 %v26522_v44, %v34035_v39  ;;  %v30733_v39 = vand.u32 4294901760, %v30723_v45 }
 0x23a   :  { %v30718_v11 = vpop.f32.mrf.mxu0  ;;  %v26646_v60 = vpop.f32.mrf.mxu1 }
 0x23b   :  { %34036 = vst [vmem:[#allocation93_spill] sm:$0xff] %v30718_v11  ;;  %v30720_v40 = vadd.f32 %v26646_v60, %v2438_v10 }
 0x23c   :  { %v26525_v57 = vpop.f32.mrf.mxu0  ;;  %v30725_v7 = vpop.f32.mrf.mxu1 }
 0x23d   :  { %34037 = vst [vmem:[#allocation25_spill] sm:$0xff] %v30720_v40  ;;  %34038 = vst [vmem:[#allocation95_spill] sm:$0xff] %v30725_v7  ;;  %v2452_v5 = vadd.f32 %v26525_v57, %v34039_v54  ;;  %v4346_v57 = vsub.f32 %v30723_v45, %v30733_v39 }
 0x23e   :  { %v30728_v51 = vpop.f32.mrf.mxu0  ;;  %v26649_v33 = vpop.f32.mrf.mxu1 }
 0x23f   :  { %34040 = vst [vmem:[#allocation22_spill] sm:$0xff] %v30728_v51  ;;  %v30730_v50 = vadd.f32 %v26649_v33, %v2452_v5 }
 0x240   :  { %v30735_v44 = vpop.f32.mrf.mxu1  ;;  %v26656_v60 = vpop.f32.mrf.mxu0 }
 0x241   :  { %34041 = vst [vmem:[#allocation97_spill] sm:$0xff] %v30730_v50  ;;  %34042 = vst [vmem:[#allocation24_spill] sm:$0xff] %v30735_v44  ;;  %v3242_v10 = vadd.f32 %v26656_v60, %v30336_v59 }
 0x242   :  { %v3235_v21 = vpop.f32.mrf.mxu0  ;;  %v26780_v11 = vpop.f32.mrf.mxu1 }
 0x243   :  { %v3236_v36 = vadd.f32 %v3235_v21, %v30341_v6  ;;  %v3789_v7 = vadd.f32 %v26780_v11, %v3242_v10  ;;  %v30748_v6 = vand.u32 4294901760, %v4346_v57 }
 0x244   :  { %v26659_v54 = vpop.f32.mrf.mxu0  ;;  %v3782_v51 = vpop.f32.mrf.mxu1 }
 0x245   :  { %v30741_v33 = vand.u32 4294901760, %v3789_v7  ;;  %v3783_v5 = vadd.f32 %v3782_v51, %v3236_v36  ;;  %v3254_v50 = vadd.f32 %v26659_v54, %v30346_v19 }
 0x246   :  { %v3247_v40 = vpop.f32.mrf.mxu0  ;;  %v26783_v44 = vpop.f32.mrf.mxu1 }
 0x247   :  { %v4383_v56 = vsub.f32 %v3789_v7, %v30741_v33  ;;  %v30745_v59 = vand.u32 4294901760, %v3783_v5  ;;  %26898 = vmatprep.subr.mxu0 %v30741_v33  ;;  %v3248_v11 = vadd.f32 %v3247_v40, %v30351_v31  ;;  %v3801_v19 = vadd.f32 %v26783_v44, %v3254_v50 }
 0x248   :  { %v26662_v60 = vpop.f32.mrf.mxu0  ;;  %v3794_v10 = vpop.f32.mrf.mxu1  ;;  %26899 = vmatpush3.msra.mxu0 %v30741_v33 }
 0x249   :  { %v4390_v51 = vsub.f32 %v3783_v5, %v30745_v59  ;;  %26900 = vmatprep.subr.mxu0 %v30745_v59  ;;  %v4384_v7 = vand.u32 4294901760, %v4383_v56  ;;  %v3795_v57 = vadd.f32 %v3794_v10, %v3248_v11  ;;  %v30763_v50 = vand.u32 4294901760, %v3801_v19 }
 0x24a   :  { %v3259_v36 = vpop.f32.mrf.mxu0  ;;  %v30754_v21 = vpop.f32.mrf.mxu1  ;;  %26901 = vmatpush3.msra.mxu0 %v30745_v59 }
 0x24b   :  { %26912 = vmatprep.subr.mxu0 %v4383_v56  ;;  %26903 = vmatmul.mubr.f32.vlgmr.msra.gmra.mxu0 %v30748_v6  ;;  %v4385_v54 = vsub.f32 %v4383_v56, %v4384_v7  ;;  %v4391_v5 = vand.u32 4294901760, %v4390_v51  ;;  %v30770_v11 = vand.u32 4294901760, %v3795_v57  ;;  %v4885_v35 = vsub.f32 %v3801_v19, %v30763_v50 }
 0x24c   :  { %v30758_v31 = vpop.f32.mrf.mxu0  ;;  %v30760_v40 = vpop.f32.mrf.mxu1  ;;  %26913 = vmatpush3.msra.mxu0 %v4383_v56  ;;  %26916 = vmatprep.mubr.f32.mxu0 %v30611_v22  ;;  %v3260_v30 = vadd.f32 %v3259_v36, %v30361_v55 }
 0x24d   :  { %26914 = vmatprep.subr.mxu0 %v4390_v51  ;;  %v4386_v29 = vand.u32 4294901760, %v4385_v54  ;;  %v4392_v41 = vsub.f32 %v4390_v51, %v4391_v5  ;;  %v4892_v54 = vsub.f32 %v3795_v57, %v30770_v11  ;;  %v3266_v57 = vadd.f32 %v26662_v60, %v30356_v8 }
 0x24e   :  { %v30765_v44 = vpop.f32.mrf.mxu0  ;;  %v30767_v2 = vpop.f32.mrf.mxu1  ;;  %26915 = vmatpush3.msra.mxu0 %v4390_v51  ;;  %v3807_v25 = vadd.f32 %v30760_v40, %v3260_v30 }
 0x24f   :  { %26926 = vmatprep.subr.mxu0 %v4384_v7  ;;  %26917 = vmatmul.mubr.f32.vlgmr.msra.gmra.mxu0 %v30723_v45  ;;  %v4393_v4 = vand.u32 4294901760, %v4392_v41  ;;  %v4893_v13 = vand.u32 4294901760, %v4892_v54  ;;  %v3813_v58 = vadd.f32 %v30754_v21, %v3266_v57 }
 0x250   :  { %26905 = vmatprep.subr.mxu1 %v4386_v29  ;;  %v30772_v56 = vpop.f32.mrf.mxu0  ;;  %v30774_v10 = vpop.f32.mrf.mxu1  ;;  %26927 = vmatpush3.msra.mxu0 %v4384_v7  ;;  %v4886_v7 = vand.u32 4294901760, %v4885_v35 }
 0x251   :  { %26906 = vmatpush3.msra.mxu1 %v4386_v29  ;;  %26928 = vmatprep.subr.mxu0 %v4391_v5  ;;  %v4894_v36 = vsub.f32 %v4892_v54, %v4893_v13  ;;  %v30831_v57 = vand.u32 4294901760, %v3813_v58 }
 0x252   :  { %26907 = vmatprep.subr.mxu1 %v4393_v4  ;;  %v30777_v27 = vpop.f32.mrf.mxu0  ;;  %v30779_v51 = vpop.f32.mrf.mxu1  ;;  %26929 = vmatpush3.msra.mxu0 %v4391_v5  ;;  %v4887_v46 = vsub.f32 %v4885_v35, %v4886_v7 }
 0x253   :  { %26908 = vmatpush3.msra.mxu1 %v4393_v4  ;;  %26930 = vmatprep.mubr.f32.mxu0 %v30597_v53 }
 0x254   :  { %26910 = vmatmul.mubr.f32.vlgmr.msra.gmra.mxu1 %v30713_v3  ;;  %26919 = vmatprep.subr.mxu1 %v30741_v33  ;;  %v30785_v41 = vpop.f32.mrf.mxu0  ;;  %v30787_v29 = vpop.f32.mrf.mxu1 }
 0x255   :  { %26940 = vmatprep.subr.mxu0 %v30763_v50  ;;  %26920 = vmatpush3.msra.mxu1 %v30741_v33 }
 0x256   :  { %26931 = vmatmul.mubr.f32.vlgmr.msra.gmra.mxu0 %v30713_v3  ;;  %26921 = vmatprep.subr.mxu1 %v30745_v59  ;;  %v30793_v4 = vpop.f32.mrf.mxu0  ;;  %v30795_v19 = vpop.f32.mrf.mxu1 }
 0x257   :  { %26941 = vmatpush3.msra.mxu0 %v30763_v50  ;;  %26922 = vmatpush3.msra.mxu1 %v30745_v59 }
 0x258   :  { %26942 = vmatprep.subr.mxu0 %v30770_v11  ;;  %26923 = vmatprep.mubr.f32.mxu1 %v30625_v26  ;;  %v30802_v5 = vpop.f32.mrf.mxu0  ;;  %v30804_v34 = vpop.f32.mrf.mxu1 }
 0x259   :  { %26943 = vmatpush3.msra.mxu0 %v30770_v11  ;;  %26924 = vmatmul.mubr.f32.vlgmr.msra.gmra.mxu1 %v30733_v39 }
 0x25a   :  { %26933 = vmatprep.subr.mxu1 %v30741_v33  ;;  %26944 = vmatprep.mubr.f32.mxu0 %v30651_v47  ;;  %v30811_v8 = vpop.f32.mrf.mxu0  ;;  %v30813_v60 = vpop.f32.mrf.mxu1 }
 0x25b   :  { %26954 = vmatprep.subr.mxu0 %v4885_v35  ;;  %26934 = vmatpush3.msra.mxu1 %v30741_v33  ;;  %v4888_v33 = vand.u32 4294901760, %v4887_v46  ;;  %v30838_v46 = vand.u32 4294901760, %v3807_v25 }
 0x25c   :  { %26945 = vmatmul.mubr.f32.vlgmr.msra.gmra.mxu0 %v30748_v6  ;;  %26935 = vmatprep.subr.mxu1 %v30745_v59  ;;  %v30819_v61 = vpop.f32.mrf.mxu0  ;;  %v30821_v55 = vpop.f32.mrf.mxu1 }
 0x25d   :  { %26955 = vmatpush3.msra.mxu0 %v4885_v35  ;;  %26936 = vmatpush3.msra.mxu1 %v30745_v59  ;;  %v4895_v35 = vand.u32 4294901760, %v4894_v36 }
 0x25e   :  { %26956 = vmatprep.subr.mxu0 %v4892_v54  ;;  %26937 = vmatprep.mubr.f32.mxu1 %v30597_v53  ;;  %v30826_v0 = vpop.f32.mrf.mxu0  ;;  %v30828_v21 = vpop.f32.mrf.mxu1 }
 0x25f   :  { %34043 = vst [vmem:[#allocation98_spill] sm:$0xff] %v30828_v21  ;;  %26957 = vmatpush3.msra.mxu0 %v4892_v54  ;;  %26938 = vmatmul.mubr.f32.vlgmr.msra.gmra.mxu1 %v30713_v3  ;;  %v5387_v21 = vsub.f32 %v3813_v58, %v30831_v57 }
 0x260   :  { %26947 = vmatprep.subr.mxu1 %v4888_v33  ;;  %26958 = vmatprep.mubr.f32.mxu0 %v30611_v22  ;;  %v30834_v59 = vpop.f32.mrf.mxu0  ;;  %v30836_v30 = vpop.f32.mrf.mxu1 }
 0x261   :  { %34044 = vst [vmem:[#allocation29_spill] sm:$0xff] %v30834_v59  ;;  %26968 = vmatprep.subr.mxu0 %v4886_v7  ;;  %26948 = vmatpush3.msra.mxu1 %v4888_v33  ;;  %v5394_v33 = vsub.f32 %v3807_v25, %v30838_v46 }
 0x262   :  { %26959 = vmatmul.mubr.f32.vlgmr.msra.gmra.mxu0 %v30723_v45  ;;  %26949 = vmatprep.subr.mxu1 %v4895_v35  ;;  %v30841_v40 = vpop.f32.mrf.mxu0  ;;  %v30843_v54 = vpop.f32.mrf.mxu1 }
 0x263   :  { %26969 = vmatpush3.msra.mxu0 %v4886_v7  ;;  %26950 = vmatpush3.msra.mxu1 %v4895_v35 }
 0x264   :  { %26970 = vmatprep.subr.mxu0 %v4893_v13  ;;  %26951 = vmatprep.mubr.f32.mxu1 %v30597_v53  ;;  %v30847_v36 = vpop.f32.mrf.mxu0  ;;  %v30849_v59 = vpop.f32.mrf.mxu1 }
 0x265   :  { %34045 = vst [vmem:[#allocation101_spill] sm:$0xff] %v30847_v36  ;;  %34046 = vst [vmem:[#allocation16_spill] sm:$0xff] %v30849_v59  ;;  %26971 = vmatpush3.msra.mxu0 %v4893_v13  ;;  %26952 = vmatmul.mubr.f32.vlgmr.msra.gmra.mxu1 %v30713_v3  ;;  %v5388_v13 = vand.u32 4294901760, %v5387_v21 }
 0x266   :  { %26961 = vmatprep.subr.mxu1 %v30763_v50  ;;  %26972 = vmatprep.mubr.f32.mxu0 %v30597_v53  ;;  %v30855_v7 = vpop.f32.mrf.mxu0  ;;  %v30857_v35 = vpop.f32.mrf.mxu1 }
 0x267   :  { %34047 = vst [vmem:[#allocation102_spill] sm:$0xff] %v30855_v7  ;;  %34048 = vst [vmem:[#allocation30_spill] sm:$0xff] %v30857_v35  ;;  %26982 = vmatprep.subr.mxu0 %v30831_v57  ;;  %26962 = vmatpush3.msra.mxu1 %v30763_v50  ;;  %v3278_v35 = vadd.f32 %v30758_v31, %v30366_v48  ;;  %v5395_v7 = vand.u32 4294901760, %v5394_v33  ;;  %v5389_v48 = vsub.f32 %v5387_v21, %v5388_v13 }
 0x268   :  { %26973 = vmatmul.mubr.f32.vlgmr.msra.gmra.mxu0 %v30713_v3  ;;  %26963 = vmatprep.subr.mxu1 %v30770_v11  ;;  %v30863_v58 = vpop.f32.mrf.mxu0  ;;  %v30865_v25 = vpop.f32.mrf.mxu1 }
 0x269   :  { %34049 = vst [vmem:[#allocation106_spill] sm:$0xff] %v30863_v58  ;;  %34050 = vst [vmem:[#allocation17_spill] sm:$0xff] %v30865_v25  ;;  %26983 = vmatpush3.msra.mxu0 %v30831_v57  ;;  %26964 = vmatpush3.msra.mxu1 %v30770_v11  ;;  %v3272_v58 = vadd.f32 %v30765_v44, %v30371_v1 }
 0x26a   :  { %26984 = vmatprep.subr.mxu0 %v30838_v46  ;;  %26965 = vmatprep.mubr.f32.mxu1 %v30625_v26  ;;  %v30873_v36 = vpop.f32.mrf.mxu0  ;;  %v30875_v59 = vpop.f32.mrf.mxu1 }
 0x26b   :  { %34051 = vst [vmem:[#allocation107_spill] sm:$0xff] %v30873_v36  ;;  %34052 = vst [vmem:[#allocation31_spill] sm:$0xff] %v30875_v59  ;;  %26985 = vmatpush3.msra.mxu0 %v30838_v46  ;;  %26966 = vmatmul.mubr.f32.vlgmr.msra.gmra.mxu1 %v30733_v39  ;;  %v3825_v59 = vadd.f32 %v30767_v2, %v3278_v35  ;;  %v5396_v36 = vsub.f32 %v5394_v33, %v5395_v7 }
 0x26c   :  { %26975 = vmatprep.subr.mxu1 %v30763_v50  ;;  %26986 = vmatprep.mubr.f32.mxu0 %v30651_v47  ;;  %v30883_v31 = vpop.f32.mrf.mxu0  ;;  %v30885_v25 = vpop.f32.mrf.mxu1 }
 0x26d   :  { %34053 = vst [vmem:[#allocation108_spill] sm:$0xff] %v30883_v31  ;;  %34054 = vst [vmem:[#allocation111_spill] sm:$0xff] %v30885_v25  ;;  %26996 = vmatprep.subr.mxu0 %v5387_v21  ;;  %26976 = vmatpush3.msra.mxu1 %v30763_v50  ;;  %v3819_v31 = vadd.f32 %v30774_v10, %v3272_v58  ;;  %v5390_v50 = vand.u32 4294901760, %v5389_v48  ;;  %v30903_v35 = vand.u32 4294901760, %v3825_v59 }
 0x26e   :  { %26987 = vmatmul.mubr.f32.vlgmr.msra.gmra.mxu0 %v30748_v6  ;;  %26977 = vmatprep.subr.mxu1 %v30770_v11  ;;  %v30891_v1 = vpop.f32.mrf.mxu0  ;;  %v30893_v44 = vpop.f32.mrf.mxu1 }
 0x26f   :  { %26997 = vmatpush3.msra.mxu0 %v5387_v21  ;;  %26978 = vmatpush3.msra.mxu1 %v30770_v11  ;;  %v5397_v21 = vand.u32 4294901760, %v5396_v36  ;;  %v30910_v58 = vand.u32 4294901760, %v3819_v31 }
 0x270   :  { %26998 = vmatprep.subr.mxu0 %v5394_v33  ;;  %26979 = vmatprep.mubr.f32.mxu1 %v30597_v53  ;;  %v30898_v25 = vpop.f32.mrf.mxu0  ;;  %v30900_v2 = vpop.f32.mrf.mxu1 }
 0x271   :  { %34055 = vst [vmem:[#allocation113_spill] sm:$0xff] %v30898_v25  ;;  %26999 = vmatpush3.msra.mxu0 %v5394_v33  ;;  %26980 = vmatmul.mubr.f32.vlgmr.msra.gmra.mxu1 %v30713_v3  ;;  %v5889_v25 = vsub.f32 %v3825_v59, %v30903_v35 }
 0x272   :  { %26989 = vmatprep.subr.mxu1 %v5390_v50  ;;  %27000 = vmatprep.mubr.f32.mxu0 %v30611_v22  ;;  %v30906_v11 = vpop.f32.mrf.mxu0  ;;  %v30908_v10 = vpop.f32.mrf.mxu1 }
 0x273   :  { %34056 = vst [vmem:[#allocation115_spill] sm:$0xff] %v30908_v10  ;;  %27010 = vmatprep.subr.mxu0 %v5388_v13  ;;  %26990 = vmatpush3.msra.mxu1 %v5390_v50  ;;  %v5896_v50 = vsub.f32 %v3819_v31, %v30910_v58  ;;  %v5890_v59 = vand.u32 4294901760, %v5889_v25 }
 0x274   :  { %27001 = vmatmul.mubr.f32.vlgmr.msra.gmra.mxu0 %v30723_v45  ;;  %26991 = vmatprep.subr.mxu1 %v5397_v21  ;;  %v30913_v33 = vpop.f32.mrf.mxu0  ;;  %v30915_v48 = vpop.f32.mrf.mxu1 }
 0x275   :  { %34057 = vst [vmem:[#allocation34_spill] sm:$0xff] %v30913_v33  ;;  %34058 = vst [vmem:[#allocation117_spill] sm:$0xff] %v30915_v48  ;;  %27011 = vmatpush3.msra.mxu0 %v5388_v13  ;;  %26992 = vmatpush3.msra.mxu1 %v5397_v21 }
 0x276   :  { %27012 = vmatprep.subr.mxu0 %v5395_v7  ;;  %26993 = vmatprep.mubr.f32.mxu1 %v30597_v53  ;;  %v30919_v36 = vpop.f32.mrf.mxu0  ;;  %v30921_v10 = vpop.f32.mrf.mxu1 }
 0x277   :  { %34059 = vst [vmem:[#allocation119_spill] sm:$0xff] %v30919_v36  ;;  %34060 = vst [vmem:[#allocation120_spill] sm:$0xff] %v30921_v10  ;;  %27013 = vmatpush3.msra.mxu0 %v5395_v7  ;;  %26994 = vmatmul.mubr.f32.vlgmr.msra.gmra.mxu1 %v30713_v3 }
 0x278   :  { %27003 = vmatprep.subr.mxu1 %v30831_v57  ;;  %27014 = vmatprep.mubr.f32.mxu0 %v30597_v53  ;;  %v30927_v13 = vpop.f32.mrf.mxu0  ;;  %v30929_v21 = vpop.f32.mrf.mxu1 }
 0x279   :  { %34061 = vst [vmem:[#allocation121_spill] sm:$0xff] %v30927_v13  ;;  %34062 = vst [vmem:[#allocation70_spill] sm:$0xff] %v30929_v21  ;;  %27024 = vmatprep.subr.mxu0 %v30903_v35  ;;  %27004 = vmatpush3.msra.mxu1 %v30831_v57  ;;  %v3290_v13 = vadd.f32 %v30772_v56, %v30376_v12  ;;  %v5897_v21 = vand.u32 4294901760, %v5896_v50  ;;  %v5891_v12 = vsub.f32 %v5889_v25, %v5890_v59 }
 0x27a   :  { %27015 = vmatmul.mubr.f32.vlgmr.msra.gmra.mxu0 %v30713_v3  ;;  %27005 = vmatprep.subr.mxu1 %v30838_v46  ;;  %v30935_v7 = vpop.f32.mrf.mxu0  ;;  %v30937_v31 = vpop.f32.mrf.mxu1 }
 0x27b   :  { %34063 = vst [vmem:[#allocation123_spill] sm:$0xff] %v30935_v7  ;;  %34064 = vst [vmem:[#allocation124_spill] sm:$0xff] %v30937_v31  ;;  %27025 = vmatpush3.msra.mxu0 %v30903_v35  ;;  %27006 = vmatpush3.msra.mxu1 %v30838_v46  ;;  %v3284_v7 = vadd.f32 %v30777_v27, %v30381_v28  ;;  %v3837_v48 = vadd.f32 %v30779_v51, %v3290_v13 }
 0x27c   :  { %27026 = vmatprep.subr.mxu0 %v30910_v58  ;;  %27007 = vmatprep.mubr.f32.mxu1 %v30625_v26  ;;  %v26701_v10 = vpop.f32.mrf.mxu0  ;;  %v30945_v36 = vpop.f32.mrf.mxu1  ;;  %v5898_v28 = vsub.f32 %v5896_v50, %v5897_v21 }
 0x27d   :  { %34065 = vst [vmem:[#allocation125_spill] sm:$0xff] %v30945_v36  ;;  %27027 = vmatpush3.msra.mxu0 %v30910_v58  ;;  %27008 = vmatmul.mubr.f32.vlgmr.msra.gmra.mxu1 %v30733_v39  ;;  %v3422_v31 = vadd.f32 %v26701_v10, %v30486_v16 }
 0x27e   :  { %27017 = vmatprep.subr.mxu1 %v30831_v57  ;;  %27028 = vmatprep.mubr.f32.mxu0 %v30651_v47  ;;  %v30954_v56 = vpop.f32.mrf.mxu0  ;;  %v26825_v33 = vpop.f32.mrf.mxu1 }
 0x27f   :  { %34066 = vst [vmem:[#allocation126_spill] sm:$0xff] %v30954_v56  ;;  %27038 = vmatprep.subr.mxu0 %v5889_v25  ;;  %27018 = vmatpush3.msra.mxu1 %v30831_v57  ;;  %v30957_v36 = vadd.f32 %v26825_v33, %v3422_v31  ;;  %v3831_v56 = vadd.f32 %v30787_v29, %v3284_v7  ;;  %v5892_v57 = vand.u32 4294901760, %v5891_v12  ;;  %v30973_v31 = vand.u32 4294901760, %v3837_v48 }
 0x280   :  { %27029 = vmatmul.mubr.f32.vlgmr.msra.gmra.mxu0 %v30748_v6  ;;  %27019 = vmatprep.subr.mxu1 %v30838_v46  ;;  %v26704_v27 = vpop.f32.mrf.mxu0  ;;  %v30962_v16 = vpop.f32.mrf.mxu1 }
 0x281   :  { %27039 = vmatpush3.msra.mxu0 %v5889_v25  ;;  %27020 = vmatpush3.msra.mxu1 %v30838_v46  ;;  %v3434_v10 = vadd.f32 %v26704_v27, %v30496_v14  ;;  %v5899_v14 = vand.u32 4294901760, %v5898_v28  ;;  %v30979_v7 = vand.u32 4294901760, %v3831_v56  ;;  %v6391_v28 = vsub.f32 %v3837_v48, %v30973_v31 }
 0x282   :  { %27040 = vmatprep.subr.mxu0 %v5896_v50  ;;  %27021 = vmatprep.mubr.f32.mxu1 %v30597_v53  ;;  %v30968_v51 = vpop.f32.mrf.mxu0  ;;  %v26828_v33 = vpop.f32.mrf.mxu1 }
 0x283   :  { %27041 = vmatpush3.msra.mxu0 %v5896_v50  ;;  %27022 = vmatmul.mubr.f32.vlgmr.msra.gmra.mxu1 %v30713_v3  ;;  %v30971_v13 = vadd.f32 %v26828_v33, %v3434_v10  ;;  %v6398_v33 = vsub.f32 %v3831_v56, %v30979_v7 }
 0x284   :  { %27031 = vmatprep.subr.mxu1 %v5892_v57  ;;  %27042 = vmatprep.mubr.f32.mxu0 %v30611_v22  ;;  %v26707_v46 = vpop.f32.mrf.mxu0  ;;  %v30976_v29 = vpop.f32.mrf.mxu1 }
 0x285   :  { %27052 = vmatprep.subr.mxu0 %v5890_v59  ;;  %27032 = vmatpush3.msra.mxu1 %v5892_v57  ;;  %v3446_v25 = vadd.f32 %v26707_v46, %v30506_v62 }
 0x286   :  { %27043 = vmatmul.mubr.f32.vlgmr.msra.gmra.mxu0 %v30723_v45  ;;  %27033 = vmatprep.subr.mxu1 %v5899_v14  ;;  %v30982_v50 = vpop.f32.mrf.mxu0  ;;  %v26831_v12 = vpop.f32.mrf.mxu1 }
 0x287   :  { %27053 = vmatpush3.msra.mxu0 %v5890_v59  ;;  %27034 = vmatpush3.msra.mxu1 %v5899_v14  ;;  %v30984_v27 = vadd.f32 %v26831_v12, %v3446_v25  ;;  %v3302_v25 = vadd.f32 %v30785_v41, %v30386_v18  ;;  %v6399_v12 = vand.u32 4294901760, %v6398_v33 }
 0x288   :  { %27054 = vmatprep.subr.mxu0 %v5897_v21  ;;  %27035 = vmatprep.mubr.f32.mxu1 %v30597_v53  ;;  %v26710_v10 = vpop.f32.mrf.mxu0  ;;  %v30988_v57 = vpop.f32.mrf.mxu1 }
 0x289   :  { %27055 = vmatpush3.msra.mxu0 %v5897_v21  ;;  %27036 = vmatmul.mubr.f32.vlgmr.msra.gmra.mxu1 %v30713_v3  ;;  %v3458_v62 = vadd.f32 %v26710_v10, %v30516_v24  ;;  %v6392_v24 = vand.u32 4294901760, %v6391_v28 }
 0x28a   :  { %27045 = vmatprep.subr.mxu1 %v30903_v35  ;;  %27056 = vmatprep.mubr.f32.mxu0 %v30597_v53  ;;  %v30995_v59 = vpop.f32.mrf.mxu0  ;;  %v26834_v48 = vpop.f32.mrf.mxu1 }
 0x28b   :  { %27066 = vmatprep.subr.mxu0 %v30973_v31  ;;  %27046 = vmatpush3.msra.mxu1 %v30903_v35  ;;  %v30999_v14 = vadd.f32 %v26834_v48, %v3458_v62  ;;  %v6393_v18 = vsub.f32 %v6391_v28, %v6392_v24 }
 0x28c   :  { %27057 = vmatmul.mubr.f32.vlgmr.msra.gmra.mxu0 %v30713_v3  ;;  %27047 = vmatprep.subr.mxu1 %v30910_v58  ;;  %v26713_v21 = vpop.f32.mrf.mxu0  ;;  %v31003_v56 = vpop.f32.mrf.mxu1 }
 0x28d   :  { %34067 = vst [vmem:[#allocation127_spill] sm:$0xff] %v30999_v14  ;;  %27067 = vmatpush3.msra.mxu0 %v30973_v31  ;;  %27048 = vmatpush3.msra.mxu1 %v30910_v58  ;;  %v3470_v46 = vadd.f32 %v26713_v21, %v30526_v37  ;;  %v3296_v37 = vadd.f32 %v30793_v4, %v30391_v20 }
 0x28e   :  { %27068 = vmatprep.subr.mxu0 %v30979_v7  ;;  %27049 = vmatprep.mubr.f32.mxu1 %v30625_v26  ;;  %v31012_v10 = vpop.f32.mrf.mxu0  ;;  %v26837_v62 = vpop.f32.mrf.mxu1  ;;  %v3849_v14 = vadd.f32 %v30795_v19, %v3302_v25  ;;  %v6400_v20 = vsub.f32 %v6398_v33, %v6399_v12 }
 0x28f   :  { %34068 = vst [vmem:[#allocation128_spill] sm:$0xff] %v31012_v10  ;;  %27069 = vmatpush3.msra.mxu0 %v30979_v7  ;;  %27050 = vmatmul.mubr.f32.vlgmr.msra.gmra.mxu1 %v30733_v39  ;;  %v31016_v48 = vadd.f32 %v26837_v62, %v3470_v46 }
 0x290   :  { %27059 = vmatprep.subr.mxu1 %v30903_v35  ;;  %27070 = vmatprep.mubr.f32.mxu0 %v30651_v47  ;;  %v26716_v41 = vpop.f32.mrf.mxu0  ;;  %v31022_v21 = vpop.f32.mrf.mxu1 }
 0x291   :  { %34069 = vst [vmem:[#allocation129_spill] sm:$0xff] %v31016_v48  ;;  %27080 = vmatprep.subr.mxu0 %v6391_v28  ;;  %27060 = vmatpush3.msra.mxu1 %v30903_v35  ;;  %v3482_v10 = vadd.f32 %v26716_v41, %v30536_v42  ;;  %v3843_v48 = vadd.f32 %v30804_v34, %v3296_v37  ;;  %v6394_v42 = vand.u32 4294901760, %v6393_v18  ;;  %v31040_v41 = vand.u32 4294901760, %v3849_v14 }
 0x292   :  { %27071 = vmatmul.mubr.f32.vlgmr.msra.gmra.mxu0 %v30748_v6  ;;  %27061 = vmatprep.subr.mxu1 %v30910_v58  ;;  %v31029_v4 = vpop.f32.mrf.mxu0  ;;  %v26840_v46 = vpop.f32.mrf.mxu1 }
 0x293   :  { %27081 = vmatpush3.msra.mxu0 %v6391_v28  ;;  %27062 = vmatpush3.msra.mxu1 %v30910_v58  ;;  %v31032_v62 = vadd.f32 %v26840_v46, %v3482_v10  ;;  %v6401_v58 = vand.u32 4294901760, %v6400_v20  ;;  %v31047_v37 = vand.u32 4294901760, %v3843_v48  ;;  %v6893_v20 = vsub.f32 %v3849_v14, %v31040_v41 }
 0x294   :  { %27082 = vmatprep.subr.mxu0 %v6398_v33  ;;  %27063 = vmatprep.mubr.f32.mxu1 %v30597_v53  ;;  %v26719_v19 = vpop.f32.mrf.mxu0  ;;  %v31036_v35 = vpop.f32.mrf.mxu1 }
 0x295   :  { %27083 = vmatpush3.msra.mxu0 %v6398_v33  ;;  %27064 = vmatmul.mubr.f32.vlgmr.msra.gmra.mxu1 %v30713_v3  ;;  %v3494_v25 = vadd.f32 %v26719_v19, %v30546_v17 }
 0x296   :  { %27073 = vmatprep.subr.mxu1 %v6394_v42  ;;  %27084 = vmatprep.mubr.f32.mxu0 %v30611_v22  ;;  %v31043_v28 = vpop.f32.mrf.mxu0  ;;  %v26843_v34 = vpop.f32.mrf.mxu1 }
 0x297   :  { %27094 = vmatprep.subr.mxu0 %v6392_v24  ;;  %27074 = vmatpush3.msra.mxu1 %v6394_v42  ;;  %v31045_v10 = vadd.f32 %v26843_v34, %v3494_v25  ;;  %v6900_v25 = vsub.f32 %v3843_v48, %v31047_v37 }
 0x298   :  { %27085 = vmatmul.mubr.f32.vlgmr.msra.gmra.mxu0 %v30723_v45  ;;  %27075 = vmatprep.subr.mxu1 %v6401_v58  ;;  %v26722_v33 = vpop.f32.mrf.mxu0  ;;  %v31050_v17 = vpop.f32.mrf.mxu1 }
 0x299   :  { %27095 = vmatpush3.msra.mxu0 %v6392_v24  ;;  %27076 = vmatpush3.msra.mxu1 %v6401_v58  ;;  %v3506_v18 = vadd.f32 %v26722_v33, %v30556_v43  ;;  %v3314_v33 = vadd.f32 %v30802_v5, %v30396_v63 }
 0x29a   :  { %27096 = vmatprep.subr.mxu0 %v6399_v12  ;;  %27077 = vmatprep.mubr.f32.mxu1 %v30597_v53  ;;  %v31055_v46 = vpop.f32.mrf.mxu0  ;;  %v26846_v42 = vpop.f32.mrf.mxu1 }
 0x29b   :  { %27097 = vmatpush3.msra.mxu0 %v6399_v12  ;;  %27078 = vmatmul.mubr.f32.vlgmr.msra.gmra.mxu1 %v30713_v3  ;;  %v31058_v19 = vadd.f32 %v26846_v42, %v3506_v18  ;;  %v6894_v12 = vand.u32 4294901760, %v6893_v20 }
 0x29c   :  { %27087 = vmatprep.subr.mxu1 %v30973_v31  ;;  %27098 = vmatprep.mubr.f32.mxu0 %v30597_v53  ;;  %v26725_v43 = vpop.f32.mrf.mxu0  ;;  %v31063_v24 = vpop.f32.mrf.mxu1 }
 0x29d   :  { %27108 = vmatprep.subr.mxu0 %v31040_v41  ;;  %27088 = vmatpush3.msra.mxu1 %v30973_v31  ;;  %v3518_v14 = vadd.f32 %v26725_v43, %v30566_v52  ;;  %v6901_v52 = vand.u32 4294901760, %v6900_v25  ;;  %v6895_v63 = vsub.f32 %v6893_v20, %v6894_v12 }
 0x29e   :  { %27099 = vmatmul.mubr.f32.vlgmr.msra.gmra.mxu0 %v30713_v3  ;;  %27089 = vmatprep.subr.mxu1 %v30979_v7  ;;  %v31070_v58 = vpop.f32.mrf.mxu0  ;;  %v26849_v48 = vpop.f32.mrf.mxu1 }
 0x29f   :  { %27109 = vmatpush3.msra.mxu0 %v31040_v41  ;;  %27090 = vmatpush3.msra.mxu1 %v30979_v7  ;;  %v31074_v34 = vadd.f32 %v26849_v48, %v3518_v14  ;;  %v3308_v14 = vadd.f32 %v30811_v8, %v30401_v49  ;;  %v6902_v49 = vsub.f32 %v6900_v25, %v6901_v52 }
 0x2a0   :  { %27110 = vmatprep.subr.mxu0 %v31047_v37  ;;  %27091 = vmatprep.mubr.f32.mxu1 %v30625_v26  ;;  %v26728_v18 = vpop.f32.mrf.mxu0  ;;  %v31080_v42 = vpop.f32.mrf.mxu1 }
 0x2a1   :  { %34070 = vst [vmem:[#allocation130_spill] sm:$0xff] %v31074_v34  ;;  %34071 = vst [vmem:[#allocation131_spill] sm:$0xff] %v31080_v42  ;;  %27111 = vmatpush3.msra.mxu0 %v31047_v37  ;;  %27092 = vmatmul.mubr.f32.vlgmr.msra.gmra.mxu1 %v30733_v39  ;;  %v3530_v43 = vadd.f32 %v26728_v18, %v30577_v15  ;;  %v3861_v42 = vadd.f32 %v30813_v60, %v3314_v33 }
 0x2a2   :  { %27101 = vmatprep.subr.mxu1 %v30973_v31  ;;  %27112 = vmatprep.mubr.f32.mxu0 %v30651_v47  ;;  %v31089_v5 = vpop.f32.mrf.mxu0  ;;  %v26852_v48 = vpop.f32.mrf.mxu1 }
 0x2a3   :  { %34072 = vst [vmem:[#allocation132_spill] sm:$0xff] %v31089_v5  ;;  %27122 = vmatprep.subr.mxu0 %v6893_v20  ;;  %27102 = vmatpush3.msra.mxu1 %v30973_v31  ;;  %v31092_v34 = vadd.f32 %v26852_v48, %v3530_v43  ;;  %v3855_v5 = vadd.f32 %v30821_v55, %v3308_v14  ;;  %v6896_v31 = vand.u32 4294901760, %v6895_v63  ;;  %v31108_v48 = vand.u32 4294901760, %v3861_v42 }
 0x2a4   :  { %27113 = vmatmul.mubr.f32.vlgmr.msra.gmra.mxu0 %v30748_v6  ;;  %27103 = vmatprep.subr.mxu1 %v30979_v7  ;;  %v26731_v15 = vpop.f32.mrf.mxu0  ;;  %v31097_v8 = vpop.f32.mrf.mxu1 }
 0x2a5   :  { %27123 = vmatpush3.msra.mxu0 %v6893_v20  ;;  %27104 = vmatpush3.msra.mxu1 %v30979_v7  ;;  %v3542_v18 = vadd.f32 %v26731_v15, %v30589_v9  ;;  %v6903_v9 = vand.u32 4294901760, %v6902_v49  ;;  %v31114_v14 = vand.u32 4294901760, %v3855_v5  ;;  %v7395_v49 = vsub.f32 %v3861_v42, %v31108_v48 }
 0x2a6   :  { %27124 = vmatprep.subr.mxu0 %v6900_v25  ;;  %27105 = vmatprep.mubr.f32.mxu1 %v30597_v53  ;;  %v31103_v60 = vpop.f32.mrf.mxu0  ;;  %v26855_v33 = vpop.f32.mrf.mxu1 }
 0x2a7   :  { %27125 = vmatpush3.msra.mxu0 %v6900_v25  ;;  %27106 = vmatmul.mubr.f32.vlgmr.msra.gmra.mxu1 %v30713_v3  ;;  %v31106_v43 = vadd.f32 %v26855_v33, %v3542_v18  ;;  %v7402_v33 = vsub.f32 %v3855_v5, %v31114_v14 }
 0x2a8   :  { %27115 = vmatprep.subr.mxu1 %v6896_v31  ;;  %27126 = vmatprep.mubr.f32.mxu0 %v30611_v22  ;;  %v26734_v7 = vpop.f32.mrf.mxu0  ;;  %v31111_v55 = vpop.f32.mrf.mxu1 }
 0x2a9   :  { %27136 = vmatprep.subr.mxu0 %v6894_v12  ;;  %27116 = vmatpush3.msra.mxu1 %v6896_v31  ;;  %v3554_v20 = vadd.f32 %v26734_v7, %v30602_v32 }
 0x2aa   :  { %27127 = vmatmul.mubr.f32.vlgmr.msra.gmra.mxu0 %v30723_v45  ;;  %27117 = vmatprep.subr.mxu1 %v6903_v9  ;;  %v31117_v25 = vpop.f32.mrf.mxu0  ;;  %v26858_v63 = vpop.f32.mrf.mxu1 }
 0x2ab   :  { %27137 = vmatpush3.msra.mxu0 %v6894_v12  ;;  %27118 = vmatpush3.msra.mxu1 %v6903_v9  ;;  %v31119_v15 = vadd.f32 %v26858_v63, %v3554_v20  ;;  %v34078_v20 = vld [vmem:[#allocation89_spill] sm:$0xff] }
 0x2ac   :  { %27138 = vmatprep.subr.mxu0 %v6901_v52  ;;  %27119 = vmatprep.mubr.f32.mxu1 %v30597_v53  ;;  %v26737_v18 = vpop.f32.mrf.mxu0  ;;  %v31123_v31 = vpop.f32.mrf.mxu1  ;;  %v3326_v63 = vadd.f32 %v30819_v61, %v34078_v20 }
 0x2ad   :  { %34073 = vst [vmem:[#allocation133_spill] sm:$0xff] %v31119_v15  ;;  %34074 = vst [vmem:[#allocation134_spill] sm:$0xff] %v31123_v31  ;;  %27139 = vmatpush3.msra.mxu0 %v6901_v52  ;;  %27120 = vmatmul.mubr.f32.vlgmr.msra.gmra.mxu1 %v30713_v3  ;;  %v3566_v32 = vadd.f32 %v26737_v18, %v30616_v23  ;;  %v7396_v23 = vand.u32 4294901760, %v7395_v49  ;;  %v7403_v18 = vand.u32 4294901760, %v7402_v33  ;;  %v34083_v15 = vld [vmem:[#allocation98_spill] sm:$0xff] }
 0x2ae   :  { %27129 = vmatprep.subr.mxu1 %v31040_v41  ;;  %27140 = vmatprep.mubr.f32.mxu0 %v30597_v53  ;;  %v31130_v12 = vpop.f32.mrf.mxu0  ;;  %v26861_v42 = vpop.f32.mrf.mxu1  ;;  %v3873_v31 = vadd.f32 %v34083_v15, %v3326_v63 }
 0x2af   :  { %34075 = vst [vmem:[#allocation135_spill] sm:$0xff] %v31130_v12  ;;  %27150 = vmatprep.subr.mxu0 %v31108_v48  ;;  %27130 = vmatpush3.msra.mxu1 %v31040_v41  ;;  %v31134_v9 = vadd.f32 %v26861_v42, %v3566_v32  ;;  %v7397_v61 = vsub.f32 %v7395_v49, %v7396_v23 }
 0x2b0   :  { %27141 = vmatmul.mubr.f32.vlgmr.msra.gmra.mxu0 %v30713_v3  ;;  %27131 = vmatprep.subr.mxu1 %v31047_v37  ;;  %v26740_v52 = vpop.f32.mrf.mxu0  ;;  %v31138_v5 = vpop.f32.mrf.mxu1 }
 0x2b1   :  { %34076 = vst [vmem:[#allocation136_spill] sm:$0xff] %v31134_v9  ;;  %34077 = vst [vmem:[#allocation137_spill] sm:$0xff] %v31138_v5  ;;  %27151 = vmatpush3.msra.mxu0 %v31108_v48  ;;  %27132 = vmatpush3.msra.mxu1 %v31047_v37  ;;  %v3578_v7 = vadd.f32 %v26740_v52, %v30630_v38  ;;  %v34081_v5 = vld [vmem:[#allocation90_spill] sm:$0xff] }
 0x2b2   :  { %27152 = vmatprep.subr.mxu0 %v31114_v14  ;;  %27133 = vmatprep.mubr.f32.mxu1 %v30625_v26  ;;  %v31147_v32 = vpop.f32.mrf.mxu0  ;;  %v26864_v42 = vpop.f32.mrf.mxu1  ;;  %v3320_v38 = vadd.f32 %v30826_v0, %v34081_v5  ;;  %v7404_v0 = vsub.f32 %v7402_v33, %v7403_v18 }
 0x2b3   :  { %34079 = vst [vmem:[#allocation138_spill] sm:$0xff] %v31147_v32  ;;  %27153 = vmatpush3.msra.mxu0 %v31114_v14  ;;  %27134 = vmatmul.mubr.f32.vlgmr.msra.gmra.mxu1 %v30733_v39  ;;  %v31151_v9 = vadd.f32 %v26864_v42, %v3578_v7  ;;  %v34082_v32 = vld [vmem:[#allocation57_spill] sm:$0xff] }
 0x2b4   :  { %27143 = vmatprep.subr.mxu1 %v31040_v41  ;;  %27154 = vmatprep.mubr.f32.mxu0 %v30651_v47  ;;  %v26743_v52 = vpop.f32.mrf.mxu0  ;;  %v31157_v20 = vpop.f32.mrf.mxu1 }
 0x2b5   :  { %34080 = vst [vmem:[#allocation139_spill] sm:$0xff] %v31151_v9  ;;  %27164 = vmatprep.subr.mxu0 %v7395_v49  ;;  %27144 = vmatpush3.msra.mxu1 %v31040_v41  ;;  %v3590_v12 = vadd.f32 %v26743_v52, %v34082_v32  ;;  %v3867_v9 = vadd.f32 %v30836_v30, %v3320_v38  ;;  %v7398_v41 = vand.u32 4294901760, %v7397_v61  ;;  %v34086_v32 = vld [vmem:[#allocation63_spill] sm:$0xff] }
 0x2b6   :  { %27155 = vmatmul.mubr.f32.vlgmr.msra.gmra.mxu0 %v30748_v6  ;;  %27145 = vmatprep.subr.mxu1 %v31047_v37  ;;  %v31164_v5 = vpop.f32.mrf.mxu0  ;;  %v26867_v7 = vpop.f32.mrf.mxu1 }
 0x2b7   :  { %34084 = vst [vmem:[#allocation140_spill] sm:$0xff] %v31164_v5  ;;  %27165 = vmatpush3.msra.mxu0 %v7395_v49  ;;  %27146 = vmatpush3.msra.mxu1 %v31047_v37  ;;  %v31167_v42 = vadd.f32 %v26867_v7, %v3590_v12  ;;  %v31175_v5 = vand.u32 4294901760, %v3873_v31  ;;  %v7405_v37 = vand.u32 4294901760, %v7404_v0  ;;  %v31182_v38 = vand.u32 4294901760, %v3867_v9  ;;  %v34090_v7 = vld [vmem:[#allocation68_spill] sm:$0xff] }
 0x2b8   :  { %27166 = vmatprep.subr.mxu0 %v7402_v33  ;;  %27147 = vmatprep.mubr.f32.mxu1 %v30597_v53  ;;  %v26746_v15 = vpop.f32.mrf.mxu0  ;;  %v31171_v63 = vpop.f32.mrf.mxu1 }
 0x2b9   :  { %34085 = vst [vmem:[#allocation141_spill] sm:$0xff] %v31167_v42  ;;  %27167 = vmatpush3.msra.mxu0 %v7402_v33  ;;  %27148 = vmatmul.mubr.f32.vlgmr.msra.gmra.mxu1 %v30713_v3  ;;  %v3602_v52 = vadd.f32 %v26746_v15, %v34086_v32  ;;  %v7897_v0 = vsub.f32 %v3873_v31, %v31175_v5  ;;  %v34094_v31 = vld [vmem:[#allocation72_spill] sm:$0xff] }
 0x2ba   :  { %27157 = vmatprep.subr.mxu1 %v7398_v41  ;;  %27168 = vmatprep.mubr.f32.mxu0 %v30611_v22  ;;  %v31178_v49 = vpop.f32.mrf.mxu0  ;;  %v26870_v30 = vpop.f32.mrf.mxu1 }
 0x2bb   :  { %34087 = vst [vmem:[#allocation142_spill] sm:$0xff] %v31178_v49  ;;  %27178 = vmatprep.subr.mxu0 %v7396_v23  ;;  %27158 = vmatpush3.msra.mxu1 %v7398_v41  ;;  %v31180_v12 = vadd.f32 %v26870_v30, %v3602_v52  ;;  %v7904_v30 = vsub.f32 %v3867_v9, %v31182_v38  ;;  %v34105_v49 = vld [vmem:[#allocation16_spill] sm:$0xff] }
 0x2bc   :  { %27169 = vmatmul.mubr.f32.vlgmr.msra.gmra.mxu0 %v30723_v45  ;;  %27159 = vmatprep.subr.mxu1 %v7405_v37  ;;  %v26749_v33 = vpop.f32.mrf.mxu0  ;;  %v31185_v61 = vpop.f32.mrf.mxu1 }
 0x2bd   :  { %34088 = vst [vmem:[#allocation62_spill] sm:$0xff] %v31180_v12  ;;  %34089 = vst [vmem:[#allocation66_spill] sm:$0xff] %v31185_v61  ;;  %27179 = vmatpush3.msra.mxu0 %v7396_v23  ;;  %27160 = vmatpush3.msra.mxu1 %v7405_v37  ;;  %v3614_v15 = vadd.f32 %v26749_v33, %v34090_v7  ;;  %v34101_v61 = vld [vmem:[#allocation94_spill] sm:$0xff] }
 0x2be   :  { %27180 = vmatprep.subr.mxu0 %v7403_v18  ;;  %27161 = vmatprep.mubr.f32.mxu1 %v30597_v53  ;;  %v31190_v41 = vpop.f32.mrf.mxu0  ;;  %v26873_v32 = vpop.f32.mrf.mxu1 }
 0x2bf   :  { %34091 = vst [vmem:[#allocation76_spill] sm:$0xff] %v31190_v41  ;;  %27181 = vmatpush3.msra.mxu0 %v7403_v18  ;;  %27162 = vmatmul.mubr.f32.vlgmr.msra.gmra.mxu1 %v30713_v3  ;;  %v31193_v52 = vadd.f32 %v26873_v32, %v3614_v15  ;;  %v7898_v18 = vand.u32 4294901760, %v7897_v0  ;;  %v34097_v32 = vld [vmem:[#allocation92_spill] sm:$0xff] }
 0x2c0   :  { %27171 = vmatprep.subr.mxu1 %v31108_v48  ;;  %27182 = vmatprep.mubr.f32.mxu0 %v30597_v53  ;;  %v26752_v23 = vpop.f32.mrf.mxu0  ;;  %v31198_v37 = vpop.f32.mrf.mxu1 }
 0x2c1   :  { %34092 = vst [vmem:[#allocation89_spill] sm:$0xff] %v31193_v52  ;;  %34093 = vst [vmem:[#allocation90_spill] sm:$0xff] %v31198_v37  ;;  %27192 = vmatprep.subr.mxu0 %v31175_v5  ;;  %27172 = vmatpush3.msra.mxu1 %v31108_v48  ;;  %v3626_v33 = vadd.f32 %v26752_v23, %v34094_v31  ;;  %v34098_v52 = vld [vmem:[#allocation29_spill] sm:$0xff]  ;;  %v7905_v23 = vand.u32 4294901760, %v7904_v30 }
 0x2c2   :  { %27183 = vmatmul.mubr.f32.vlgmr.msra.gmra.mxu0 %v30713_v3  ;;  %27173 = vmatprep.subr.mxu1 %v31114_v14  ;;  %v31205_v7 = vpop.f32.mrf.mxu0  ;;  %v26876_v9 = vpop.f32.mrf.mxu1  ;;  %v3338_v37 = vadd.f32 %v34098_v52, %v34097_v32  ;;  %v7899_v52 = vsub.f32 %v7897_v0, %v7898_v18 }
 0x2c3   :  { %34095 = vst [vmem:[#allocation57_spill] sm:$0xff] %v31205_v7  ;;  %27193 = vmatpush3.msra.mxu0 %v31175_v5  ;;  %27174 = vmatpush3.msra.mxu1 %v31114_v14  ;;  %v31209_v15 = vadd.f32 %v26876_v9, %v3626_v33  ;;  %v34100_v7 = vld [vmem:[#allocation77_spill] sm:$0xff]  ;;  %v3332_v33 = vadd.f32 %v30841_v40, %v34101_v61 }
 0x2c4   :  { %27194 = vmatprep.subr.mxu0 %v31182_v38  ;;  %27175 = vmatprep.mubr.f32.mxu1 %v30625_v26  ;;  %v26755_v31 = vpop.f32.mrf.mxu0  ;;  %v31215_v41 = vpop.f32.mrf.mxu1  ;;  %v7906_v40 = vsub.f32 %v7904_v30, %v7905_v23 }
 0x2c5   :  { %34096 = vst [vmem:[#allocation98_spill] sm:$0xff] %v31209_v15  ;;  %34099 = vst [vmem:[#allocation63_spill] sm:$0xff] %v31215_v41  ;;  %27195 = vmatpush3.msra.mxu0 %v31182_v38  ;;  %27176 = vmatmul.mubr.f32.vlgmr.msra.gmra.mxu1 %v30733_v39  ;;  %v3638_v12 = vadd.f32 %v26755_v31, %v34100_v7  ;;  %v3885_v41 = vadd.f32 %v30843_v54, %v3338_v37  ;;  %v34104_v31 = vld [vmem:[#allocation80_spill] sm:$0xff] }
 0x2c6   :  { %27185 = vmatprep.subr.mxu1 %v31108_v48  ;;  %27196 = vmatprep.mubr.f32.mxu0 %v30651_v47  ;;  %v31224_v9 = vpop.f32.mrf.mxu0  ;;  %v26879_v32 = vpop.f32.mrf.mxu1  ;;  %v3879_v42 = vadd.f32 %v34105_v49, %v3332_v33  ;;  %v34109_v33 = vld [vmem:[#allocation83_spill] sm:$0xff] }
 0x2c7   :  { %34102 = vst [vmem:[#allocation68_spill] sm:$0xff] %v31224_v9  ;;  %27206 = vmatprep.subr.mxu0 %v7897_v0  ;;  %27186 = vmatpush3.msra.mxu1 %v31108_v48  ;;  %v31227_v15 = vadd.f32 %v26879_v32, %v3638_v12  ;;  %v7900_v48 = vand.u32 4294901760, %v7899_v52  ;;  %v31243_v32 = vand.u32 4294901760, %v3885_v41 }
 0x2c8   :  { %27197 = vmatmul.mubr.f32.vlgmr.msra.gmra.mxu0 %v30748_v6  ;;  %27187 = vmatprep.subr.mxu1 %v31114_v14  ;;  %v26758_v61 = vpop.f32.mrf.mxu0  ;;  %v31232_v7 = vpop.f32.mrf.mxu1 }
 0x2c9   :  { %34103 = vst [vmem:[#allocation72_spill] sm:$0xff] %v31227_v15  ;;  %27207 = vmatpush3.msra.mxu0 %v7897_v0  ;;  %27188 = vmatpush3.msra.mxu1 %v31114_v14  ;;  %v3650_v9 = vadd.f32 %v26758_v61, %v34104_v31  ;;  %v7907_v14 = vand.u32 4294901760, %v7906_v40  ;;  %v31249_v61 = vand.u32 4294901760, %v3879_v42  ;;  %v8399_v40 = vsub.f32 %v3885_v41, %v31243_v32 }
 0x2ca   :  { %27208 = vmatprep.subr.mxu0 %v7904_v30  ;;  %27189 = vmatprep.mubr.f32.mxu1 %v30597_v53  ;;  %v31238_v54 = vpop.f32.mrf.mxu0  ;;  %v26882_v12 = vpop.f32.mrf.mxu1 }
 0x2cb   :  { %34106 = vst [vmem:[#allocation92_spill] sm:$0xff] %v31238_v54  ;;  %27209 = vmatpush3.msra.mxu0 %v7904_v30  ;;  %27190 = vmatmul.mubr.f32.vlgmr.msra.gmra.mxu1 %v30713_v3  ;;  %v31241_v37 = vadd.f32 %v26882_v12, %v3650_v9  ;;  %v34126_v54 = vld [vmem:[#allocation30_spill] sm:$0xff] }
 0x2cc   :  { %27199 = vmatprep.subr.mxu1 %v7900_v48  ;;  %27210 = vmatprep.mubr.f32.mxu0 %v30611_v22  ;;  %v26761_v0 = vpop.f32.mrf.mxu0  ;;  %v31246_v49 = vpop.f32.mrf.mxu1 }
 0x2cd   :  { %34107 = vst [vmem:[#allocation29_spill] sm:$0xff] %v31241_v37  ;;  %34108 = vst [vmem:[#allocation77_spill] sm:$0xff] %v31246_v49  ;;  %27220 = vmatprep.subr.mxu0 %v7898_v18  ;;  %27200 = vmatpush3.msra.mxu1 %v7900_v48  ;;  %v3662_v52 = vadd.f32 %v26761_v0, %v34109_v33  ;;  %v34113_v0 = vld [vmem:[#allocation87_spill] sm:$0xff]  ;;  %v34123_v37 = vld [vmem:[#allocation102_spill] sm:$0xff] }
 0x2ce   :  { %27211 = vmatmul.mubr.f32.vlgmr.msra.gmra.mxu0 %v30723_v45  ;;  %27201 = vmatprep.subr.mxu1 %v7907_v14  ;;  %v31252_v30 = vpop.f32.mrf.mxu0  ;;  %v26885_v9 = vpop.f32.mrf.mxu1 }
 0x2cf   :  { %34110 = vst [vmem:[#allocation94_spill] sm:$0xff] %v31252_v30  ;;  %27221 = vmatpush3.msra.mxu0 %v7898_v18  ;;  %27202 = vmatpush3.msra.mxu1 %v7907_v14  ;;  %v31254_v31 = vadd.f32 %v26885_v9, %v3662_v52  ;;  %v8406_v30 = vsub.f32 %v3879_v42, %v31249_v61  ;;  %v34117_v9 = vld [vmem:[#allocation91_spill] sm:$0xff] }
 0x2d0   :  { %27222 = vmatprep.subr.mxu0 %v7905_v23  ;;  %27203 = vmatprep.mubr.f32.mxu1 %v30597_v53  ;;  %v26764_v48 = vpop.f32.mrf.mxu0  ;;  %v31258_v12 = vpop.f32.mrf.mxu1 }
 0x2d1   :  { %34111 = vst [vmem:[#allocation80_spill] sm:$0xff] %v31254_v31  ;;  %34112 = vst [vmem:[#allocation16_spill] sm:$0xff] %v31258_v12  ;;  %27223 = vmatpush3.msra.mxu0 %v7905_v23  ;;  %27204 = vmatmul.mubr.f32.vlgmr.msra.gmra.mxu1 %v30713_v3  ;;  %v3674_v33 = vadd.f32 %v26764_v48, %v34113_v0  ;;  %v8400_v23 = vand.u32 4294901760, %v8399_v40  ;;  %v34118_v0 = vld [vmem:[#allocation96_spill] sm:$0xff]  ;;  %v34122_v12 = vld [vmem:[#allocation99_spill] sm:$0xff] }
 0x2d2   :  { %27213 = vmatprep.subr.mxu1 %v31175_v5  ;;  %27224 = vmatprep.mubr.f32.mxu0 %v30597_v53  ;;  %v31265_v18 = vpop.f32.mrf.mxu0  ;;  %v26888_v41 = vpop.f32.mrf.mxu1 }
 0x2d3   :  { %34114 = vst [vmem:[#allocation83_spill] sm:$0xff] %v31265_v18  ;;  %27234 = vmatprep.subr.mxu0 %v31243_v32  ;;  %27214 = vmatpush3.msra.mxu1 %v31175_v5  ;;  %v31269_v14 = vadd.f32 %v26888_v41, %v3674_v33  ;;  %v34119_v18 = vld [vmem:[#allocation101_spill] sm:$0xff]  ;;  %v8407_v33 = vand.u32 4294901760, %v8406_v30 }
 0x2d4   :  { %27225 = vmatmul.mubr.f32.vlgmr.msra.gmra.mxu0 %v30713_v3  ;;  %27215 = vmatprep.subr.mxu1 %v31182_v38  ;;  %v26767_v52 = vpop.f32.mrf.mxu0  ;;  %v31273_v42 = vpop.f32.mrf.mxu1  ;;  %v3350_v31 = vadd.f32 %v34119_v18, %v34118_v0  ;;  %v8401_v18 = vsub.f32 %v8399_v40, %v8400_v23 }
 0x2d5   :  { %34115 = vst [vmem:[#allocation87_spill] sm:$0xff] %v31269_v14  ;;  %34116 = vst [vmem:[#allocation143_spill] sm:$0xff] %v31273_v42  ;;  %27235 = vmatpush3.msra.mxu0 %v31243_v32  ;;  %27216 = vmatpush3.msra.mxu1 %v31182_v38  ;;  %v3686_v48 = vadd.f32 %v26767_v52, %v34117_v9  ;;  %v3344_v52 = vadd.f32 %v34123_v37, %v34122_v12 }
 0x2d6   :  { %27236 = vmatprep.subr.mxu0 %v31249_v61  ;;  %27217 = vmatprep.mubr.f32.mxu1 %v30625_v26  ;;  %v31282_v41 = vpop.f32.mrf.mxu0  ;;  %v26891_v14 = vpop.f32.mrf.mxu1  ;;  %v3897_v15 = vadd.f32 %v34126_v54, %v3350_v31  ;;  %v8408_v37 = vsub.f32 %v8406_v30, %v8407_v33 }
 0x2d7   :  { %34120 = vst [vmem:[#allocation91_spill] sm:$0xff] %v31282_v41  ;;  %27237 = vmatpush3.msra.mxu0 %v31249_v61  ;;  %27218 = vmatmul.mubr.f32.vlgmr.msra.gmra.mxu1 %v30733_v39  ;;  %v31286_v42 = vadd.f32 %v26891_v14, %v3686_v48  ;;  %v34125_v41 = vld [vmem:[#allocation25_spill] sm:$0xff] }
 0x2d8   :  { %27227 = vmatprep.subr.mxu1 %v31175_v5  ;;  %27238 = vmatprep.mubr.f32.mxu0 %v30651_v47  ;;  %v26770_v9 = vpop.f32.mrf.mxu0  ;;  %v31292_v0 = vpop.f32.mrf.mxu1 }
 0x2d9   :  { %34121 = vst [vmem:[#allocation96_spill] sm:$0xff] %v31286_v42  ;;  %34124 = vst [vmem:[#allocation101_spill] sm:$0xff] %v31292_v0  ;;  %27248 = vmatprep.subr.mxu0 %v8399_v40  ;;  %27228 = vmatpush3.msra.mxu1 %v31175_v5  ;;  %v3698_v49 = vadd.f32 %v26770_v9, %v34125_v41  ;;  %v34128_v42 = vld [vmem:[#allocation17_spill] sm:$0xff]  ;;  %v8402_v5 = vand.u32 4294901760, %v8401_v18 }
 0x2da   :  { %27239 = vmatmul.mubr.f32.vlgmr.msra.gmra.mxu0 %v30748_v6  ;;  %27229 = vmatprep.subr.mxu1 %v31182_v38  ;;  %v31299_v12 = vpop.f32.mrf.mxu0  ;;  %v26894_v14 = vpop.f32.mrf.mxu1  ;;  %v3891_v0 = vadd.f32 %v34128_v42, %v3344_v52  ;;  %v34129_v41 = vld [vmem:[#allocation97_spill] sm:$0xff] }
 0x2db   :  { %34127 = vst [vmem:[#allocation99_spill] sm:$0xff] %v31299_v12  ;;  %27249 = vmatpush3.msra.mxu0 %v8399_v40  ;;  %27230 = vmatpush3.msra.mxu1 %v31182_v38  ;;  %v31302_v48 = vadd.f32 %v26894_v14, %v3698_v49  ;;  %v31310_v12 = vand.u32 4294901760, %v3897_v15  ;;  %v8409_v38 = vand.u32 4294901760, %v8408_v37  ;;  %v34133_v37 = vld [vmem:[#allocation103_spill] sm:$0xff] }
 0x2dc   :  { %27250 = vmatprep.subr.mxu0 %v8406_v30  ;;  %27231 = vmatprep.mubr.f32.mxu1 %v30597_v53  ;;  %v26773_v54 = vpop.f32.mrf.mxu0  ;;  %v31306_v31 = vpop.f32.mrf.mxu1  ;;  %v31315_v42 = vand.u32 4294901760, %v3891_v0  ;;  %v34134_v14 = vld [vmem:[#allocation107_spill] sm:$0xff] }
 0x2dd   :  { %27251 = vmatpush3.msra.mxu0 %v8406_v30  ;;  %27232 = vmatmul.mubr.f32.vlgmr.msra.gmra.mxu1 %v30713_v3  ;;  %v3710_v9 = vadd.f32 %v26773_v54, %v34129_v41  ;;  %v8901_v30 = vsub.f32 %v3897_v15, %v31310_v12  ;;  %v34135_v41 = vld [vmem:[#allocation31_spill] sm:$0xff] }
 0x2de   :  { %27241 = vmatprep.subr.mxu1 %v8402_v5  ;;  %27252 = vmatprep.mubr.f32.mxu0 %v30611_v22  ;;  %v26897_v49 = vpop.f32.mrf.mxu1  ;;  %v8908_v52 = vsub.f32 %v3891_v0, %v31315_v42 }
 0x2df   :  { %27262 = vmatprep.subr.mxu0 %v8400_v23  ;;  %27242 = vmatpush3.msra.mxu1 %v8402_v5  ;;  %v31313_v40 = vadd.f32 %v26897_v49, %v3710_v9  ;;  %v8902_v15 = vand.u32 4294901760, %v8901_v30  ;;  %v3356_v5 = vadd.f32 %v34134_v14, %v34133_v37  ;;  %v34136_v49 = vld [vmem:[#allocation111_spill] sm:$0xff]  ;;  %v34138_v37 = vld [vmem:[#allocation108_spill] sm:$0xff] }
 0x2e0   :  { %27253 = vmatmul.mubr.f32.vlgmr.msra.gmra.mxu0 %v30723_v45  ;;  %27243 = vmatprep.subr.mxu1 %v8409_v38  ;;  %v8909_v0 = vand.u32 4294901760, %v8908_v52 }
 0x2e1   :  { %34130 = vst [vmem:[#allocation102_spill] sm:$0xff] %v31313_v40  ;;  %27263 = vmatpush3.msra.mxu0 %v8400_v23  ;;  %27244 = vmatpush3.msra.mxu1 %v8409_v38  ;;  %v34131_v23 = vld [vmem:[#allocation100_spill] sm:$0xff]  ;;  %v8903_v54 = vsub.f32 %v8901_v30, %v8902_v15 }
 0x2e2   :  { %27264 = vmatprep.subr.mxu0 %v8407_v33  ;;  %27245 = vmatprep.mubr.f32.mxu1 %v30597_v53  ;;  %v8910_v38 = vsub.f32 %v8908_v52, %v8909_v0 }
 0x2e3   :  { %27265 = vmatpush3.msra.mxu0 %v8407_v33  ;;  %27246 = vmatmul.mubr.f32.vlgmr.msra.gmra.mxu1 %v30713_v3  ;;  %v34132_v33 = vld [vmem:[#allocation106_spill] sm:$0xff] }
 0x2e4   :  { %27255 = vmatprep.subr.mxu1 %v31243_v32  ;;  %27266 = vmatprep.mubr.f32.mxu0 %v30597_v53  ;;  %v3362_v18 = vadd.f32 %v34132_v33, %v34131_v23  ;;  %v3903_v23 = vadd.f32 %v34136_v49, %v3356_v5  ;;  %v8904_v33 = vand.u32 4294901760, %v8903_v54  ;;  %v34139_v54 = vld [vmem:[#allocation105_spill] sm:$0xff] }
 0x2e5   :  { %27276 = vmatprep.subr.mxu0 %v31310_v12  ;;  %27256 = vmatpush3.msra.mxu1 %v31243_v32 }
 0x2e6   :  { %27267 = vmatmul.mubr.f32.vlgmr.msra.gmra.mxu0 %v30713_v3  ;;  %27257 = vmatprep.subr.mxu1 %v31249_v61  ;;  %v3909_v9 = vadd.f32 %v34135_v41, %v3362_v18  ;;  %v8911_v18 = vand.u32 4294901760, %v8910_v38  ;;  %v3368_v41 = vadd.f32 %v30891_v1, %v34139_v54  ;;  %v34143_v54 = vld [vmem:[#allocation110_spill] sm:$0xff] }
 0x2e7   :  { %27277 = vmatpush3.msra.mxu0 %v31310_v12  ;;  %27258 = vmatpush3.msra.mxu1 %v31249_v61 }
 0x2e8   :  { %27278 = vmatprep.subr.mxu0 %v31315_v42  ;;  %27259 = vmatprep.mubr.f32.mxu1 %v30625_v26  ;;  %v3915_v1 = vadd.f32 %v30900_v2, %v3368_v41  ;;  %v3380_v41 = vadd.f32 %v30906_v11, %v34143_v54  ;;  %v34145_v11 = vld [vmem:[#allocation117_spill] sm:$0xff] }
 0x2e9   :  { %27279 = vmatpush3.msra.mxu0 %v31315_v42  ;;  %27260 = vmatmul.mubr.f32.vlgmr.msra.gmra.mxu1 %v30733_v39 }
 0x2ea   :  { %27269 = vmatprep.subr.mxu1 %v31243_v32  ;;  %27280 = vmatprep.mubr.f32.mxu0 %v30651_v47 }
 0x2eb   :  { %27290 = vmatprep.subr.mxu0 %v8901_v30  ;;  %27270 = vmatpush3.msra.mxu1 %v31243_v32  ;;  %v31348_v32 = vand.u32 4294901760, %v3909_v9 }
 0x2ec   :  { %27281 = vmatmul.mubr.f32.vlgmr.msra.gmra.mxu0 %v30748_v6  ;;  %27271 = vmatprep.subr.mxu1 %v31249_v61 }
 0x2ed   :  { %27291 = vmatpush3.msra.mxu0 %v8901_v30  ;;  %27272 = vmatpush3.msra.mxu1 %v31249_v61  ;;  %v31351_v30 = vand.u32 4294901760, %v3903_v23  ;;  %v9403_v61 = vsub.f32 %v3909_v9, %v31348_v32 }
 0x2ee   :  { %27292 = vmatprep.subr.mxu0 %v8908_v52  ;;  %27273 = vmatprep.mubr.f32.mxu1 %v30597_v53 }
 0x2ef   :  { %27293 = vmatpush3.msra.mxu0 %v8908_v52  ;;  %27274 = vmatmul.mubr.f32.vlgmr.msra.gmra.mxu1 %v30713_v3  ;;  %v9410_v52 = vsub.f32 %v3903_v23, %v31351_v30 }
 0x2f0   :  { %27283 = vmatprep.subr.mxu1 %v8904_v33  ;;  %27294 = vmatprep.mubr.f32.mxu0 %v30611_v22 }
 0x2f1   :  { %27304 = vmatprep.subr.mxu0 %v8902_v15  ;;  %27284 = vmatpush3.msra.mxu1 %v8904_v33  ;;  %v9411_v5 = vand.u32 4294901760, %v9410_v52  ;;  %v31387_v33 = vand.u32 4294901760, %v3915_v1 }
 0x2f2   :  { %27295 = vmatmul.mubr.f32.vlgmr.msra.gmra.mxu0 %v30723_v45  ;;  %27285 = vmatprep.subr.mxu1 %v8911_v18 }
 0x2f3   :  { %27305 = vmatpush3.msra.mxu0 %v8902_v15  ;;  %27286 = vmatpush3.msra.mxu1 %v8911_v18  ;;  %v9404_v15 = vand.u32 4294901760, %v9403_v61  ;;  %v9412_v49 = vsub.f32 %v9410_v52, %v9411_v5  ;;  %v31398_v18 = vpop.f32.mrf.mxu0 }
 0x2f4   :  { %27306 = vmatprep.subr.mxu0 %v8909_v0  ;;  %27287 = vmatprep.mubr.f32.mxu1 %v30597_v53 }
 0x2f5   :  { %27307 = vmatpush3.msra.mxu0 %v8909_v0  ;;  %27288 = vmatmul.mubr.f32.vlgmr.msra.gmra.mxu1 %v30713_v3  ;;  %v34137_v0 = vld [vmem:[#allocation104_spill] sm:$0xff]  ;;  %v9405_v9 = vsub.f32 %v9403_v61, %v9404_v15 }
 0x2f6   :  { %27297 = vmatprep.subr.mxu1 %v31310_v12  ;;  %27308 = vmatprep.mubr.f32.mxu0 %v30597_v53  ;;  %v3374_v14 = vadd.f32 %v34138_v37, %v34137_v0  ;;  %v34141_v0 = vld [vmem:[#allocation113_spill] sm:$0xff] }
 0x2f7   :  { %27318 = vmatprep.subr.mxu0 %v31348_v32  ;;  %27298 = vmatpush3.msra.mxu1 %v31310_v12  ;;  %v9406_v23 = vand.u32 4294901760, %v9405_v9 }
 0x2f8   :  { %27309 = vmatmul.mubr.f32.vlgmr.msra.gmra.mxu0 %v30713_v3  ;;  %27299 = vmatprep.subr.mxu1 %v31315_v42  ;;  %v3921_v38 = vadd.f32 %v30893_v44, %v3374_v14  ;;  %v9413_v44 = vand.u32 4294901760, %v9412_v49  ;;  %v34144_v49 = vld [vmem:[#allocation115_spill] sm:$0xff] }
 0x2f9   :  { %27319 = vmatpush3.msra.mxu0 %v31348_v32  ;;  %27300 = vmatpush3.msra.mxu1 %v31315_v42 }
 0x2fa   :  { %27320 = vmatprep.subr.mxu0 %v31351_v30  ;;  %27301 = vmatprep.mubr.f32.mxu1 %v30625_v26 }
 0x2fb   :  { %27321 = vmatpush3.msra.mxu0 %v31351_v30  ;;  %27302 = vmatmul.mubr.f32.vlgmr.msra.gmra.mxu1 %v30733_v39 }
 0x2fc   :  { %27311 = vmatprep.subr.mxu1 %v31310_v12  ;;  %27322 = vmatprep.mubr.f32.mxu0 %v30651_v47 }
 0x2fd   :  { %27332 = vmatprep.subr.mxu0 %v9403_v61  ;;  %27312 = vmatpush3.msra.mxu1 %v31310_v12  ;;  %v31384_v12 = vand.u32 4294901760, %v3921_v38 }
 0x2fe   :  { %27323 = vmatmul.mubr.f32.vlgmr.msra.gmra.mxu0 %v30748_v6  ;;  %27313 = vmatprep.subr.mxu1 %v31315_v42 }
 0x2ff   :  { %27333 = vmatpush3.msra.mxu0 %v9403_v61  ;;  %27314 = vmatpush3.msra.mxu1 %v31315_v42  ;;  %v9905_v2 = vsub.f32 %v3921_v38, %v31384_v12  ;;  %v9912_v42 = vsub.f32 %v3915_v1, %v31387_v33 }
 0x300   :  { %27334 = vmatprep.subr.mxu0 %v9410_v52  ;;  %27315 = vmatprep.mubr.f32.mxu1 %v30597_v53 }
 0x301   :  { %27335 = vmatpush3.msra.mxu0 %v9410_v52  ;;  %27316 = vmatmul.mubr.f32.vlgmr.msra.gmra.mxu1 %v30713_v3  ;;  %v9906_v61 = vand.u32 4294901760, %v9905_v2  ;;  %v9913_v14 = vand.u32 4294901760, %v9912_v42 }
 0x302   :  { %27325 = vmatprep.subr.mxu1 %v9406_v23  ;;  %27336 = vmatprep.mubr.f32.mxu0 %v30611_v22 }
 0x303   :  { %27346 = vmatprep.subr.mxu0 %v9404_v15  ;;  %27326 = vmatpush3.msra.mxu1 %v9406_v23  ;;  %v9907_v9 = vsub.f32 %v9905_v2, %v9906_v61  ;;  %v9914_v23 = vsub.f32 %v9912_v42, %v9913_v14 }
 0x304   :  { %27337 = vmatmul.mubr.f32.vlgmr.msra.gmra.mxu0 %v30723_v45  ;;  %27327 = vmatprep.subr.mxu1 %v9413_v44 }
 0x305   :  { %27347 = vmatpush3.msra.mxu0 %v9404_v15  ;;  %27328 = vmatpush3.msra.mxu1 %v9413_v44  ;;  %v34140_v15 = vld [vmem:[#allocation109_spill] sm:$0xff]  ;;  %v3927_v44 = vadd.f32 %v34145_v11, %v3380_v41 }
 0x306   :  { %27348 = vmatprep.subr.mxu0 %v9411_v5  ;;  %27329 = vmatprep.mubr.f32.mxu1 %v30597_v53  ;;  %v3386_v37 = vadd.f32 %v34141_v0, %v34140_v15  ;;  %v9908_v15 = vand.u32 4294901760, %v9907_v9  ;;  %v31423_v0 = vpop.f32.mrf.mxu1 }
 0x307   :  { %27349 = vmatpush3.msra.mxu0 %v9411_v5  ;;  %27330 = vmatmul.mubr.f32.vlgmr.msra.gmra.mxu1 %v30713_v3  ;;  %34146 = vst [vmem:[#allocation30_spill] sm:$0xff] %v31423_v0  ;;  %v31431_v41 = vand.u32 4294901760, %v3927_v44 }
 0x308   :  { %27339 = vmatprep.subr.mxu1 %v31348_v32  ;;  %27350 = vmatprep.mubr.f32.mxu0 %v30597_v53  ;;  %v3933_v1 = vadd.f32 %v34144_v49, %v3386_v37 }
 0x309   :  { %27360 = vmatprep.subr.mxu0 %v31384_v12  ;;  %27340 = vmatpush3.msra.mxu1 %v31348_v32 }
 0x30a   :  { %27351 = vmatmul.mubr.f32.vlgmr.msra.gmra.mxu0 %v30713_v3  ;;  %27341 = vmatprep.subr.mxu1 %v31351_v30  ;;  %v31428_v37 = vand.u32 4294901760, %v3933_v1 }
 0x30b   :  { %27361 = vmatpush3.msra.mxu0 %v31384_v12  ;;  %27342 = vmatpush3.msra.mxu1 %v31351_v30  ;;  %v26904_v52 = vpop.f32.mrf.mxu0 }
 0x30c   :  { %27362 = vmatprep.subr.mxu0 %v31387_v33  ;;  %27343 = vmatprep.mubr.f32.mxu1 %v30625_v26  ;;  %v10407_v11 = vsub.f32 %v3933_v1, %v31428_v37 }
 0x30d   :  { %27363 = vmatpush3.msra.mxu0 %v31387_v33  ;;  %27344 = vmatmul.mubr.f32.vlgmr.msra.gmra.mxu1 %v30733_v39  ;;  %v31410_v5 = vpop.f32.mrf.mxu0 }
 0x30e   :  { %34142 = vst [vmem:[#allocation25_spill] sm:$0xff] %v31410_v5  ;;  %27353 = vmatprep.subr.mxu1 %v31348_v32  ;;  %27364 = vmatprep.mubr.f32.mxu0 %v30651_v47 }
 0x30f   :  { %27374 = vmatprep.subr.mxu0 %v9905_v2  ;;  %27354 = vmatpush3.msra.mxu1 %v31348_v32  ;;  %v26918_v38 = vpop.f32.mrf.mxu0 }
 0x310   :  { %27365 = vmatmul.mubr.f32.vlgmr.msra.gmra.mxu0 %v30748_v6  ;;  %27355 = vmatprep.subr.mxu1 %v31351_v30 }
 0x311   :  { %27375 = vmatpush3.msra.mxu0 %v9905_v2  ;;  %27356 = vmatpush3.msra.mxu1 %v31351_v30  ;;  %v31425_v32 = vpop.f32.mrf.mxu0  ;;  %v9915_v2 = vand.u32 4294901760, %v9914_v23 }
 0x312   :  { %27376 = vmatprep.subr.mxu0 %v9912_v42  ;;  %27357 = vmatprep.mubr.f32.mxu1 %v30597_v53  ;;  %34147 = vst [vmem:[#allocation17_spill] sm:$0xff] %v31425_v32 }
 0x313   :  { %27377 = vmatpush3.msra.mxu0 %v9912_v42  ;;  %27358 = vmatmul.mubr.f32.vlgmr.msra.gmra.mxu1 %v30713_v3 }
 0x314   :  { %27367 = vmatprep.subr.mxu1 %v9908_v15  ;;  %27378 = vmatprep.mubr.f32.mxu0 %v30611_v22  ;;  %v26911_v30 = vpop.f32.mrf.mxu1 }
 0x315   :  { %27388 = vmatprep.subr.mxu0 %v9906_v61  ;;  %27368 = vmatpush3.msra.mxu1 %v9908_v15  ;;  %v4437_v54 = vadd.f32 %v26911_v30, %v26904_v52  ;;  %v10414_v15 = vsub.f32 %v3927_v44, %v31431_v41  ;;  %v34151_v44 = vld [vmem:[#allocation112_spill] sm:$0xff]  ;;  %v34152_v30 = vld [vmem:[#allocation34_spill] sm:$0xff] }
 0x316   :  { %27379 = vmatmul.mubr.f32.vlgmr.msra.gmra.mxu0 %v30723_v45  ;;  %27369 = vmatprep.subr.mxu1 %v9915_v2  ;;  %v31434_v9 = vpop.f32.mrf.mxu1  ;;  %v26932_v42 = vpop.f32.mrf.mxu0 }
 0x317   :  { %34148 = vst [vmem:[#allocation97_spill] sm:$0xff] %v31434_v9  ;;  %27389 = vmatpush3.msra.mxu0 %v9906_v61  ;;  %27370 = vmatpush3.msra.mxu1 %v9915_v2  ;;  %v4520_v49 = vadd.f32 %v26918_v38, %v4437_v54  ;;  %v3398_v54 = vadd.f32 %v34152_v30, %v34151_v44 }
 0x318   :  { %27390 = vmatprep.subr.mxu0 %v9913_v14  ;;  %27371 = vmatprep.mubr.f32.mxu1 %v30597_v53  ;;  %v31438_v23 = vpop.f32.mrf.mxu0 }
 0x319   :  { %34149 = vst [vmem:[#allocation100_spill] sm:$0xff] %v31438_v23  ;;  %27391 = vmatpush3.msra.mxu0 %v9913_v14  ;;  %27372 = vmatmul.mubr.f32.vlgmr.msra.gmra.mxu1 %v30713_v3  ;;  %v26925_v52 = vpop.f32.mrf.mxu1  ;;  %v10408_v14 = vand.u32 4294901760, %v10407_v11  ;;  %v34155_v23 = vld [vmem:[#allocation119_spill] sm:$0xff] }
 0x31a   :  { %27381 = vmatprep.subr.mxu1 %v31384_v12  ;;  %27392 = vmatprep.mubr.f32.mxu0 %v30597_v53  ;;  %v4603_v61 = vadd.f32 %v26925_v52, %v4520_v49  ;;  %v10415_v49 = vand.u32 4294901760, %v10414_v15 }
 0x31b   :  { %27402 = vmatprep.subr.mxu0 %v31428_v37  ;;  %27382 = vmatpush3.msra.mxu1 %v31384_v12  ;;  %v31446_v38 = vpop.f32.mrf.mxu1  ;;  %v10409_v44 = vsub.f32 %v10407_v11, %v10408_v14 }
 0x31c   :  { %34150 = vst [vmem:[#allocation106_spill] sm:$0xff] %v31446_v38  ;;  %27393 = vmatmul.mubr.f32.vlgmr.msra.gmra.mxu0 %v30713_v3  ;;  %27383 = vmatprep.subr.mxu1 %v31387_v33  ;;  %v4686_v1 = vadd.f32 %v26932_v42, %v4603_v61  ;;  %v26946_v2 = vpop.f32.mrf.mxu0  ;;  %v34154_v61 = vld [vmem:[#allocation114_spill] sm:$0xff]  ;;  %v10416_v5 = vsub.f32 %v10414_v15, %v10415_v49 }
 0x31d   :  { %27403 = vmatpush3.msra.mxu0 %v31428_v37  ;;  %27384 = vmatpush3.msra.mxu1 %v31387_v33  ;;  %v3392_v38 = vadd.f32 %v34155_v23, %v34154_v61  ;;  %v34158_v61 = vld [vmem:[#allocation70_spill] sm:$0xff] }
 0x31e   :  { %27404 = vmatprep.subr.mxu0 %v31431_v41  ;;  %27385 = vmatprep.mubr.f32.mxu1 %v30625_v26  ;;  %v31456_v52 = vpop.f32.mrf.mxu0 }
 0x31f   :  { %34153 = vst [vmem:[#allocation103_spill] sm:$0xff] %v31456_v52  ;;  %27405 = vmatpush3.msra.mxu0 %v31431_v41  ;;  %27386 = vmatmul.mubr.f32.vlgmr.msra.gmra.mxu1 %v30733_v39  ;;  %v26939_v42 = vpop.f32.mrf.mxu1  ;;  %v34157_v52 = vld [vmem:[#allocation120_spill] sm:$0xff]  ;;  %v3939_v40 = vadd.f32 %v34158_v61, %v3392_v38 }
 0x320   :  { %27395 = vmatprep.subr.mxu1 %v31384_v12  ;;  %27406 = vmatprep.mubr.f32.mxu0 %v30651_v47  ;;  %v31464_v30 = vadd.f32 %v26939_v42, %v4686_v1  ;;  %v3945_v9 = vadd.f32 %v34157_v52, %v3398_v54  ;;  %v10410_v1 = vand.u32 4294901760, %v10409_v44 }
 0x321   :  { %27416 = vmatprep.subr.mxu0 %v10407_v11  ;;  %27396 = vmatpush3.msra.mxu1 %v31384_v12  ;;  %v31467_v32 = vpop.f32.mrf.mxu1  ;;  %v31483_v38 = vand.u32 4294901760, %v3939_v40 }
 0x322   :  { %34156 = vst [vmem:[#allocation107_spill] sm:$0xff] %v31467_v32  ;;  %27407 = vmatmul.mubr.f32.vlgmr.msra.gmra.mxu0 %v30748_v6  ;;  %27397 = vmatprep.subr.mxu1 %v31387_v33  ;;  %v26960_v23 = vpop.f32.mrf.mxu0  ;;  %v31478_v52 = vand.u32 4294901760, %v3945_v9 }
 0x323   :  { %27417 = vmatpush3.msra.mxu0 %v10407_v11  ;;  %27398 = vmatpush3.msra.mxu1 %v31387_v33  ;;  %v10417_v11 = vand.u32 4294901760, %v10416_v5 }
 0x324   :  { %27418 = vmatprep.subr.mxu0 %v10414_v15  ;;  %27399 = vmatprep.mubr.f32.mxu1 %v30597_v53  ;;  %v31475_v12 = vpop.f32.mrf.mxu0  ;;  %v10909_v61 = vsub.f32 %v3945_v9, %v31478_v52 }
 0x325   :  { %34159 = vst [vmem:[#allocation31_spill] sm:$0xff] %v31475_v12  ;;  %27419 = vmatpush3.msra.mxu0 %v10414_v15  ;;  %27400 = vmatmul.mubr.f32.vlgmr.msra.gmra.mxu1 %v30713_v3  ;;  %v26953_v54 = vpop.f32.mrf.mxu1 }
 0x326   :  { %27409 = vmatprep.subr.mxu1 %v10410_v1  ;;  %27420 = vmatprep.mubr.f32.mxu0 %v30611_v22  ;;  %v4939_v42 = vadd.f32 %v26953_v54, %v26946_v2 }
 0x327   :  { %27430 = vmatprep.subr.mxu0 %v10408_v14  ;;  %27410 = vmatpush3.msra.mxu1 %v10410_v1  ;;  %v31481_v33 = vpop.f32.mrf.mxu1  ;;  %v10916_v1 = vsub.f32 %v3939_v40, %v31483_v38  ;;  %v34163_v40 = vld [vmem:[#allocation116_spill] sm:$0xff] }
 0x328   :  { %34160 = vst [vmem:[#allocation111_spill] sm:$0xff] %v31481_v33  ;;  %27421 = vmatmul.mubr.f32.vlgmr.msra.gmra.mxu0 %v30723_v45  ;;  %27411 = vmatprep.subr.mxu1 %v10417_v11  ;;  %v5022_v15 = vadd.f32 %v26960_v23, %v4939_v42  ;;  %v26974_v44 = vpop.f32.mrf.mxu0 }
 0x329   :  { %27431 = vmatpush3.msra.mxu0 %v10408_v14  ;;  %27412 = vmatpush3.msra.mxu1 %v10417_v11  ;;  %v10910_v14 = vand.u32 4294901760, %v10909_v61  ;;  %v34164_v11 = vld [vmem:[#allocation121_spill] sm:$0xff] }
 0x32a   :  { %27432 = vmatprep.subr.mxu0 %v10415_v49  ;;  %27413 = vmatprep.mubr.f32.mxu1 %v30597_v53  ;;  %v31488_v5 = vpop.f32.mrf.mxu0  ;;  %v3410_v42 = vadd.f32 %v34164_v11, %v34163_v40 }
 0x32b   :  { %34161 = vst [vmem:[#allocation104_spill] sm:$0xff] %v31488_v5  ;;  %27433 = vmatpush3.msra.mxu0 %v10415_v49  ;;  %27414 = vmatmul.mubr.f32.vlgmr.msra.gmra.mxu1 %v30713_v3  ;;  %v26967_v2 = vpop.f32.mrf.mxu1  ;;  %v34167_v5 = vld [vmem:[#allocation123_spill] sm:$0xff]  ;;  %v10911_v40 = vsub.f32 %v10909_v61, %v10910_v14 }
 0x32c   :  { %27423 = vmatprep.subr.mxu1 %v31428_v37  ;;  %27434 = vmatprep.mubr.f32.mxu0 %v30597_v53  ;;  %v5105_v23 = vadd.f32 %v26967_v2, %v5022_v15  ;;  %v10917_v15 = vand.u32 4294901760, %v10916_v1 }
 0x32d   :  { %27444 = vmatprep.subr.mxu0 %v31478_v52  ;;  %27424 = vmatpush3.msra.mxu1 %v31428_v37  ;;  %v31496_v9 = vpop.f32.mrf.mxu1 }
 0x32e   :  { %34162 = vst [vmem:[#allocation108_spill] sm:$0xff] %v31496_v9  ;;  %27435 = vmatmul.mubr.f32.vlgmr.msra.gmra.mxu0 %v30713_v3  ;;  %27425 = vmatprep.subr.mxu1 %v31431_v41  ;;  %v5188_v49 = vadd.f32 %v26974_v44, %v5105_v23  ;;  %v26988_v54 = vpop.f32.mrf.mxu0  ;;  %v34166_v23 = vld [vmem:[#allocation118_spill] sm:$0xff]  ;;  %v10918_v33 = vsub.f32 %v10916_v1, %v10917_v15 }
 0x32f   :  { %27445 = vmatpush3.msra.mxu0 %v31478_v52  ;;  %27426 = vmatpush3.msra.mxu1 %v31431_v41  ;;  %v3404_v9 = vadd.f32 %v34167_v5, %v34166_v23  ;;  %v34170_v23 = vld [vmem:[#allocation125_spill] sm:$0xff] }
 0x330   :  { %27446 = vmatprep.subr.mxu0 %v31483_v38  ;;  %27427 = vmatprep.mubr.f32.mxu1 %v30625_v26  ;;  %v31506_v2 = vpop.f32.mrf.mxu0 }
 0x331   :  { %34165 = vst [vmem:[#allocation105_spill] sm:$0xff] %v31506_v2  ;;  %27447 = vmatpush3.msra.mxu0 %v31483_v38  ;;  %27428 = vmatmul.mubr.f32.vlgmr.msra.gmra.mxu1 %v30733_v39  ;;  %v26981_v44 = vpop.f32.mrf.mxu1  ;;  %v34169_v2 = vld [vmem:[#allocation124_spill] sm:$0xff]  ;;  %v3951_v0 = vadd.f32 %v34170_v23, %v3404_v9 }
 0x332   :  { %27437 = vmatprep.subr.mxu1 %v31428_v37  ;;  %27448 = vmatprep.mubr.f32.mxu0 %v30651_v47  ;;  %v31514_v11 = vadd.f32 %v26981_v44, %v5188_v49  ;;  %v3957_v32 = vadd.f32 %v34169_v2, %v3410_v42  ;;  %v10912_v49 = vand.u32 4294901760, %v10911_v40 }
 0x333   :  { %27458 = vmatprep.subr.mxu0 %v10909_v61  ;;  %27438 = vmatpush3.msra.mxu1 %v31428_v37  ;;  %v31517_v12 = vpop.f32.mrf.mxu1  ;;  %v31533_v9 = vand.u32 4294901760, %v3951_v0 }
 0x334   :  { %34168 = vst [vmem:[#allocation109_spill] sm:$0xff] %v31517_v12  ;;  %27449 = vmatmul.mubr.f32.vlgmr.msra.gmra.mxu0 %v30748_v6  ;;  %27439 = vmatprep.subr.mxu1 %v31431_v41  ;;  %v27002_v5 = vpop.f32.mrf.mxu0  ;;  %v31528_v2 = vand.u32 4294901760, %v3957_v32 }
 0x335   :  { %27459 = vmatpush3.msra.mxu0 %v10909_v61  ;;  %27440 = vmatpush3.msra.mxu1 %v31431_v41  ;;  %v10919_v61 = vand.u32 4294901760, %v10918_v33 }
 0x336   :  { %27460 = vmatprep.subr.mxu0 %v10916_v1  ;;  %27441 = vmatprep.mubr.f32.mxu1 %v30597_v53  ;;  %v31525_v37 = vpop.f32.mrf.mxu0  ;;  %v11411_v23 = vsub.f32 %v3957_v32, %v31528_v2 }
 0x337   :  { %34171 = vst [vmem:[#allocation113_spill] sm:$0xff] %v31525_v37  ;;  %27461 = vmatpush3.msra.mxu0 %v10916_v1  ;;  %27442 = vmatmul.mubr.f32.vlgmr.msra.gmra.mxu1 %v30713_v3  ;;  %v26995_v42 = vpop.f32.mrf.mxu1 }
 0x338   :  { %27451 = vmatprep.subr.mxu1 %v10912_v49  ;;  %27462 = vmatprep.mubr.f32.mxu0 %v30611_v22  ;;  %v5441_v44 = vadd.f32 %v26995_v42, %v26988_v54 }
 0x339   :  { %27472 = vmatprep.subr.mxu0 %v10910_v14  ;;  %27452 = vmatpush3.msra.mxu1 %v10912_v49  ;;  %v31531_v41 = vpop.f32.mrf.mxu1  ;;  %v11418_v49 = vsub.f32 %v3951_v0, %v31533_v9 }
 0x33a   :  { %34172 = vst [vmem:[#allocation110_spill] sm:$0xff] %v31531_v41  ;;  %27463 = vmatmul.mubr.f32.vlgmr.msra.gmra.mxu0 %v30723_v45  ;;  %27453 = vmatprep.subr.mxu1 %v10919_v61  ;;  %v5524_v1 = vadd.f32 %v27002_v5, %v5441_v44  ;;  %v27016_v40 = vpop.f32.mrf.mxu0 }
 0x33b   :  { %27473 = vmatpush3.msra.mxu0 %v10910_v14  ;;  %27454 = vmatpush3.msra.mxu1 %v10919_v61  ;;  %v11412_v14 = vand.u32 4294901760, %v11411_v23  ;;  %v11419_v0 = vand.u32 4294901760, %v11418_v49 }
 0x33c   :  { %27474 = vmatprep.subr.mxu0 %v10917_v15  ;;  %27455 = vmatprep.mubr.f32.mxu1 %v30597_v53  ;;  %v31538_v33 = vpop.f32.mrf.mxu0 }
 0x33d   :  { %34173 = vst [vmem:[#allocation115_spill] sm:$0xff] %v31538_v33  ;;  %27475 = vmatpush3.msra.mxu0 %v10917_v15  ;;  %27456 = vmatmul.mubr.f32.vlgmr.msra.gmra.mxu1 %v30713_v3  ;;  %v27009_v54 = vpop.f32.mrf.mxu1 }
 0x33e   :  { %27465 = vmatprep.subr.mxu1 %v31478_v52  ;;  %27476 = vmatprep.mubr.f32.mxu0 %v30597_v53  ;;  %v5607_v5 = vadd.f32 %v27009_v54, %v5524_v1  ;;  %v34176_v1 = vld [vmem:[#allocation122_spill] sm:$0xff] }
 0x33f   :  { %27486 = vmatprep.subr.mxu0 %v31528_v2  ;;  %27466 = vmatpush3.msra.mxu1 %v31478_v52  ;;  %v31546_v32 = vpop.f32.mrf.mxu1  ;;  %v34177_v54 = vld [vmem:[#allocation126_spill] sm:$0xff] }
 0x340   :  { %34174 = vst [vmem:[#allocation117_spill] sm:$0xff] %v31546_v32  ;;  %27477 = vmatmul.mubr.f32.vlgmr.msra.gmra.mxu0 %v30713_v3  ;;  %27467 = vmatprep.subr.mxu1 %v31483_v38  ;;  %v5690_v15 = vadd.f32 %v27016_v40, %v5607_v5  ;;  %v27030_v42 = vpop.f32.mrf.mxu0  ;;  %v3416_v40 = vadd.f32 %v34177_v54, %v34176_v1  ;;  %v31576_v54 = vand.u32 4294901760, %v30957_v36 }
 0x341   :  { %27487 = vmatpush3.msra.mxu0 %v31528_v2  ;;  %27468 = vmatpush3.msra.mxu1 %v31483_v38  ;;  %v11413_v5 = vsub.f32 %v11411_v23, %v11412_v14 }
 0x342   :  { %27488 = vmatprep.subr.mxu0 %v31533_v9  ;;  %27469 = vmatprep.mubr.f32.mxu1 %v30625_v26  ;;  %v31554_v61 = vpop.f32.mrf.mxu0  ;;  %v3963_v1 = vadd.f32 %v30962_v16, %v3416_v40 }
 0x343   :  { %34175 = vst [vmem:[#allocation112_spill] sm:$0xff] %v31554_v61  ;;  %27489 = vmatpush3.msra.mxu0 %v31533_v9  ;;  %27470 = vmatmul.mubr.f32.vlgmr.msra.gmra.mxu1 %v30733_v39  ;;  %v27023_v44 = vpop.f32.mrf.mxu1  ;;  %v11420_v61 = vsub.f32 %v11418_v49, %v11419_v0 }
 0x344   :  { %27479 = vmatprep.subr.mxu1 %v31478_v52  ;;  %27490 = vmatprep.mubr.f32.mxu0 %v30651_v47  ;;  %v31562_v33 = vadd.f32 %v27023_v44, %v5690_v15  ;;  %v11414_v15 = vand.u32 4294901760, %v11413_v5  ;;  %v31581_v40 = vand.u32 4294901760, %v3963_v1 }
 0x345   :  { %27500 = vmatprep.subr.mxu0 %v11411_v23  ;;  %27480 = vmatpush3.msra.mxu1 %v31478_v52  ;;  %v31565_v32 = vpop.f32.mrf.mxu1 }
 0x346   :  { %34178 = vst [vmem:[#allocation34_spill] sm:$0xff] %v31565_v32  ;;  %27491 = vmatmul.mubr.f32.vlgmr.msra.gmra.mxu0 %v30748_v6  ;;  %27481 = vmatprep.subr.mxu1 %v31483_v38  ;;  %v27044_v37 = vpop.f32.mrf.mxu0 }
 0x347   :  { %27501 = vmatpush3.msra.mxu0 %v11411_v23  ;;  %27482 = vmatpush3.msra.mxu1 %v31483_v38  ;;  %v11421_v23 = vand.u32 4294901760, %v11420_v61 }
 0x348   :  { %27502 = vmatprep.subr.mxu0 %v11418_v49  ;;  %27483 = vmatprep.mubr.f32.mxu1 %v30597_v53  ;;  %v31572_v44 = vpop.f32.mrf.mxu0 }
 0x349   :  { %34179 = vst [vmem:[#allocation114_spill] sm:$0xff] %v31572_v44  ;;  %27503 = vmatpush3.msra.mxu0 %v11418_v49  ;;  %27484 = vmatmul.mubr.f32.vlgmr.msra.gmra.mxu1 %v30713_v3  ;;  %v27037_v52 = vpop.f32.mrf.mxu1  ;;  %v11913_v44 = vsub.f32 %v30957_v36, %v31576_v54 }
 0x34a   :  { %27493 = vmatprep.subr.mxu1 %v11414_v15  ;;  %27504 = vmatprep.mubr.f32.mxu0 %v30611_v22  ;;  %v5943_v38 = vadd.f32 %v27037_v52, %v27030_v42 }
 0x34b   :  { %27514 = vmatprep.subr.mxu0 %v11412_v14  ;;  %27494 = vmatpush3.msra.mxu1 %v11414_v15  ;;  %v31579_v16 = vpop.f32.mrf.mxu1  ;;  %v11920_v15 = vsub.f32 %v3963_v1, %v31581_v40 }
 0x34c   :  { %34180 = vst [vmem:[#allocation119_spill] sm:$0xff] %v31579_v16  ;;  %27505 = vmatmul.mubr.f32.vlgmr.msra.gmra.mxu0 %v30723_v45  ;;  %27495 = vmatprep.subr.mxu1 %v11421_v23  ;;  %v6026_v49 = vadd.f32 %v27044_v37, %v5943_v38  ;;  %v27058_v5 = vpop.f32.mrf.mxu0 }
 0x34d   :  { %27515 = vmatpush3.msra.mxu0 %v11412_v14  ;;  %27496 = vmatpush3.msra.mxu1 %v11421_v23  ;;  %v11914_v14 = vand.u32 4294901760, %v11913_v44  ;;  %v11921_v1 = vand.u32 4294901760, %v11920_v15 }
 0x34e   :  { %27516 = vmatprep.subr.mxu0 %v11419_v0  ;;  %27497 = vmatprep.mubr.f32.mxu1 %v30597_v53  ;;  %v31587_v42 = vpop.f32.mrf.mxu0 }
 0x34f   :  { %34181 = vst [vmem:[#allocation120_spill] sm:$0xff] %v31587_v42  ;;  %27517 = vmatpush3.msra.mxu0 %v11419_v0  ;;  %27498 = vmatmul.mubr.f32.vlgmr.msra.gmra.mxu1 %v30713_v3  ;;  %v27051_v61 = vpop.f32.mrf.mxu1 }
 0x350   :  { %27507 = vmatprep.subr.mxu1 %v31528_v2  ;;  %27518 = vmatprep.mubr.f32.mxu0 %v30597_v53  ;;  %v6109_v37 = vadd.f32 %v27051_v61, %v6026_v49  ;;  %v34184_v49 = vld [vmem:[#allocation18_spill] sm:$0xff]  ;;  %v11915_v61 = vsub.f32 %v11913_v44, %v11914_v14 }
 0x351   :  { %27528 = vmatprep.subr.mxu0 %v31576_v54  ;;  %27508 = vmatpush3.msra.mxu1 %v31528_v2  ;;  %v31595_v36 = vpop.f32.mrf.mxu1 }
 0x352   :  { %34182 = vst [vmem:[#allocation70_spill] sm:$0xff] %v31595_v36  ;;  %27519 = vmatmul.mubr.f32.vlgmr.msra.gmra.mxu0 %v30713_v3  ;;  %27509 = vmatprep.subr.mxu1 %v31533_v9  ;;  %v6192_v0 = vadd.f32 %v27058_v5, %v6109_v37  ;;  %v27072_v52 = vpop.f32.mrf.mxu0  ;;  %v3428_v5 = vadd.f32 %v30968_v51, %v34184_v49  ;;  %v31625_v49 = vand.u32 4294901760, %v30971_v13 }
 0x353   :  { %27529 = vmatpush3.msra.mxu0 %v31576_v54  ;;  %27510 = vmatpush3.msra.mxu1 %v31533_v9 }
 0x354   :  { %27530 = vmatprep.subr.mxu0 %v31581_v40  ;;  %27511 = vmatprep.mubr.f32.mxu1 %v30625_v26  ;;  %v31603_v23 = vpop.f32.mrf.mxu0  ;;  %v3975_v51 = vadd.f32 %v30976_v29, %v3428_v5 }
 0x355   :  { %34183 = vst [vmem:[#allocation116_spill] sm:$0xff] %v31603_v23  ;;  %27531 = vmatpush3.msra.mxu0 %v31581_v40  ;;  %27512 = vmatmul.mubr.f32.vlgmr.msra.gmra.mxu1 %v30733_v39  ;;  %v27065_v38 = vpop.f32.mrf.mxu1  ;;  %v11922_v23 = vsub.f32 %v11920_v15, %v11921_v1 }
 0x356   :  { %27521 = vmatprep.subr.mxu1 %v31528_v2  ;;  %27532 = vmatprep.mubr.f32.mxu0 %v30651_v47  ;;  %v31611_v37 = vadd.f32 %v27065_v38, %v6192_v0  ;;  %v11916_v0 = vand.u32 4294901760, %v11915_v61  ;;  %v31630_v5 = vand.u32 4294901760, %v3975_v51 }
 0x357   :  { %27542 = vmatprep.subr.mxu0 %v11913_v44  ;;  %27522 = vmatpush3.msra.mxu1 %v31528_v2  ;;  %v31614_v42 = vpop.f32.mrf.mxu1 }
 0x358   :  { %34185 = vst [vmem:[#allocation121_spill] sm:$0xff] %v31614_v42  ;;  %27533 = vmatmul.mubr.f32.vlgmr.msra.gmra.mxu0 %v30748_v6  ;;  %27523 = vmatprep.subr.mxu1 %v31533_v9  ;;  %v27086_v36 = vpop.f32.mrf.mxu0 }
 0x359   :  { %27543 = vmatpush3.msra.mxu0 %v11913_v44  ;;  %27524 = vmatpush3.msra.mxu1 %v31533_v9  ;;  %v11923_v44 = vand.u32 4294901760, %v11922_v23 }
 0x35a   :  { %27544 = vmatprep.subr.mxu0 %v11920_v15  ;;  %27525 = vmatprep.mubr.f32.mxu1 %v30597_v53  ;;  %v31621_v38 = vpop.f32.mrf.mxu0 }
 0x35b   :  { %34186 = vst [vmem:[#allocation118_spill] sm:$0xff] %v31621_v38  ;;  %27545 = vmatpush3.msra.mxu0 %v11920_v15  ;;  %27526 = vmatmul.mubr.f32.vlgmr.msra.gmra.mxu1 %v30713_v3  ;;  %v27079_v2 = vpop.f32.mrf.mxu1  ;;  %v12415_v38 = vsub.f32 %v30971_v13, %v31625_v49 }
 0x35c   :  { %27535 = vmatprep.subr.mxu1 %v11916_v0  ;;  %27546 = vmatprep.mubr.f32.mxu0 %v30611_v22  ;;  %v6445_v9 = vadd.f32 %v27079_v2, %v27072_v52 }
 0x35d   :  { %27556 = vmatprep.subr.mxu0 %v11914_v14  ;;  %27536 = vmatpush3.msra.mxu1 %v11916_v0  ;;  %v31628_v29 = vpop.f32.mrf.mxu1  ;;  %v12422_v0 = vsub.f32 %v3975_v51, %v31630_v5 }
 0x35e   :  { %34187 = vst [vmem:[#allocation123_spill] sm:$0xff] %v31628_v29  ;;  %27547 = vmatmul.mubr.f32.vlgmr.msra.gmra.mxu0 %v30723_v45  ;;  %27537 = vmatprep.subr.mxu1 %v11923_v44  ;;  %v6528_v15 = vadd.f32 %v27086_v36, %v6445_v9  ;;  %v27100_v61 = vpop.f32.mrf.mxu0 }
 0x35f   :  { %27557 = vmatpush3.msra.mxu0 %v11914_v14  ;;  %27538 = vmatpush3.msra.mxu1 %v11923_v44  ;;  %v12416_v14 = vand.u32 4294901760, %v12415_v38  ;;  %v12423_v51 = vand.u32 4294901760, %v12422_v0 }
 0x360   :  { %27558 = vmatprep.subr.mxu0 %v11921_v1  ;;  %27539 = vmatprep.mubr.f32.mxu1 %v30597_v53  ;;  %v31636_v52 = vpop.f32.mrf.mxu0 }
 0x361   :  { %34188 = vst [vmem:[#allocation124_spill] sm:$0xff] %v31636_v52  ;;  %27559 = vmatpush3.msra.mxu0 %v11921_v1  ;;  %27540 = vmatmul.mubr.f32.vlgmr.msra.gmra.mxu1 %v30713_v3  ;;  %v27093_v23 = vpop.f32.mrf.mxu1 }
 0x362   :  { %27549 = vmatprep.subr.mxu1 %v31576_v54  ;;  %27560 = vmatprep.mubr.f32.mxu0 %v30597_v53  ;;  %v6611_v36 = vadd.f32 %v27093_v23, %v6528_v15  ;;  %v34190_v15 = vld [vmem:[#allocation19_spill] sm:$0xff]  ;;  %v12417_v23 = vsub.f32 %v12415_v38, %v12416_v14 }
 0x363   :  { %27570 = vmatprep.subr.mxu0 %v31625_v49  ;;  %27550 = vmatpush3.msra.mxu1 %v31576_v54  ;;  %v31644_v13 = vpop.f32.mrf.mxu1 }
 0x364   :  { %34189 = vst [vmem:[#allocation125_spill] sm:$0xff] %v31644_v13  ;;  %27561 = vmatmul.mubr.f32.vlgmr.msra.gmra.mxu0 %v30713_v3  ;;  %27551 = vmatprep.subr.mxu1 %v31581_v40  ;;  %v6694_v1 = vadd.f32 %v27100_v61, %v6611_v36  ;;  %v27114_v2 = vpop.f32.mrf.mxu0  ;;  %v3440_v61 = vadd.f32 %v30982_v50, %v34190_v15  ;;  %v31674_v15 = vand.u32 4294901760, %v30984_v27 }
 0x365   :  { %27571 = vmatpush3.msra.mxu0 %v31625_v49  ;;  %27552 = vmatpush3.msra.mxu1 %v31581_v40  ;;  %v12424_v13 = vsub.f32 %v12422_v0, %v12423_v51 }
 0x366   :  { %27572 = vmatprep.subr.mxu0 %v31630_v5  ;;  %27553 = vmatprep.mubr.f32.mxu1 %v30625_v26  ;;  %v31652_v44 = vpop.f32.mrf.mxu0  ;;  %v3987_v50 = vadd.f32 %v30988_v57, %v3440_v61 }
 0x367   :  { %27573 = vmatpush3.msra.mxu0 %v31630_v5  ;;  %27554 = vmatmul.mubr.f32.vlgmr.msra.gmra.mxu1 %v30733_v39  ;;  %v27107_v9 = vpop.f32.mrf.mxu1 }
 0x368   :  { %27563 = vmatprep.subr.mxu1 %v31576_v54  ;;  %27574 = vmatprep.mubr.f32.mxu0 %v30651_v47  ;;  %v31660_v36 = vadd.f32 %v27107_v9, %v6694_v1  ;;  %v12418_v1 = vand.u32 4294901760, %v12417_v23  ;;  %v31679_v61 = vand.u32 4294901760, %v3987_v50 }
 0x369   :  { %27584 = vmatprep.subr.mxu0 %v12415_v38  ;;  %27564 = vmatpush3.msra.mxu1 %v31576_v54  ;;  %v31663_v52 = vpop.f32.mrf.mxu1 }
 0x36a   :  { %34191 = vst [vmem:[#allocation122_spill] sm:$0xff] %v31663_v52  ;;  %27575 = vmatmul.mubr.f32.vlgmr.msra.gmra.mxu0 %v30748_v6  ;;  %27565 = vmatprep.subr.mxu1 %v31581_v40  ;;  %v27128_v29 = vpop.f32.mrf.mxu0  ;;  %v12917_v52 = vsub.f32 %v30984_v27, %v31674_v15 }
 0x36b   :  { %27585 = vmatpush3.msra.mxu0 %v12415_v38  ;;  %27566 = vmatpush3.msra.mxu1 %v31581_v40  ;;  %v12425_v38 = vand.u32 4294901760, %v12424_v13 }
 0x36c   :  { %27586 = vmatprep.subr.mxu0 %v12422_v0  ;;  %27567 = vmatprep.mubr.f32.mxu1 %v30597_v53  ;;  %v31670_v9 = vpop.f32.mrf.mxu0 }
 0x36d   :  { %27587 = vmatpush3.msra.mxu0 %v12422_v0  ;;  %27568 = vmatmul.mubr.f32.vlgmr.msra.gmra.mxu1 %v30713_v3  ;;  %v27121_v54 = vpop.f32.mrf.mxu1 }
 0x36e   :  { %27577 = vmatprep.subr.mxu1 %v12418_v1  ;;  %27588 = vmatprep.mubr.f32.mxu0 %v30611_v22  ;;  %v6947_v40 = vadd.f32 %v27121_v54, %v27114_v2 }
 0x36f   :  { %27598 = vmatprep.subr.mxu0 %v12416_v14  ;;  %27578 = vmatpush3.msra.mxu1 %v12418_v1  ;;  %v31677_v57 = vpop.f32.mrf.mxu1  ;;  %v12924_v1 = vsub.f32 %v3987_v50, %v31679_v61 }
 0x370   :  { %27589 = vmatmul.mubr.f32.vlgmr.msra.gmra.mxu0 %v30723_v45  ;;  %27579 = vmatprep.subr.mxu1 %v12425_v38  ;;  %v7030_v0 = vadd.f32 %v27128_v29, %v6947_v40  ;;  %v27142_v23 = vpop.f32.mrf.mxu0 }
 0x371   :  { %27599 = vmatpush3.msra.mxu0 %v12416_v14  ;;  %27580 = vmatpush3.msra.mxu1 %v12425_v38  ;;  %v12918_v14 = vand.u32 4294901760, %v12917_v52  ;;  %v12925_v50 = vand.u32 4294901760, %v12924_v1 }
 0x372   :  { %27600 = vmatprep.subr.mxu0 %v12423_v51  ;;  %27581 = vmatprep.mubr.f32.mxu1 %v30597_v53  ;;  %v31685_v13 = vpop.f32.mrf.mxu0 }
 0x373   :  { %34192 = vst [vmem:[#allocation126_spill] sm:$0xff] %v31685_v13  ;;  %27601 = vmatpush3.msra.mxu0 %v12423_v51  ;;  %27582 = vmatmul.mubr.f32.vlgmr.msra.gmra.mxu1 %v30713_v3  ;;  %v27135_v2 = vpop.f32.mrf.mxu1  ;;  %v12926_v32 = vsub.f32 %v12924_v1, %v12925_v50 }
 0x374   :  { %27591 = vmatprep.subr.mxu1 %v31625_v49  ;;  %27602 = vmatprep.mubr.f32.mxu0 %v30597_v53  ;;  %v7113_v29 = vadd.f32 %v27135_v2, %v7030_v0  ;;  %v34195_v0 = vld [vmem:[#allocation20_spill] sm:$0xff]  ;;  %v12919_v2 = vsub.f32 %v12917_v52, %v12918_v14 }
 0x375   :  { %27612 = vmatprep.subr.mxu0 %v31674_v15  ;;  %27592 = vmatpush3.msra.mxu1 %v31625_v49  ;;  %v31693_v27 = vpop.f32.mrf.mxu1 }
 0x376   :  { %34193 = vst [vmem:[#allocation18_spill] sm:$0xff] %v31693_v27  ;;  %27603 = vmatmul.mubr.f32.vlgmr.msra.gmra.mxu0 %v30713_v3  ;;  %27593 = vmatprep.subr.mxu1 %v31630_v5  ;;  %v7196_v51 = vadd.f32 %v27142_v23, %v7113_v29  ;;  %v27156_v54 = vpop.f32.mrf.mxu0  ;;  %v3452_v23 = vadd.f32 %v30995_v59, %v34195_v0  ;;  %v34198_v0 = vld [vmem:[#allocation127_spill] sm:$0xff] }
 0x377   :  { %27613 = vmatpush3.msra.mxu0 %v31674_v15  ;;  %27594 = vmatpush3.msra.mxu1 %v31630_v5  ;;  %v31723_v12 = vand.u32 4294901760, %v34198_v0 }
 0x378   :  { %27614 = vmatprep.subr.mxu0 %v31679_v61  ;;  %27595 = vmatprep.mubr.f32.mxu1 %v30625_v26  ;;  %v31701_v38 = vpop.f32.mrf.mxu0  ;;  %v3999_v59 = vadd.f32 %v31003_v56, %v3452_v23 }
 0x379   :  { %34194 = vst [vmem:[#allocation19_spill] sm:$0xff] %v31701_v38  ;;  %27615 = vmatpush3.msra.mxu0 %v31679_v61  ;;  %27596 = vmatmul.mubr.f32.vlgmr.msra.gmra.mxu1 %v30733_v39  ;;  %v27149_v40 = vpop.f32.mrf.mxu1  ;;  %v13419_v41 = vsub.f32 %v34198_v0, %v31723_v12 }
 0x37a   :  { %27605 = vmatprep.subr.mxu1 %v31625_v49  ;;  %27616 = vmatprep.mubr.f32.mxu0 %v30651_v47  ;;  %v31709_v29 = vadd.f32 %v27149_v40, %v7196_v51  ;;  %v12920_v51 = vand.u32 4294901760, %v12919_v2  ;;  %v31728_v23 = vand.u32 4294901760, %v3999_v59 }
 0x37b   :  { %27626 = vmatprep.subr.mxu0 %v12917_v52  ;;  %27606 = vmatpush3.msra.mxu1 %v31625_v49  ;;  %v31712_v42 = vpop.f32.mrf.mxu1 }
 0x37c   :  { %34196 = vst [vmem:[#allocation20_spill] sm:$0xff] %v31712_v42  ;;  %27617 = vmatmul.mubr.f32.vlgmr.msra.gmra.mxu0 %v30748_v6  ;;  %27607 = vmatprep.subr.mxu1 %v31630_v5  ;;  %v27170_v16 = vpop.f32.mrf.mxu0 }
 0x37d   :  { %27627 = vmatpush3.msra.mxu0 %v12917_v52  ;;  %27608 = vmatpush3.msra.mxu1 %v31630_v5  ;;  %v12927_v52 = vand.u32 4294901760, %v12926_v32 }
 0x37e   :  { %27628 = vmatprep.subr.mxu0 %v12924_v1  ;;  %27609 = vmatprep.mubr.f32.mxu1 %v30597_v53  ;;  %v31719_v40 = vpop.f32.mrf.mxu0 }
 0x37f   :  { %34197 = vst [vmem:[#allocation144_spill] sm:$0xff] %v31719_v40  ;;  %27629 = vmatpush3.msra.mxu0 %v12924_v1  ;;  %27610 = vmatmul.mubr.f32.vlgmr.msra.gmra.mxu1 %v30713_v3  ;;  %v27163_v49 = vpop.f32.mrf.mxu1 }
 0x380   :  { %27619 = vmatprep.subr.mxu1 %v12920_v51  ;;  %27630 = vmatprep.mubr.f32.mxu0 %v30611_v22  ;;  %v7449_v5 = vadd.f32 %v27163_v49, %v27156_v54 }
 0x381   :  { %27640 = vmatprep.subr.mxu0 %v12918_v14  ;;  %27620 = vmatpush3.msra.mxu1 %v12920_v51  ;;  %v31726_v56 = vpop.f32.mrf.mxu1  ;;  %v13426_v51 = vsub.f32 %v3999_v59, %v31728_v23 }
 0x382   :  { %34199 = vst [vmem:[#allocation127_spill] sm:$0xff] %v31726_v56  ;;  %27631 = vmatmul.mubr.f32.vlgmr.msra.gmra.mxu0 %v30723_v45  ;;  %27621 = vmatprep.subr.mxu1 %v12927_v52  ;;  %v7532_v1 = vadd.f32 %v27170_v16, %v7449_v5  ;;  %v27184_v2 = vpop.f32.mrf.mxu0 }
 0x383   :  { %27641 = vmatpush3.msra.mxu0 %v12918_v14  ;;  %27622 = vmatpush3.msra.mxu1 %v12927_v52  ;;  %v13427_v59 = vand.u32 4294901760, %v13426_v51 }
 0x384   :  { %27642 = vmatprep.subr.mxu0 %v12925_v50  ;;  %27623 = vmatprep.mubr.f32.mxu1 %v30597_v53  ;;  %v31734_v32 = vpop.f32.mrf.mxu0 }
 0x385   :  { %34200 = vst [vmem:[#allocation145_spill] sm:$0xff] %v31734_v32  ;;  %27643 = vmatpush3.msra.mxu0 %v12925_v50  ;;  %27624 = vmatmul.mubr.f32.vlgmr.msra.gmra.mxu1 %v30713_v3  ;;  %v27177_v54 = vpop.f32.mrf.mxu1  ;;  %v13420_v50 = vand.u32 4294901760, %v13419_v41 }
 0x386   :  { %27633 = vmatprep.subr.mxu1 %v31674_v15  ;;  %27644 = vmatprep.mubr.f32.mxu0 %v30597_v53  ;;  %v7615_v16 = vadd.f32 %v27177_v54, %v7532_v1  ;;  %v34203_v1 = vld [vmem:[#allocation26_spill] sm:$0xff]  ;;  %v34204_v54 = vld [vmem:[#allocation128_spill] sm:$0xff] }
 0x387   :  { %27654 = vmatprep.subr.mxu0 %v31723_v12  ;;  %27634 = vmatpush3.msra.mxu1 %v31674_v15  ;;  %v31742_v14 = vpop.f32.mrf.mxu1 }
 0x388   :  { %34201 = vst [vmem:[#allocation146_spill] sm:$0xff] %v31742_v14  ;;  %27645 = vmatmul.mubr.f32.vlgmr.msra.gmra.mxu0 %v30713_v3  ;;  %27635 = vmatprep.subr.mxu1 %v31679_v61  ;;  %v7698_v49 = vadd.f32 %v27184_v2, %v7615_v16  ;;  %v27198_v0 = vpop.f32.mrf.mxu0  ;;  %v3464_v2 = vadd.f32 %v34204_v54, %v34203_v1  ;;  %v34207_v54 = vld [vmem:[#allocation129_spill] sm:$0xff] }
 0x389   :  { %27655 = vmatpush3.msra.mxu0 %v31723_v12  ;;  %27636 = vmatpush3.msra.mxu1 %v31679_v61  ;;  %v13421_v16 = vsub.f32 %v13419_v41, %v13420_v50 }
 0x38a   :  { %27656 = vmatprep.subr.mxu0 %v31728_v23  ;;  %27637 = vmatprep.mubr.f32.mxu1 %v30625_v26  ;;  %v31750_v52 = vpop.f32.mrf.mxu0  ;;  %v4011_v1 = vadd.f32 %v31022_v21, %v3464_v2 }
 0x38b   :  { %34202 = vst [vmem:[#allocation147_spill] sm:$0xff] %v31750_v52  ;;  %27657 = vmatpush3.msra.mxu0 %v31728_v23  ;;  %27638 = vmatmul.mubr.f32.vlgmr.msra.gmra.mxu1 %v30733_v39  ;;  %v27191_v5 = vpop.f32.mrf.mxu1  ;;  %v13428_v52 = vsub.f32 %v13426_v51, %v13427_v59 }
 0x38c   :  { %27647 = vmatprep.subr.mxu1 %v31674_v15  ;;  %27658 = vmatprep.mubr.f32.mxu0 %v30651_v47  ;;  %v31758_v32 = vadd.f32 %v27191_v5, %v7698_v49  ;;  %v13422_v49 = vand.u32 4294901760, %v13421_v16  ;;  %v31777_v2 = vand.u32 4294901760, %v4011_v1 }
 0x38d   :  { %27668 = vmatprep.subr.mxu0 %v13419_v41  ;;  %27648 = vmatpush3.msra.mxu1 %v31674_v15  ;;  %v31761_v14 = vpop.f32.mrf.mxu1 }
 0x38e   :  { %34205 = vst [vmem:[#allocation26_spill] sm:$0xff] %v31761_v14  ;;  %27659 = vmatmul.mubr.f32.vlgmr.msra.gmra.mxu0 %v30748_v6  ;;  %27649 = vmatprep.subr.mxu1 %v31679_v61  ;;  %v27212_v40 = vpop.f32.mrf.mxu0  ;;  %v31772_v14 = vand.u32 4294901760, %v34207_v54 }
 0x38f   :  { %27669 = vmatpush3.msra.mxu0 %v13419_v41  ;;  %27650 = vmatpush3.msra.mxu1 %v31679_v61  ;;  %v13429_v41 = vand.u32 4294901760, %v13428_v52 }
 0x390   :  { %27670 = vmatprep.subr.mxu0 %v13426_v51  ;;  %27651 = vmatprep.mubr.f32.mxu1 %v30597_v53  ;;  %v31768_v5 = vpop.f32.mrf.mxu0 }
 0x391   :  { %34206 = vst [vmem:[#allocation128_spill] sm:$0xff] %v31768_v5  ;;  %27671 = vmatpush3.msra.mxu0 %v13426_v51  ;;  %27652 = vmatmul.mubr.f32.vlgmr.msra.gmra.mxu1 %v30713_v3  ;;  %v27205_v15 = vpop.f32.mrf.mxu1  ;;  %v13921_v5 = vsub.f32 %v34207_v54, %v31772_v14 }
 0x392   :  { %27661 = vmatprep.subr.mxu1 %v13422_v49  ;;  %27672 = vmatprep.mubr.f32.mxu0 %v30611_v22  ;;  %v7951_v61 = vadd.f32 %v27205_v15, %v27198_v0 }
 0x393   :  { %27682 = vmatprep.subr.mxu0 %v13420_v50  ;;  %27662 = vmatpush3.msra.mxu1 %v13422_v49  ;;  %v31775_v21 = vpop.f32.mrf.mxu1  ;;  %v13928_v49 = vsub.f32 %v4011_v1, %v31777_v2 }
 0x394   :  { %34208 = vst [vmem:[#allocation129_spill] sm:$0xff] %v31775_v21  ;;  %27673 = vmatmul.mubr.f32.vlgmr.msra.gmra.mxu0 %v30723_v45  ;;  %27663 = vmatprep.subr.mxu1 %v13429_v41  ;;  %v8034_v51 = vadd.f32 %v27212_v40, %v7951_v61  ;;  %v27226_v16 = vpop.f32.mrf.mxu0  ;;  %v34212_v61 = vld [vmem:[#allocation27_spill] sm:$0xff] }
 0x395   :  { %27683 = vmatpush3.msra.mxu0 %v13420_v50  ;;  %27664 = vmatpush3.msra.mxu1 %v13429_v41  ;;  %v13929_v1 = vand.u32 4294901760, %v13928_v49 }
 0x396   :  { %27684 = vmatprep.subr.mxu0 %v13427_v59  ;;  %27665 = vmatprep.mubr.f32.mxu1 %v30597_v53  ;;  %v31783_v0 = vpop.f32.mrf.mxu0 }
 0x397   :  { %34209 = vst [vmem:[#allocation148_spill] sm:$0xff] %v31783_v0  ;;  %27685 = vmatpush3.msra.mxu0 %v13427_v59  ;;  %27666 = vmatmul.mubr.f32.vlgmr.msra.gmra.mxu1 %v30713_v3  ;;  %v27219_v52 = vpop.f32.mrf.mxu1  ;;  %v13922_v59 = vand.u32 4294901760, %v13921_v5 }
 0x398   :  { %27675 = vmatprep.subr.mxu1 %v31723_v12  ;;  %27686 = vmatprep.mubr.f32.mxu0 %v30597_v53  ;;  %v8117_v40 = vadd.f32 %v27219_v52, %v8034_v51  ;;  %v3476_v51 = vadd.f32 %v31029_v4, %v34212_v61  ;;  %v13930_v4 = vsub.f32 %v13928_v49, %v13929_v1 }
 0x399   :  { %27696 = vmatprep.subr.mxu0 %v31772_v14  ;;  %27676 = vmatpush3.msra.mxu1 %v31723_v12  ;;  %v31791_v50 = vpop.f32.mrf.mxu1  ;;  %v13923_v52 = vsub.f32 %v13921_v5, %v13922_v59 }
 0x39a   :  { %34210 = vst [vmem:[#allocation149_spill] sm:$0xff] %v31791_v50  ;;  %27687 = vmatmul.mubr.f32.vlgmr.msra.gmra.mxu0 %v30713_v3  ;;  %27677 = vmatprep.subr.mxu1 %v31728_v23  ;;  %v8200_v15 = vadd.f32 %v27226_v16, %v8117_v40  ;;  %v27240_v54 = vpop.f32.mrf.mxu0  ;;  %v4023_v50 = vadd.f32 %v31036_v35, %v3476_v51  ;;  %v13931_v35 = vand.u32 4294901760, %v13930_v4 }
 0x39b   :  { %27697 = vmatpush3.msra.mxu0 %v31772_v14  ;;  %27678 = vmatpush3.msra.mxu1 %v31728_v23 }
 0x39c   :  { %27698 = vmatprep.subr.mxu0 %v31777_v2  ;;  %27679 = vmatprep.mubr.f32.mxu1 %v30625_v26  ;;  %v31799_v41 = vpop.f32.mrf.mxu0  ;;  %v31824_v51 = vand.u32 4294901760, %v4023_v50 }
 0x39d   :  { %34211 = vst [vmem:[#allocation150_spill] sm:$0xff] %v31799_v41  ;;  %27699 = vmatpush3.msra.mxu0 %v31777_v2  ;;  %27680 = vmatmul.mubr.f32.vlgmr.msra.gmra.mxu1 %v30733_v39  ;;  %v27233_v16 = vpop.f32.mrf.mxu1 }
 0x39e   :  { %27689 = vmatprep.subr.mxu1 %v31723_v12  ;;  %27700 = vmatprep.mubr.f32.mxu0 %v30651_v47  ;;  %v31807_v40 = vadd.f32 %v27233_v16, %v8200_v15  ;;  %v13924_v15 = vand.u32 4294901760, %v13923_v52  ;;  %v14430_v4 = vsub.f32 %v4023_v50, %v31824_v51 }
 0x39f   :  { %27710 = vmatprep.subr.mxu0 %v13921_v5  ;;  %27690 = vmatpush3.msra.mxu1 %v31723_v12  ;;  %v31810_v0 = vpop.f32.mrf.mxu1 }
 0x3a0   :  { %34213 = vst [vmem:[#allocation27_spill] sm:$0xff] %v31810_v0  ;;  %27701 = vmatmul.mubr.f32.vlgmr.msra.gmra.mxu0 %v30748_v6  ;;  %27691 = vmatprep.subr.mxu1 %v31728_v23  ;;  %v27254_v61 = vpop.f32.mrf.mxu0  ;;  %v31821_v0 = vand.u32 4294901760, %v31032_v62 }
 0x3a1   :  { %27711 = vmatpush3.msra.mxu0 %v13921_v5  ;;  %27692 = vmatpush3.msra.mxu1 %v31728_v23 }
 0x3a2   :  { %27712 = vmatprep.subr.mxu0 %v13928_v49  ;;  %27693 = vmatprep.mubr.f32.mxu1 %v30597_v53  ;;  %v31817_v16 = vpop.f32.mrf.mxu0 }
 0x3a3   :  { %34214 = vst [vmem:[#allocation151_spill] sm:$0xff] %v31817_v16  ;;  %27713 = vmatpush3.msra.mxu0 %v13928_v49  ;;  %27694 = vmatmul.mubr.f32.vlgmr.msra.gmra.mxu1 %v30713_v3  ;;  %v27247_v12 = vpop.f32.mrf.mxu1  ;;  %v14423_v16 = vsub.f32 %v31032_v62, %v31821_v0 }
 0x3a4   :  { %27703 = vmatprep.subr.mxu1 %v13924_v15  ;;  %27714 = vmatprep.mubr.f32.mxu0 %v30611_v22  ;;  %v8453_v5 = vadd.f32 %v27247_v12, %v27240_v54  ;;  %v14431_v12 = vand.u32 4294901760, %v14430_v4 }
 0x3a5   :  { %27724 = vmatprep.subr.mxu0 %v13922_v59  ;;  %27704 = vmatpush3.msra.mxu1 %v13924_v15  ;;  %v31826_v23 = vpop.f32.mrf.mxu1  ;;  %v14424_v50 = vand.u32 4294901760, %v14423_v16 }
 0x3a6   :  { %34215 = vst [vmem:[#allocation152_spill] sm:$0xff] %v31826_v23  ;;  %27715 = vmatmul.mubr.f32.vlgmr.msra.gmra.mxu0 %v30723_v45  ;;  %27705 = vmatprep.subr.mxu1 %v13931_v35  ;;  %v8536_v49 = vadd.f32 %v27254_v61, %v8453_v5  ;;  %v27268_v52 = vpop.f32.mrf.mxu0  ;;  %v34219_v5 = vld [vmem:[#allocation28_spill] sm:$0xff] }
 0x3a7   :  { %27725 = vmatpush3.msra.mxu0 %v13922_v59  ;;  %27706 = vmatpush3.msra.mxu1 %v13931_v35  ;;  %v34262_v23 = vld [vmem:[#allocation40_spill] sm:$0xff] }
 0x3a8   :  { %27726 = vmatprep.subr.mxu0 %v13929_v1  ;;  %27707 = vmatprep.mubr.f32.mxu1 %v30597_v53  ;;  %v31832_v54 = vpop.f32.mrf.mxu0 }
 0x3a9   :  { %34216 = vst [vmem:[#allocation153_spill] sm:$0xff] %v31832_v54  ;;  %27727 = vmatpush3.msra.mxu0 %v13929_v1  ;;  %27708 = vmatmul.mubr.f32.vlgmr.msra.gmra.mxu1 %v30713_v3  ;;  %v27261_v15 = vpop.f32.mrf.mxu1  ;;  %v14432_v54 = vsub.f32 %v14430_v4, %v14431_v12 }
 0x3aa   :  { %27717 = vmatprep.subr.mxu1 %v31772_v14  ;;  %27728 = vmatprep.mubr.f32.mxu0 %v30597_v53  ;;  %v8619_v59 = vadd.f32 %v27261_v15, %v8536_v49  ;;  %v3488_v49 = vadd.f32 %v31043_v28, %v34219_v5  ;;  %v14425_v15 = vsub.f32 %v14423_v16, %v14424_v50 }
 0x3ab   :  { %27738 = vmatprep.subr.mxu0 %v31821_v0  ;;  %27718 = vmatpush3.msra.mxu1 %v31772_v14  ;;  %v31840_v62 = vpop.f32.mrf.mxu1  ;;  %v31861_v28 = vmul.f32 %v31464_v30, %v31464_v30 }
 0x3ac   :  { %34217 = vst [vmem:[#allocation154_spill] sm:$0xff] %v31840_v62  ;;  %27729 = vmatmul.mubr.f32.vlgmr.msra.gmra.mxu0 %v30713_v3  ;;  %27719 = vmatprep.subr.mxu1 %v31777_v2  ;;  %v8702_v1 = vadd.f32 %v27268_v52, %v8619_v59  ;;  %v27282_v61 = vpop.f32.mrf.mxu0 }
 0x3ad   :  { %27739 = vmatpush3.msra.mxu0 %v31821_v0  ;;  %27720 = vmatpush3.msra.mxu1 %v31777_v2 }
 0x3ae   :  { %27740 = vmatprep.subr.mxu0 %v31824_v51  ;;  %27721 = vmatprep.mubr.f32.mxu1 %v30625_v26  ;;  %v31848_v35 = vpop.f32.mrf.mxu0 }
 0x3af   :  { %34218 = vst [vmem:[#allocation155_spill] sm:$0xff] %v31848_v35  ;;  %27741 = vmatpush3.msra.mxu0 %v31824_v51  ;;  %27722 = vmatmul.mubr.f32.vlgmr.msra.gmra.mxu1 %v30733_v39  ;;  %v27275_v52 = vpop.f32.mrf.mxu1 }
 0x3b0   :  { %27731 = vmatprep.subr.mxu1 %v31772_v14  ;;  %27742 = vmatprep.mubr.f32.mxu0 %v30651_v47  ;;  %v8781_v59 = vadd.f32 %v27275_v52, %v8702_v1  ;;  %v4035_v52 = vadd.f32 %v31050_v17, %v3488_v49  ;;  %v14433_v17 = vand.u32 4294901760, %v14432_v54 }
 0x3b1   :  { %27752 = vmatprep.subr.mxu0 %v14423_v16  ;;  %27732 = vmatpush3.msra.mxu1 %v31772_v14  ;;  %v31857_v62 = vpop.f32.mrf.mxu1  ;;  %v14426_v14 = vand.u32 4294901760, %v14425_v15 }
 0x3b2   :  { %34220 = vst [vmem:[#allocation28_spill] sm:$0xff] %v31857_v62  ;;  %27743 = vmatmul.mubr.f32.vlgmr.msra.gmra.mxu0 %v30748_v6  ;;  %27733 = vmatprep.subr.mxu1 %v31777_v2  ;;  %v31865_v5 = vmul.f32 %v8781_v59, %v8781_v59  ;;  %v31868_v35 = vmul.f32 %v8781_v59, %v31464_v30  ;;  %v27296_v1 = vpop.f32.mrf.mxu0  ;;  %v31881_v59 = vand.u32 4294901760, %v31045_v10 }
 0x3b3   :  { %27753 = vmatpush3.msra.mxu0 %v14423_v16  ;;  %27734 = vmatpush3.msra.mxu1 %v31777_v2  ;;  %v31884_v2 = vand.u32 4294901760, %v4035_v52 }
 0x3b4   :  { %34221 = vst [vmem:[#allocation156_spill] sm:$0xff] %v31868_v35  ;;  %27754 = vmatprep.subr.mxu0 %v14430_v4  ;;  %27735 = vmatprep.mubr.f32.mxu1 %v30597_v53  ;;  %v31875_v62 = vadd.f32 %v31865_v5, %v31861_v28  ;;  %v31877_v21 = vpop.f32.mrf.mxu0  ;;  %v14925_v35 = vsub.f32 %v31045_v10, %v31881_v59 }
 0x3b5   :  { %34222 = vst [vmem:[#allocation157_spill] sm:$0xff] %v31877_v21  ;;  %27755 = vmatpush3.msra.mxu0 %v14430_v4  ;;  %27736 = vmatmul.mubr.f32.vlgmr.msra.gmra.mxu1 %v30713_v3  ;;  %v27289_v30 = vpop.f32.mrf.mxu1 }
 0x3b6   :  { %27745 = vmatprep.subr.mxu1 %v14426_v14  ;;  %27756 = vmatprep.mubr.f32.mxu0 %v30611_v22  ;;  %v8955_v16 = vadd.f32 %v27289_v30, %v27282_v61 }
 0x3b7   :  { %27766 = vmatprep.subr.mxu0 %v14424_v50  ;;  %27746 = vmatpush3.msra.mxu1 %v14426_v14  ;;  %v31886_v49 = vpop.f32.mrf.mxu1  ;;  %v14932_v14 = vsub.f32 %v4035_v52, %v31884_v2 }
 0x3b8   :  { %34223 = vst [vmem:[#allocation158_spill] sm:$0xff] %v31886_v49  ;;  %27757 = vmatmul.mubr.f32.vlgmr.msra.gmra.mxu0 %v30723_v45  ;;  %27747 = vmatprep.subr.mxu1 %v14433_v17  ;;  %v27310_v4 = vpop.f32.mrf.mxu0  ;;  %v9038_v15 = vadd.f32 %v27296_v1, %v8955_v16  ;;  %v14926_v1 = vand.u32 4294901760, %v14925_v35  ;;  %v34227_v16 = vld [vmem:[#allocation32_spill] sm:$0xff]  ;;  %v34243_v49 = vld [vmem:[#allocation35_spill] sm:$0xff] }
 0x3b9   :  { %27767 = vmatpush3.msra.mxu0 %v14424_v50  ;;  %27748 = vmatpush3.msra.mxu1 %v14433_v17  ;;  %v14933_v30 = vand.u32 4294901760, %v14932_v14 }
 0x3ba   :  { %27768 = vmatprep.subr.mxu0 %v14431_v12  ;;  %27749 = vmatprep.mubr.f32.mxu1 %v30597_v53  ;;  %v31892_v54 = vpop.f32.mrf.mxu0 }
 0x3bb   :  { %34224 = vst [vmem:[#allocation159_spill] sm:$0xff] %v31892_v54  ;;  %27769 = vmatpush3.msra.mxu0 %v14431_v12  ;;  %27750 = vmatmul.mubr.f32.vlgmr.msra.gmra.mxu1 %v30713_v3  ;;  %v27303_v61 = vpop.f32.mrf.mxu1  ;;  %v14934_v54 = vsub.f32 %v14932_v14, %v14933_v30 }
 0x3bc   :  { %27759 = vmatprep.subr.mxu1 %v31821_v0  ;;  %27770 = vmatprep.mubr.f32.mxu0 %v30597_v53  ;;  %v9121_v50 = vadd.f32 %v27303_v61, %v9038_v15  ;;  %v3500_v15 = vadd.f32 %v31055_v46, %v34227_v16  ;;  %v14927_v61 = vsub.f32 %v14925_v35, %v14926_v1 }
 0x3bd   :  { %27780 = vmatprep.subr.mxu0 %v31881_v59  ;;  %27760 = vmatpush3.msra.mxu1 %v31821_v0  ;;  %v31900_v10 = vpop.f32.mrf.mxu1  ;;  %v31921_v46 = vmul.f32 %v31514_v11, %v31514_v11 }
 0x3be   :  { %34225 = vst [vmem:[#allocation160_spill] sm:$0xff] %v31900_v10  ;;  %27771 = vmatmul.mubr.f32.vlgmr.msra.gmra.mxu0 %v30713_v3  ;;  %27761 = vmatprep.subr.mxu1 %v31824_v51  ;;  %v9204_v12 = vadd.f32 %v27310_v4, %v9121_v50  ;;  %v27324_v52 = vpop.f32.mrf.mxu0 }
 0x3bf   :  { %27781 = vmatpush3.msra.mxu0 %v31881_v59  ;;  %27762 = vmatpush3.msra.mxu1 %v31824_v51 }
 0x3c0   :  { %27782 = vmatprep.subr.mxu0 %v31884_v2  ;;  %27763 = vmatprep.mubr.f32.mxu1 %v30625_v26  ;;  %v31908_v17 = vpop.f32.mrf.mxu0 }
 0x3c1   :  { %34226 = vst [vmem:[#allocation161_spill] sm:$0xff] %v31908_v17  ;;  %27783 = vmatpush3.msra.mxu0 %v31884_v2  ;;  %27764 = vmatmul.mubr.f32.vlgmr.msra.gmra.mxu1 %v30733_v39  ;;  %v27317_v4 = vpop.f32.mrf.mxu1 }
 0x3c2   :  { %27773 = vmatprep.subr.mxu1 %v31821_v0  ;;  %27784 = vmatprep.mubr.f32.mxu0 %v30651_v47  ;;  %v9283_v50 = vadd.f32 %v27317_v4, %v9204_v12  ;;  %v4047_v4 = vadd.f32 %v31063_v24, %v3500_v15  ;;  %v14935_v24 = vand.u32 4294901760, %v14934_v54 }
 0x3c3   :  { %27794 = vmatprep.subr.mxu0 %v14925_v35  ;;  %27774 = vmatpush3.msra.mxu1 %v31821_v0  ;;  %v31917_v10 = vpop.f32.mrf.mxu1  ;;  %v14928_v0 = vand.u32 4294901760, %v14927_v61 }
 0x3c4   :  { %34228 = vst [vmem:[#allocation32_spill] sm:$0xff] %v31917_v10  ;;  %27785 = vmatmul.mubr.f32.vlgmr.msra.gmra.mxu0 %v30748_v6  ;;  %27775 = vmatprep.subr.mxu1 %v31824_v51  ;;  %v31925_v16 = vmul.f32 %v9283_v50, %v9283_v50  ;;  %v31928_v17 = vmul.f32 %v9283_v50, %v31514_v11  ;;  %v27338_v12 = vpop.f32.mrf.mxu0  ;;  %v31941_v50 = vand.u32 4294901760, %v31058_v19 }
 0x3c5   :  { %27795 = vmatpush3.msra.mxu0 %v14925_v35  ;;  %27776 = vmatpush3.msra.mxu1 %v31824_v51  ;;  %v31944_v51 = vand.u32 4294901760, %v4047_v4 }
 0x3c6   :  { %34229 = vst [vmem:[#allocation162_spill] sm:$0xff] %v31928_v17  ;;  %27796 = vmatprep.subr.mxu0 %v14932_v14  ;;  %27777 = vmatprep.mubr.f32.mxu1 %v30597_v53  ;;  %v31935_v10 = vadd.f32 %v31925_v16, %v31921_v46  ;;  %v31937_v21 = vpop.f32.mrf.mxu0  ;;  %v15427_v17 = vsub.f32 %v31058_v19, %v31941_v50 }
 0x3c7   :  { %34230 = vst [vmem:[#allocation163_spill] sm:$0xff] %v31937_v21  ;;  %27797 = vmatpush3.msra.mxu0 %v14932_v14  ;;  %27778 = vmatmul.mubr.f32.vlgmr.msra.gmra.mxu1 %v30713_v3  ;;  %v27331_v11 = vpop.f32.mrf.mxu1 }
 0x3c8   :  { %27787 = vmatprep.subr.mxu1 %v14928_v0  ;;  %27798 = vmatprep.mubr.f32.mxu0 %v30611_v22  ;;  %v9457_v35 = vadd.f32 %v27331_v11, %v27324_v52 }
 0x3c9   :  { %27808 = vmatprep.subr.mxu0 %v14926_v1  ;;  %27788 = vmatpush3.msra.mxu1 %v14928_v0  ;;  %v31946_v15 = vpop.f32.mrf.mxu1  ;;  %v15434_v0 = vsub.f32 %v4047_v4, %v31944_v51 }
 0x3ca   :  { %34231 = vst [vmem:[#allocation164_spill] sm:$0xff] %v31946_v15  ;;  %27799 = vmatmul.mubr.f32.vlgmr.msra.gmra.mxu0 %v30723_v45  ;;  %27789 = vmatprep.subr.mxu1 %v14935_v24  ;;  %v27352_v14 = vpop.f32.mrf.mxu0  ;;  %v9540_v61 = vadd.f32 %v27338_v12, %v9457_v35  ;;  %v15428_v12 = vand.u32 4294901760, %v15427_v17  ;;  %v34235_v35 = vld [vmem:[#allocation33_spill] sm:$0xff] }
 0x3cb   :  { %27809 = vmatpush3.msra.mxu0 %v14926_v1  ;;  %27790 = vmatpush3.msra.mxu1 %v14935_v24  ;;  %v15435_v11 = vand.u32 4294901760, %v15434_v0 }
 0x3cc   :  { %27810 = vmatprep.subr.mxu0 %v14933_v30  ;;  %27791 = vmatprep.mubr.f32.mxu1 %v30597_v53  ;;  %v31952_v54 = vpop.f32.mrf.mxu0 }
 0x3cd   :  { %34232 = vst [vmem:[#allocation165_spill] sm:$0xff] %v31952_v54  ;;  %27811 = vmatpush3.msra.mxu0 %v14933_v30  ;;  %27792 = vmatmul.mubr.f32.vlgmr.msra.gmra.mxu1 %v30713_v3  ;;  %v27345_v52 = vpop.f32.mrf.mxu1  ;;  %v15436_v54 = vsub.f32 %v15434_v0, %v15435_v11 }
 0x3ce   :  { %27801 = vmatprep.subr.mxu1 %v31881_v59  ;;  %27812 = vmatprep.mubr.f32.mxu0 %v30597_v53  ;;  %v9623_v1 = vadd.f32 %v27345_v52, %v9540_v61  ;;  %v3512_v61 = vadd.f32 %v31070_v58, %v34235_v35  ;;  %v15429_v52 = vsub.f32 %v15427_v17, %v15428_v12 }
 0x3cf   :  { %27822 = vmatprep.subr.mxu0 %v31941_v50  ;;  %27802 = vmatpush3.msra.mxu1 %v31881_v59  ;;  %v31960_v19 = vpop.f32.mrf.mxu1  ;;  %v31981_v58 = vmul.f32 %v31562_v33, %v31562_v33 }
 0x3d0   :  { %34233 = vst [vmem:[#allocation166_spill] sm:$0xff] %v31960_v19  ;;  %27813 = vmatmul.mubr.f32.vlgmr.msra.gmra.mxu0 %v30713_v3  ;;  %27803 = vmatprep.subr.mxu1 %v31884_v2  ;;  %v9706_v30 = vadd.f32 %v27352_v14, %v9623_v1  ;;  %v27366_v4 = vpop.f32.mrf.mxu0 }
 0x3d1   :  { %27823 = vmatpush3.msra.mxu0 %v31941_v50  ;;  %27804 = vmatpush3.msra.mxu1 %v31884_v2 }
 0x3d2   :  { %27824 = vmatprep.subr.mxu0 %v31944_v51  ;;  %27805 = vmatprep.mubr.f32.mxu1 %v30625_v26  ;;  %v31968_v24 = vpop.f32.mrf.mxu0 }
 0x3d3   :  { %34234 = vst [vmem:[#allocation167_spill] sm:$0xff] %v31968_v24  ;;  %27825 = vmatpush3.msra.mxu0 %v31944_v51  ;;  %27806 = vmatmul.mubr.f32.vlgmr.msra.gmra.mxu1 %v30733_v39  ;;  %v27359_v14 = vpop.f32.mrf.mxu1 }
 0x3d4   :  { %27815 = vmatprep.subr.mxu1 %v31881_v59  ;;  %27826 = vmatprep.mubr.f32.mxu0 %v30651_v47  ;;  %v9785_v1 = vadd.f32 %v27359_v14, %v9706_v30  ;;  %v34238_v14 = vld [vmem:[#allocation131_spill] sm:$0xff] }
 0x3d5   :  { %27836 = vmatprep.subr.mxu0 %v15427_v17  ;;  %27816 = vmatpush3.msra.mxu1 %v31881_v59  ;;  %v31977_v19 = vpop.f32.mrf.mxu1  ;;  %v4059_v21 = vadd.f32 %v34238_v14, %v3512_v61  ;;  %v15430_v59 = vand.u32 4294901760, %v15429_v52 }
 0x3d6   :  { %34236 = vst [vmem:[#allocation33_spill] sm:$0xff] %v31977_v19  ;;  %27827 = vmatmul.mubr.f32.vlgmr.msra.gmra.mxu0 %v30748_v6  ;;  %27817 = vmatprep.subr.mxu1 %v31884_v2  ;;  %v31985_v35 = vmul.f32 %v9785_v1, %v9785_v1  ;;  %v31988_v24 = vmul.f32 %v9785_v1, %v31562_v33  ;;  %v27380_v30 = vpop.f32.mrf.mxu0  ;;  %v34240_v1 = vld [vmem:[#allocation130_spill] sm:$0xff] }
 0x3d7   :  { %27837 = vmatpush3.msra.mxu0 %v15427_v17  ;;  %27818 = vmatpush3.msra.mxu1 %v31884_v2  ;;  %v15437_v2 = vand.u32 4294901760, %v15436_v54  ;;  %v32004_v17 = vand.u32 4294901760, %v4059_v21 }
 0x3d8   :  { %34237 = vst [vmem:[#allocation168_spill] sm:$0xff] %v31988_v24  ;;  %27838 = vmatprep.subr.mxu0 %v15434_v0  ;;  %27819 = vmatprep.mubr.f32.mxu1 %v30597_v53  ;;  %v31995_v19 = vadd.f32 %v31985_v35, %v31981_v58  ;;  %v31997_v15 = vpop.f32.mrf.mxu0  ;;  %v32001_v24 = vand.u32 4294901760, %v34240_v1 }
 0x3d9   :  { %34239 = vst [vmem:[#allocation131_spill] sm:$0xff] %v31997_v15  ;;  %27839 = vmatpush3.msra.mxu0 %v15434_v0  ;;  %27820 = vmatmul.mubr.f32.vlgmr.msra.gmra.mxu1 %v30713_v3  ;;  %v27373_v33 = vpop.f32.mrf.mxu1 }
 0x3da   :  { %27829 = vmatprep.subr.mxu1 %v15430_v59  ;;  %27840 = vmatprep.mubr.f32.mxu0 %v30611_v22  ;;  %v9959_v61 = vadd.f32 %v27373_v33, %v27366_v4  ;;  %v15929_v15 = vsub.f32 %v34240_v1, %v32001_v24  ;;  %v15936_v33 = vsub.f32 %v4059_v21, %v32004_v17  ;;  %v34246_v1 = vld [vmem:[#allocation37_spill] sm:$0xff] }
 0x3db   :  { %27850 = vmatprep.subr.mxu0 %v15428_v12  ;;  %27830 = vmatpush3.msra.mxu1 %v15430_v59  ;;  %v32006_v52 = vpop.f32.mrf.mxu1  ;;  %v34244_v59 = vld [vmem:[#allocation36_spill] sm:$0xff] }
 0x3dc   :  { %34241 = vst [vmem:[#allocation130_spill] sm:$0xff] %v32006_v52  ;;  %27841 = vmatmul.mubr.f32.vlgmr.msra.gmra.mxu0 %v30723_v45  ;;  %27831 = vmatprep.subr.mxu1 %v15437_v2  ;;  %v27394_v0 = vpop.f32.mrf.mxu0  ;;  %v10042_v14 = vadd.f32 %v27380_v30, %v9959_v61  ;;  %v2235_v4 = vadd.f32 %v34244_v59, %v34243_v49  ;;  %v15930_v21 = vand.u32 4294901760, %v15929_v15  ;;  %v15937_v61 = vand.u32 4294901760, %v15936_v33 }
 0x3dd   :  { %27851 = vmatpush3.msra.mxu0 %v15428_v12  ;;  %27832 = vmatpush3.msra.mxu1 %v15437_v2 }
 0x3de   :  { %27852 = vmatprep.subr.mxu0 %v15435_v11  ;;  %27833 = vmatprep.mubr.f32.mxu1 %v30597_v53  ;;  %v32012_v54 = vpop.f32.mrf.mxu0  ;;  %v2911_v2 = vadd.f32 %v34246_v1, %v2235_v4  ;;  %v15931_v4 = vsub.f32 %v15929_v15, %v15930_v21  ;;  %v15938_v1 = vsub.f32 %v15936_v33, %v15937_v61 }
 0x3df   :  { %34242 = vst [vmem:[#allocation169_spill] sm:$0xff] %v32012_v54  ;;  %27853 = vmatpush3.msra.mxu0 %v15435_v11  ;;  %27834 = vmatmul.mubr.f32.vlgmr.msra.gmra.mxu1 %v30713_v3  ;;  %v27387_v52 = vpop.f32.mrf.mxu1 }
 0x3e0   :  { %27843 = vmatprep.subr.mxu1 %v31941_v50  ;;  %27854 = vmatprep.mubr.f32.mxu0 %v30597_v53  ;;  %v10125_v12 = vadd.f32 %v27387_v52, %v10042_v14  ;;  %v34248_v14 = vld [vmem:[#allocation132_spill] sm:$0xff] }
 0x3e1   :  { %27864 = vmatprep.subr.mxu0 %v32001_v24  ;;  %27844 = vmatpush3.msra.mxu1 %v31941_v50  ;;  %v32022_v30 = vpop.f32.mrf.mxu1  ;;  %v3524_v59 = vadd.f32 %v34248_v14, %v2911_v2  ;;  %v32043_v2 = vmul.f32 %v31611_v37, %v31611_v37 }
 0x3e2   :  { %34245 = vst [vmem:[#allocation35_spill] sm:$0xff] %v32022_v30  ;;  %27855 = vmatmul.mubr.f32.vlgmr.msra.gmra.mxu0 %v30713_v3  ;;  %27845 = vmatprep.subr.mxu1 %v31944_v51  ;;  %v10208_v49 = vadd.f32 %v27394_v0, %v10125_v12  ;;  %v27408_v11 = vpop.f32.mrf.mxu0 }
 0x3e3   :  { %27865 = vmatpush3.msra.mxu0 %v32001_v24  ;;  %27846 = vmatpush3.msra.mxu1 %v31944_v51 }
 0x3e4   :  { %27866 = vmatprep.subr.mxu0 %v32004_v17  ;;  %27847 = vmatprep.mubr.f32.mxu1 %v30625_v26  ;;  %v32031_v52 = vpop.f32.mrf.mxu0 }
 0x3e5   :  { %34247 = vst [vmem:[#allocation36_spill] sm:$0xff] %v32031_v52  ;;  %27867 = vmatpush3.msra.mxu0 %v32004_v17  ;;  %27848 = vmatmul.mubr.f32.vlgmr.msra.gmra.mxu1 %v30733_v39  ;;  %v27401_v0 = vpop.f32.mrf.mxu1 }
 0x3e6   :  { %27857 = vmatprep.subr.mxu1 %v31941_v50  ;;  %27868 = vmatprep.mubr.f32.mxu0 %v30651_v47  ;;  %v10287_v12 = vadd.f32 %v27401_v0, %v10208_v49  ;;  %v4071_v0 = vadd.f32 %v31097_v8, %v3524_v59  ;;  %v15939_v8 = vand.u32 4294901760, %v15938_v1 }
 0x3e7   :  { %27878 = vmatprep.subr.mxu0 %v15929_v15  ;;  %27858 = vmatpush3.msra.mxu1 %v31941_v50  ;;  %v32039_v54 = vpop.f32.mrf.mxu1  ;;  %v15932_v50 = vand.u32 4294901760, %v15931_v4 }
 0x3e8   :  { %34249 = vst [vmem:[#allocation37_spill] sm:$0xff] %v32039_v54  ;;  %27869 = vmatmul.mubr.f32.vlgmr.msra.gmra.mxu0 %v30748_v6  ;;  %27859 = vmatprep.subr.mxu1 %v31944_v51  ;;  %v32047_v14 = vmul.f32 %v10287_v12, %v10287_v12  ;;  %v32050_v52 = vmul.f32 %v10287_v12, %v31611_v37  ;;  %v27422_v49 = vpop.f32.mrf.mxu0  ;;  %v32063_v12 = vand.u32 4294901760, %v31092_v34 }
 0x3e9   :  { %27879 = vmatpush3.msra.mxu0 %v15929_v15  ;;  %27860 = vmatpush3.msra.mxu1 %v31944_v51  ;;  %v32066_v51 = vand.u32 4294901760, %v4071_v0 }
 0x3ea   :  { %34250 = vst [vmem:[#allocation132_spill] sm:$0xff] %v32050_v52  ;;  %27880 = vmatprep.subr.mxu0 %v15936_v33  ;;  %27861 = vmatprep.mubr.f32.mxu1 %v30597_v53  ;;  %v32057_v54 = vadd.f32 %v32047_v14, %v32043_v2  ;;  %v32059_v30 = vpop.f32.mrf.mxu0  ;;  %v16431_v52 = vsub.f32 %v31092_v34, %v32063_v12 }
 0x3eb   :  { %34251 = vst [vmem:[#allocation170_spill] sm:$0xff] %v32059_v30  ;;  %27881 = vmatpush3.msra.mxu0 %v15936_v33  ;;  %27862 = vmatmul.mubr.f32.vlgmr.msra.gmra.mxu1 %v30713_v3  ;;  %v27415_v37 = vpop.f32.mrf.mxu1  ;;  %v34254_v30 = vld [vmem:[#allocation39_spill] sm:$0xff] }
 0x3ec   :  { %27871 = vmatprep.subr.mxu1 %v15932_v50  ;;  %27882 = vmatprep.mubr.f32.mxu0 %v30611_v22  ;;  %v10461_v15 = vadd.f32 %v27415_v37, %v27408_v11  ;;  %v16438_v37 = vsub.f32 %v4071_v0, %v32066_v51  ;;  %v34257_v0 = vld [vmem:[#allocation42_spill] sm:$0xff] }
 0x3ed   :  { %27892 = vmatprep.subr.mxu0 %v15930_v21  ;;  %27872 = vmatpush3.msra.mxu1 %v15932_v50  ;;  %v32068_v59 = vpop.f32.mrf.mxu1  ;;  %v34255_v50 = vld [vmem:[#allocation38_spill] sm:$0xff] }
 0x3ee   :  { %34252 = vst [vmem:[#allocation171_spill] sm:$0xff] %v32068_v59  ;;  %27883 = vmatmul.mubr.f32.vlgmr.msra.gmra.mxu0 %v30723_v45  ;;  %27873 = vmatprep.subr.mxu1 %v15939_v8  ;;  %v27436_v33 = vpop.f32.mrf.mxu0  ;;  %v10544_v4 = vadd.f32 %v27422_v49, %v10461_v15  ;;  %v2249_v11 = vadd.f32 %v34255_v50, %v34254_v30  ;;  %v16432_v30 = vand.u32 4294901760, %v16431_v52  ;;  %v16439_v15 = vand.u32 4294901760, %v16438_v37 }
 0x3ef   :  { %27893 = vmatpush3.msra.mxu0 %v15930_v21  ;;  %27874 = vmatpush3.msra.mxu1 %v15939_v8 }
 0x3f0   :  { %27894 = vmatprep.subr.mxu0 %v15937_v61  ;;  %27875 = vmatprep.mubr.f32.mxu1 %v30597_v53  ;;  %v32074_v1 = vpop.f32.mrf.mxu0  ;;  %v2927_v8 = vadd.f32 %v34257_v0, %v2249_v11  ;;  %v16433_v50 = vsub.f32 %v16431_v52, %v16432_v30 }
 0x3f1   :  { %34253 = vst [vmem:[#allocation172_spill] sm:$0xff] %v32074_v1  ;;  %27895 = vmatpush3.msra.mxu0 %v15937_v61  ;;  %27876 = vmatmul.mubr.f32.vlgmr.msra.gmra.mxu1 %v30713_v3  ;;  %v27429_v59 = vpop.f32.mrf.mxu1 }
 0x3f2   :  { %27885 = vmatprep.subr.mxu1 %v32001_v24  ;;  %27896 = vmatprep.mubr.f32.mxu0 %v30597_v53  ;;  %v10627_v21 = vadd.f32 %v27429_v59, %v10544_v4  ;;  %v3536_v4 = vadd.f32 %v31103_v60, %v2927_v8  ;;  %v32105_v60 = vmul.f32 %v31660_v36, %v31660_v36 }
 0x3f3   :  { %27906 = vmatprep.subr.mxu0 %v32063_v12  ;;  %27886 = vmatpush3.msra.mxu1 %v32001_v24  ;;  %v32084_v34 = vpop.f32.mrf.mxu1 }
 0x3f4   :  { %34256 = vst [vmem:[#allocation39_spill] sm:$0xff] %v32084_v34  ;;  %27897 = vmatmul.mubr.f32.vlgmr.msra.gmra.mxu0 %v30713_v3  ;;  %27887 = vmatprep.subr.mxu1 %v32004_v17  ;;  %v10710_v61 = vadd.f32 %v27436_v33, %v10627_v21  ;;  %v27450_v49 = vpop.f32.mrf.mxu0  ;;  %v16440_v21 = vsub.f32 %v16438_v37, %v16439_v15 }
 0x3f5   :  { %27907 = vmatpush3.msra.mxu0 %v32063_v12  ;;  %27888 = vmatpush3.msra.mxu1 %v32004_v17 }
 0x3f6   :  { %27908 = vmatprep.subr.mxu0 %v32066_v51  ;;  %27889 = vmatprep.mubr.f32.mxu1 %v30625_v26  ;;  %v32093_v59 = vpop.f32.mrf.mxu0 }
 0x3f7   :  { %27909 = vmatpush3.msra.mxu0 %v32066_v51  ;;  %27890 = vmatmul.mubr.f32.vlgmr.msra.gmra.mxu1 %v30733_v39  ;;  %v27443_v33 = vpop.f32.mrf.mxu1 }
 0x3f8   :  { %27899 = vmatprep.subr.mxu1 %v32001_v24  ;;  %27910 = vmatprep.mubr.f32.mxu0 %v30651_v47  ;;  %v10789_v11 = vadd.f32 %v27443_v33, %v10710_v61  ;;  %v4083_v33 = vadd.f32 %v31111_v55, %v3536_v4  ;;  %v16441_v55 = vand.u32 4294901760, %v16440_v21 }
 0x3f9   :  { %27920 = vmatprep.subr.mxu0 %v16431_v52  ;;  %27900 = vmatpush3.msra.mxu1 %v32001_v24  ;;  %v32101_v0 = vpop.f32.mrf.mxu1  ;;  %v16434_v24 = vand.u32 4294901760, %v16433_v50 }
 0x3fa   :  { %34258 = vst [vmem:[#allocation38_spill] sm:$0xff] %v32101_v0  ;;  %27911 = vmatmul.mubr.f32.vlgmr.msra.gmra.mxu0 %v30748_v6  ;;  %27901 = vmatprep.subr.mxu1 %v32004_v17  ;;  %v32109_v8 = vmul.f32 %v10789_v11, %v10789_v11  ;;  %v32112_v1 = vmul.f32 %v10789_v11, %v31660_v36  ;;  %v27464_v61 = vpop.f32.mrf.mxu0  ;;  %v32125_v11 = vand.u32 4294901760, %v31106_v43 }
 0x3fb   :  { %27921 = vmatpush3.msra.mxu0 %v16431_v52  ;;  %27902 = vmatpush3.msra.mxu1 %v32004_v17  ;;  %v32128_v17 = vand.u32 4294901760, %v4083_v33 }
 0x3fc   :  { %34259 = vst [vmem:[#allocation42_spill] sm:$0xff] %v32112_v1  ;;  %27922 = vmatprep.subr.mxu0 %v16438_v37  ;;  %27903 = vmatprep.mubr.f32.mxu1 %v30597_v53  ;;  %v32119_v0 = vadd.f32 %v32109_v8, %v32105_v60  ;;  %v32121_v34 = vpop.f32.mrf.mxu0  ;;  %v16933_v1 = vsub.f32 %v31106_v43, %v32125_v11 }
 0x3fd   :  { %27923 = vmatpush3.msra.mxu0 %v16438_v37  ;;  %27904 = vmatmul.mubr.f32.vlgmr.msra.gmra.mxu1 %v30713_v3  ;;  %v27457_v36 = vpop.f32.mrf.mxu1 }
 0x3fe   :  { %34260 = vst [vmem:[#allocation173_spill] sm:$0xff] %v32119_v0  ;;  %27913 = vmatprep.subr.mxu1 %v16434_v24  ;;  %27924 = vmatprep.mubr.f32.mxu0 %v30611_v22  ;;  %v10963_v52 = vadd.f32 %v27457_v36, %v27450_v49  ;;  %v16940_v36 = vsub.f32 %v4083_v33, %v32128_v17  ;;  %v34265_v33 = vld [vmem:[#allocation44_spill] sm:$0xff] }
 0x3ff   :  { %27934 = vmatprep.subr.mxu0 %v16432_v30  ;;  %27914 = vmatpush3.msra.mxu1 %v16434_v24  ;;  %v32130_v4 = vpop.f32.mrf.mxu1  ;;  %v34263_v24 = vld [vmem:[#allocation43_spill] sm:$0xff] }
 0x400   :  { %27925 = vmatmul.mubr.f32.vlgmr.msra.gmra.mxu0 %v30723_v45  ;;  %27915 = vmatprep.subr.mxu1 %v16441_v55  ;;  %v27478_v37 = vpop.f32.mrf.mxu0  ;;  %v11046_v50 = vadd.f32 %v27464_v61, %v10963_v52  ;;  %v2263_v49 = vadd.f32 %v34263_v24, %v34262_v23  ;;  %v16934_v23 = vand.u32 4294901760, %v16933_v1 }
 0x401   :  { %27935 = vmatpush3.msra.mxu0 %v16432_v30  ;;  %27916 = vmatpush3.msra.mxu1 %v16441_v55 }
 0x402   :  { %27936 = vmatprep.subr.mxu0 %v16439_v15  ;;  %27917 = vmatprep.mubr.f32.mxu1 %v30597_v53  ;;  %v32136_v21 = vpop.f32.mrf.mxu0  ;;  %v2943_v55 = vadd.f32 %v34265_v33, %v2263_v49  ;;  %v16935_v24 = vsub.f32 %v16933_v1, %v16934_v23 }
 0x403   :  { %34261 = vst [vmem:[#allocation174_spill] sm:$0xff] %v32136_v21  ;;  %27937 = vmatpush3.msra.mxu0 %v16439_v15  ;;  %27918 = vmatmul.mubr.f32.vlgmr.msra.gmra.mxu1 %v30713_v3  ;;  %v27471_v41 = vpop.f32.mrf.mxu1 }
 0x404   :  { %27927 = vmatprep.subr.mxu1 %v32063_v12  ;;  %27938 = vmatprep.mubr.f32.mxu0 %v30597_v53  ;;  %v11129_v30 = vadd.f32 %v27471_v41, %v11046_v50  ;;  %v16941_v41 = vand.u32 4294901760, %v16940_v36  ;;  %v3548_v50 = vadd.f32 %v31117_v25, %v2943_v55  ;;  %v32167_v25 = vmul.f32 %v31709_v29, %v31709_v29 }
 0x405   :  { %27948 = vmatprep.subr.mxu0 %v32125_v11  ;;  %27928 = vmatpush3.msra.mxu1 %v32063_v12  ;;  %v32146_v43 = vpop.f32.mrf.mxu1 }
 0x406   :  { %34264 = vst [vmem:[#allocation40_spill] sm:$0xff] %v32146_v43  ;;  %27939 = vmatmul.mubr.f32.vlgmr.msra.gmra.mxu0 %v30713_v3  ;;  %27929 = vmatprep.subr.mxu1 %v32066_v51  ;;  %v11212_v15 = vadd.f32 %v27478_v37, %v11129_v30  ;;  %v27492_v61 = vpop.f32.mrf.mxu0  ;;  %v16942_v30 = vsub.f32 %v16940_v36, %v16941_v41  ;;  %34268 = vst [vmem:[#allocation175_spill] sm:$0xff] %v32167_v25  ;;  %v34363_v43 = vld [vmem:[#allocation79_spill] sm:$0xff] }
 0x407   :  { %27949 = vmatpush3.msra.mxu0 %v32125_v11  ;;  %27930 = vmatpush3.msra.mxu1 %v32066_v51 }
 0x408   :  { %27950 = vmatprep.subr.mxu0 %v32128_v17  ;;  %27931 = vmatprep.mubr.f32.mxu1 %v30625_v26  ;;  %v32155_v52 = vpop.f32.mrf.mxu0 }
 0x409   :  { %34266 = vst [vmem:[#allocation43_spill] sm:$0xff] %v32155_v52  ;;  %27951 = vmatpush3.msra.mxu0 %v32128_v17  ;;  %27932 = vmatmul.mubr.f32.vlgmr.msra.gmra.mxu1 %v30733_v39  ;;  %v27485_v37 = vpop.f32.mrf.mxu1 }
 0x40a   :  { %27941 = vmatprep.subr.mxu1 %v32063_v12  ;;  %27952 = vmatprep.mubr.f32.mxu0 %v30651_v47  ;;  %v11291_v49 = vadd.f32 %v27485_v37, %v11212_v15  ;;  %v34271_v37 = vld [vmem:[#allocation134_spill] sm:$0xff] }
 0x40b   :  { %27962 = vmatprep.subr.mxu0 %v16933_v1  ;;  %27942 = vmatpush3.msra.mxu1 %v32063_v12  ;;  %v32163_v33 = vpop.f32.mrf.mxu1  ;;  %v4095_v56 = vadd.f32 %v34271_v37, %v3548_v50  ;;  %v16936_v12 = vand.u32 4294901760, %v16935_v24 }
 0x40c   :  { %34267 = vst [vmem:[#allocation44_spill] sm:$0xff] %v32163_v33  ;;  %27953 = vmatmul.mubr.f32.vlgmr.msra.gmra.mxu0 %v30748_v6  ;;  %27943 = vmatprep.subr.mxu1 %v32066_v51  ;;  %v32171_v55 = vmul.f32 %v11291_v49, %v11291_v49  ;;  %v32174_v52 = vmul.f32 %v11291_v49, %v31709_v29  ;;  %v27506_v15 = vpop.f32.mrf.mxu0  ;;  %v34274_v49 = vld [vmem:[#allocation133_spill] sm:$0xff] }
 0x40d   :  { %27963 = vmatpush3.msra.mxu0 %v16933_v1  ;;  %27944 = vmatpush3.msra.mxu1 %v32066_v51  ;;  %v16943_v51 = vand.u32 4294901760, %v16942_v30  ;;  %v32190_v1 = vand.u32 4294901760, %v4095_v56 }
 0x40e   :  { %34269 = vst [vmem:[#allocation176_spill] sm:$0xff] %v32171_v55  ;;  %34270 = vst [vmem:[#allocation177_spill] sm:$0xff] %v32174_v52  ;;  %27964 = vmatprep.subr.mxu0 %v16940_v36  ;;  %27945 = vmatprep.mubr.f32.mxu1 %v30597_v53  ;;  %v32181_v38 = vadd.f32 %v32171_v55, %v32167_v25  ;;  %v32183_v33 = vpop.f32.mrf.mxu0  ;;  %v32187_v52 = vand.u32 4294901760, %v34274_v49 }
 0x40f   :  { %34273 = vst [vmem:[#allocation178_spill] sm:$0xff] %v32183_v33  ;;  %27965 = vmatpush3.msra.mxu0 %v16940_v36  ;;  %27946 = vmatmul.mubr.f32.vlgmr.msra.gmra.mxu1 %v30713_v3  ;;  %v27499_v29 = vpop.f32.mrf.mxu1  ;;  %v34277_v33 = vld [vmem:[#allocation41_spill] sm:$0xff] }
 0x410   :  { %34272 = vst [vmem:[#allocation134_spill] sm:$0xff] %v32181_v38  ;;  %27955 = vmatprep.subr.mxu1 %v16936_v12  ;;  %27966 = vmatprep.mubr.f32.mxu0 %v30611_v22  ;;  %v11465_v50 = vadd.f32 %v27499_v29, %v27492_v61  ;;  %v17435_v38 = vsub.f32 %v34274_v49, %v32187_v52  ;;  %v34280_v49 = vld [vmem:[#allocation50_spill] sm:$0xff] }
 0x411   :  { %27976 = vmatprep.subr.mxu0 %v16934_v23  ;;  %27956 = vmatpush3.msra.mxu1 %v16936_v12  ;;  %v32192_v24 = vpop.f32.mrf.mxu1  ;;  %v34278_v12 = vld [vmem:[#allocation48_spill] sm:$0xff]  ;;  %v17442_v29 = vsub.f32 %v4095_v56, %v32190_v1 }
 0x412   :  { %34275 = vst [vmem:[#allocation133_spill] sm:$0xff] %v32192_v24  ;;  %27967 = vmatmul.mubr.f32.vlgmr.msra.gmra.mxu0 %v30723_v45  ;;  %27957 = vmatprep.subr.mxu1 %v16943_v51  ;;  %v27520_v36 = vpop.f32.mrf.mxu0  ;;  %v11548_v37 = vadd.f32 %v27506_v15, %v11465_v50  ;;  %v2277_v61 = vadd.f32 %v34278_v12, %v34277_v33  ;;  %v17436_v56 = vand.u32 4294901760, %v17435_v38 }
 0x413   :  { %27977 = vmatpush3.msra.mxu0 %v16934_v23  ;;  %27958 = vmatpush3.msra.mxu1 %v16943_v51 }
 0x414   :  { %27978 = vmatprep.subr.mxu0 %v16941_v41  ;;  %27959 = vmatprep.mubr.f32.mxu1 %v30597_v53  ;;  %v32198_v30 = vpop.f32.mrf.mxu0  ;;  %v2959_v51 = vadd.f32 %v34280_v49, %v2277_v61  ;;  %v17437_v61 = vsub.f32 %v17435_v38, %v17436_v56 }
 0x415   :  { %34276 = vst [vmem:[#allocation179_spill] sm:$0xff] %v32198_v30  ;;  %27979 = vmatpush3.msra.mxu0 %v16941_v41  ;;  %27960 = vmatmul.mubr.f32.vlgmr.msra.gmra.mxu1 %v30713_v3  ;;  %v27513_v55 = vpop.f32.mrf.mxu1 }
 0x416   :  { %27969 = vmatprep.subr.mxu1 %v32125_v11  ;;  %27980 = vmatprep.mubr.f32.mxu0 %v30597_v53  ;;  %v11631_v23 = vadd.f32 %v27513_v55, %v11548_v37  ;;  %v17443_v55 = vand.u32 4294901760, %v17442_v29  ;;  %v34282_v37 = vld [vmem:[#allocation135_spill] sm:$0xff] }
 0x417   :  { %27990 = vmatprep.subr.mxu0 %v32187_v52  ;;  %27970 = vmatpush3.msra.mxu1 %v32125_v11  ;;  %v32208_v15 = vpop.f32.mrf.mxu1  ;;  %v3560_v12 = vadd.f32 %v34282_v37, %v2959_v51  ;;  %v32229_v51 = vmul.f32 %v31758_v32, %v31758_v32 }
 0x418   :  { %34279 = vst [vmem:[#allocation41_spill] sm:$0xff] %v32208_v15  ;;  %27981 = vmatmul.mubr.f32.vlgmr.msra.gmra.mxu0 %v30713_v3  ;;  %27971 = vmatprep.subr.mxu1 %v32128_v17  ;;  %v11714_v41 = vadd.f32 %v27520_v36, %v11631_v23  ;;  %v27534_v33 = vpop.f32.mrf.mxu0  ;;  %v17444_v49 = vsub.f32 %v17442_v29, %v17443_v55 }
 0x419   :  { %27991 = vmatpush3.msra.mxu0 %v32187_v52  ;;  %27972 = vmatpush3.msra.mxu1 %v32128_v17  ;;  %34284 = vst [vmem:[#allocation135_spill] sm:$0xff] %v32229_v51 }
 0x41a   :  { %27992 = vmatprep.subr.mxu0 %v32190_v1  ;;  %27973 = vmatprep.mubr.f32.mxu1 %v30625_v26  ;;  %v32217_v50 = vpop.f32.mrf.mxu0 }
 0x41b   :  { %34281 = vst [vmem:[#allocation48_spill] sm:$0xff] %v32217_v50  ;;  %27993 = vmatpush3.msra.mxu0 %v32190_v1  ;;  %27974 = vmatmul.mubr.f32.vlgmr.msra.gmra.mxu1 %v30733_v39  ;;  %v27527_v36 = vpop.f32.mrf.mxu1 }
 0x41c   :  { %27983 = vmatprep.subr.mxu1 %v32125_v11  ;;  %27994 = vmatprep.mubr.f32.mxu0 %v30651_v47  ;;  %v11793_v23 = vadd.f32 %v27527_v36, %v11714_v41  ;;  %v34287_v36 = vld [vmem:[#allocation137_spill] sm:$0xff] }
 0x41d   :  { %28004 = vmatprep.subr.mxu0 %v17435_v38  ;;  %27984 = vmatpush3.msra.mxu1 %v32125_v11  ;;  %v32225_v30 = vpop.f32.mrf.mxu1  ;;  %v4107_v15 = vadd.f32 %v34287_v36, %v3560_v12  ;;  %v17438_v11 = vand.u32 4294901760, %v17437_v61 }
 0x41e   :  { %34283 = vst [vmem:[#allocation50_spill] sm:$0xff] %v32225_v30  ;;  %27995 = vmatmul.mubr.f32.vlgmr.msra.gmra.mxu0 %v30748_v6  ;;  %27985 = vmatprep.subr.mxu1 %v32128_v17  ;;  %v32233_v37 = vmul.f32 %v11793_v23, %v11793_v23  ;;  %v32236_v50 = vmul.f32 %v11793_v23, %v31758_v32  ;;  %v27548_v41 = vpop.f32.mrf.mxu0  ;;  %v34290_v23 = vld [vmem:[#allocation136_spill] sm:$0xff] }
 0x41f   :  { %28005 = vmatpush3.msra.mxu0 %v17435_v38  ;;  %27986 = vmatpush3.msra.mxu1 %v32128_v17  ;;  %v17445_v38 = vand.u32 4294901760, %v17444_v49  ;;  %v32252_v17 = vand.u32 4294901760, %v4107_v15 }
 0x420   :  { %34285 = vst [vmem:[#allocation180_spill] sm:$0xff] %v32233_v37  ;;  %34286 = vst [vmem:[#allocation181_spill] sm:$0xff] %v32236_v50  ;;  %28006 = vmatprep.subr.mxu0 %v17442_v29  ;;  %27987 = vmatprep.mubr.f32.mxu1 %v30597_v53  ;;  %v32243_v30 = vadd.f32 %v32233_v37, %v32229_v51  ;;  %v32245_v24 = vpop.f32.mrf.mxu0  ;;  %v32249_v50 = vand.u32 4294901760, %v34290_v23 }
 0x421   :  { %34289 = vst [vmem:[#allocation182_spill] sm:$0xff] %v32245_v24  ;;  %28007 = vmatpush3.msra.mxu0 %v17442_v29  ;;  %27988 = vmatmul.mubr.f32.vlgmr.msra.gmra.mxu1 %v30713_v3  ;;  %v27541_v32 = vpop.f32.mrf.mxu1  ;;  %v34294_v24 = vld [vmem:[#allocation51_spill] sm:$0xff] }
 0x422   :  { %34288 = vst [vmem:[#allocation137_spill] sm:$0xff] %v32243_v30  ;;  %27997 = vmatprep.subr.mxu1 %v17438_v11  ;;  %28008 = vmatprep.mubr.f32.mxu0 %v30611_v22  ;;  %v11967_v12 = vadd.f32 %v27541_v32, %v27534_v33  ;;  %v17937_v30 = vsub.f32 %v34290_v23, %v32249_v50  ;;  %v34293_v32 = vld [vmem:[#allocation45_spill] sm:$0xff] }
 0x423   :  { %28018 = vmatprep.subr.mxu0 %v17436_v56  ;;  %27998 = vmatpush3.msra.mxu1 %v17438_v11  ;;  %v32254_v61 = vpop.f32.mrf.mxu1  ;;  %v17944_v11 = vsub.f32 %v4107_v15, %v32252_v17  ;;  %v2291_v37 = vadd.f32 %v34294_v24, %v34293_v32 }
 0x424   :  { %34291 = vst [vmem:[#allocation136_spill] sm:$0xff] %v32254_v61  ;;  %28009 = vmatmul.mubr.f32.vlgmr.msra.gmra.mxu0 %v30723_v45  ;;  %27999 = vmatprep.subr.mxu1 %v17445_v38  ;;  %v27562_v29 = vpop.f32.mrf.mxu0  ;;  %v12050_v36 = vadd.f32 %v27548_v41, %v11967_v12  ;;  %v17938_v15 = vand.u32 4294901760, %v17937_v30 }
 0x425   :  { %28019 = vmatpush3.msra.mxu0 %v17436_v56  ;;  %28000 = vmatpush3.msra.mxu1 %v17445_v38  ;;  %v17945_v24 = vand.u32 4294901760, %v17944_v11  ;;  %v34296_v38 = vld [vmem:[#allocation53_spill] sm:$0xff] }
 0x426   :  { %28020 = vmatprep.subr.mxu0 %v17443_v55  ;;  %28001 = vmatprep.mubr.f32.mxu1 %v30597_v53  ;;  %v32260_v49 = vpop.f32.mrf.mxu0  ;;  %v2975_v12 = vadd.f32 %v34296_v38, %v2291_v37 }
 0x427   :  { %34292 = vst [vmem:[#allocation183_spill] sm:$0xff] %v32260_v49  ;;  %28021 = vmatpush3.msra.mxu0 %v17443_v55  ;;  %28002 = vmatmul.mubr.f32.vlgmr.msra.gmra.mxu1 %v30713_v3  ;;  %v27555_v33 = vpop.f32.mrf.mxu1  ;;  %v17946_v37 = vsub.f32 %v17944_v11, %v17945_v24 }
 0x428   :  { %28011 = vmatprep.subr.mxu1 %v32187_v52  ;;  %28022 = vmatprep.mubr.f32.mxu0 %v30597_v53  ;;  %v12133_v56 = vadd.f32 %v27555_v33, %v12050_v36 }
 0x429   :  { %28032 = vmatprep.subr.mxu0 %v32249_v50  ;;  %28012 = vmatpush3.msra.mxu1 %v32187_v52  ;;  %v32270_v41 = vpop.f32.mrf.mxu1 }
 0x42a   :  { %34295 = vst [vmem:[#allocation45_spill] sm:$0xff] %v32270_v41  ;;  %28023 = vmatmul.mubr.f32.vlgmr.msra.gmra.mxu0 %v30713_v3  ;;  %28013 = vmatprep.subr.mxu1 %v32190_v1  ;;  %v12216_v55 = vadd.f32 %v27562_v29, %v12133_v56  ;;  %v27576_v23 = vpop.f32.mrf.mxu0  ;;  %v34298_v29 = vld [vmem:[#allocation138_spill] sm:$0xff]  ;;  %v17939_v56 = vsub.f32 %v17937_v30, %v17938_v15 }
 0x42b   :  { %28033 = vmatpush3.msra.mxu0 %v32249_v50  ;;  %28014 = vmatpush3.msra.mxu1 %v32190_v1  ;;  %v3572_v32 = vadd.f32 %v34298_v29, %v2975_v12  ;;  %v32291_v41 = vmul.f32 %v31807_v40, %v31807_v40 }
 0x42c   :  { %28034 = vmatprep.subr.mxu0 %v32252_v17  ;;  %28015 = vmatprep.mubr.f32.mxu1 %v30625_v26  ;;  %v32279_v36 = vpop.f32.mrf.mxu0 }
 0x42d   :  { %34297 = vst [vmem:[#allocation51_spill] sm:$0xff] %v32279_v36  ;;  %28035 = vmatpush3.msra.mxu0 %v32252_v17  ;;  %28016 = vmatmul.mubr.f32.vlgmr.msra.gmra.mxu1 %v30733_v39  ;;  %v27569_v33 = vpop.f32.mrf.mxu1  ;;  %34300 = vst [vmem:[#allocation138_spill] sm:$0xff] %v32291_v41 }
 0x42e   :  { %28025 = vmatprep.subr.mxu1 %v32187_v52  ;;  %28036 = vmatprep.mubr.f32.mxu0 %v30651_v47  ;;  %v12295_v49 = vadd.f32 %v27569_v33, %v12216_v55  ;;  %v17940_v33 = vand.u32 4294901760, %v17939_v56 }
 0x42f   :  { %28046 = vmatprep.subr.mxu0 %v17937_v30  ;;  %28026 = vmatpush3.msra.mxu1 %v32187_v52  ;;  %v32287_v38 = vpop.f32.mrf.mxu1  ;;  %v4119_v52 = vadd.f32 %v31157_v20, %v3572_v32  ;;  %v17947_v20 = vand.u32 4294901760, %v17946_v37 }
 0x430   :  { %34299 = vst [vmem:[#allocation53_spill] sm:$0xff] %v32287_v38  ;;  %28037 = vmatmul.mubr.f32.vlgmr.msra.gmra.mxu0 %v30748_v6  ;;  %28027 = vmatprep.subr.mxu1 %v32190_v1  ;;  %v32295_v12 = vmul.f32 %v12295_v49, %v12295_v49  ;;  %v32298_v29 = vmul.f32 %v12295_v49, %v31807_v40  ;;  %v27590_v55 = vpop.f32.mrf.mxu0  ;;  %v34305_v49 = vld [vmem:[#allocation139_spill] sm:$0xff] }
 0x431   :  { %28047 = vmatpush3.msra.mxu0 %v17937_v30  ;;  %28028 = vmatpush3.msra.mxu1 %v32190_v1  ;;  %v32311_v30 = vand.u32 4294901760, %v34305_v49  ;;  %v32316_v56 = vand.u32 4294901760, %v4119_v52 }
 0x432   :  { %34301 = vst [vmem:[#allocation184_spill] sm:$0xff] %v32295_v12  ;;  %34302 = vst [vmem:[#allocation185_spill] sm:$0xff] %v32298_v29  ;;  %28048 = vmatprep.subr.mxu0 %v17944_v11  ;;  %28029 = vmatprep.mubr.f32.mxu1 %v30597_v53  ;;  %v32305_v38 = vadd.f32 %v32295_v12, %v32291_v41  ;;  %v32307_v36 = vpop.f32.mrf.mxu0 }
 0x433   :  { %34304 = vst [vmem:[#allocation187_spill] sm:$0xff] %v32307_v36  ;;  %28049 = vmatpush3.msra.mxu0 %v17944_v11  ;;  %28030 = vmatmul.mubr.f32.vlgmr.msra.gmra.mxu1 %v30713_v3  ;;  %v27583_v40 = vpop.f32.mrf.mxu1  ;;  %v18446_v36 = vsub.f32 %v4119_v52, %v32316_v56  ;;  %v34311_v52 = vld [vmem:[#allocation59_spill] sm:$0xff] }
 0x434   :  { %34303 = vst [vmem:[#allocation186_spill] sm:$0xff] %v32305_v38  ;;  %28039 = vmatprep.subr.mxu1 %v17940_v33  ;;  %28050 = vmatprep.mubr.f32.mxu0 %v30611_v22  ;;  %v12469_v1 = vadd.f32 %v27583_v40, %v27576_v23  ;;  %v18439_v38 = vsub.f32 %v34305_v49, %v32311_v30  ;;  %v34309_v40 = vld [vmem:[#allocation55_spill] sm:$0xff] }
 0x435   :  { %28060 = vmatprep.subr.mxu0 %v17938_v15  ;;  %28040 = vmatpush3.msra.mxu1 %v17940_v33  ;;  %v32314_v32 = vpop.f32.mrf.mxu1  ;;  %v34308_v33 = vld [vmem:[#allocation46_spill] sm:$0xff] }
 0x436   :  { %34306 = vst [vmem:[#allocation139_spill] sm:$0xff] %v32314_v32  ;;  %28051 = vmatmul.mubr.f32.vlgmr.msra.gmra.mxu0 %v30723_v45  ;;  %28041 = vmatprep.subr.mxu1 %v17947_v20  ;;  %v27604_v11 = vpop.f32.mrf.mxu0  ;;  %v12552_v29 = vadd.f32 %v27590_v55, %v12469_v1  ;;  %v2305_v12 = vadd.f32 %v34309_v40, %v34308_v33 }
 0x437   :  { %28061 = vmatpush3.msra.mxu0 %v17938_v15  ;;  %28042 = vmatpush3.msra.mxu1 %v17947_v20 }
 0x438   :  { %28062 = vmatprep.subr.mxu0 %v17945_v24  ;;  %28043 = vmatprep.mubr.f32.mxu1 %v30597_v53  ;;  %v32322_v37 = vpop.f32.mrf.mxu0  ;;  %v2991_v1 = vadd.f32 %v34311_v52, %v2305_v12 }
 0x439   :  { %34307 = vst [vmem:[#allocation188_spill] sm:$0xff] %v32322_v37  ;;  %28063 = vmatpush3.msra.mxu0 %v17945_v24  ;;  %28044 = vmatmul.mubr.f32.vlgmr.msra.gmra.mxu1 %v30713_v3  ;;  %v27597_v23 = vpop.f32.mrf.mxu1  ;;  %v18440_v24 = vand.u32 4294901760, %v18439_v38  ;;  %v34316_v37 = vld [vmem:[#allocation141_spill] sm:$0xff] }
 0x43a   :  { %28053 = vmatprep.subr.mxu1 %v32249_v50  ;;  %28064 = vmatprep.mubr.f32.mxu0 %v30597_v53  ;;  %v12635_v15 = vadd.f32 %v27597_v23, %v12552_v29  ;;  %v18447_v29 = vand.u32 4294901760, %v18446_v36 }
 0x43b   :  { %28074 = vmatprep.subr.mxu0 %v32311_v30  ;;  %28054 = vmatpush3.msra.mxu1 %v32249_v50  ;;  %v32332_v55 = vpop.f32.mrf.mxu1 }
 0x43c   :  { %34310 = vst [vmem:[#allocation46_spill] sm:$0xff] %v32332_v55  ;;  %28065 = vmatmul.mubr.f32.vlgmr.msra.gmra.mxu0 %v30713_v3  ;;  %28055 = vmatprep.subr.mxu1 %v32252_v17  ;;  %v12718_v49 = vadd.f32 %v27604_v11, %v12635_v15  ;;  %v27618_v20 = vpop.f32.mrf.mxu0  ;;  %v34313_v11 = vld [vmem:[#allocation140_spill] sm:$0xff]  ;;  %v18441_v15 = vsub.f32 %v18439_v38, %v18440_v24  ;;  %v32364_v55 = vand.u32 4294901760, %v34316_v37 }
 0x43d   :  { %28075 = vmatpush3.msra.mxu0 %v32311_v30  ;;  %28056 = vmatpush3.msra.mxu1 %v32252_v17  ;;  %v3584_v40 = vadd.f32 %v34313_v11, %v2991_v1 }
 0x43e   :  { %28076 = vmatprep.subr.mxu0 %v32316_v56  ;;  %28057 = vmatprep.mubr.f32.mxu1 %v30625_v26  ;;  %v32341_v23 = vpop.f32.mrf.mxu0  ;;  %v18941_v1 = vsub.f32 %v34316_v37, %v32364_v55 }
 0x43f   :  { %34312 = vst [vmem:[#allocation55_spill] sm:$0xff] %v32341_v23  ;;  %28077 = vmatpush3.msra.mxu0 %v32316_v56  ;;  %28058 = vmatmul.mubr.f32.vlgmr.msra.gmra.mxu1 %v30733_v39  ;;  %v27611_v33 = vpop.f32.mrf.mxu1  ;;  %v18448_v23 = vsub.f32 %v18446_v36, %v18447_v29 }
 0x440   :  { %28067 = vmatprep.subr.mxu1 %v32249_v50  ;;  %28078 = vmatprep.mubr.f32.mxu0 %v30651_v47  ;;  %v32348_v12 = vadd.f32 %v27611_v33, %v12718_v49  ;;  %v4131_v49 = vadd.f32 %v31171_v63, %v3584_v40 }
 0x441   :  { %28088 = vmatprep.subr.mxu0 %v18439_v38  ;;  %28068 = vmatpush3.msra.mxu1 %v32249_v50  ;;  %v32351_v52 = vpop.f32.mrf.mxu1  ;;  %v18442_v50 = vand.u32 4294901760, %v18441_v15 }
 0x442   :  { %34314 = vst [vmem:[#allocation59_spill] sm:$0xff] %v32351_v52  ;;  %28079 = vmatmul.mubr.f32.vlgmr.msra.gmra.mxu0 %v30748_v6  ;;  %28069 = vmatprep.subr.mxu1 %v32252_v17  ;;  %v27632_v11 = vpop.f32.mrf.mxu0  ;;  %v32369_v40 = vand.u32 4294901760, %v4131_v49 }
 0x443   :  { %28089 = vmatpush3.msra.mxu0 %v18439_v38  ;;  %28070 = vmatpush3.msra.mxu1 %v32252_v17  ;;  %v18449_v38 = vand.u32 4294901760, %v18448_v23 }
 0x444   :  { %28090 = vmatprep.subr.mxu0 %v18446_v36  ;;  %28071 = vmatprep.mubr.f32.mxu1 %v30597_v53  ;;  %v32360_v33 = vpop.f32.mrf.mxu0 }
 0x445   :  { %34315 = vst [vmem:[#allocation140_spill] sm:$0xff] %v32360_v33  ;;  %28091 = vmatpush3.msra.mxu0 %v18446_v36  ;;  %28072 = vmatmul.mubr.f32.vlgmr.msra.gmra.mxu1 %v30713_v3  ;;  %v27625_v52 = vpop.f32.mrf.mxu1 }
 0x446   :  { %28081 = vmatprep.subr.mxu1 %v18442_v50  ;;  %28092 = vmatprep.mubr.f32.mxu0 %v30611_v22  ;;  %v12971_v17 = vadd.f32 %v27625_v52, %v27618_v20  ;;  %v34319_v52 = vld [vmem:[#allocation47_spill] sm:$0xff] }
 0x447   :  { %28102 = vmatprep.subr.mxu0 %v18440_v24  ;;  %28082 = vmatpush3.msra.mxu1 %v18442_v50  ;;  %v32367_v63 = vpop.f32.mrf.mxu1  ;;  %v34320_v50 = vld [vmem:[#allocation61_spill] sm:$0xff] }
 0x448   :  { %34317 = vst [vmem:[#allocation141_spill] sm:$0xff] %v32367_v63  ;;  %28093 = vmatmul.mubr.f32.vlgmr.msra.gmra.mxu0 %v30723_v45  ;;  %28083 = vmatprep.subr.mxu1 %v18449_v38  ;;  %v13054_v36 = vadd.f32 %v27632_v11, %v12971_v17  ;;  %v27646_v15 = vpop.f32.mrf.mxu0  ;;  %v2319_v33 = vadd.f32 %v34320_v50, %v34319_v52  ;;  %v34328_v63 = vld [vmem:[#allocation62_spill] sm:$0xff] }
 0x449   :  { %28103 = vmatpush3.msra.mxu0 %v18440_v24  ;;  %28084 = vmatpush3.msra.mxu1 %v18449_v38  ;;  %v18948_v11 = vsub.f32 %v4131_v49, %v32369_v40  ;;  %v34322_v49 = vld [vmem:[#allocation65_spill] sm:$0xff]  ;;  %v32417_v32 = vand.u32 4294901760, %v34328_v63 }
 0x44a   :  { %28104 = vmatprep.subr.mxu0 %v18447_v29  ;;  %28085 = vmatprep.mubr.f32.mxu1 %v30597_v53  ;;  %v32375_v20 = vpop.f32.mrf.mxu0  ;;  %v3007_v52 = vadd.f32 %v34322_v49, %v2319_v33 }
 0x44b   :  { %34318 = vst [vmem:[#allocation189_spill] sm:$0xff] %v32375_v20  ;;  %28105 = vmatpush3.msra.mxu0 %v18447_v29  ;;  %28086 = vmatmul.mubr.f32.vlgmr.msra.gmra.mxu1 %v30713_v3  ;;  %v27639_v23 = vpop.f32.mrf.mxu1  ;;  %v18942_v29 = vand.u32 4294901760, %v18941_v1 }
 0x44c   :  { %28095 = vmatprep.subr.mxu1 %v32311_v30  ;;  %28106 = vmatprep.mubr.f32.mxu0 %v30597_v53  ;;  %v13137_v24 = vadd.f32 %v27639_v23, %v13054_v36  ;;  %v18949_v36 = vand.u32 4294901760, %v18948_v11 }
 0x44d   :  { %28116 = vmatprep.subr.mxu0 %v32364_v55  ;;  %28096 = vmatpush3.msra.mxu1 %v32311_v30  ;;  %v32385_v37 = vpop.f32.mrf.mxu1  ;;  %v18943_v20 = vsub.f32 %v18941_v1, %v18942_v29 }
 0x44e   :  { %34321 = vst [vmem:[#allocation47_spill] sm:$0xff] %v32385_v37  ;;  %28107 = vmatmul.mubr.f32.vlgmr.msra.gmra.mxu0 %v30713_v3  ;;  %28097 = vmatprep.subr.mxu1 %v32316_v56  ;;  %v13220_v38 = vadd.f32 %v27646_v15, %v13137_v24  ;;  %v27660_v17 = vpop.f32.mrf.mxu0  ;;  %v34324_v15 = vld [vmem:[#allocation142_spill] sm:$0xff] }
 0x44f   :  { %28117 = vmatpush3.msra.mxu0 %v32364_v55  ;;  %28098 = vmatpush3.msra.mxu1 %v32316_v56  ;;  %v3596_v24 = vadd.f32 %v34324_v15, %v3007_v52  ;;  %v34326_v37 = vld [vmem:[#allocation66_spill] sm:$0xff]  ;;  %v19443_v52 = vsub.f32 %v34328_v63, %v32417_v32 }
 0x450   :  { %28118 = vmatprep.subr.mxu0 %v32369_v40  ;;  %28099 = vmatprep.mubr.f32.mxu1 %v30625_v26  ;;  %v32394_v23 = vpop.f32.mrf.mxu0 }
 0x451   :  { %34323 = vst [vmem:[#allocation61_spill] sm:$0xff] %v32394_v23  ;;  %28119 = vmatpush3.msra.mxu0 %v32369_v40  ;;  %28100 = vmatmul.mubr.f32.vlgmr.msra.gmra.mxu1 %v30733_v39  ;;  %v27653_v50 = vpop.f32.mrf.mxu1  ;;  %v18950_v23 = vsub.f32 %v18948_v11, %v18949_v36 }
 0x452   :  { %28109 = vmatprep.subr.mxu1 %v32311_v30  ;;  %28120 = vmatprep.mubr.f32.mxu0 %v30651_v47  ;;  %v32401_v33 = vadd.f32 %v27653_v50, %v13220_v38  ;;  %v4143_v38 = vadd.f32 %v34326_v37, %v3596_v24 }
 0x453   :  { %28130 = vmatprep.subr.mxu0 %v18941_v1  ;;  %28110 = vmatpush3.msra.mxu1 %v32311_v30  ;;  %v32404_v49 = vpop.f32.mrf.mxu1  ;;  %v18944_v30 = vand.u32 4294901760, %v18943_v20 }
 0x454   :  { %34325 = vst [vmem:[#allocation65_spill] sm:$0xff] %v32404_v49  ;;  %28121 = vmatmul.mubr.f32.vlgmr.msra.gmra.mxu0 %v30748_v6  ;;  %28111 = vmatprep.subr.mxu1 %v32316_v56  ;;  %v27674_v15 = vpop.f32.mrf.mxu0  ;;  %v32422_v24 = vand.u32 4294901760, %v4143_v38 }
 0x455   :  { %28131 = vmatpush3.msra.mxu0 %v18941_v1  ;;  %28112 = vmatpush3.msra.mxu1 %v32316_v56  ;;  %v18951_v1 = vand.u32 4294901760, %v18950_v23 }
 0x456   :  { %28132 = vmatprep.subr.mxu0 %v18948_v11  ;;  %28113 = vmatprep.mubr.f32.mxu1 %v30597_v53  ;;  %v32413_v50 = vpop.f32.mrf.mxu0 }
 0x457   :  { %34327 = vst [vmem:[#allocation142_spill] sm:$0xff] %v32413_v50  ;;  %28133 = vmatpush3.msra.mxu0 %v18948_v11  ;;  %28114 = vmatmul.mubr.f32.vlgmr.msra.gmra.mxu1 %v30713_v3  ;;  %v27667_v49 = vpop.f32.mrf.mxu1 }
 0x458   :  { %28123 = vmatprep.subr.mxu1 %v18944_v30  ;;  %28134 = vmatprep.mubr.f32.mxu0 %v30611_v22  ;;  %v13473_v56 = vadd.f32 %v27667_v49, %v27660_v17  ;;  %v34331_v49 = vld [vmem:[#allocation49_spill] sm:$0xff] }
 0x459   :  { %28144 = vmatprep.subr.mxu0 %v18942_v29  ;;  %28124 = vmatpush3.msra.mxu1 %v18944_v30  ;;  %v32420_v37 = vpop.f32.mrf.mxu1  ;;  %v34332_v30 = vld [vmem:[#allocation67_spill] sm:$0xff] }
 0x45a   :  { %34329 = vst [vmem:[#allocation66_spill] sm:$0xff] %v32420_v37  ;;  %28135 = vmatmul.mubr.f32.vlgmr.msra.gmra.mxu0 %v30723_v45  ;;  %28125 = vmatprep.subr.mxu1 %v18951_v1  ;;  %v13556_v20 = vadd.f32 %v27674_v15, %v13473_v56  ;;  %v27688_v11 = vpop.f32.mrf.mxu0  ;;  %v2333_v50 = vadd.f32 %v34332_v30, %v34331_v49  ;;  %v34340_v37 = vld [vmem:[#allocation89_spill] sm:$0xff] }
 0x45b   :  { %28145 = vmatpush3.msra.mxu0 %v18942_v29  ;;  %28126 = vmatpush3.msra.mxu1 %v18951_v1  ;;  %v19450_v15 = vsub.f32 %v4143_v38, %v32422_v24  ;;  %v34334_v38 = vld [vmem:[#allocation69_spill] sm:$0xff]  ;;  %v32470_v61 = vand.u32 4294901760, %v34340_v37 }
 0x45c   :  { %28146 = vmatprep.subr.mxu0 %v18949_v36  ;;  %28127 = vmatprep.mubr.f32.mxu1 %v30597_v53  ;;  %v32428_v17 = vpop.f32.mrf.mxu0  ;;  %v3023_v49 = vadd.f32 %v34334_v38, %v2333_v50 }
 0x45d   :  { %34330 = vst [vmem:[#allocation62_spill] sm:$0xff] %v32428_v17  ;;  %28147 = vmatpush3.msra.mxu0 %v18949_v36  ;;  %28128 = vmatmul.mubr.f32.vlgmr.msra.gmra.mxu1 %v30713_v3  ;;  %v27681_v23 = vpop.f32.mrf.mxu1  ;;  %v19444_v36 = vand.u32 4294901760, %v19443_v52 }
 0x45e   :  { %28137 = vmatprep.subr.mxu1 %v32364_v55  ;;  %28148 = vmatprep.mubr.f32.mxu0 %v30597_v53  ;;  %v13639_v29 = vadd.f32 %v27681_v23, %v13556_v20  ;;  %v19451_v20 = vand.u32 4294901760, %v19450_v15 }
 0x45f   :  { %28158 = vmatprep.subr.mxu0 %v32417_v32  ;;  %28138 = vmatpush3.msra.mxu1 %v32364_v55  ;;  %v32438_v63 = vpop.f32.mrf.mxu1  ;;  %v19445_v17 = vsub.f32 %v19443_v52, %v19444_v36 }
 0x460   :  { %34333 = vst [vmem:[#allocation49_spill] sm:$0xff] %v32438_v63  ;;  %28149 = vmatmul.mubr.f32.vlgmr.msra.gmra.mxu0 %v30713_v3  ;;  %28139 = vmatprep.subr.mxu1 %v32369_v40  ;;  %v13722_v1 = vadd.f32 %v27688_v11, %v13639_v29  ;;  %v27702_v56 = vpop.f32.mrf.mxu0  ;;  %v34336_v11 = vld [vmem:[#allocation76_spill] sm:$0xff]  ;;  %v34338_v63 = vld [vmem:[#allocation90_spill] sm:$0xff] }
 0x461   :  { %28159 = vmatpush3.msra.mxu0 %v32417_v32  ;;  %28140 = vmatpush3.msra.mxu1 %v32369_v40  ;;  %v3608_v29 = vadd.f32 %v34336_v11, %v3023_v49  ;;  %v19945_v49 = vsub.f32 %v34340_v37, %v32470_v61 }
 0x462   :  { %28160 = vmatprep.subr.mxu0 %v32422_v24  ;;  %28141 = vmatprep.mubr.f32.mxu1 %v30625_v26  ;;  %v32447_v23 = vpop.f32.mrf.mxu0 }
 0x463   :  { %34335 = vst [vmem:[#allocation67_spill] sm:$0xff] %v32447_v23  ;;  %28161 = vmatpush3.msra.mxu0 %v32422_v24  ;;  %28142 = vmatmul.mubr.f32.vlgmr.msra.gmra.mxu1 %v30733_v39  ;;  %v27695_v30 = vpop.f32.mrf.mxu1  ;;  %v19452_v23 = vsub.f32 %v19450_v15, %v19451_v20 }
 0x464   :  { %28151 = vmatprep.subr.mxu1 %v32364_v55  ;;  %28162 = vmatprep.mubr.f32.mxu0 %v30651_v47  ;;  %v32454_v50 = vadd.f32 %v27695_v30, %v13722_v1  ;;  %v4155_v1 = vadd.f32 %v34338_v63, %v3608_v29 }
 0x465   :  { %28172 = vmatprep.subr.mxu0 %v19443_v52  ;;  %28152 = vmatpush3.msra.mxu1 %v32364_v55  ;;  %v32457_v38 = vpop.f32.mrf.mxu1  ;;  %v19446_v55 = vand.u32 4294901760, %v19445_v17 }
 0x466   :  { %34337 = vst [vmem:[#allocation69_spill] sm:$0xff] %v32457_v38  ;;  %28163 = vmatmul.mubr.f32.vlgmr.msra.gmra.mxu0 %v30748_v6  ;;  %28153 = vmatprep.subr.mxu1 %v32369_v40  ;;  %v27716_v11 = vpop.f32.mrf.mxu0  ;;  %v32475_v29 = vand.u32 4294901760, %v4155_v1 }
 0x467   :  { %28173 = vmatpush3.msra.mxu0 %v19443_v52  ;;  %28154 = vmatpush3.msra.mxu1 %v32369_v40  ;;  %v19453_v52 = vand.u32 4294901760, %v19452_v23 }
 0x468   :  { %28174 = vmatprep.subr.mxu0 %v19450_v15  ;;  %28155 = vmatprep.mubr.f32.mxu1 %v30597_v53  ;;  %v32466_v30 = vpop.f32.mrf.mxu0 }
 0x469   :  { %34339 = vst [vmem:[#allocation76_spill] sm:$0xff] %v32466_v30  ;;  %28175 = vmatpush3.msra.mxu0 %v19450_v15  ;;  %28156 = vmatmul.mubr.f32.vlgmr.msra.gmra.mxu1 %v30713_v3  ;;  %v27709_v38 = vpop.f32.mrf.mxu1 }
 0x46a   :  { %28165 = vmatprep.subr.mxu1 %v19446_v55  ;;  %28176 = vmatprep.mubr.f32.mxu0 %v30611_v22  ;;  %v13975_v40 = vadd.f32 %v27709_v38, %v27702_v56  ;;  %v34343_v38 = vld [vmem:[#allocation52_spill] sm:$0xff] }
 0x46b   :  { %28186 = vmatprep.subr.mxu0 %v19444_v36  ;;  %28166 = vmatpush3.msra.mxu1 %v19446_v55  ;;  %v32473_v63 = vpop.f32.mrf.mxu1  ;;  %v34344_v55 = vld [vmem:[#allocation71_spill] sm:$0xff] }
 0x46c   :  { %34341 = vst [vmem:[#allocation90_spill] sm:$0xff] %v32473_v63  ;;  %28177 = vmatmul.mubr.f32.vlgmr.msra.gmra.mxu0 %v30723_v45  ;;  %28167 = vmatprep.subr.mxu1 %v19453_v52  ;;  %v14058_v17 = vadd.f32 %v27716_v11, %v13975_v40  ;;  %v27730_v15 = vpop.f32.mrf.mxu0  ;;  %v2347_v30 = vadd.f32 %v34344_v55, %v34343_v38  ;;  %v34352_v63 = vld [vmem:[#allocation98_spill] sm:$0xff] }
 0x46d   :  { %28187 = vmatpush3.msra.mxu0 %v19444_v36  ;;  %28168 = vmatpush3.msra.mxu1 %v19453_v52  ;;  %v19952_v11 = vsub.f32 %v4155_v1, %v32475_v29  ;;  %v34346_v1 = vld [vmem:[#allocation74_spill] sm:$0xff]  ;;  %v32523_v42 = vand.u32 4294901760, %v34352_v63 }
 0x46e   :  { %28188 = vmatprep.subr.mxu0 %v19451_v20  ;;  %28169 = vmatprep.mubr.f32.mxu1 %v30597_v53  ;;  %v32481_v56 = vpop.f32.mrf.mxu0  ;;  %v3039_v38 = vadd.f32 %v34346_v1, %v2347_v30 }
 0x46f   :  { %34342 = vst [vmem:[#allocation89_spill] sm:$0xff] %v32481_v56  ;;  %28189 = vmatpush3.msra.mxu0 %v19451_v20  ;;  %28170 = vmatmul.mubr.f32.vlgmr.msra.gmra.mxu1 %v30713_v3  ;;  %v27723_v23 = vpop.f32.mrf.mxu1  ;;  %v19946_v20 = vand.u32 4294901760, %v19945_v49 }
 0x470   :  { %28179 = vmatprep.subr.mxu1 %v32417_v32  ;;  %28190 = vmatprep.mubr.f32.mxu0 %v30597_v53  ;;  %v14141_v36 = vadd.f32 %v27723_v23, %v14058_v17  ;;  %v19953_v17 = vand.u32 4294901760, %v19952_v11 }
 0x471   :  { %28200 = vmatprep.subr.mxu0 %v32470_v61  ;;  %28180 = vmatpush3.msra.mxu1 %v32417_v32  ;;  %v32491_v37 = vpop.f32.mrf.mxu1  ;;  %v19947_v56 = vsub.f32 %v19945_v49, %v19946_v20 }
 0x472   :  { %34345 = vst [vmem:[#allocation52_spill] sm:$0xff] %v32491_v37  ;;  %28191 = vmatmul.mubr.f32.vlgmr.msra.gmra.mxu0 %v30713_v3  ;;  %28181 = vmatprep.subr.mxu1 %v32422_v24  ;;  %v14224_v52 = vadd.f32 %v27730_v15, %v14141_v36  ;;  %v27744_v40 = vpop.f32.mrf.mxu0  ;;  %v34348_v15 = vld [vmem:[#allocation57_spill] sm:$0xff]  ;;  %v34350_v37 = vld [vmem:[#allocation63_spill] sm:$0xff] }
 0x473   :  { %28201 = vmatpush3.msra.mxu0 %v32470_v61  ;;  %28182 = vmatpush3.msra.mxu1 %v32422_v24  ;;  %v3620_v36 = vadd.f32 %v34348_v15, %v3039_v38  ;;  %v20447_v38 = vsub.f32 %v34352_v63, %v32523_v42 }
 0x474   :  { %28202 = vmatprep.subr.mxu0 %v32475_v29  ;;  %28183 = vmatprep.mubr.f32.mxu1 %v30625_v26  ;;  %v32500_v23 = vpop.f32.mrf.mxu0 }
 0x475   :  { %34347 = vst [vmem:[#allocation71_spill] sm:$0xff] %v32500_v23  ;;  %28203 = vmatpush3.msra.mxu0 %v32475_v29  ;;  %28184 = vmatmul.mubr.f32.vlgmr.msra.gmra.mxu1 %v30733_v39  ;;  %v27737_v55 = vpop.f32.mrf.mxu1  ;;  %v19954_v23 = vsub.f32 %v19952_v11, %v19953_v17 }
 0x476   :  { %28193 = vmatprep.subr.mxu1 %v32417_v32  ;;  %28204 = vmatprep.mubr.f32.mxu0 %v30651_v47  ;;  %v32507_v30 = vadd.f32 %v27737_v55, %v14224_v52  ;;  %v4167_v52 = vadd.f32 %v34350_v37, %v3620_v36 }
 0x477   :  { %28214 = vmatprep.subr.mxu0 %v19945_v49  ;;  %28194 = vmatpush3.msra.mxu1 %v32417_v32  ;;  %v32510_v1 = vpop.f32.mrf.mxu1  ;;  %v19948_v32 = vand.u32 4294901760, %v19947_v56 }
 0x478   :  { %34349 = vst [vmem:[#allocation74_spill] sm:$0xff] %v32510_v1  ;;  %28205 = vmatmul.mubr.f32.vlgmr.msra.gmra.mxu0 %v30748_v6  ;;  %28195 = vmatprep.subr.mxu1 %v32422_v24  ;;  %v27758_v15 = vpop.f32.mrf.mxu0  ;;  %v32528_v36 = vand.u32 4294901760, %v4167_v52 }
 0x479   :  { %28215 = vmatpush3.msra.mxu0 %v19945_v49  ;;  %28196 = vmatpush3.msra.mxu1 %v32422_v24  ;;  %v19955_v49 = vand.u32 4294901760, %v19954_v23 }
 0x47a   :  { %28216 = vmatprep.subr.mxu0 %v19952_v11  ;;  %28197 = vmatprep.mubr.f32.mxu1 %v30597_v53  ;;  %v32519_v55 = vpop.f32.mrf.mxu0 }
 0x47b   :  { %34351 = vst [vmem:[#allocation57_spill] sm:$0xff] %v32519_v55  ;;  %28217 = vmatpush3.msra.mxu0 %v19952_v11  ;;  %28198 = vmatmul.mubr.f32.vlgmr.msra.gmra.mxu1 %v30713_v3  ;;  %v27751_v1 = vpop.f32.mrf.mxu1 }
 0x47c   :  { %28207 = vmatprep.subr.mxu1 %v19948_v32  ;;  %28218 = vmatprep.mubr.f32.mxu0 %v30611_v22  ;;  %v14477_v24 = vadd.f32 %v27751_v1, %v27744_v40  ;;  %v34355_v1 = vld [vmem:[#allocation54_spill] sm:$0xff] }
 0x47d   :  { %28228 = vmatprep.subr.mxu0 %v19946_v20  ;;  %28208 = vmatpush3.msra.mxu1 %v19948_v32  ;;  %v32526_v37 = vpop.f32.mrf.mxu1  ;;  %v34356_v32 = vld [vmem:[#allocation75_spill] sm:$0xff] }
 0x47e   :  { %34353 = vst [vmem:[#allocation63_spill] sm:$0xff] %v32526_v37  ;;  %28219 = vmatmul.mubr.f32.vlgmr.msra.gmra.mxu0 %v30723_v45  ;;  %28209 = vmatprep.subr.mxu1 %v19955_v49  ;;  %v14560_v56 = vadd.f32 %v27758_v15, %v14477_v24  ;;  %v27772_v11 = vpop.f32.mrf.mxu0  ;;  %v2361_v55 = vadd.f32 %v34356_v32, %v34355_v1  ;;  %v34361_v37 = vld [vmem:[#allocation72_spill] sm:$0xff] }
 0x47f   :  { %28229 = vmatpush3.msra.mxu0 %v19946_v20  ;;  %28210 = vmatpush3.msra.mxu1 %v19955_v49  ;;  %v20454_v15 = vsub.f32 %v4167_v52, %v32528_v36  ;;  %v34358_v52 = vld [vmem:[#allocation78_spill] sm:$0xff]  ;;  %v32572_v21 = vand.u32 4294901760, %v34361_v37 }
 0x480   :  { %28230 = vmatprep.subr.mxu0 %v19953_v17  ;;  %28211 = vmatprep.mubr.f32.mxu1 %v30597_v53  ;;  %v32534_v40 = vpop.f32.mrf.mxu0  ;;  %v3055_v1 = vadd.f32 %v34358_v52, %v2361_v55 }
 0x481   :  { %34354 = vst [vmem:[#allocation98_spill] sm:$0xff] %v32534_v40  ;;  %28231 = vmatpush3.msra.mxu0 %v19953_v17  ;;  %28212 = vmatmul.mubr.f32.vlgmr.msra.gmra.mxu1 %v30713_v3  ;;  %v27765_v23 = vpop.f32.mrf.mxu1  ;;  %v20448_v17 = vand.u32 4294901760, %v20447_v38  ;;  %v34359_v40 = vld [vmem:[#allocation68_spill] sm:$0xff]  ;;  %v20949_v13 = vsub.f32 %v34361_v37, %v32572_v21 }
 0x482   :  { %28221 = vmatprep.subr.mxu1 %v32470_v61  ;;  %28232 = vmatprep.mubr.f32.mxu0 %v30597_v53  ;;  %v14643_v20 = vadd.f32 %v27765_v23, %v14560_v56  ;;  %v20455_v56 = vand.u32 4294901760, %v20454_v15 }
 0x483   :  { %28242 = vmatprep.subr.mxu0 %v32523_v42  ;;  %28222 = vmatpush3.msra.mxu1 %v32470_v61  ;;  %v32544_v63 = vpop.f32.mrf.mxu1 }
 0x484   :  { %34357 = vst [vmem:[#allocation54_spill] sm:$0xff] %v32544_v63  ;;  %28233 = vmatmul.mubr.f32.vlgmr.msra.gmra.mxu0 %v30713_v3  ;;  %28223 = vmatprep.subr.mxu1 %v32475_v29  ;;  %v14726_v49 = vadd.f32 %v27772_v11, %v14643_v20  ;;  %v27786_v24 = vpop.f32.mrf.mxu0  ;;  %v3632_v11 = vadd.f32 %v34359_v40, %v3055_v1 }
 0x485   :  { %28243 = vmatpush3.msra.mxu0 %v32523_v42  ;;  %28224 = vmatpush3.msra.mxu1 %v32475_v29  ;;  %v20449_v20 = vsub.f32 %v20447_v38, %v20448_v17  ;;  %v20456_v52 = vsub.f32 %v20454_v15, %v20455_v56 }
 0x486   :  { %28244 = vmatprep.subr.mxu0 %v32528_v36  ;;  %28225 = vmatprep.mubr.f32.mxu1 %v30625_v26  ;;  %v14881_v23 = vpop.f32.mrf.mxu0 }
 0x487   :  { %28245 = vmatpush3.msra.mxu0 %v32528_v36  ;;  %28226 = vmatmul.mubr.f32.vlgmr.msra.gmra.mxu1 %v30733_v39  ;;  %v27779_v32 = vpop.f32.mrf.mxu1 }
 0x488   :  { %28235 = vmatprep.subr.mxu1 %v32470_v61  ;;  %28246 = vmatprep.mubr.f32.mxu0 %v30651_v47  ;;  %v32558_v63 = vadd.f32 %v27779_v32, %v14726_v49  ;;  %v4179_v49 = vadd.f32 %v31232_v7, %v3632_v11 }
 0x489   :  { %28256 = vmatprep.subr.mxu0 %v20447_v38  ;;  %28236 = vmatpush3.msra.mxu1 %v32470_v61  ;;  %v32561_v55 = vpop.f32.mrf.mxu1  ;;  %v20450_v61 = vand.u32 4294901760, %v20449_v20 }
 0x48a   :  { %34360 = vst [vmem:[#allocation75_spill] sm:$0xff] %v32561_v55  ;;  %28247 = vmatmul.mubr.f32.vlgmr.msra.gmra.mxu0 %v30748_v6  ;;  %28237 = vmatprep.subr.mxu1 %v32475_v29  ;;  %v27800_v1 = vpop.f32.mrf.mxu0 }
 0x48b   :  { %28257 = vmatpush3.msra.mxu0 %v20447_v38  ;;  %28238 = vmatpush3.msra.mxu1 %v32475_v29  ;;  %v20457_v38 = vand.u32 4294901760, %v20456_v52  ;;  %v32575_v29 = vand.u32 4294901760, %v4179_v49 }
 0x48c   :  { %28258 = vmatprep.subr.mxu0 %v20454_v15  ;;  %28239 = vmatprep.mubr.f32.mxu1 %v30597_v53  ;;  %v15054_v32 = vpop.f32.mrf.mxu0 }
 0x48d   :  { %28259 = vmatpush3.msra.mxu0 %v20454_v15  ;;  %28240 = vmatmul.mubr.f32.vlgmr.msra.gmra.mxu1 %v30713_v3  ;;  %v27793_v55 = vpop.f32.mrf.mxu1 }
 0x48e   :  { %28249 = vmatprep.subr.mxu1 %v20450_v61  ;;  %28260 = vmatprep.mubr.f32.mxu0 %v30611_v22  ;;  %v14979_v40 = vadd.f32 %v27793_v55, %v27786_v24 }
 0x48f   :  { %28270 = vmatprep.subr.mxu0 %v20448_v17  ;;  %28250 = vmatpush3.msra.mxu1 %v20450_v61  ;;  %v14972_v7 = vpop.f32.mrf.mxu1  ;;  %v34362_v61 = vld [vmem:[#allocation56_spill] sm:$0xff] }
 0x490   :  { %28261 = vmatmul.mubr.f32.vlgmr.msra.gmra.mxu0 %v30723_v45  ;;  %28251 = vmatprep.subr.mxu1 %v20457_v38  ;;  %v14973_v15 = vadd.f32 %v14972_v7, %v14881_v23  ;;  %v15062_v11 = vadd.f32 %v27800_v1, %v14979_v40  ;;  %v27814_v20 = vpop.f32.mrf.mxu0  ;;  %v2375_v27 = vadd.f32 %v34363_v43, %v34362_v61 }
 0x491   :  { %28271 = vmatpush3.msra.mxu0 %v20448_v17  ;;  %28252 = vmatpush3.msra.mxu1 %v20457_v38  ;;  %v20956_v23 = vsub.f32 %v4179_v49, %v32575_v29  ;;  %v34364_v49 = vld [vmem:[#allocation81_spill] sm:$0xff] }
 0x492   :  { %28272 = vmatprep.subr.mxu0 %v20455_v56  ;;  %28253 = vmatprep.mubr.f32.mxu1 %v30597_v53  ;;  %v15055_v24 = vadd.f32 %v15054_v32, %v14973_v15  ;;  %v15221_v55 = vpop.f32.mrf.mxu0  ;;  %v3071_v32 = vadd.f32 %v34364_v49, %v2375_v27 }
 0x493   :  { %28273 = vmatpush3.msra.mxu0 %v20455_v56  ;;  %28254 = vmatmul.mubr.f32.vlgmr.msra.gmra.mxu1 %v30713_v3  ;;  %v27807_v52 = vpop.f32.mrf.mxu1  ;;  %v20950_v56 = vand.u32 4294901760, %v20949_v13  ;;  %v20957_v38 = vand.u32 4294901760, %v20956_v23 }
 0x494   :  { %28263 = vmatprep.subr.mxu1 %v32523_v42  ;;  %28274 = vmatprep.mubr.f32.mxu0 %v30597_v53  ;;  %v15145_v17 = vadd.f32 %v27807_v52, %v15062_v11 }
 0x495   :  { %28284 = vmatprep.subr.mxu0 %v32572_v21  ;;  %28264 = vmatpush3.msra.mxu1 %v32523_v42  ;;  %v15136_v37 = vpop.f32.mrf.mxu1  ;;  %v20951_v52 = vsub.f32 %v20949_v13, %v20950_v56 }
 0x496   :  { %28275 = vmatmul.mubr.f32.vlgmr.msra.gmra.mxu0 %v30713_v3  ;;  %28265 = vmatprep.subr.mxu1 %v32528_v36  ;;  %v15137_v40 = vadd.f32 %v15136_v37, %v15055_v24  ;;  %v15228_v1 = vadd.f32 %v27814_v20, %v15145_v17  ;;  %v27828_v43 = vpop.f32.mrf.mxu0  ;;  %v34365_v20 = vld [vmem:[#allocation92_spill] sm:$0xff]  ;;  %v34370_v17 = vld [vmem:[#allocation82_spill] sm:$0xff] }
 0x497   :  { %28285 = vmatpush3.msra.mxu0 %v32572_v21  ;;  %28266 = vmatpush3.msra.mxu1 %v32528_v36  ;;  %v3644_v24 = vadd.f32 %v34365_v20, %v3071_v32  ;;  %v34368_v20 = vld [vmem:[#allocation29_spill] sm:$0xff] }
 0x498   :  { %28286 = vmatprep.subr.mxu0 %v32575_v29  ;;  %28267 = vmatprep.mubr.f32.mxu1 %v30625_v26  ;;  %v15222_v7 = vadd.f32 %v15221_v55, %v15137_v40  ;;  %v15383_v15 = vpop.f32.mrf.mxu0  ;;  %v20958_v55 = vsub.f32 %v20956_v23, %v20957_v38  ;;  %v32615_v0 = vand.u32 4294901760, %v34368_v20 }
 0x499   :  { %28287 = vmatpush3.msra.mxu0 %v32575_v29  ;;  %28268 = vmatmul.mubr.f32.vlgmr.msra.gmra.mxu1 %v30733_v39  ;;  %v27821_v11 = vpop.f32.mrf.mxu1 }
 0x49a   :  { %28277 = vmatprep.subr.mxu1 %v32523_v42  ;;  %28288 = vmatprep.mubr.f32.mxu0 %v30651_v47  ;;  %v32601_v27 = vadd.f32 %v27821_v11, %v15228_v1  ;;  %v34367_v1 = vld [vmem:[#allocation77_spill] sm:$0xff] }
 0x49b   :  { %28298 = vmatprep.subr.mxu0 %v20949_v13  ;;  %28278 = vmatpush3.msra.mxu1 %v32523_v42  ;;  %v15300_v61 = vpop.f32.mrf.mxu1  ;;  %v4191_v49 = vadd.f32 %v34367_v1, %v3644_v24  ;;  %v20952_v42 = vand.u32 4294901760, %v20951_v52  ;;  %v21451_v1 = vsub.f32 %v34368_v20, %v32615_v0 }
 0x49c   :  { %34366 = vst [vmem:[#allocation78_spill] sm:$0xff] %v32601_v27  ;;  %28289 = vmatmul.mubr.f32.vlgmr.msra.gmra.mxu0 %v30748_v6  ;;  %28279 = vmatprep.subr.mxu1 %v32528_v36  ;;  %v32608_v37 = vadd.f32 %v15300_v61, %v15222_v7  ;;  %v27842_v40 = vpop.f32.mrf.mxu0 }
 0x49d   :  { %28299 = vmatpush3.msra.mxu0 %v20949_v13  ;;  %28280 = vmatpush3.msra.mxu1 %v32528_v36  ;;  %v20959_v13 = vand.u32 4294901760, %v20958_v55  ;;  %v32618_v24 = vand.u32 4294901760, %v4191_v49 }
 0x49e   :  { %28300 = vmatprep.subr.mxu0 %v20956_v23  ;;  %28281 = vmatprep.mubr.f32.mxu1 %v30597_v53  ;;  %v15556_v32 = vpop.f32.mrf.mxu0 }
 0x49f   :  { %28301 = vmatpush3.msra.mxu0 %v20956_v23  ;;  %28282 = vmatmul.mubr.f32.vlgmr.msra.gmra.mxu1 %v30713_v3  ;;  %v27835_v11 = vpop.f32.mrf.mxu1 }
 0x4a0   :  { %28291 = vmatprep.subr.mxu1 %v20952_v42  ;;  %28302 = vmatprep.mubr.f32.mxu0 %v30611_v22  ;;  %v15481_v7 = vadd.f32 %v27835_v11, %v27828_v43  ;;  %v34369_v11 = vld [vmem:[#allocation58_spill] sm:$0xff] }
 0x4a1   :  { %28312 = vmatprep.subr.mxu0 %v20950_v56  ;;  %28292 = vmatpush3.msra.mxu1 %v20952_v42  ;;  %v15474_v36 = vpop.f32.mrf.mxu1  ;;  %v2389_v25 = vadd.f32 %v34370_v17, %v34369_v11 }
 0x4a2   :  { %28303 = vmatmul.mubr.f32.vlgmr.msra.gmra.mxu0 %v30723_v45  ;;  %28293 = vmatprep.subr.mxu1 %v20959_v13  ;;  %v15475_v23 = vadd.f32 %v15474_v36, %v15383_v15  ;;  %v15564_v52 = vadd.f32 %v27842_v40, %v15481_v7  ;;  %v27856_v61 = vpop.f32.mrf.mxu0  ;;  %v21458_v15 = vsub.f32 %v4191_v49, %v32618_v24  ;;  %v34371_v49 = vld [vmem:[#allocation84_spill] sm:$0xff] }
 0x4a3   :  { %28313 = vmatpush3.msra.mxu0 %v20950_v56  ;;  %28294 = vmatpush3.msra.mxu1 %v20959_v13  ;;  %v3087_v13 = vadd.f32 %v34371_v49, %v2389_v25 }
 0x4a4   :  { %28314 = vmatprep.subr.mxu0 %v20957_v38  ;;  %28295 = vmatprep.mubr.f32.mxu1 %v30597_v53  ;;  %v15557_v43 = vadd.f32 %v15556_v32, %v15475_v23  ;;  %v15723_v55 = vpop.f32.mrf.mxu0  ;;  %v21459_v7 = vand.u32 4294901760, %v21458_v15 }
 0x4a5   :  { %28315 = vmatpush3.msra.mxu0 %v20957_v38  ;;  %28296 = vmatmul.mubr.f32.vlgmr.msra.gmra.mxu1 %v30713_v3  ;;  %v27849_v42 = vpop.f32.mrf.mxu1  ;;  %v21452_v38 = vand.u32 4294901760, %v21451_v1 }
 0x4a6   :  { %28305 = vmatprep.subr.mxu1 %v32572_v21  ;;  %28316 = vmatprep.mubr.f32.mxu0 %v30597_v53  ;;  %v15647_v56 = vadd.f32 %v27849_v42, %v15564_v52 }
 0x4a7   :  { %28326 = vmatprep.subr.mxu0 %v32615_v0  ;;  %28306 = vmatpush3.msra.mxu1 %v32572_v21  ;;  %v15638_v40 = vpop.f32.mrf.mxu1  ;;  %v21453_v42 = vsub.f32 %v21451_v1, %v21452_v38 }
 0x4a8   :  { %28317 = vmatmul.mubr.f32.vlgmr.msra.gmra.mxu0 %v30713_v3  ;;  %28307 = vmatprep.subr.mxu1 %v32575_v29  ;;  %v15639_v32 = vadd.f32 %v15638_v40, %v15557_v43  ;;  %v15730_v20 = vadd.f32 %v27856_v61, %v15647_v56  ;;  %v27870_v17 = vpop.f32.mrf.mxu0  ;;  %v34372_v61 = vld [vmem:[#allocation94_spill] sm:$0xff] }
 0x4a9   :  { %28327 = vmatpush3.msra.mxu0 %v32615_v0  ;;  %28308 = vmatpush3.msra.mxu1 %v32575_v29  ;;  %v3656_v43 = vadd.f32 %v34372_v61, %v3087_v13  ;;  %v34375_v61 = vld [vmem:[#allocation80_spill] sm:$0xff]  ;;  %v34377_v56 = vld [vmem:[#allocation86_spill] sm:$0xff] }
 0x4aa   :  { %28328 = vmatprep.subr.mxu0 %v32618_v24  ;;  %28309 = vmatprep.mubr.f32.mxu1 %v30625_v26  ;;  %v15724_v36 = vadd.f32 %v15723_v55, %v15639_v32  ;;  %v15885_v23 = vpop.f32.mrf.mxu0  ;;  %v21460_v55 = vsub.f32 %v21458_v15, %v21459_v7  ;;  %v32658_v27 = vand.u32 4294901760, %v34375_v61 }
 0x4ab   :  { %28329 = vmatpush3.msra.mxu0 %v32618_v24  ;;  %28310 = vmatmul.mubr.f32.vlgmr.msra.gmra.mxu1 %v30733_v39  ;;  %v27863_v52 = vpop.f32.mrf.mxu1 }
 0x4ac   :  { %28319 = vmatprep.subr.mxu1 %v32572_v21  ;;  %28330 = vmatprep.mubr.f32.mxu0 %v30651_v47  ;;  %v32644_v25 = vadd.f32 %v27863_v52, %v15730_v20  ;;  %v34374_v20 = vld [vmem:[#allocation16_spill] sm:$0xff] }
 0x4ad   :  { %28340 = vmatprep.subr.mxu0 %v21451_v1  ;;  %28320 = vmatpush3.msra.mxu1 %v32572_v21  ;;  %v15802_v11 = vpop.f32.mrf.mxu1  ;;  %v4203_v49 = vadd.f32 %v34374_v20, %v3656_v43  ;;  %v21454_v21 = vand.u32 4294901760, %v21453_v42  ;;  %v21953_v20 = vsub.f32 %v34375_v61, %v32658_v27 }
 0x4ae   :  { %34373 = vst [vmem:[#allocation68_spill] sm:$0xff] %v32644_v25  ;;  %28331 = vmatmul.mubr.f32.vlgmr.msra.gmra.mxu0 %v30748_v6  ;;  %28321 = vmatprep.subr.mxu1 %v32575_v29  ;;  %v32651_v40 = vadd.f32 %v15802_v11, %v15724_v36  ;;  %v27884_v32 = vpop.f32.mrf.mxu0 }
 0x4af   :  { %28341 = vmatpush3.msra.mxu0 %v21451_v1  ;;  %28322 = vmatpush3.msra.mxu1 %v32575_v29  ;;  %v21461_v1 = vand.u32 4294901760, %v21460_v55  ;;  %v32661_v43 = vand.u32 4294901760, %v4203_v49 }
 0x4b0   :  { %28342 = vmatprep.subr.mxu0 %v21458_v15  ;;  %28323 = vmatprep.mubr.f32.mxu1 %v30597_v53  ;;  %v16058_v13 = vpop.f32.mrf.mxu0 }
 0x4b1   :  { %28343 = vmatpush3.msra.mxu0 %v21458_v15  ;;  %28324 = vmatmul.mubr.f32.vlgmr.msra.gmra.mxu1 %v30713_v3  ;;  %v27877_v52 = vpop.f32.mrf.mxu1 }
 0x4b2   :  { %28333 = vmatprep.subr.mxu1 %v21454_v21  ;;  %28344 = vmatprep.mubr.f32.mxu0 %v30611_v22  ;;  %v15983_v36 = vadd.f32 %v27877_v52, %v27870_v17  ;;  %v34376_v52 = vld [vmem:[#allocation60_spill] sm:$0xff] }
 0x4b3   :  { %28354 = vmatprep.subr.mxu0 %v21452_v38  ;;  %28334 = vmatpush3.msra.mxu1 %v21454_v21  ;;  %v15976_v29 = vpop.f32.mrf.mxu1  ;;  %v2403_v51 = vadd.f32 %v34377_v56, %v34376_v52 }
 0x4b4   :  { %28345 = vmatmul.mubr.f32.vlgmr.msra.gmra.mxu0 %v30723_v45  ;;  %28335 = vmatprep.subr.mxu1 %v21461_v1  ;;  %v15977_v15 = vadd.f32 %v15976_v29, %v15885_v23  ;;  %v16066_v42 = vadd.f32 %v27884_v32, %v15983_v36  ;;  %v27898_v11 = vpop.f32.mrf.mxu0  ;;  %v21960_v23 = vsub.f32 %v4203_v49, %v32661_v43  ;;  %v34378_v49 = vld [vmem:[#allocation88_spill] sm:$0xff] }
 0x4b5   :  { %28355 = vmatpush3.msra.mxu0 %v21452_v38  ;;  %28336 = vmatpush3.msra.mxu1 %v21461_v1  ;;  %v3103_v1 = vadd.f32 %v34378_v49, %v2403_v51 }
 0x4b6   :  { %28356 = vmatprep.subr.mxu0 %v21459_v7  ;;  %28337 = vmatprep.mubr.f32.mxu1 %v30597_v53  ;;  %v16059_v17 = vadd.f32 %v16058_v13, %v15977_v15  ;;  %v16225_v55 = vpop.f32.mrf.mxu0  ;;  %v21961_v36 = vand.u32 4294901760, %v21960_v23 }
 0x4b7   :  { %28357 = vmatpush3.msra.mxu0 %v21459_v7  ;;  %28338 = vmatmul.mubr.f32.vlgmr.msra.gmra.mxu1 %v30713_v3  ;;  %v27891_v21 = vpop.f32.mrf.mxu1  ;;  %v21954_v7 = vand.u32 4294901760, %v21953_v20 }
 0x4b8   :  { %28347 = vmatprep.subr.mxu1 %v32615_v0  ;;  %28358 = vmatprep.mubr.f32.mxu0 %v30597_v53  ;;  %v16149_v38 = vadd.f32 %v27891_v21, %v16066_v42 }
 0x4b9   :  { %28368 = vmatprep.subr.mxu0 %v32658_v27  ;;  %28348 = vmatpush3.msra.mxu1 %v32615_v0  ;;  %v16140_v32 = vpop.f32.mrf.mxu1  ;;  %v21955_v21 = vsub.f32 %v21953_v20, %v21954_v7 }
 0x4ba   :  { %28359 = vmatmul.mubr.f32.vlgmr.msra.gmra.mxu0 %v30713_v3  ;;  %28349 = vmatprep.subr.mxu1 %v32618_v24  ;;  %v16141_v13 = vadd.f32 %v16140_v32, %v16059_v17  ;;  %v16232_v61 = vadd.f32 %v27898_v11, %v16149_v38  ;;  %v27912_v56 = vpop.f32.mrf.mxu0  ;;  %v34379_v11 = vld [vmem:[#allocation83_spill] sm:$0xff]  ;;  %v34385_v38 = vld [vmem:[#allocation21_spill] sm:$0xff] }
 0x4bb   :  { %28369 = vmatpush3.msra.mxu0 %v32658_v27  ;;  %28350 = vmatpush3.msra.mxu1 %v32618_v24  ;;  %v3668_v17 = vadd.f32 %v34379_v11, %v3103_v1  ;;  %v34383_v11 = vld [vmem:[#allocation87_spill] sm:$0xff] }
 0x4bc   :  { %28370 = vmatprep.subr.mxu0 %v32661_v43  ;;  %28351 = vmatprep.mubr.f32.mxu1 %v30625_v26  ;;  %v16226_v29 = vadd.f32 %v16225_v55, %v16141_v13  ;;  %v16387_v15 = vpop.f32.mrf.mxu0  ;;  %v21962_v55 = vsub.f32 %v21960_v23, %v21961_v36  ;;  %v32701_v25 = vand.u32 4294901760, %v34383_v11 }
 0x4bd   :  { %28371 = vmatpush3.msra.mxu0 %v32661_v43  ;;  %28352 = vmatmul.mubr.f32.vlgmr.msra.gmra.mxu1 %v30733_v39  ;;  %v27905_v42 = vpop.f32.mrf.mxu1 }
 0x4be   :  { %28361 = vmatprep.subr.mxu1 %v32615_v0  ;;  %28372 = vmatprep.mubr.f32.mxu0 %v30651_v47  ;;  %v32687_v51 = vadd.f32 %v27905_v42, %v16232_v61  ;;  %v34382_v61 = vld [vmem:[#allocation143_spill] sm:$0xff] }
 0x4bf   :  { %28382 = vmatprep.subr.mxu0 %v21953_v20  ;;  %28362 = vmatpush3.msra.mxu1 %v32615_v0  ;;  %v16304_v52 = vpop.f32.mrf.mxu1  ;;  %v4215_v49 = vadd.f32 %v34382_v61, %v3668_v17  ;;  %v21956_v0 = vand.u32 4294901760, %v21955_v21  ;;  %v22455_v61 = vsub.f32 %v34383_v11, %v32701_v25 }
 0x4c0   :  { %34380 = vst [vmem:[#allocation72_spill] sm:$0xff] %v32687_v51  ;;  %28373 = vmatmul.mubr.f32.vlgmr.msra.gmra.mxu0 %v30748_v6  ;;  %28363 = vmatprep.subr.mxu1 %v32618_v24  ;;  %v32694_v32 = vadd.f32 %v16304_v52, %v16226_v29  ;;  %v27926_v13 = vpop.f32.mrf.mxu0  ;;  %v34390_v51 = vld [vmem:[#allocation96_spill] sm:$0xff] }
 0x4c1   :  { %28383 = vmatpush3.msra.mxu0 %v21953_v20  ;;  %28364 = vmatpush3.msra.mxu1 %v32618_v24  ;;  %v21963_v20 = vand.u32 4294901760, %v21962_v55  ;;  %v32704_v17 = vand.u32 4294901760, %v4215_v49 }
 0x4c2   :  { %34381 = vst [vmem:[#allocation56_spill] sm:$0xff] %v32694_v32  ;;  %28384 = vmatprep.subr.mxu0 %v21960_v23  ;;  %28365 = vmatprep.mubr.f32.mxu1 %v30597_v53  ;;  %v16560_v1 = vpop.f32.mrf.mxu0  ;;  %v32743_v32 = vand.u32 4294901760, %v34390_v51 }
 0x4c3   :  { %28385 = vmatpush3.msra.mxu0 %v21960_v23  ;;  %28366 = vmatmul.mubr.f32.vlgmr.msra.gmra.mxu1 %v30713_v3  ;;  %v27919_v42 = vpop.f32.mrf.mxu1 }
 0x4c4   :  { %28375 = vmatprep.subr.mxu1 %v21956_v0  ;;  %28386 = vmatprep.mubr.f32.mxu0 %v30611_v22  ;;  %v16485_v29 = vadd.f32 %v27919_v42, %v27912_v56  ;;  %v34384_v42 = vld [vmem:[#allocation64_spill] sm:$0xff] }
 0x4c5   :  { %28396 = vmatprep.subr.mxu0 %v21954_v7  ;;  %28376 = vmatpush3.msra.mxu1 %v21956_v0  ;;  %v16478_v24 = vpop.f32.mrf.mxu1  ;;  %v2417_v41 = vadd.f32 %v34385_v38, %v34384_v42 }
 0x4c6   :  { %28387 = vmatmul.mubr.f32.vlgmr.msra.gmra.mxu0 %v30723_v45  ;;  %28377 = vmatprep.subr.mxu1 %v21963_v20  ;;  %v16479_v23 = vadd.f32 %v16478_v24, %v16387_v15  ;;  %v16568_v21 = vadd.f32 %v27926_v13, %v16485_v29  ;;  %v27940_v52 = vpop.f32.mrf.mxu0  ;;  %v22462_v15 = vsub.f32 %v4215_v49, %v32704_v17  ;;  %v34386_v49 = vld [vmem:[#allocation23_spill] sm:$0xff] }
 0x4c7   :  { %28397 = vmatpush3.msra.mxu0 %v21954_v7  ;;  %28378 = vmatpush3.msra.mxu1 %v21963_v20  ;;  %v3119_v20 = vadd.f32 %v34386_v49, %v2417_v41  ;;  %v34388_v49 = vld [vmem:[#allocation101_spill] sm:$0xff] }
 0x4c8   :  { %28398 = vmatprep.subr.mxu0 %v21961_v36  ;;  %28379 = vmatprep.mubr.f32.mxu1 %v30597_v53  ;;  %v16561_v56 = vadd.f32 %v16560_v1, %v16479_v23  ;;  %v16727_v55 = vpop.f32.mrf.mxu0  ;;  %v22463_v29 = vand.u32 4294901760, %v22462_v15 }
 0x4c9   :  { %28399 = vmatpush3.msra.mxu0 %v21961_v36  ;;  %28380 = vmatmul.mubr.f32.vlgmr.msra.gmra.mxu1 %v30713_v3  ;;  %v27933_v0 = vpop.f32.mrf.mxu1  ;;  %v22456_v36 = vand.u32 4294901760, %v22455_v61 }
 0x4ca   :  { %28389 = vmatprep.subr.mxu1 %v32658_v27  ;;  %28400 = vmatprep.mubr.f32.mxu0 %v30597_v53  ;;  %v16651_v7 = vadd.f32 %v27933_v0, %v16568_v21 }
 0x4cb   :  { %28410 = vmatprep.subr.mxu0 %v32701_v25  ;;  %28390 = vmatpush3.msra.mxu1 %v32658_v27  ;;  %v16642_v13 = vpop.f32.mrf.mxu1  ;;  %v22457_v0 = vsub.f32 %v22455_v61, %v22456_v36 }
 0x4cc   :  { %28401 = vmatmul.mubr.f32.vlgmr.msra.gmra.mxu0 %v30713_v3  ;;  %28391 = vmatprep.subr.mxu1 %v32661_v43  ;;  %v16643_v1 = vadd.f32 %v16642_v13, %v16561_v56  ;;  %v16734_v11 = vadd.f32 %v27940_v52, %v16651_v7  ;;  %v27954_v38 = vpop.f32.mrf.mxu0  ;;  %v34387_v52 = vld [vmem:[#allocation91_spill] sm:$0xff] }
 0x4cd   :  { %28411 = vmatpush3.msra.mxu0 %v32701_v25  ;;  %28392 = vmatpush3.msra.mxu1 %v32661_v43  ;;  %v3680_v56 = vadd.f32 %v34387_v52, %v3119_v20 }
 0x4ce   :  { %28412 = vmatprep.subr.mxu0 %v32704_v17  ;;  %28393 = vmatprep.mubr.f32.mxu1 %v30625_v26  ;;  %v16728_v24 = vadd.f32 %v16727_v55, %v16643_v1  ;;  %v16889_v23 = vpop.f32.mrf.mxu0  ;;  %v22464_v55 = vsub.f32 %v22462_v15, %v22463_v29 }
 0x4cf   :  { %28413 = vmatpush3.msra.mxu0 %v32704_v17  ;;  %28394 = vmatmul.mubr.f32.vlgmr.msra.gmra.mxu1 %v30733_v39  ;;  %v27947_v21 = vpop.f32.mrf.mxu1  ;;  %v4227_v20 = vadd.f32 %v34388_v49, %v3680_v56  ;;  %v34391_v49 = vld [vmem:[#allocation73_spill] sm:$0xff] }
 0x4d0   :  { %28403 = vmatprep.subr.mxu1 %v32658_v27  ;;  %28414 = vmatprep.mubr.f32.mxu0 %v30651_v47  ;;  %v16813_v41 = vadd.f32 %v27947_v21, %v16734_v11  ;;  %v34389_v11 = vsub.f32 %v32348_v12, %v31861_v28 }
 0x4d1   :  { %28424 = vmatprep.subr.mxu0 %v22455_v61  ;;  %28404 = vmatpush3.msra.mxu1 %v32658_v27  ;;  %v16806_v42 = vpop.f32.mrf.mxu1  ;;  %v22458_v27 = vand.u32 4294901760, %v22457_v0  ;;  %v32748_v12 = vand.u32 4294901760, %v4227_v20 }
 0x4d2   :  { %28415 = vmatmul.mubr.f32.vlgmr.msra.gmra.mxu0 %v30748_v6  ;;  %28405 = vmatprep.subr.mxu1 %v32661_v43  ;;  %v24411_v7 = vsub.f32 %v16813_v41, %v31865_v5  ;;  %v32734_v13 = vadd.f32 %v16806_v42, %v16728_v24  ;;  %v27968_v1 = vpop.f32.mrf.mxu0 }
 0x4d3   :  { %28425 = vmatpush3.msra.mxu0 %v22455_v61  ;;  %28406 = vmatpush3.msra.mxu1 %v32661_v43  ;;  %v24539_v43 = vadd.f32 0.0001, %v31875_v62  ;;  %v22465_v61 = vand.u32 4294901760, %v22464_v55  ;;  %v22957_v62 = vsub.f32 %v34390_v51, %v32743_v32 }
 0x4d4   :  { %28426 = vmatprep.subr.mxu0 %v22462_v15  ;;  %28407 = vmatprep.mubr.f32.mxu1 %v30597_v53  ;;  %v24555_v21 = vadd.f32 %v24411_v7, %v34389_v11  ;;  %v17062_v52 = vpop.f32.mrf.mxu0 }
 0x4d5   :  { %28427 = vmatpush3.msra.mxu0 %v22462_v15  ;;  %28408 = vmatmul.mubr.f32.vlgmr.msra.gmra.mxu1 %v30713_v3  ;;  %v27961_v5 = vpop.f32.mrf.mxu1 }
 0x4d6   :  { %28417 = vmatprep.subr.mxu1 %v22458_v27  ;;  %28428 = vmatprep.mubr.f32.mxu0 %v30611_v22  ;;  %v24571_v24 = vadd.f32 0.0009, %v24555_v21  ;;  %v16987_v56 = vadd.f32 %v27961_v5, %v27954_v38 }
 0x4d7   :  { %28438 = vmatprep.subr.mxu0 %v22456_v36  ;;  %28418 = vmatpush3.msra.mxu1 %v22458_v27  ;;  %v16980_v28 = vpop.f32.mrf.mxu1  ;;  %v34392_v27 = vld [vmem:[#allocation93_spill] sm:$0xff] }
 0x4d8   :  { %28429 = vmatmul.mubr.f32.vlgmr.msra.gmra.mxu0 %v30723_v45  ;;  %28419 = vmatprep.subr.mxu1 %v22465_v61  ;;  %v32751_v15 = vmul.f32 %v24571_v24, %v24539_v43  ;;  %v16981_v0 = vadd.f32 %v16980_v28, %v16889_v23  ;;  %v17070_v41 = vadd.f32 %v27968_v1, %v16987_v56  ;;  %v27982_v42 = vpop.f32.mrf.mxu0  ;;  %v34394_v28 = vld [vmem:[#allocation99_spill] sm:$0xff] }
 0x4d9   :  { %28439 = vmatpush3.msra.mxu0 %v22456_v36  ;;  %28420 = vmatpush3.msra.mxu1 %v22465_v61  ;;  %v2431_v11 = vadd.f32 %v34392_v27, %v34391_v49  ;;  %v22964_v23 = vsub.f32 %v4227_v20, %v32748_v12  ;;  %v34393_v20 = vld [vmem:[#allocation95_spill] sm:$0xff] }
 0x4da   :  { %28440 = vmatprep.subr.mxu0 %v22463_v29  ;;  %28421 = vmatprep.mubr.f32.mxu1 %v30597_v53  ;;  %v17063_v38 = vadd.f32 %v17062_v52, %v16981_v0  ;;  %v17229_v55 = vpop.f32.mrf.mxu0  ;;  %28588 = vrcp.f32 %v32751_v15  ;;  %v34492_v15 = vld [vmem:[#allocation163_spill] sm:$0xff] }
 0x4db   :  { %28441 = vmatpush3.msra.mxu0 %v22463_v29  ;;  %28422 = vmatmul.mubr.f32.vlgmr.msra.gmra.mxu1 %v30713_v3  ;;  %v27975_v7 = vpop.f32.mrf.mxu1  ;;  %v22958_v29 = vand.u32 4294901760, %v22957_v62  ;;  %v3135_v5 = vadd.f32 %v34393_v20, %v2431_v11  ;;  %v22965_v43 = vand.u32 4294901760, %v22964_v23 }
 0x4dc   :  { %28431 = vmatprep.subr.mxu1 %v32701_v25  ;;  %28442 = vmatprep.mubr.f32.mxu0 %v30597_v53  ;;  %v17153_v36 = vadd.f32 %v27975_v7, %v17070_v41 }
 0x4dd   :  { %28452 = vmatprep.subr.mxu0 %v32743_v32  ;;  %28432 = vmatpush3.msra.mxu1 %v32701_v25  ;;  %v17144_v51 = vpop.f32.mrf.mxu1  ;;  %v3692_v0 = vadd.f32 %v34394_v28, %v3135_v5  ;;  %v22959_v41 = vsub.f32 %v22957_v62, %v22958_v29 }
 0x4de   :  { %28443 = vmatmul.mubr.f32.vlgmr.msra.gmra.mxu0 %v30713_v3  ;;  %28433 = vmatprep.subr.mxu1 %v32704_v17  ;;  %v17145_v1 = vadd.f32 %v17144_v51, %v17063_v38  ;;  %v17236_v21 = vadd.f32 %v27982_v42, %v17153_v36  ;;  %v27996_v52 = vpop.f32.mrf.mxu0  ;;  %v34395_v36 = vsub.f32 %v32401_v33, %v31921_v46 }
 0x4df   :  { %28453 = vmatpush3.msra.mxu0 %v32743_v32  ;;  %28434 = vmatpush3.msra.mxu1 %v32704_v17  ;;  %v4239_v11 = vadd.f32 %v31306_v31, %v3692_v0 }
 0x4e0   :  { %28454 = vmatprep.subr.mxu0 %v32748_v12  ;;  %28435 = vmatprep.mubr.f32.mxu1 %v30625_v26  ;;  %v17230_v61 = vadd.f32 %v17229_v55, %v17145_v1  ;;  %v17391_v24 = vpop.f32.mrf.mxu0  ;;  %v22966_v55 = vsub.f32 %v22964_v23, %v22965_v43 }
 0x4e1   :  { %28455 = vmatpush3.msra.mxu0 %v32748_v12  ;;  %28436 = vmatmul.mubr.f32.vlgmr.msra.gmra.mxu1 %v30733_v39  ;;  %v27989_v56 = vpop.f32.mrf.mxu1  ;;  %v32794_v33 = vand.u32 4294901760, %v4239_v11 }
 0x4e2   :  { %28445 = vmatprep.subr.mxu1 %v32701_v25  ;;  %28456 = vmatprep.mubr.f32.mxu0 %v30651_v47  ;;  %v17315_v42 = vadd.f32 %v27989_v56, %v17236_v21  ;;  %v32789_v21 = vand.u32 4294901760, %v31302_v48  ;;  %v22967_v31 = vand.u32 4294901760, %v22966_v55 }
 0x4e3   :  { %28466 = vmatprep.subr.mxu0 %v22957_v62  ;;  %28446 = vmatpush3.msra.mxu1 %v32701_v25  ;;  %v17308_v38 = vpop.f32.mrf.mxu1  ;;  %v22960_v25 = vand.u32 4294901760, %v22959_v41  ;;  %v34396_v41 = vld [vmem:[#allocation85_spill] sm:$0xff] }
 0x4e4   :  { %28457 = vmatmul.mubr.f32.vlgmr.msra.gmra.mxu0 %v30748_v6  ;;  %28447 = vmatprep.subr.mxu1 %v32704_v17  ;;  %v24413_v7 = vsub.f32 %v17315_v42, %v31925_v16  ;;  %v32780_v49 = vadd.f32 %v17308_v38, %v17230_v61  ;;  %v28010_v27 = vpop.f32.mrf.mxu0  ;;  %v34397_v42 = vld [vmem:[#allocation22_spill] sm:$0xff] }
 0x4e5   :  { %28467 = vmatpush3.msra.mxu0 %v22957_v62  ;;  %28448 = vmatpush3.msra.mxu1 %v32704_v17  ;;  %v24541_v17 = vadd.f32 0.0001, %v31935_v10  ;;  %v23459_v10 = vsub.f32 %v31302_v48, %v32789_v21  ;;  %v2445_v38 = vadd.f32 %v34397_v42, %v34396_v41  ;;  %v34401_v42 = vld [vmem:[#allocation102_spill] sm:$0xff] }
 0x4e6   :  { %28468 = vmatprep.subr.mxu0 %v22964_v23  ;;  %28449 = vmatprep.mubr.f32.mxu1 %v30597_v53  ;;  %v24557_v51 = vadd.f32 %v24413_v7, %v34395_v36  ;;  %v17564_v1 = vpop.f32.mrf.mxu0 }
 0x4e7   :  { %28469 = vmatpush3.msra.mxu0 %v22964_v23  ;;  %28450 = vmatmul.mubr.f32.vlgmr.msra.gmra.mxu1 %v30713_v3  ;;  %v28003_v16 = vpop.f32.mrf.mxu1 }
 0x4e8   :  { %28459 = vmatprep.subr.mxu1 %v22960_v25  ;;  %28470 = vmatprep.mubr.f32.mxu0 %v30611_v22  ;;  %v24573_v62 = vadd.f32 0.0009, %v24557_v51  ;;  %v17489_v20 = vadd.f32 %v28003_v16, %v27996_v52 }
 0x4e9   :  { %28480 = vmatprep.subr.mxu0 %v22958_v29  ;;  %28460 = vmatpush3.msra.mxu1 %v22960_v25  ;;  %v17482_v46 = vpop.f32.mrf.mxu1 }
 0x4ea   :  { %28471 = vmatmul.mubr.f32.vlgmr.msra.gmra.mxu0 %v30723_v45  ;;  %28461 = vmatprep.subr.mxu1 %v22967_v31  ;;  %v32797_v23 = vmul.f32 %v24573_v62, %v24541_v17  ;;  %v17483_v5 = vadd.f32 %v17482_v46, %v17391_v24  ;;  %v17572_v61 = vadd.f32 %v28010_v27, %v17489_v20  ;;  %v28024_v56 = vpop.f32.mrf.mxu0 }
 0x4eb   :  { %28481 = vmatpush3.msra.mxu0 %v22958_v29  ;;  %28462 = vmatpush3.msra.mxu1 %v22967_v31  ;;  %v23466_v24 = vsub.f32 %v4239_v11, %v32794_v33  ;;  %v34398_v11 = vld [vmem:[#allocation24_spill] sm:$0xff] }
 0x4ec   :  { %28482 = vmatprep.subr.mxu0 %v22965_v43  ;;  %28463 = vmatprep.mubr.f32.mxu1 %v30597_v53  ;;  %v17565_v52 = vadd.f32 %v17564_v1, %v17483_v5  ;;  %v17731_v28 = vpop.f32.mrf.mxu0  ;;  %v3151_v25 = vadd.f32 %v34398_v11, %v2445_v38  ;;  %v32835_v38 = vand.u32 4294901760, %v34401_v42 }
 0x4ed   :  { %28483 = vmatpush3.msra.mxu0 %v22965_v43  ;;  %28464 = vmatmul.mubr.f32.vlgmr.msra.gmra.mxu1 %v30713_v3  ;;  %v28017_v0 = vpop.f32.mrf.mxu1  ;;  %v23460_v43 = vand.u32 4294901760, %v23459_v10  ;;  %v23467_v36 = vand.u32 4294901760, %v23466_v24 }
 0x4ee   :  { %28473 = vmatprep.subr.mxu1 %v32743_v32  ;;  %28484 = vmatprep.mubr.f32.mxu0 %v30597_v53  ;;  %v17655_v29 = vadd.f32 %v28017_v0, %v17572_v61  ;;  %v3704_v17 = vadd.f32 %v31398_v18, %v3151_v25 }
 0x4ef   :  { %28494 = vmatprep.subr.mxu0 %v32789_v21  ;;  %28474 = vmatpush3.msra.mxu1 %v32743_v32  ;;  %v17646_v48 = vpop.f32.mrf.mxu1  ;;  %v23461_v31 = vsub.f32 %v23459_v10, %v23460_v43  ;;  %v23468_v46 = vsub.f32 %v23466_v24, %v23467_v36 }
 0x4f0   :  { %28485 = vmatmul.mubr.f32.vlgmr.msra.gmra.mxu0 %v30713_v3  ;;  %28475 = vmatprep.subr.mxu1 %v32748_v12  ;;  %v17647_v55 = vadd.f32 %v17646_v48, %v17565_v52  ;;  %v17738_v7 = vadd.f32 %v28024_v56, %v17655_v29  ;;  %v28038_v27 = vpop.f32.mrf.mxu0  ;;  %v34399_v56 = vld [vmem:[#allocation30_spill] sm:$0xff] }
 0x4f1   :  { %28495 = vmatpush3.msra.mxu0 %v32789_v21  ;;  %28476 = vmatpush3.msra.mxu1 %v32748_v12  ;;  %v4251_v52 = vadd.f32 %v34399_v56, %v3704_v17 }
 0x4f2   :  { %28496 = vmatprep.subr.mxu0 %v32794_v33  ;;  %28477 = vmatprep.mubr.f32.mxu1 %v30625_v26  ;;  %v17732_v51 = vadd.f32 %v17731_v28, %v17647_v55  ;;  %v17893_v1 = vpop.f32.mrf.mxu0  ;;  %v34400_v28 = vsub.f32 %v32454_v50, %v31981_v58 }
 0x4f3   :  { %28497 = vmatpush3.msra.mxu0 %v32794_v33  ;;  %28478 = vmatmul.mubr.f32.vlgmr.msra.gmra.mxu1 %v30733_v39  ;;  %v28031_v16 = vpop.f32.mrf.mxu1  ;;  %v32840_v50 = vand.u32 4294901760, %v4251_v52 }
 0x4f4   :  { %28487 = vmatprep.subr.mxu1 %v32743_v32  ;;  %28498 = vmatprep.mubr.f32.mxu0 %v30651_v47  ;;  %v17817_v62 = vadd.f32 %v28031_v16, %v17738_v7 }
 0x4f5   :  { %28508 = vmatprep.subr.mxu0 %v23459_v10  ;;  %28488 = vmatpush3.msra.mxu1 %v32743_v32  ;;  %v17810_v20 = vpop.f32.mrf.mxu1  ;;  %v23462_v32 = vand.u32 4294901760, %v23461_v31  ;;  %v23968_v16 = vsub.f32 %v4251_v52, %v32840_v50 }
 0x4f6   :  { %28499 = vmatmul.mubr.f32.vlgmr.msra.gmra.mxu0 %v30748_v6  ;;  %28489 = vmatprep.subr.mxu1 %v32748_v12  ;;  %v24415_v5 = vsub.f32 %v17817_v62, %v31985_v35  ;;  %v32826_v61 = vadd.f32 %v17810_v20, %v17732_v51  ;;  %v28052_v18 = vpop.f32.mrf.mxu0 }
 0x4f7   :  { %28509 = vmatpush3.msra.mxu0 %v23459_v10  ;;  %28490 = vmatpush3.msra.mxu1 %v32748_v12  ;;  %v24543_v12 = vadd.f32 0.0001, %v31995_v19  ;;  %v23469_v10 = vand.u32 4294901760, %v23468_v46  ;;  %v23961_v19 = vsub.f32 %v34401_v42, %v32835_v38  ;;  %v23969_v20 = vand.u32 4294901760, %v23968_v16 }
 0x4f8   :  { %28510 = vmatprep.subr.mxu0 %v23466_v24  ;;  %28491 = vmatprep.mubr.f32.mxu1 %v30597_v53  ;;  %v24559_v0 = vadd.f32 %v24415_v5, %v34400_v28  ;;  %v18066_v41 = vpop.f32.mrf.mxu0 }
 0x4f9   :  { %28511 = vmatpush3.msra.mxu0 %v23466_v24  ;;  %28492 = vmatmul.mubr.f32.vlgmr.msra.gmra.mxu1 %v30713_v3  ;;  %v28045_v35 = vpop.f32.mrf.mxu1  ;;  %v23970_v28 = vsub.f32 %v23968_v16, %v23969_v20 }
 0x4fa   :  { %28501 = vmatprep.subr.mxu1 %v23462_v32  ;;  %28512 = vmatprep.mubr.f32.mxu0 %v30611_v22  ;;  %v24575_v29 = vadd.f32 0.0009, %v24559_v0  ;;  %v17991_v48 = vadd.f32 %v28045_v35, %v28038_v27 }
 0x4fb   :  { %28522 = vmatprep.subr.mxu0 %v23460_v43  ;;  %28502 = vmatpush3.msra.mxu1 %v23462_v32  ;;  %v17984_v58 = vpop.f32.mrf.mxu1 }
 0x4fc   :  { %28513 = vmatmul.mubr.f32.vlgmr.msra.gmra.mxu0 %v30723_v45  ;;  %28503 = vmatprep.subr.mxu1 %v23469_v10  ;;  %v32843_v24 = vmul.f32 %v24575_v29, %v24543_v12  ;;  %v17985_v55 = vadd.f32 %v17984_v58, %v17893_v1  ;;  %v18074_v7 = vadd.f32 %v28052_v18, %v17991_v48  ;;  %v28066_v11 = vpop.f32.mrf.mxu0 }
 0x4fd   :  { %28523 = vmatpush3.msra.mxu0 %v23460_v43  ;;  %28504 = vmatpush3.msra.mxu1 %v23469_v10  ;;  %v23971_v10 = vand.u32 4294901760, %v23970_v28 }
 0x4fe   :  { %28524 = vmatprep.subr.mxu0 %v23467_v36  ;;  %28505 = vmatprep.mubr.f32.mxu1 %v30597_v53  ;;  %v18067_v27 = vadd.f32 %v18066_v41, %v17985_v55  ;;  %v18233_v25 = vpop.f32.mrf.mxu0 }
 0x4ff   :  { %28525 = vmatpush3.msra.mxu0 %v23467_v36  ;;  %28506 = vmatmul.mubr.f32.vlgmr.msra.gmra.mxu1 %v30713_v3  ;;  %v28059_v51 = vpop.f32.mrf.mxu1  ;;  %v23962_v36 = vand.u32 4294901760, %v23961_v19 }
 0x500   :  { %28515 = vmatprep.subr.mxu1 %v32789_v21  ;;  %28526 = vmatprep.mubr.f32.mxu0 %v30597_v53  ;;  %v18157_v43 = vadd.f32 %v28059_v51, %v18074_v7 }
 0x501   :  { %28536 = vmatprep.subr.mxu0 %v32835_v38  ;;  %28516 = vmatpush3.msra.mxu1 %v32789_v21  ;;  %v18148_v1 = vpop.f32.mrf.mxu1  ;;  %v23963_v56 = vsub.f32 %v23961_v19, %v23962_v36 }
 0x502   :  { %28527 = vmatmul.mubr.f32.vlgmr.msra.gmra.mxu0 %v30713_v3  ;;  %28517 = vmatprep.subr.mxu1 %v32794_v33  ;;  %v18149_v17 = vadd.f32 %v18148_v1, %v18067_v27  ;;  %v18240_v31 = vadd.f32 %v28066_v11, %v18157_v43  ;;  %v28080_v62 = vpop.f32.mrf.mxu0  ;;  %v10957_v1 = vadd.f32 %v32130_v4, %v32093_v59 }
 0x503   :  { %28537 = vmatpush3.msra.mxu0 %v32835_v38  ;;  %28518 = vmatpush3.msra.mxu1 %v32794_v33  ;;  %v34403_v59 = vsub.f32 %v32558_v63, %v32105_v60  ;;  %v34407_v63 = vld [vmem:[#allocation126_spill] sm:$0xff] }
 0x504   :  { %28538 = vmatprep.subr.mxu0 %v32840_v50  ;;  %28519 = vmatprep.mubr.f32.mxu1 %v30625_v26  ;;  %v18234_v46 = vadd.f32 %v18233_v25, %v18149_v17  ;;  %v18395_v5 = vpop.f32.mrf.mxu0 }
 0x505   :  { %28539 = vmatpush3.msra.mxu0 %v32840_v50  ;;  %28520 = vmatmul.mubr.f32.vlgmr.msra.gmra.mxu1 %v30733_v39  ;;  %v28073_v18 = vpop.f32.mrf.mxu1 }
 0x506   :  { %28529 = vmatprep.subr.mxu1 %v32789_v21  ;;  %28540 = vmatprep.mubr.f32.mxu0 %v30651_v47  ;;  %v18319_v52 = vadd.f32 %v28073_v18, %v18240_v31  ;;  %v23964_v47 = vand.u32 4294901760, %v23963_v56  ;;  %v34406_v56 = vld [vmem:[#allocation40_spill] sm:$0xff] }
 0x507   :  { %28550 = vmatprep.subr.mxu0 %v23961_v19  ;;  %28530 = vmatpush3.msra.mxu1 %v32789_v21  ;;  %v18312_v32 = vpop.f32.mrf.mxu1  ;;  %v34402_v21 = vsub.f32 %v32507_v30, %v32043_v2 }
 0x508   :  { %28541 = vmatmul.mubr.f32.vlgmr.msra.gmra.mxu0 %v30748_v6  ;;  %28531 = vmatprep.subr.mxu1 %v32794_v33  ;;  %v24417_v0 = vsub.f32 %v18319_v52, %v32047_v14  ;;  %v32868_v41 = vadd.f32 %v18312_v32, %v18234_v46  ;;  %v28094_v42 = vpop.f32.mrf.mxu0  ;;  %v24545_v14 = vadd.f32 0.0001, %v32057_v54 }
 0x509   :  { %28551 = vmatpush3.msra.mxu0 %v23961_v19  ;;  %28532 = vmatpush3.msra.mxu1 %v32794_v33 }
 0x50a   :  { %28552 = vmatprep.subr.mxu0 %v23968_v16  ;;  %28533 = vmatprep.mubr.f32.mxu1 %v30597_v53  ;;  %v24561_v35 = vadd.f32 %v24417_v0, %v34402_v21  ;;  %v18568_v6 = vpop.f32.mrf.mxu0  ;;  %v34408_v21 = vld [vmem:[#allocation174_spill] sm:$0xff] }
 0x50b   :  { %28553 = vmatpush3.msra.mxu0 %v23968_v16  ;;  %28534 = vmatmul.mubr.f32.vlgmr.msra.gmra.mxu1 %v30713_v3  ;;  %v28087_v12 = vpop.f32.mrf.mxu1  ;;  %v6941_v16 = vadd.f32 %v31677_v57, %v31652_v44 }
 0x50c   :  { %28543 = vmatprep.subr.mxu1 %v23964_v47  ;;  %28554 = vmatprep.mubr.f32.mxu0 %v30611_v22  ;;  %v24577_v33 = vadd.f32 0.0009, %v24561_v35  ;;  %v18493_v29 = vadd.f32 %v28087_v12, %v28080_v62 }
 0x50d   :  { %28564 = vmatprep.subr.mxu0 %v23962_v36  ;;  %28544 = vmatpush3.msra.mxu1 %v23964_v47  ;;  %v18486_v48 = vpop.f32.mrf.mxu1  ;;  %v7023_v57 = vadd.f32 %v31670_v9, %v6941_v16 }
 0x50e   :  { %28555 = vmatmul.mubr.f32.vlgmr.msra.gmra.mxu0 %v30723_v45  ;;  %28545 = vmatprep.subr.mxu1 %v23971_v10  ;;  %v32879_v2 = vmul.f32 %v24577_v33, %v24545_v14  ;;  %v18487_v30 = vadd.f32 %v18486_v48, %v18395_v5  ;;  %v18576_v58 = vadd.f32 %v28094_v42, %v18493_v29  ;;  %v28108_v55 = vpop.f32.mrf.mxu0  ;;  %v34409_v29 = vld [vmem:[#allocation20_spill] sm:$0xff] }
 0x50f   :  { %28565 = vmatpush3.msra.mxu0 %v23962_v36  ;;  %28546 = vmatpush3.msra.mxu1 %v23971_v10 }
 0x510   :  { %28566 = vmatprep.subr.mxu0 %v23969_v20  ;;  %28547 = vmatprep.mubr.f32.mxu1 %v30597_v53  ;;  %v18569_v22 = vadd.f32 %v18568_v6, %v18487_v30  ;;  %v18735_v54 = vpop.f32.mrf.mxu0  ;;  %v34410_v30 = vld [vmem:[#allocation44_spill] sm:$0xff] }
 0x511   :  { %28567 = vmatpush3.msra.mxu0 %v23969_v20  ;;  %28548 = vmatmul.mubr.f32.vlgmr.msra.gmra.mxu1 %v30713_v3  ;;  %v28101_v7 = vpop.f32.mrf.mxu1  ;;  %v34404_v20 = vld [vmem:[#allocation173_spill] sm:$0xff] }
 0x512   :  { %28557 = vmatprep.subr.mxu1 %v32835_v38  ;;  %28561 = vmatprep.mubr.f32.mxu1 %v30625_v26  ;;  %v18659_v45 = vadd.f32 %v28101_v7, %v18576_v58  ;;  %v34412_v7 = vld [vmem:[#allocation127_spill] sm:$0xff] }
 0x513   :  { %28558 = vmatpush3.msra.mxu1 %v32835_v38  ;;  %28568 = vmatprep.mubr.f32.mxu0 %v30597_v53  ;;  %v18650_v11 = vpop.f32.mrf.mxu1 }
 0x514   :  { %28559 = vmatprep.subr.mxu1 %v32840_v50  ;;  %28569 = vmatmul.mubr.f32.vlgmr.msra.gmra.mxu0 %v30713_v3  ;;  %v18651_v19 = vadd.f32 %v18650_v11, %v18569_v22  ;;  %v18742_v27 = vadd.f32 %v28108_v55, %v18659_v45  ;;  %v28122_v25 = vpop.f32.mrf.mxu0 }
 0x515   :  { %28560 = vmatpush3.msra.mxu1 %v32840_v50 }
 0x516   :  { %28562 = vmatmul.mubr.f32.vlgmr.msra.gmra.mxu1 %v30733_v39  ;;  %28571 = vmatprep.subr.mxu1 %v32835_v38  ;;  %v18736_v26 = vadd.f32 %v18735_v54, %v18651_v19  ;;  %v18897_v51 = vpop.f32.mrf.mxu0  ;;  %v34411_v54 = vld [vmem:[#allocation19_spill] sm:$0xff] }
 0x517   :  { %28572 = vmatpush3.msra.mxu1 %v32835_v38  ;;  %28575 = vmatprep.mubr.f32.mxu1 %v30597_v53  ;;  %v28115_v43 = vpop.f32.mrf.mxu1  ;;  %v11039_v53 = vadd.f32 %v32121_v34, %v10957_v1  ;;  %v7443_v45 = vadd.f32 %v34412_v7, %v34411_v54  ;;  %v34413_v19 = vld [vmem:[#allocation43_spill] sm:$0xff]  ;;  %v34415_v1 = vld [vmem:[#allocation176_spill] sm:$0xff]  ;;  %v34426_v54 = vld [vmem:[#allocation150_spill] sm:$0xff] }
 0x518   :  { %28573 = vmatprep.subr.mxu1 %v32840_v50  ;;  %v18821_v36 = vadd.f32 %v28115_v43, %v18742_v27  ;;  %v34414_v27 = vld [vmem:[#allocation133_spill] sm:$0xff] }
 0x519   :  { %28574 = vmatpush3.msra.mxu1 %v32840_v50  ;;  %v18814_v39 = vpop.f32.mrf.mxu1  ;;  %v24547_v50 = vadd.f32 0.0001, %v34404_v20  ;;  %v11121_v52 = vadd.f32 %v34406_v56, %v11039_v53  ;;  %v34417_v53 = vld [vmem:[#allocation178_spill] sm:$0xff] }
 0x51a   :  { %28576 = vmatmul.mubr.f32.vlgmr.msra.gmra.mxu1 %v30713_v3  ;;  %v24419_v17 = vsub.f32 %v18821_v36, %v32109_v8  ;;  %v32902_v31 = vadd.f32 %v18814_v39, %v18736_v26  ;;  %v28136_v44 = vpop.f32.mrf.mxu0  ;;  %v34405_v3 = vld [vmem:[#allocation18_spill] sm:$0xff] }
 0x51b   :  { %v7105_v18 = vadd.f32 %v34405_v3, %v7023_v57  ;;  %v11206_v35 = vadd.f32 %v34408_v21, %v11121_v52 }
 0x51c   :  { %v24563_v4 = vadd.f32 %v24419_v17, %v34403_v59  ;;  %v19070_v38 = vpop.f32.mrf.mxu0 }
 0x51d   :  { %v28129_v62 = vpop.f32.mrf.mxu1  ;;  %v7190_v47 = vadd.f32 %v34407_v63, %v7105_v18  ;;  %v32920_v58 = vadd.f32 %v34410_v30, %v11206_v35  ;;  %v34421_v18 = vld [vmem:[#allocation134_spill] sm:$0xff] }
 0x51e   :  { %v24579_v46 = vadd.f32 0.0009, %v24563_v4  ;;  %v18995_v5 = vadd.f32 %v28129_v62, %v28122_v25  ;;  %v11459_v25 = vadd.f32 %v34414_v27, %v34413_v19  ;;  %v34419_v62 = vld [vmem:[#allocation175_spill] sm:$0xff] }
 0x51f   :  { %v18988_v8 = vpop.f32.mrf.mxu1  ;;  %v32917_v48 = vadd.f32 %v34409_v29, %v7190_v47  ;;  %v32932_v43 = vmul.f32 %v32920_v58, %v32920_v58  ;;  %v34425_v29 = vld [vmem:[#allocation179_spill] sm:$0xff] }
 0x520   :  { %v32912_v32 = vmul.f32 %v24579_v46, %v24547_v50  ;;  %v18989_v9 = vadd.f32 %v18988_v8, %v18897_v51  ;;  %v19078_v28 = vadd.f32 %v28136_v44, %v18995_v5  ;;  %v28150_v34 = vpop.f32.mrf.mxu0  ;;  %v34416_v44 = vld [vmem:[#allocation144_spill] sm:$0xff]  ;;  %v11541_v59 = vadd.f32 %v34417_v53, %v11459_v25  ;;  %v34428_v25 = vld [vmem:[#allocation25_spill] sm:$0xff] }
 0x521   :  { %v32928_v16 = vmul.f32 %v32917_v48, %v32917_v48  ;;  %v7525_v57 = vadd.f32 %v34416_v44, %v7443_v45  ;;  %v24549_v8 = vadd.f32 0.0001, %v34421_v18  ;;  %v34433_v53 = vld [vmem:[#allocation129_spill] sm:$0xff] }
 0x522   :  { %v19071_v0 = vadd.f32 %v19070_v38, %v18989_v9  ;;  %v19237_v42 = vpop.f32.mrf.mxu0  ;;  %v34418_v38 = vld [vmem:[#allocation78_spill] sm:$0xff] }
 0x523   :  { %v28143_v60 = vpop.f32.mrf.mxu1  ;;  %v24404_v4 = vsub.f32 %v32608_v37, %v32928_v16  ;;  %v34420_v20 = vsub.f32 %v34418_v38, %v34419_v62  ;;  %v34435_v62 = vld [vmem:[#allocation48_spill] sm:$0xff] }
 0x524   :  { %v19161_v6 = vadd.f32 %v28143_v60, %v19078_v28  ;;  %v34422_v28 = vld [vmem:[#allocation146_spill] sm:$0xff] }
 0x525   :  { %v19152_v12 = vpop.f32.mrf.mxu1 }
 0x526   :  { %v19153_v14 = vadd.f32 %v19152_v12, %v19071_v0  ;;  %v19244_v10 = vadd.f32 %v28150_v34, %v19161_v6  ;;  %v28164_v33 = vpop.f32.mrf.mxu0  ;;  %v7607_v34 = vadd.f32 %v34422_v28, %v7525_v57  ;;  %v34432_v57 = vld [vmem:[#allocation147_spill] sm:$0xff] }
 0x528   :  { %v19238_v55 = vadd.f32 %v19237_v42, %v19153_v14  ;;  %v19399_v22 = vpop.f32.mrf.mxu0  ;;  %v34423_v42 = vld [vmem:[#allocation41_spill] sm:$0xff] }
 0x529   :  { %v28157_v11 = vpop.f32.mrf.mxu1  ;;  %v11623_v60 = vadd.f32 %v34423_v42, %v11541_v59  ;;  %v34424_v14 = vld [vmem:[#allocation145_spill] sm:$0xff]  ;;  %v7945_v59 = vadd.f32 %v34433_v53, %v34432_v57  ;;  %v34440_v42 = vld [vmem:[#allocation180_spill] sm:$0xff] }
 0x52a   :  { %v19323_v26 = vadd.f32 %v28157_v11, %v19244_v10  ;;  %v7692_v10 = vadd.f32 %v34424_v14, %v7607_v34  ;;  %v34443_v14 = vld [vmem:[#allocation182_spill] sm:$0xff] }
 0x52b   :  { %v19316_v51 = vpop.f32.mrf.mxu1  ;;  %v11708_v30 = vadd.f32 %v34425_v29, %v11623_v60  ;;  %v34444_v29 = vld [vmem:[#allocation187_spill] sm:$0xff] }
 0x52c   :  { %v24421_v36 = vsub.f32 %v19323_v26, %v34415_v1  ;;  %v19317_v39 = vadd.f32 %v19316_v51, %v19238_v55  ;;  %v28178_v17 = vpop.f32.mrf.mxu0  ;;  %v34429_v26 = vld [vmem:[#allocation97_spill] sm:$0xff]  ;;  %v34430_v51 = vld [vmem:[#allocation26_spill] sm:$0xff] }
 0x52d   :  { %v32957_v1 = vadd.f32 %v34430_v51, %v7692_v10  ;;  %v34449_v51 = vld [vmem:[#allocation137_spill] sm:$0xff] }
 0x52e   :  { %v24565_v50 = vadd.f32 %v24421_v36, %v34420_v20  ;;  %v24420_v46 = vsub.f32 %v19317_v39, %v32932_v43  ;;  %v19572_v5 = vpop.f32.mrf.mxu0  ;;  %v34431_v36 = vld [vmem:[#allocation50_spill] sm:$0xff]  ;;  %v34436_v20 = vld [vmem:[#allocation136_spill] sm:$0xff] }
 0x52f   :  { %v28171_v3 = vpop.f32.mrf.mxu1  ;;  %v32960_v39 = vadd.f32 %v34431_v36, %v11708_v30  ;;  %v32972_v34 = vmul.f32 %v32957_v1, %v32957_v1  ;;  %v24551_v36 = vadd.f32 0.0001, %v34449_v51  ;;  %v34464_v51 = vld [vmem:[#allocation27_spill] sm:$0xff] }
 0x530   :  { %v24581_v56 = vadd.f32 0.0009, %v24565_v50  ;;  %v32944_v52 = vadd.f32 %v24420_v46, %v24404_v4  ;;  %v19497_v9 = vadd.f32 %v28171_v3, %v28164_v33  ;;  %v34427_v33 = vld [vmem:[#allocation152_spill] sm:$0xff]  ;;  %v34434_v4 = vld [vmem:[#allocation151_spill] sm:$0xff]  ;;  %v11961_v50 = vadd.f32 %v34436_v20, %v34435_v62  ;;  %v34452_v62 = vld [vmem:[#allocation45_spill] sm:$0xff] }
 0x531   :  { %v19490_v0 = vpop.f32.mrf.mxu1  ;;  %v8447_v7 = vadd.f32 %v34427_v33, %v34426_v54  ;;  %v34438_v3 = vld [vmem:[#allocation139_spill] sm:$0xff]  ;;  %v34445_v54 = vld [vmem:[#allocation68_spill] sm:$0xff] }
 0x532   :  { %v32948_v37 = vmul.f32 %v24581_v56, %v24549_v8  ;;  %v19491_v63 = vadd.f32 %v19490_v0, %v19399_v22  ;;  %v19580_v47 = vadd.f32 %v28178_v17, %v19497_v9  ;;  %v28192_v21 = vpop.f32.mrf.mxu0  ;;  %v4431_v22 = vadd.f32 %v34429_v26, %v34428_v25  ;;  %v34439_v56 = vld [vmem:[#allocation17_spill] sm:$0xff]  ;;  %v34446_v33 = vld [vmem:[#allocation135_spill] sm:$0xff]  ;;  %v34448_v25 = vld [vmem:[#allocation106_spill] sm:$0xff] }
 0x533   :  { %v8529_v38 = vadd.f32 %v34434_v4, %v8447_v7  ;;  %v32976_v0 = vmul.f32 %v32960_v39, %v32960_v39  ;;  %v12043_v10 = vadd.f32 %v34443_v14, %v11961_v50  ;;  %v34447_v7 = vsub.f32 %v34445_v54, %v34446_v33  ;;  %v34460_v54 = vld [vmem:[#allocation111_spill] sm:$0xff]  ;;  %v34462_v33 = vld [vmem:[#allocation158_spill] sm:$0xff] }
 0x534   :  { %v19573_v35 = vadd.f32 %v19572_v5, %v19491_v63  ;;  %v19739_v6 = vpop.f32.mrf.mxu0  ;;  %v34437_v5 = vld [vmem:[#allocation51_spill] sm:$0xff]  ;;  %v4513_v9 = vadd.f32 %v34439_v56, %v4431_v22 }
 0x535   :  { %v28185_v12 = vpop.f32.mrf.mxu1  ;;  %v12463_v18 = vadd.f32 %v34438_v3, %v34437_v5  ;;  %v12125_v20 = vadd.f32 %v34452_v62, %v12043_v10  ;;  %v34458_v10 = vld [vmem:[#allocation188_spill] sm:$0xff] }
 0x536   :  { %v19663_v55 = vadd.f32 %v28185_v12, %v19580_v47  ;;  %v4595_v26 = vadd.f32 %v34448_v25, %v4513_v9  ;;  %v34454_v9 = vld [vmem:[#allocation100_spill] sm:$0xff] }
 0x537   :  { %v19654_v45 = vpop.f32.mrf.mxu1  ;;  %v12545_v30 = vadd.f32 %v34444_v29, %v12463_v18 }
 0x538   :  { %v19655_v11 = vadd.f32 %v19654_v45, %v19573_v35  ;;  %v19746_v19 = vadd.f32 %v28192_v21, %v19663_v55  ;;  %v28206_v27 = vpop.f32.mrf.mxu0  ;;  %v34441_v21 = vld [vmem:[#allocation128_spill] sm:$0xff]  ;;  %v24406_v55 = vsub.f32 %v32651_v40, %v32972_v34 }
 0x539   :  { %v8027_v35 = vadd.f32 %v34441_v21, %v7945_v59  ;;  %v34450_v59 = vld [vmem:[#allocation149_spill] sm:$0xff] }
 0x53a   :  { %v19740_v17 = vadd.f32 %v19739_v6, %v19655_v11  ;;  %v19901_v44 = vpop.f32.mrf.mxu0  ;;  %v34442_v6 = vld [vmem:[#allocation154_spill] sm:$0xff] }
 0x53b   :  { %v28199_v46 = vpop.f32.mrf.mxu1  ;;  %v8611_v12 = vadd.f32 %v34442_v6, %v8529_v38  ;;  %v8109_v4 = vadd.f32 %v34450_v59, %v8027_v35  ;;  %v34451_v38 = vld [vmem:[#allocation153_spill] sm:$0xff]  ;;  %v34456_v35 = vld [vmem:[#allocation28_spill] sm:$0xff] }
 0x53c   :  { %v19825_v8 = vadd.f32 %v28199_v46, %v19746_v19  ;;  %v34453_v46 = vld [vmem:[#allocation46_spill] sm:$0xff] }
 0x53d   :  { %v19818_v28 = vpop.f32.mrf.mxu1  ;;  %v8696_v40 = vadd.f32 %v34451_v38, %v8611_v12  ;;  %v12627_v5 = vadd.f32 %v34453_v46, %v12545_v30  ;;  %v34457_v12 = vld [vmem:[#allocation183_spill] sm:$0xff]  ;;  %v34468_v46 = vld [vmem:[#allocation157_spill] sm:$0xff] }
 0x53e   :  { %v24423_v60 = vsub.f32 %v19825_v8, %v34440_v42  ;;  %v19819_v63 = vadd.f32 %v19818_v28, %v19740_v17  ;;  %v28220_v47 = vpop.f32.mrf.mxu0  ;;  %v4680_v28 = vadd.f32 %v34454_v9, %v4595_v26  ;;  %v12210_v14 = vadd.f32 %v34457_v12, %v12125_v20  ;;  %v34467_v20 = vld [vmem:[#allocation31_spill] sm:$0xff]  ;;  %v34471_v12 = vld [vmem:[#allocation184_spill] sm:$0xff] }
 0x53f   :  { %v33002_v6 = vadd.f32 %v34456_v35, %v8696_v40  ;;  %v12712_v29 = vadd.f32 %v34458_v10, %v12627_v5 }
 0x540   :  { %v24567_v45 = vadd.f32 %v24423_v60, %v34447_v7  ;;  %v24422_v11 = vsub.f32 %v19819_v63, %v32976_v0  ;;  %v20074_v19 = vpop.f32.mrf.mxu0  ;;  %v34455_v63 = vld [vmem:[#allocation148_spill] sm:$0xff] }
 0x541   :  { %v28213_v22 = vpop.f32.mrf.mxu1 }
 0x542   :  { %v24583_v17 = vadd.f32 0.0009, %v24567_v45  ;;  %v32991_v57 = vadd.f32 %v24422_v11, %v24406_v55  ;;  %v19999_v53 = vadd.f32 %v28213_v22, %v28206_v27  ;;  %v8194_v27 = vadd.f32 %v34455_v63, %v8109_v4  ;;  %v34459_v55 = vld [vmem:[#allocation103_spill] sm:$0xff] }
 0x543   :  { %v19992_v50 = vpop.f32.mrf.mxu1  ;;  %v34463_v11 = vld [vmem:[#allocation107_spill] sm:$0xff] }
 0x544   :  { %v32997_v3 = vmul.f32 %v24583_v17, %v24551_v36  ;;  %v19993_v18 = vadd.f32 %v19992_v50, %v19901_v44  ;;  %v20082_v8 = vadd.f32 %v28220_v47, %v19999_v53  ;;  %v28234_v56 = vpop.f32.mrf.mxu0  ;;  %v4933_v44 = vadd.f32 %v34460_v54, %v34459_v55  ;;  %v34461_v47 = vld [vmem:[#allocation155_spill] sm:$0xff]  ;;  %v34465_v53 = vld [vmem:[#allocation53_spill] sm:$0xff]  ;;  %v34473_v54 = vld [vmem:[#allocation160_spill] sm:$0xff] }
 0x545   :  { %v8949_v7 = vadd.f32 %v34462_v33, %v34461_v47  ;;  %v33014_v36 = vadd.f32 %v34464_v51, %v8194_v27  ;;  %v24362_v17 = vmul.f32 %v33002_v6, %v33002_v6  ;;  %v33019_v59 = vadd.f32 %v34465_v53, %v12210_v14  ;;  %v34466_v4 = vld [vmem:[#allocation59_spill] sm:$0xff]  ;;  %v34475_v33 = vld [vmem:[#allocation56_spill] sm:$0xff] }
 0x546   :  { %v20075_v42 = vadd.f32 %v20074_v19, %v19993_v18  ;;  %v20241_v60 = vpop.f32.mrf.mxu0  ;;  %v33011_v19 = vadd.f32 %v34463_v11, %v4680_v28  ;;  %v12791_v38 = vadd.f32 %v34466_v4, %v12712_v29  ;;  %v5015_v50 = vadd.f32 %v34467_v20, %v4933_v44  ;;  %v34469_v18 = vld [vmem:[#allocation55_spill] sm:$0xff]  ;;  %v34476_v11 = vld [vmem:[#allocation72_spill] sm:$0xff]  ;;  %v34479_v20 = vld [vmem:[#allocation186_spill] sm:$0xff] }
 0x547   :  { %v28227_v21 = vpop.f32.mrf.mxu1  ;;  %v9031_v5 = vadd.f32 %v34468_v46, %v8949_v7  ;;  %v33031_v27 = vmul.f32 %v33014_v36, %v33014_v36  ;;  %v24553_v46 = vadd.f32 0.0001, %v34479_v20 }
 0x548   :  { %v20165_v30 = vadd.f32 %v28227_v21, %v20082_v8  ;;  %v34470_v8 = vld [vmem:[#allocation141_spill] sm:$0xff]  ;;  %v24346_v28 = vmul.f32 %v33011_v19, %v33011_v19  ;;  %v33035_v21 = vmul.f32 %v33019_v59, %v33019_v59 }
 0x549   :  { %v20156_v45 = vpop.f32.mrf.mxu1  ;;  %v9113_v44 = vadd.f32 %v34473_v54, %v9031_v5  ;;  %v24408_v7 = vsub.f32 %v34475_v33, %v33031_v27  ;;  %v34483_v33 = vld [vmem:[#allocation105_spill] sm:$0xff] }
 0x54a   :  { %v20157_v25 = vadd.f32 %v20156_v45, %v20075_v42  ;;  %v20248_v26 = vadd.f32 %v28234_v56, %v20165_v30  ;;  %v28248_v22 = vpop.f32.mrf.mxu0  ;;  %v12965_v56 = vadd.f32 %v34470_v8, %v34469_v18  ;;  %v24410_v42 = vsub.f32 %v32734_v13, %v24362_v17  ;;  %v34472_v30 = vld [vmem:[#allocation108_spill] sm:$0xff] }
 0x54b   :  { %v24394_v35 = vsub.f32 %v12791_v38, %v24346_v28  ;;  %v5097_v55 = vadd.f32 %v34472_v30, %v5015_v50  ;;  %v34474_v13 = vld [vmem:[#allocation140_spill] sm:$0xff]  ;;  %v24522_v38 = vadd.f32 %v24362_v17, %v24346_v28 }
 0x54c   :  { %v20242_v40 = vadd.f32 %v20241_v60, %v20157_v25  ;;  %v20403_v62 = vpop.f32.mrf.mxu0  ;;  %v13047_v47 = vadd.f32 %v34474_v13, %v12965_v56  ;;  %v34477_v25 = vld [vmem:[#allocation138_spill] sm:$0xff]  ;;  %v34480_v8 = vld [vmem:[#allocation104_spill] sm:$0xff] }
 0x54d   :  { %v28241_v9 = vpop.f32.mrf.mxu1  ;;  %v24554_v45 = vadd.f32 %v24410_v42, %v24394_v35  ;;  %v5182_v56 = vadd.f32 %v34480_v8, %v5097_v55  ;;  %v34482_v42 = vld [vmem:[#allocation47_spill] sm:$0xff]  ;;  %v24538_v28 = vadd.f32 0.0001, %v24522_v38  ;;  %v34486_v55 = vld [vmem:[#allocation189_spill] sm:$0xff] }
 0x54e   :  { %v20327_v63 = vadd.f32 %v28241_v9, %v20248_v26  ;;  %v34478_v26 = vsub.f32 %v34476_v11, %v34477_v25  ;;  %v34481_v9 = vld [vmem:[#allocation159_spill] sm:$0xff] }
 0x54f   :  { %v20320_v60 = vpop.f32.mrf.mxu1 }
 0x550   :  { %v24425_v14 = vsub.f32 %v20327_v63, %v34471_v12  ;;  %v20321_v10 = vadd.f32 %v20320_v60, %v20242_v40  ;;  %v28262_v29 = vpop.f32.mrf.mxu0  ;;  %v9198_v63 = vadd.f32 %v34481_v9, %v9113_v44  ;;  %v13129_v60 = vadd.f32 %v34482_v42, %v13047_v47  ;;  %v34487_v47 = vld [vmem:[#allocation109_spill] sm:$0xff] }
 0x551   :  { %v24570_v12 = vadd.f32 0.0009, %v24554_v45  ;;  %v34491_v9 = vld [vmem:[#allocation65_spill] sm:$0xff] }
 0x552   :  { %v24569_v51 = vadd.f32 %v24425_v14, %v34478_v26  ;;  %v24424_v53 = vsub.f32 %v20321_v10, %v33035_v21  ;;  %v20576_v4 = vpop.f32.mrf.mxu0  ;;  %v13214_v44 = vadd.f32 %v34486_v55, %v13129_v60 }
 0x553   :  { %v28255_v40 = vpop.f32.mrf.mxu1  ;;  %v24586_v45 = vmul.f32 %v24570_v12, %v24538_v28 }
 0x554   :  { %v24585_v50 = vadd.f32 0.0009, %v24569_v51  ;;  %v33048_v18 = vadd.f32 %v24424_v53, %v24408_v7  ;;  %v20501_v5 = vadd.f32 %v28255_v40, %v28248_v22  ;;  %v34484_v7 = vld [vmem:[#allocation110_spill] sm:$0xff]  ;;  %v34485_v22 = vld [vmem:[#allocation32_spill] sm:$0xff]  ;;  %v33062_v51 = vadd.f32 %v34487_v47, %v5182_v56 }
 0x555   :  { %v20494_v35 = vpop.f32.mrf.mxu1  ;;  %v5435_v11 = vadd.f32 %v34484_v7, %v34483_v33  ;;  %v33058_v25 = vadd.f32 %v34485_v22, %v9198_v63  ;;  %v13293_v63 = vadd.f32 %v34491_v9, %v13214_v44  ;;  %28590 = vrcp.f32 %v24586_v45  ;;  %v34495_v7 = vld [vmem:[#allocation117_spill] sm:$0xff]  ;;  %v34496_v22 = vld [vmem:[#allocation156_spill] sm:$0xff] }
 0x556   :  { %v33053_v14 = vmul.f32 %v24585_v50, %v24553_v46  ;;  %v20495_v10 = vadd.f32 %v20494_v35, %v20403_v62  ;;  %v20584_v30 = vadd.f32 %v28262_v29, %v20501_v5  ;;  %v28276_v17 = vpop.f32.mrf.mxu0  ;;  %v34488_v62 = vld [vmem:[#allocation161_spill] sm:$0xff]  ;;  %v34489_v29 = vld [vmem:[#allocation164_spill] sm:$0xff]  ;;  %v24348_v56 = vmul.f32 %v33062_v51, %v33062_v51 }
 0x557   :  { %v9451_v40 = vadd.f32 %v34489_v29, %v34488_v62  ;;  %v34490_v50 = vld [vmem:[#allocation113_spill] sm:$0xff]  ;;  %v24364_v8 = vmul.f32 %v33058_v25, %v33058_v25  ;;  %v24378_v35 = vmul.f32 %v33002_v6, %v33011_v19  ;;  %v24443_v55 = vmul.f32 2.0, %v34496_v22  ;;  %v34497_v19 = vld [vmem:[#allocation166_spill] sm:$0xff] }
 0x558   :  { %v20577_v54 = vadd.f32 %v20576_v4, %v20495_v10  ;;  %v20743_v13 = vpop.f32.mrf.mxu0  ;;  %v5517_v5 = vadd.f32 %v34490_v50, %v5435_v11  ;;  %v34493_v10 = vld [vmem:[#allocation61_spill] sm:$0xff]  ;;  %v24396_v44 = vsub.f32 %v13293_v63, %v24348_v56  ;;  %v34498_v62 = vld [vmem:[#allocation142_spill] sm:$0xff]  ;;  %28592 = vrcp.f32 %v32797_v23 }
 0x559   :  { %v28269_v26 = vpop.f32.mrf.mxu1  ;;  %v9533_v12 = vadd.f32 %v34492_v15, %v9451_v40  ;;  %v24412_v28 = vsub.f32 %v32780_v49, %v24364_v8  ;;  %v24442_v6 = vmul.f32 2.0, %v24378_v35  ;;  %v24524_v15 = vadd.f32 %v24364_v8, %v24348_v56 }
 0x55a   :  { %v20667_v53 = vadd.f32 %v28269_v26, %v20584_v30  ;;  %v34494_v30 = vld [vmem:[#allocation66_spill] sm:$0xff]  ;;  %v5599_v11 = vadd.f32 %v34495_v7, %v5517_v5  ;;  %v24459_v5 = vadd.f32 0.0001, %v24443_v55  ;;  %v34501_v7 = vld [vmem:[#allocation49_spill] sm:$0xff] }
 0x55b   :  { %v20658_v38 = vpop.f32.mrf.mxu1  ;;  %v24556_v40 = vadd.f32 %v24412_v28, %v24396_v44 }
 0x55c   :  { %v20659_v4 = vadd.f32 %v20658_v38, %v20577_v54  ;;  %v20750_v20 = vadd.f32 %v28276_v17, %v20667_v53  ;;  %v28290_v46 = vpop.f32.mrf.mxu0  ;;  %v13467_v17 = vadd.f32 %v34494_v30, %v34493_v10  ;;  %v9615_v53 = vadd.f32 %v34497_v19, %v9533_v12 }
 0x55d   :  { %v24572_v12 = vadd.f32 0.0009, %v24556_v40 }
 0x55e   :  { %v20744_v42 = vadd.f32 %v20743_v13, %v20659_v4  ;;  %v20905_v60 = vpop.f32.mrf.mxu0  ;;  %v13549_v29 = vadd.f32 %v34498_v62, %v13467_v17 }
 0x55f   :  { %v28283_v54 = vpop.f32.mrf.mxu1 }
 0x560   :  { %v20829_v33 = vadd.f32 %v28283_v54, %v20750_v20  ;;  %v34499_v20 = vld [vmem:[#allocation115_spill] sm:$0xff]  ;;  %v24458_v54 = vadd.f32 0.0001, %v24442_v6 }
 0x561   :  { %v20822_v26 = vpop.f32.mrf.mxu1  ;;  %v5684_v50 = vadd.f32 %v34499_v20, %v5599_v11  ;;  %v24540_v11 = vadd.f32 0.0001, %v24524_v15  ;;  %v34503_v6 = vld [vmem:[#allocation119_spill] sm:$0xff] }
 0x562   :  { %v24427_v13 = vsub.f32 %v20829_v33, %v34496_v22  ;;  %v20823_v47 = vadd.f32 %v20822_v26, %v20744_v42  ;;  %v28304_v45 = vpop.f32.mrf.mxu0  ;;  %v34500_v42 = vld [vmem:[#allocation165_spill] sm:$0xff]  ;;  %v13631_v22 = vadd.f32 %v34501_v7, %v13549_v29  ;;  %v34505_v29 = vld [vmem:[#allocation62_spill] sm:$0xff] }
 0x563   :  { %v9700_v33 = vadd.f32 %v34500_v42, %v9615_v53  ;;  %v34504_v53 = vld [vmem:[#allocation33_spill] sm:$0xff] }
 0x564   :  { %v24475_v38 = vmul.f32 2.0, %v24427_v13  ;;  %v24426_v49 = vsub.f32 %v20823_v47, %v24378_v35  ;;  %v21078_v4 = vpop.f32.mrf.mxu0  ;;  %v28589_v47 = vpop.eup %28588  ;;  %v13716_v40 = vadd.f32 %v34505_v29, %v13631_v22 }
 0x565   :  { %v28297_v9 = vpop.f32.mrf.mxu1  ;;  %v28591_v62 = vpop.eup %28590 }
 0x566   :  { %v24491_v63 = vadd.f32 0.0009, %v24475_v38  ;;  %v24474_v10 = vmul.f32 2.0, %v24426_v49  ;;  %v21003_v30 = vadd.f32 %v28297_v9, %v28290_v46  ;;  %v34502_v46 = vld [vmem:[#allocation112_spill] sm:$0xff]  ;;  %v33090_v49 = vadd.f32 %v34504_v53, %v9700_v33  ;;  %v34514_v53 = vld [vmem:[#allocation70_spill] sm:$0xff] }
 0x567   :  { %v20996_v26 = vpop.f32.mrf.mxu1  ;;  %v5937_v38 = vadd.f32 %v34503_v6, %v34502_v46 }
 0x568   :  { %v24507_v17 = vmul.f32 %v24491_v63, %v24459_v5  ;;  %v24490_v28 = vadd.f32 0.0009, %v24474_v10  ;;  %v20997_v44 = vadd.f32 %v20996_v26, %v20905_v60  ;;  %v21086_v35 = vadd.f32 %v28304_v45, %v21003_v30  ;;  %v28318_v13 = vpop.f32.mrf.mxu0  ;;  %v34506_v5 = vld [vmem:[#allocation34_spill] sm:$0xff]  ;;  %v34507_v63 = vld [vmem:[#allocation167_spill] sm:$0xff] }
 0x569   :  { %v33094_v60 = vadd.f32 %v34506_v5, %v5684_v50  ;;  %v24588_v45 = vmul.f32 %v24572_v12, %v24540_v11  ;;  %v34508_v10 = vld [vmem:[#allocation130_spill] sm:$0xff]  ;;  %v24366_v50 = vmul.f32 %v33090_v49, %v33090_v49  ;;  %v34510_v12 = vld [vmem:[#allocation69_spill] sm:$0xff]  ;;  %v24380_v11 = vmul.f32 %v33058_v25, %v33062_v51  ;;  %v34516_v51 = vld [vmem:[#allocation35_spill] sm:$0xff] }
 0x56a   :  { %v24605_v55 = vmul.f32 %v28589_v47, %v24507_v17  ;;  %v24506_v19 = vmul.f32 %v24490_v28, %v24458_v54  ;;  %v21079_v8 = vadd.f32 %v21078_v4, %v20997_v44  ;;  %v21245_v56 = vpop.f32.mrf.mxu0  ;;  %v9953_v4 = vadd.f32 %v34508_v10, %v34507_v63  ;;  %v34509_v26 = vld [vmem:[#allocation114_spill] sm:$0xff]  ;;  %v34517_v10 = vld [vmem:[#allocation76_spill] sm:$0xff] }
 0x56b   :  { %v28311_v20 = vpop.f32.mrf.mxu1  ;;  %v6019_v17 = vadd.f32 %v34509_v26, %v5937_v38  ;;  %v13795_v28 = vadd.f32 %v34510_v12, %v13716_v40  ;;  %v24350_v23 = vmul.f32 %v33094_v60, %v33094_v60  ;;  %28594 = vrcp.f32 %v24588_v45  ;;  %v34515_v40 = vld [vmem:[#allocation162_spill] sm:$0xff] }
 0x56c   :  { %v24603_v9 = vmul.f32 %v28591_v62, %v24506_v19  ;;  %v21169_v15 = vadd.f32 %v28311_v20, %v21086_v35  ;;  %v24636_v54 = vsel %vm163_vm0, %v24605_v55, 0.0  ;;  %v34512_v19 = vld [vmem:[#allocation67_spill] sm:$0xff]  ;;  %v24414_v46 = vsub.f32 %v32826_v61, %v24366_v50 }
 0x56d   :  { %v21160_v30 = vpop.f32.mrf.mxu1  ;;  %v6101_v29 = vadd.f32 %v34514_v53, %v6019_v17  ;;  %v24445_v20 = vmul.f32 2.0, %v34515_v40  ;;  %v24398_v5 = vsub.f32 %v13795_v28, %v24350_v23  ;;  %v24444_v25 = vmul.f32 2.0, %v24380_v11 }
 0x56e   :  { %v24635_v42 = vsel %vm163_vm0, %v24603_v9, 0.0  ;;  %v21161_v33 = vadd.f32 %v21160_v30, %v21079_v8  ;;  %v21252_v7 = vadd.f32 %v28318_v13, %v21169_v15  ;;  %v28332_v22 = vpop.f32.mrf.mxu0  ;;  %v34511_v13 = vld [vmem:[#allocation131_spill] sm:$0xff]  ;;  %v34513_v8 = vld [vmem:[#allocation90_spill] sm:$0xff]  ;;  %v24526_v12 = vadd.f32 %v24366_v50, %v24350_v23 }
 0x56f   :  { %v33105_v44 = vadd.f32 %v24636_v54, %v24635_v42  ;;  %v10035_v55 = vadd.f32 %v34511_v13, %v9953_v4  ;;  %v13969_v62 = vadd.f32 %v34513_v8, %v34512_v19  ;;  %v24558_v30 = vadd.f32 %v24414_v46, %v24398_v5 }
 0x570   :  { %v21246_v35 = vadd.f32 %v21245_v56, %v21161_v33  ;;  %v21407_v47 = vpop.f32.mrf.mxu0  ;;  %v34518_v33 = vld [vmem:[#allocation120_spill] sm:$0xff]  ;;  %v24461_v26 = vadd.f32 0.0001, %v24445_v20  ;;  %v24460_v8 = vadd.f32 0.0001, %v24444_v25  ;;  %28596 = vrcp.f32 %v32843_v24 }
 0x571   :  { %v28325_v6 = vpop.f32.mrf.mxu1  ;;  %v10117_v63 = vadd.f32 %v34516_v51, %v10035_v55  ;;  %v14051_v4 = vadd.f32 %v34517_v10, %v13969_v62  ;;  %v24574_v55 = vadd.f32 0.0009, %v24558_v30  ;;  %v28593_v62 = vpop.eup %28592  ;;  %v24542_v50 = vadd.f32 0.0001, %v24526_v12 }
 0x572   :  { %v21331_v38 = vadd.f32 %v28325_v6, %v21252_v7  ;;  %v6186_v7 = vadd.f32 %v34518_v33, %v6101_v29  ;;  %v34521_v29 = vld [vmem:[#allocation121_spill] sm:$0xff] }
 0x573   :  { %v21324_v45 = vpop.f32.mrf.mxu1 }
 0x574   :  { %v24429_v56 = vsub.f32 %v21331_v38, %v34515_v40  ;;  %v21325_v9 = vadd.f32 %v21324_v45, %v21246_v35  ;;  %v28346_v15 = vpop.f32.mrf.mxu0  ;;  %v34519_v35 = vld [vmem:[#allocation169_spill] sm:$0xff]  ;;  %v34520_v38 = vld [vmem:[#allocation52_spill] sm:$0xff]  ;;  %v33124_v20 = vadd.f32 %v34521_v29, %v6186_v7  ;;  %v34531_v29 = vld [vmem:[#allocation63_spill] sm:$0xff] }
 0x575   :  { %v10202_v6 = vadd.f32 %v34519_v35, %v10117_v63  ;;  %v14133_v53 = vadd.f32 %v34520_v38, %v14051_v4  ;;  %v34522_v63 = vld [vmem:[#allocation37_spill] sm:$0xff]  ;;  %v34524_v7 = vld [vmem:[#allocation36_spill] sm:$0xff]  ;;  %v34527_v35 = vld [vmem:[#allocation123_spill] sm:$0xff] }
 0x576   :  { %v24477_v54 = vmul.f32 2.0, %v24429_v56  ;;  %v24428_v61 = vsub.f32 %v21325_v9, %v24380_v11  ;;  %v21580_v42 = vpop.f32.mrf.mxu0  ;;  %v34523_v4 = vld [vmem:[#allocation89_spill] sm:$0xff] }
 0x577   :  { %v28339_v17 = vpop.f32.mrf.mxu1  ;;  %v33127_v10 = vadd.f32 %v34522_v63, %v10202_v6  ;;  %v14218_v30 = vadd.f32 %v34523_v4, %v14133_v53  ;;  %v34528_v53 = vld [vmem:[#allocation74_spill] sm:$0xff] }
 0x578   :  { %v24493_v28 = vadd.f32 0.0009, %v24477_v54  ;;  %v24476_v13 = vmul.f32 2.0, %v24428_v61  ;;  %v21505_v19 = vadd.f32 %v28339_v17, %v28332_v22  ;;  %v28595_v51 = vpop.eup %28594  ;;  %v24590_v61 = vmul.f32 %v24574_v55, %v24542_v50  ;;  %v34532_v4 = vld [vmem:[#allocation118_spill] sm:$0xff] }
 0x579   :  { %v21498_v40 = vpop.f32.mrf.mxu1  ;;  %v24368_v38 = vmul.f32 %v33127_v10, %v33127_v10  ;;  %v14297_v55 = vadd.f32 %v34528_v53, %v14218_v30  ;;  %v34533_v30 = vld [vmem:[#allocation168_spill] sm:$0xff] }
 0x57a   :  { %v24509_v46 = vmul.f32 %v24493_v28, %v24461_v26  ;;  %v24492_v5 = vadd.f32 0.0009, %v24476_v13  ;;  %v21499_v11 = vadd.f32 %v21498_v40, %v21407_v47  ;;  %v21588_v45 = vadd.f32 %v28346_v15, %v21505_v19  ;;  %v28360_v56 = vpop.f32.mrf.mxu0  ;;  %v34525_v26 = vld [vmem:[#allocation171_spill] sm:$0xff] }
 0x57b   :  { %v24352_v15 = vmul.f32 %v33124_v20, %v33124_v20  ;;  %v10455_v17 = vadd.f32 %v34525_v26, %v34524_v7  ;;  %28598 = vrcp.f32 %v24590_v61  ;;  %v34535_v26 = vld [vmem:[#allocation57_spill] sm:$0xff] }
 0x57c   :  { %v24609_v23 = vmul.f32 %v28593_v62, %v24509_v46  ;;  %v24508_v9 = vmul.f32 %v24492_v5, %v24460_v8  ;;  %v21581_v22 = vadd.f32 %v21580_v42, %v21499_v11  ;;  %v21747_v25 = vpop.f32.mrf.mxu0  ;;  %v34526_v8 = vld [vmem:[#allocation116_spill] sm:$0xff]  ;;  %v24382_v62 = vmul.f32 %v33090_v49, %v33094_v60  ;;  %v34529_v11 = vld [vmem:[#allocation170_spill] sm:$0xff] }
 0x57d   :  { %v28353_v54 = vpop.f32.mrf.mxu1  ;;  %v6439_v6 = vadd.f32 %v34527_v35, %v34526_v8  ;;  %v24400_v49 = vsub.f32 %v14297_v55, %v24352_v15  ;;  %v24528_v53 = vadd.f32 %v24368_v38, %v24352_v15  ;;  %28600 = vrcp.f32 %v32879_v2 }
 0x57e   :  { %v24607_v33 = vmul.f32 %v28595_v51, %v24508_v9  ;;  %v21671_v47 = vadd.f32 %v28353_v54, %v21588_v45  ;;  %v24640_v24 = vsel %vm163_vm0, %v24609_v23, 0.0  ;;  %v10537_v45 = vadd.f32 %v34529_v11, %v10455_v17 }
 0x57f   :  { %v21662_v12 = vpop.f32.mrf.mxu1  ;;  %v24416_v9 = vsub.f32 %v32868_v41, %v24368_v38  ;;  %v24447_v54 = vmul.f32 2.0, %v34533_v30  ;;  %v24384_v2 = vmul.f32 %v33127_v10, %v33124_v20 }
 0x580   :  { %v24638_v42 = vsel %vm163_vm0, %v24607_v33, 0.0  ;;  %v21663_v28 = vadd.f32 %v21662_v12, %v21581_v22  ;;  %v21754_v13 = vadd.f32 %v28360_v56, %v21671_v47  ;;  %v28374_v19 = vpop.f32.mrf.mxu0  ;;  %v34530_v56 = vld [vmem:[#allocation71_spill] sm:$0xff]  ;;  %v24446_v33 = vmul.f32 2.0, %v24382_v62 }
 0x581   :  { %v24639_v40 = vadd.f32 %v24638_v42, %v33105_v44  ;;  %v14471_v50 = vadd.f32 %v34531_v29, %v34530_v56  ;;  %v6521_v44 = vadd.f32 %v34532_v4, %v6439_v6  ;;  %v34534_v47 = vld [vmem:[#allocation39_spill] sm:$0xff]  ;;  %v24560_v12 = vadd.f32 %v24416_v9, %v24400_v49  ;;  %v34538_v29 = vld [vmem:[#allocation54_spill] sm:$0xff]  ;;  %v28597_v49 = vpop.eup %28596 }
 0x582   :  { %v21748_v46 = vadd.f32 %v21747_v25, %v21663_v28  ;;  %v21909_v5 = vpop.f32.mrf.mxu0  ;;  %v10619_v7 = vadd.f32 %v34534_v47, %v10537_v45  ;;  %v24463_v35 = vadd.f32 0.0001, %v24447_v54  ;;  %v24462_v11 = vadd.f32 0.0001, %v24446_v33  ;;  %v34540_v33 = vld [vmem:[#allocation38_spill] sm:$0xff] }
 0x583   :  { %v28367_v22 = vpop.f32.mrf.mxu1  ;;  %v24641_v51 = vadd.f32 %v24640_v24, %v24639_v40  ;;  %v14553_v17 = vadd.f32 %v34535_v26, %v14471_v50  ;;  %v24576_v45 = vadd.f32 0.0009, %v24560_v12 }
 0x584   :  { %v21833_v63 = vadd.f32 %v28367_v22, %v21754_v13  ;;  %v34536_v13 = vld [vmem:[#allocation125_spill] sm:$0xff] }
 0x585   :  { %v21826_v60 = vpop.f32.mrf.mxu1  ;;  %v6603_v8 = vadd.f32 %v34536_v13, %v6521_v44  ;;  %v14635_v22 = vadd.f32 %v34538_v29, %v14553_v17  ;;  %v34539_v44 = vld [vmem:[#allocation124_spill] sm:$0xff] }
 0x586   :  { %v24431_v23 = vsub.f32 %v21833_v63, %v34533_v30  ;;  %v21827_v25 = vadd.f32 %v21826_v60, %v21748_v46  ;;  %v28388_v61 = vpop.f32.mrf.mxu0  ;;  %v34537_v46 = vld [vmem:[#allocation172_spill] sm:$0xff]  ;;  %v24544_v60 = vadd.f32 0.0001, %v24528_v53 }
 0x587   :  { %v10704_v56 = vadd.f32 %v34537_v46, %v10619_v7  ;;  %v6688_v54 = vadd.f32 %v34539_v44, %v6603_v8  ;;  %v34541_v7 = vld [vmem:[#allocation98_spill] sm:$0xff] }
 0x588   :  { %v24479_v41 = vmul.f32 2.0, %v24431_v23  ;;  %v24430_v42 = vsub.f32 %v21827_v25, %v24382_v62  ;;  %v22082_v28 = vpop.f32.mrf.mxu0  ;;  %v28599_v25 = vpop.eup %28598  ;;  %v14720_v26 = vadd.f32 %v34541_v7, %v14635_v22  ;;  %v24592_v12 = vmul.f32 %v24576_v45, %v24544_v60 }
 0x589   :  { %v28381_v6 = vpop.f32.mrf.mxu1  ;;  %v33159_v47 = vadd.f32 %v34540_v33, %v10704_v56 }
 0x58a   :  { %v24495_v55 = vadd.f32 0.0009, %v24479_v41  ;;  %v24478_v40 = vmul.f32 2.0, %v24430_v42  ;;  %v22007_v24 = vadd.f32 %v28381_v6, %v28374_v19  ;;  %28602 = vrcp.f32 %v24592_v12 }
 0x58b   :  { %v22000_v63 = vpop.f32.mrf.mxu1  ;;  %v24370_v53 = vmul.f32 %v33159_v47, %v33159_v47  ;;  %28604 = vrcp.f32 %v32912_v32 }
 0x58c   :  { %v24511_v50 = vmul.f32 %v24495_v55, %v24463_v35  ;;  %v24494_v9 = vadd.f32 0.0009, %v24478_v40  ;;  %v22001_v4 = vadd.f32 %v22000_v63, %v21909_v5  ;;  %v22090_v62 = vadd.f32 %v28388_v61, %v22007_v24  ;;  %v28402_v30 = vpop.f32.mrf.mxu0  ;;  %v34542_v61 = vld [vmem:[#allocation122_spill] sm:$0xff]  ;;  %v34543_v55 = vld [vmem:[#allocation75_spill] sm:$0xff] }
 0x58d   :  { %v33163_v42 = vadd.f32 %v34542_v61, %v6688_v54  ;;  %v14799_v40 = vadd.f32 %v34543_v55, %v14720_v26  ;;  %v24418_v22 = vsub.f32 %v32902_v31, %v24370_v53  ;;  %v24448_v54 = vmul.f32 2.0, %v24384_v2 }
 0x58e   :  { %v24613_v15 = vmul.f32 %v28597_v49, %v24511_v50  ;;  %v24510_v38 = vmul.f32 %v24494_v9, %v24462_v11  ;;  %v22083_v23 = vadd.f32 %v22082_v28, %v22001_v4  ;;  %v22249_v19 = vpop.f32.mrf.mxu0  ;;  %v34544_v9 = vld [vmem:[#allocation132_spill] sm:$0xff] }
 0x58f   :  { %v28395_v17 = vpop.f32.mrf.mxu1  ;;  %v24354_v29 = vmul.f32 %v33163_v42, %v33163_v42  ;;  %v24449_v4 = vmul.f32 2.0, %v34544_v9  ;;  %v24464_v7 = vadd.f32 0.0001, %v24448_v54 }
 0x590   :  { %v24611_v41 = vmul.f32 %v28599_v25, %v24510_v38  ;;  %v22173_v5 = vadd.f32 %v28395_v17, %v22090_v62  ;;  %v24644_v11 = vsel %vm163_vm0, %v24613_v15, 0.0 }
 0x591   :  { %v22164_v13 = vpop.f32.mrf.mxu1  ;;  %v24402_v62 = vsub.f32 %v14799_v40, %v24354_v29  ;;  %v24530_v10 = vadd.f32 %v24370_v53, %v24354_v29 }
 0x592   :  { %v24642_v8 = vsel %vm163_vm0, %v24611_v41, 0.0  ;;  %v22165_v28 = vadd.f32 %v22164_v13, %v22083_v23  ;;  %v22256_v35 = vadd.f32 %v28402_v30, %v22173_v5  ;;  %v28416_v6 = vpop.f32.mrf.mxu0 }
 0x593   :  { %v24643_v24 = vadd.f32 %v24642_v8, %v24641_v51  ;;  %v24562_v60 = vadd.f32 %v24418_v22, %v24402_v62  ;;  %v28601_v8 = vpop.eup %28600 }
 0x594   :  { %v22250_v46 = vadd.f32 %v22249_v19, %v22165_v28  ;;  %v22411_v56 = vpop.f32.mrf.mxu0  ;;  %v24465_v19 = vadd.f32 0.0001, %v24449_v4  ;;  %v24546_v28 = vadd.f32 0.0001, %v24530_v10 }
 0x595   :  { %v28409_v45 = vpop.f32.mrf.mxu1  ;;  %v24645_v63 = vadd.f32 %v24644_v11, %v24643_v24  ;;  %v24578_v26 = vadd.f32 0.0009, %v24562_v60  ;;  %v34545_v60 = vld [vmem:[#allocation42_spill] sm:$0xff] }
 0x596   :  { %v22335_v50 = vadd.f32 %v28409_v45, %v22256_v35 }
 0x597   :  { %v22328_v51 = vpop.f32.mrf.mxu1  ;;  %v28603_v11 = vpop.eup %28602  ;;  %v24594_v53 = vmul.f32 %v24578_v26, %v24546_v28 }
 0x598   :  { %v24433_v30 = vsub.f32 %v22335_v50, %v34544_v9  ;;  %v22329_v49 = vadd.f32 %v22328_v51, %v22250_v46  ;;  %v28430_v44 = vpop.f32.mrf.mxu0 }
 0x599   :  { %28606 = vrcp.f32 %v24594_v53 }
 0x59a   :  { %v24481_v15 = vmul.f32 2.0, %v24433_v30  ;;  %v24432_v38 = vsub.f32 %v22329_v49, %v24384_v2  ;;  %v22584_v23 = vpop.f32.mrf.mxu0  ;;  %v24386_v30 = vmul.f32 %v33159_v47, %v33163_v42  ;;  %28608 = vrcp.f32 %v32948_v37 }
 0x59b   :  { %v28423_v20 = vpop.f32.mrf.mxu1 }
 0x59c   :  { %v24497_v31 = vadd.f32 0.0009, %v24481_v15  ;;  %v24480_v25 = vmul.f32 2.0, %v24432_v38  ;;  %v22509_v33 = vadd.f32 %v28423_v20, %v28416_v6  ;;  %v24451_v15 = vmul.f32 2.0, %v34545_v60 }
 0x59d   :  { %v22502_v17 = vpop.f32.mrf.mxu1  ;;  %v24450_v20 = vmul.f32 2.0, %v24386_v30 }
 0x59e   :  { %v24513_v12 = vmul.f32 %v24497_v31, %v24465_v19  ;;  %v24496_v41 = vadd.f32 0.0009, %v24480_v25  ;;  %v22503_v5 = vadd.f32 %v22502_v17, %v22411_v56  ;;  %v22592_v61 = vadd.f32 %v28430_v44, %v22509_v33  ;;  %v28444_v13 = vpop.f32.mrf.mxu0 }
 0x59f   :  { %v24467_v25 = vadd.f32 0.0001, %v24451_v15  ;;  %v24466_v17 = vadd.f32 0.0001, %v24450_v20 }
 0x5a0   :  { %v24617_v35 = vmul.f32 %v28601_v8, %v24513_v12  ;;  %v24512_v55 = vmul.f32 %v24496_v41, %v24464_v7  ;;  %v22585_v40 = vadd.f32 %v22584_v23, %v22503_v5  ;;  %v22751_v24 = vpop.f32.mrf.mxu0  ;;  %v24532_v7 = vadd.f32 %v32932_v43, %v32928_v16 }
 0x5a1   :  { %v28437_v46 = vpop.f32.mrf.mxu1  ;;  %v24580_v12 = vadd.f32 0.0009, %v32944_v52 }
 0x5a2   :  { %v24615_v29 = vmul.f32 %v28603_v11, %v24512_v55  ;;  %v22675_v2 = vadd.f32 %v28437_v46, %v22592_v61  ;;  %v24648_v4 = vsel %vm163_vm0, %v24617_v35, 0.0  ;;  %v28605_v35 = vpop.eup %28604  ;;  %v24548_v55 = vadd.f32 0.0001, %v24532_v7 }
 0x5a3   :  { %v22666_v6 = vpop.f32.mrf.mxu1 }
 0x5a4   :  { %v24646_v22 = vsel %vm163_vm0, %v24615_v29, 0.0  ;;  %v22667_v45 = vadd.f32 %v22666_v6, %v22585_v40  ;;  %v22758_v56 = vadd.f32 %v28444_v13, %v22675_v2  ;;  %v28458_v50 = vpop.f32.mrf.mxu0  ;;  %v24596_v43 = vmul.f32 %v24580_v12, %v24548_v55 }
 0x5a5   :  { %v24647_v9 = vadd.f32 %v24646_v22, %v24645_v63 }
 0x5a6   :  { %v22752_v62 = vadd.f32 %v22751_v24, %v22667_v45  ;;  %v22913_v51 = vpop.f32.mrf.mxu0  ;;  %v28607_v53 = vpop.eup %28606  ;;  %28610 = vrcp.f32 %v24596_v43 }
 0x5a7   :  { %v28451_v49 = vpop.f32.mrf.mxu1  ;;  %v24649_v44 = vadd.f32 %v24648_v4, %v24647_v9  ;;  %28612 = vrcp.f32 %v32997_v3 }
 0x5a8   :  { %v22837_v54 = vadd.f32 %v28451_v49, %v22758_v56 }
 0x5a9   :  { %v22830_v32 = vpop.f32.mrf.mxu1 }
 0x5aa   :  { %v24435_v38 = vsub.f32 %v22837_v54, %v34545_v60  ;;  %v22831_v23 = vadd.f32 %v22830_v32, %v22752_v62  ;;  %v28472_v19 = vpop.f32.mrf.mxu0  ;;  %v34546_v60 = vld [vmem:[#allocation177_spill] sm:$0xff] }
 0x5ab   :  { %v24453_v15 = vmul.f32 2.0, %v34546_v60 }
 0x5ac   :  { %v24483_v63 = vmul.f32 2.0, %v24435_v38  ;;  %v24434_v10 = vsub.f32 %v22831_v23, %v24386_v30  ;;  %v23086_v31 = vpop.f32.mrf.mxu0 }
 0x5ad   :  { %v28465_v33 = vpop.f32.mrf.mxu1 }
 0x5ae   :  { %v24499_v47 = vadd.f32 0.0009, %v24483_v63  ;;  %v24482_v42 = vmul.f32 2.0, %v24434_v10  ;;  %v23011_v26 = vadd.f32 %v28465_v33, %v28458_v50  ;;  %v24469_v10 = vadd.f32 0.0001, %v24453_v15 }
 0x5af   :  { %v23004_v41 = vpop.f32.mrf.mxu1 }
 0x5b0   :  { %v24515_v5 = vmul.f32 %v24499_v47, %v24467_v25  ;;  %v24498_v61 = vadd.f32 0.0009, %v24482_v42  ;;  %v23005_v13 = vadd.f32 %v23004_v41, %v22913_v51  ;;  %v23094_v8 = vadd.f32 %v28472_v19, %v23011_v26  ;;  %v28486_v28 = vpop.f32.mrf.mxu0 }
 0x5b1   :  { %v24388_v51 = vmul.f32 %v32920_v58, %v32917_v48  ;;  %v24534_v25 = vadd.f32 %v32976_v0, %v32972_v34  ;;  %v24582_v47 = vadd.f32 0.0009, %v32991_v57 }
 0x5b2   :  { %v24621_v40 = vmul.f32 %v28605_v35, %v24515_v5  ;;  %v24514_v24 = vmul.f32 %v24498_v61, %v24466_v17  ;;  %v23087_v11 = vadd.f32 %v23086_v31, %v23005_v13  ;;  %v23253_v46 = vpop.f32.mrf.mxu0  ;;  %v28609_v61 = vpop.eup %28608 }
 0x5b3   :  { %v28479_v16 = vpop.f32.mrf.mxu1  ;;  %v24452_v19 = vmul.f32 2.0, %v24388_v51  ;;  %v24550_v13 = vadd.f32 0.0001, %v24534_v25 }
 0x5b4   :  { %v24619_v29 = vmul.f32 %v28607_v53, %v24514_v24  ;;  %v23177_v2 = vadd.f32 %v28479_v16, %v23094_v8  ;;  %v24652_v9 = vsel %vm163_vm0, %v24621_v40, 0.0  ;;  %v28611_v40 = vpop.eup %28610 }
 0x5b5   :  { %v23168_v6 = vpop.f32.mrf.mxu1  ;;  %v24468_v7 = vadd.f32 0.0001, %v24452_v19  ;;  %v24598_v0 = vmul.f32 %v24582_v47, %v24550_v13 }
 0x5b6   :  { %v24650_v52 = vsel %vm163_vm0, %v24619_v29, 0.0  ;;  %v23169_v22 = vadd.f32 %v23168_v6, %v23087_v11  ;;  %v23260_v45 = vadd.f32 %v28486_v28, %v23177_v2  ;;  %v28500_v56 = vpop.f32.mrf.mxu0 }
 0x5b7   :  { %v24651_v50 = vadd.f32 %v24650_v52, %v24649_v44  ;;  %28614 = vrcp.f32 %v24598_v0 }
 0x5b8   :  { %v23254_v4 = vadd.f32 %v23253_v46, %v23169_v22  ;;  %v23415_v62 = vpop.f32.mrf.mxu0  ;;  %v24390_v22 = vmul.f32 %v32960_v39, %v32957_v1  ;;  %28616 = vrcp.f32 %v33053_v14  ;;  %v34548_v14 = vld [vmem:[#allocation185_spill] sm:$0xff] }
 0x5b9   :  { %v28493_v30 = vpop.f32.mrf.mxu1  ;;  %v24653_v49 = vadd.f32 %v24652_v9, %v24651_v50 }
 0x5ba   :  { %v23339_v54 = vadd.f32 %v28493_v30, %v23260_v45 }
 0x5bb   :  { %v23332_v37 = vpop.f32.mrf.mxu1 }
 0x5bc   :  { %v24437_v32 = vsub.f32 %v23339_v54, %v34546_v60  ;;  %v23333_v38 = vadd.f32 %v23332_v37, %v23254_v4  ;;  %v28514_v23 = vpop.f32.mrf.mxu0  ;;  %v34547_v4 = vld [vmem:[#allocation181_spill] sm:$0xff]  ;;  %v24454_v54 = vmul.f32 2.0, %v24390_v22  ;;  %v24584_v37 = vadd.f32 0.0009, %v33048_v18 }
 0x5bd   :  { %v24455_v3 = vmul.f32 2.0, %v34547_v4 }
 0x5be   :  { %v24485_v44 = vmul.f32 2.0, %v24437_v32  ;;  %v24436_v20 = vsub.f32 %v23333_v38, %v24388_v51  ;;  %v23588_v63 = vpop.f32.mrf.mxu0 }
 0x5bf   :  { %v28507_v31 = vpop.f32.mrf.mxu1  ;;  %v24471_v1 = vadd.f32 0.0001, %v24455_v3 }
 0x5c0   :  { %v24501_v48 = vadd.f32 0.0009, %v24485_v44  ;;  %v24484_v58 = vmul.f32 2.0, %v24436_v20  ;;  %v23513_v33 = vadd.f32 %v28507_v31, %v28500_v56  ;;  %v24470_v44 = vadd.f32 0.0001, %v24454_v54 }
 0x5c1   :  { %v23506_v42 = vpop.f32.mrf.mxu1 }
 0x5c2   :  { %v24517_v26 = vmul.f32 %v24501_v48, %v24469_v10  ;;  %v24500_v17 = vadd.f32 0.0009, %v24484_v58  ;;  %v23507_v12 = vadd.f32 %v23506_v42, %v23415_v62  ;;  %v23596_v41 = vadd.f32 %v28514_v23, %v23513_v33  ;;  %v28528_v5 = vpop.f32.mrf.mxu0  ;;  %v28613_v58 = vpop.eup %28612 }
 0x5c4   :  { %v24625_v8 = vmul.f32 %v28609_v61, %v24517_v26  ;;  %v24516_v28 = vmul.f32 %v24500_v17, %v24468_v7  ;;  %v23589_v35 = vadd.f32 %v23588_v63, %v23507_v12  ;;  %v23755_v55 = vpop.f32.mrf.mxu0  ;;  %v28615_v42 = vpop.eup %28614 }
 0x5c5   :  { %v28521_v34 = vpop.f32.mrf.mxu1 }
 0x5c6   :  { %v24623_v24 = vmul.f32 %v28611_v40, %v24516_v28  ;;  %v23679_v11 = vadd.f32 %v28521_v34, %v23596_v41  ;;  %v24656_v52 = vsel %vm163_vm0, %v24625_v8, 0.0  ;;  %v24392_v28 = vmul.f32 %v33019_v59, %v33014_v36 }
 0x5c7   :  { %v23670_v46 = vpop.f32.mrf.mxu1 }
 0x5c8   :  { %v24654_v57 = vsel %vm163_vm0, %v24623_v24, 0.0  ;;  %v23671_v53 = vadd.f32 %v23670_v46, %v23589_v35  ;;  %v23762_v16 = vadd.f32 %v28528_v5, %v23679_v11  ;;  %v28542_v43 = vpop.f32.mrf.mxu0  ;;  %v24457_v24 = vmul.f32 2.0, %v34548_v14 }
 0x5c9   :  { %v24655_v29 = vadd.f32 %v24654_v57, %v24653_v49  ;;  %v24536_v49 = vadd.f32 %v33035_v21, %v33031_v27 }
 0x5ca   :  { %v23756_v2 = vadd.f32 %v23755_v55, %v23671_v53  ;;  %v23917_v6 = vpop.f32.mrf.mxu0  ;;  %v24456_v53 = vmul.f32 2.0, %v24392_v28 }
 0x5cb   :  { %v28535_v45 = vpop.f32.mrf.mxu1  ;;  %v24657_v56 = vadd.f32 %v24656_v52, %v24655_v29  ;;  %v24552_v20 = vadd.f32 0.0001, %v24536_v49  ;;  %v24473_v29 = vadd.f32 0.0001, %v24457_v24 }
 0x5cc   :  { %v23841_v50 = vadd.f32 %v28535_v45, %v23762_v16  ;;  %v24472_v52 = vadd.f32 0.0001, %v24456_v53 }
 0x5cd   :  { %v23834_v9 = vpop.f32.mrf.mxu1  ;;  %v24600_v33 = vmul.f32 %v24584_v37, %v24552_v20 }
 0x5ce   :  { %v24439_v62 = vsub.f32 %v23841_v50, %v34547_v4  ;;  %v23835_v51 = vadd.f32 %v23834_v9, %v23756_v2  ;;  %v28556_v30 = vpop.f32.mrf.mxu0 }
 0x5cf   :  { %28618 = vrcp.f32 %v24600_v33 }
 0x5d0   :  { %v24487_v60 = vmul.f32 2.0, %v24439_v62  ;;  %v24438_v15 = vsub.f32 %v23835_v51, %v24390_v22  ;;  %v24090_v19 = vpop.f32.mrf.mxu0  ;;  %v28617_v22 = vpop.eup %28616 }
 0x5d1   :  { %v28549_v32 = vpop.f32.mrf.mxu1 }
 0x5d2   :  { %v24503_v39 = vadd.f32 0.0009, %v24487_v60  ;;  %v24486_v38 = vmul.f32 2.0, %v24438_v15  ;;  %v24015_v23 = vadd.f32 %v28549_v32, %v28542_v43 }
 0x5d3   :  { %v24008_v63 = vpop.f32.mrf.mxu1 }
 0x5d4   :  { %v24519_v10 = vmul.f32 %v24503_v39, %v24471_v1  ;;  %v24502_v31 = vadd.f32 0.0009, %v24486_v38  ;;  %v24009_v25 = vadd.f32 %v24008_v63, %v23917_v6  ;;  %v24098_v48 = vadd.f32 %v28556_v30, %v24015_v23  ;;  %v28570_v47 = vpop.f32.mrf.mxu0 }
 0x5d5   :  { %v28750_v30 = vmov 0.0  }
 0x5d6   :  { %v24518_v27 = vmul.f32 %v24502_v31, %v24470_v44  ;;  %v24091_v21 = vadd.f32 %v24090_v19, %v24009_v25  ;;  %v28563_v7 = vpop.f32.mrf.mxu1  ;;  %v24629_v18 = vmul.f32 %v28613_v58, %v24519_v10  ;;  %v24257_v61 = vpop.f32.mrf.mxu0  ;;  %78 = vst.msk [vmem:[#allocation2] sm:$0x1] %vm77_vm1, %v28750_v30 }
 0x5d7   :  { %v24181_v26 = vadd.f32 %v28563_v7, %v24098_v48 }
 0x5d8   :  { %v24627_v17 = vmul.f32 %v28615_v42, %v24518_v27  ;;  %v24172_v12 = vpop.f32.mrf.mxu1  ;;  %v24660_v0 = vsel %vm163_vm0, %v24629_v18, 0.0 }
 0x5d9   :  { %v24173_v41 = vadd.f32 %v24172_v12, %v24091_v21  ;;  %v24264_v5 = vadd.f32 %v28570_v47, %v24181_v26 }
 0x5da   :  { %v28577_v13 = vpop.f32.mrf.mxu1  ;;  %v24658_v8 = vsel %vm163_vm0, %v24627_v17, 0.0 }
 0x5db   :  { %v24258_v35 = vadd.f32 %v24257_v61, %v24173_v41  ;;  %v24343_v55 = vadd.f32 %v28577_v13, %v24264_v5  ;;  %v24659_v40 = vadd.f32 %v24658_v8, %v24657_v56 }
 0x5dc   :  { %v24336_v34 = vpop.f32.mrf.mxu1  ;;  %v28619_v50 = vpop.eup %28618 }
 0x5dd   :  { %v24441_v11 = vsub.f32 %v24343_v55, %v34548_v14  ;;  %v24337_v46 = vadd.f32 %v24336_v34, %v24258_v35  ;;  %v24661_v57 = vadd.f32 %v24660_v0, %v24659_v40  ;;  %v24634_v39 = vld [vmem:[#allocation2] sm:$0x1] }
 0x5df   :  { %v24489_v16 = vmul.f32 2.0, %v24441_v11  ;;  %v24440_v43 = vsub.f32 %v24337_v46, %v24392_v28 }
 0x5e1   :  { %v24505_v2 = vadd.f32 0.0009, %v24489_v16  ;;  %v24488_v6 = vmul.f32 2.0, %v24440_v43 }
 0x5e3   :  { %v24504_v36 = vadd.f32 0.0009, %v24488_v6  ;;  %v24521_v59 = vmul.f32 %v24505_v2, %v24473_v29 }
 0x5e5   :  { %v24520_v45 = vmul.f32 %v24504_v36, %v24472_v52  ;;  %v24633_v56 = vmul.f32 %v28617_v22, %v24521_v59 }
 0x5e7   :  { %v24631_v9 = vmul.f32 %v28619_v50, %v24520_v45  ;;  %v24664_v62 = vsel %vm163_vm0, %v24633_v56, 0.0 }
 0x5e9   :  { %v24662_v4 = vsel %vm163_vm0, %v24631_v9, 0.0 }
 0x5ea   :  { %v24663_v3 = vadd.f32 %v24662_v4, %v24661_v57 }
 0x5ec   :  { %v24665_v51 = vadd.f32 %v24664_v62, %v24663_v3 }
 0x5ee   :  { %24666 = vadd.xlane.f32.xlu0 %v24665_v51 }
 0x677   :  { %v24667_v54 = vpop.xlane.xlu0 %24666 }
 0x678   :  { %v24668_v49 = vrot.slane %v24667_v54, 4 }
 0x67a   :  { %v24669_v60 = vadd.f32 %v24668_v49, %v24667_v54 }
 0x67c   :  { %v24670_v15 = vrot.slane %v24669_v60, 2 }
 0x67e   :  { %v24671_v37 = vadd.f32 %v24670_v15, %v24669_v60 }
 0x680   :  { %v24672_v32 = vrot.slane %v24671_v37, 1 }
 0x682   :  { %v24673_v1 = vadd.f32 %v24672_v32, %v24671_v37 }
 0x684   :  { %28578 = vpush %v24673_v1 }
 0x6b5   :  { %s28579_s2 = spop %28578 }
 0x6b6   :  { %v24675_v38 = vstv %s28579_s2 }
 0x6b7   :  { %v24676_v23 = vadd.f32 %v24675_v38, %v24634_v39 }
 0x6b9   :  { %24678 = vst.msk [vmem:[#allocation2] sm:$0x1] %vm77_vm1, %v24676_v23 }
 0x6c0   :  { %v24682_v19 = vld [vmem:[#allocation2] sm:$0x1] }
 0x6c1   :  { %v24683_v44 = vmul.f32 0.00048828125, %v24682_v19 }
 0x6c3   :  { %24684 = vst.msk [vmem:[#allocation11] sm:$0x1] %vm77_vm1, %v24683_v44 }
 0x6c4   :  { %28727 = shalt.err (!%p28724_p10)
}
 0x6c5   :  { %24694 = dma.vmem_to_hbm [thread:$0]  %s24692_s9, 16, %s33227_s4, [#allocation5]  }
 0x6c6   :  { %28742 = dma.done.wait [#allocation5], 16  }
 0x6c7   :  { %28743 = vsyncadd [#allocation5], 4294967280 }
 0x6c8   :  { %24698 = vsyncpa [#allocation4], 1 }
 0x6c9   :  { %24699 = vsyncpa [#allocation7], 1 }
 0x6ca   :  { %24700 = vsyncpa [#allocation10], 1 }
 0x6cb   :  { %24701 = vsyncpa [#allocation5], 1 }

</bundles_post_ra>
